<compile_context>
chip_gen: v6e
topology: v6e:2x2x1
jax: 0.10.0
libtpu: 0.0.40
codegen_flags: <defaults>
</compile_context>

<pallas_src>
import functools

import jax
import jax.numpy as jnp
from jax import lax
from jax.experimental import pallas as pl
from jax.experimental.pallas import tpu as pltpu


def _round_up(x, m):
    return ((x + m - 1) // m) * m


_CHUNK_TARGET = 1024  # flat-output lanes per grid step (kept a multiple of 128)


# ---------------------------------------------------------------------------
# Pallas kernel: fused stride-1 "valid" conv + per-channel shift + activation
# on a row-major-flattened padded image.  Output flat position m = r*Wp + s
# reads input flat position m + (i*Wp + j) for tap (i, j): a uniform lane
# shift.  Columns s in [Wo, Wp) are garbage and are sliced off by the caller.
# The flat output is chunked over grid axis 1; the shifted windows for one
# chunk are built from two statically-blocked input chunks (c and c+1), so
# every ref access uses static offsets only.
# ---------------------------------------------------------------------------
def _conv_tap_kernel(xa_ref, xb_ref, w_ref, shift_ref, o_ref, *,
                     taps, cin_p, chunk, activation):
    # xa_ref/xb_ref: (1, cin_p, chunk) bf16   flat-input blocks c and c+1
    # w_ref:         (cout_p, ntaps*cin_p) bf16  (BN scale pre-folded)
    # shift_ref:     (cout_p, 1) f32            (conv bias + BN shift)
    # o_ref:         (1, cout_p, chunk)
    cout_p = o_ref.shape[1]
    # Window covering every shifted tap of this chunk (static concat + slices).
    xw = jnp.concatenate([xa_ref[0], xb_ref[0]], axis=-1)      # (cin_p, 2*chunk)
    acc = jnp.zeros((cout_p, chunk), jnp.float32)
    for t, d in enumerate(taps):                               # static unroll
        wt = w_ref[:, t * cin_p:(t + 1) * cin_p]               # (cout_p, cin_p)
        xs = xw[:, d:d + chunk]                                 # static lane shift
        acc = acc + jnp.dot(wt, xs, preferred_element_type=jnp.float32)  # MXU
    y = acc + shift_ref[...]
    if activation == "relu":
        y = jnp.maximum(y, 0.0)
    elif activation == "tanh":
        y = jnp.tanh(y)
    o_ref[0] = y.astype(o_ref.dtype)


def conv2d_fused(x_pad, w, shift, activation, out_dtype):
    """act(conv2d_valid(x_pad, w) + shift), NCHW in / NCHW out.

    x_pad: (N, Cin, Hp, Wp)  already padded as required by the layer
    w:     (Cout, Cin, kh, kw)  (any per-out-channel scale pre-folded)
    shift: (Cout,)
    """
    n, cin, hp, wp = x_pad.shape
    cout, cin2, kh, kw = w.shape
    assert cin == cin2
    ho, wo = hp - kh + 1, wp - kw + 1
    lout = ho * wp                               # over-wide flat output length
    lin = hp * wp
    d_max = (kh - 1) * wp + (kw - 1)

    cin_p = _round_up(cin, 8)
    cout_p = _round_up(cout, 8)

    num_chunks = max(1, -(-lout // _CHUNK_TARGET))
    chunk = _round_up(-(-lout // num_chunks), 128)
    chunk = max(chunk, _round_up(d_max + 1, 128))   # two-block window covers all taps
    lin_total = (num_chunks + 1) * chunk            # +1 block for the tap halo

    x_flat = x_pad.reshape(n, cin, lin).astype(jnp.bfloat16)
    x_flat = jnp.pad(x_flat, ((0, 0), (0, cin_p - cin), (0, lin_total - lin)))

    ntaps = kh * kw
    w_taps = jnp.transpose(w, (0, 2, 3, 1))                     # (cout, kh, kw, cin)
    w_taps = jnp.pad(w_taps,
                     ((0, cout_p - cout), (0, 0), (0, 0), (0, cin_p - cin)))
    w_taps = w_taps.reshape(cout_p, ntaps * cin_p).astype(jnp.bfloat16)

    shift_p = jnp.pad(shift.astype(jnp.float32),
                      (0, cout_p - cout)).reshape(cout_p, 1)

    taps = tuple(i * wp + j for i in range(kh) for j in range(kw))
    kernel = functools.partial(_conv_tap_kernel, taps=taps, cin_p=cin_p,
                               chunk=chunk, activation=activation)

    out = pl.pallas_call(
        kernel,
        out_shape=jax.ShapeDtypeStruct((n, cout_p, num_chunks * chunk), out_dtype),
        grid_spec=pltpu.PrefetchScalarGridSpec(
            num_scalar_prefetch=0,
            grid=(n, num_chunks),
            in_specs=[
                pl.BlockSpec((1, cin_p, chunk), lambda b, c: (b, 0, c)),
                pl.BlockSpec((1, cin_p, chunk), lambda b, c: (b, 0, c + 1)),
                pl.BlockSpec((cout_p, ntaps * cin_p), lambda b, c: (0, 0)),
                pl.BlockSpec((cout_p, 1), lambda b, c: (0, 0)),
            ],
            out_specs=pl.BlockSpec((1, cout_p, chunk), lambda b, c: (b, 0, c)),
        ),
        compiler_params=pltpu.CompilerParams(
            dimension_semantics=("parallel", "parallel"),
            vmem_limit_bytes=32 * 1024 * 1024,
        ),
    )(x_flat, x_flat, w_taps, shift_p)

    # Drop padded channels / lanes / garbage columns; these copies are small
    # bf16 and fuse with the consumer's depth-to-space / pad reshapes.
    return out[:, :cout, :lout].reshape(n, cout, ho, wp)[:, :, :, :wo]


# ---------------------------------------------------------------------------
# Plain-JAX glue (inside the same jit): sub-pixel tconv weights, BN fold,
# depth-to-space, reflection pad.
# ---------------------------------------------------------------------------
def _tconv_subpixel_weight(w_t):
    """ConvTranspose2d(k=3, s=2, p=1, op=1) weight (Cin, Cout, 3, 3) ->
    equivalent 2x2 stride-1 conv weight (4*Cout, Cin, 2, 2) applied to the
    input zero-padded by 1 on the right/bottom.  Output channel
    (a*2 + b)*Cout + co holds sub-pixel phase (a, b) of the upsampled output."""
    cin, cout = w_t.shape[0], w_t.shape[1]
    w_eq = jnp.zeros((2, 2, cout, cin, 2, 2), w_t.dtype)
    for a in range(2):
        for b in range(2):
            for p in range(2):
                for q in range(2):
                    i, j = a + 1 - 2 * p, b + 1 - 2 * q
                    if 0 <= i <= 2 and 0 <= j <= 2:
                        w_eq = w_eq.at[a, b, :, :, p, q].set(w_t[:, :, i, j].T)
    return w_eq.reshape(4 * cout, cin, 2, 2)


def _bn_fold(conv_bias, gamma, beta, mean, var, eps=1e-5):
    inv = gamma / jnp.sqrt(var + eps)
    return inv, (conv_bias - mean) * inv + beta


def _tconv_bn_relu(x, w_t, bias, gamma, beta, mean, var):
    n, cin, h, wd = x.shape
    cout = w_t.shape[1]
    scale, shift = _bn_fold(bias, gamma, beta, mean, var)
    w_eq = _tconv_subpixel_weight(w_t) * jnp.tile(scale, 4)[:, None, None, None]
    shift4 = jnp.tile(shift, 4)
    x_pad = jnp.pad(x, ((0, 0), (0, 0), (0, 1), (0, 1)))        # halo for odd phases
    y = conv2d_fused(x_pad, w_eq, shift4, "relu", jnp.bfloat16)  # (n, 4*cout, h, wd)
    # depth-to-space: out[n, co, 2Y+a, 2X+b] = y[n, (a*2+b)*cout + co, Y, X]
    y = y.reshape(n, 2, 2, cout, h, wd).transpose(0, 3, 4, 1, 5, 2)
    return y.reshape(n, cout, 2 * h, 2 * wd)


# ---------------------------------------------------------------------------
# Upsample module
# ---------------------------------------------------------------------------
def init_params(key, sc_channel, out_channel):
    c1, c2 = sc_channel // 2, sc_channel // 4
    ks = jax.random.split(key, 14)
    u = lambda k, shape, s=0.2: jax.random.uniform(k, shape, jnp.float32, -s, s)
    return dict(
        tconv1_w=u(ks[0], (sc_channel, c1, 3, 3)),
        tconv1_b=u(ks[1], (c1,)),
        bn1_gamma=1.0 + u(ks[2], (c1,)),
        bn1_beta=u(ks[3], (c1,)),
        bn1_mean=u(ks[4], (c1,)),
        bn1_var=1.0 + jnp.abs(u(ks[5], (c1,))),
        tconv2_w=u(ks[6], (c1, c2, 3, 3)),
        tconv2_b=u(ks[7], (c2,)),
        bn2_gamma=1.0 + u(ks[8], (c2,)),
        bn2_beta=u(ks[9], (c2,)),
        bn2_mean=u(ks[10], (c2,)),
        bn2_var=1.0 + jnp.abs(u(ks[11], (c2,))),
        conv3_w=u(ks[12], (out_channel, c2, 7, 7)),
        conv3_b=u(ks[13], (c2 * 0 + out_channel,)),
    )


@jax.jit
def upsample_forward(params, x):
    # relu(bn1(tconv1(x)))  -- sub-pixel conv, bf16 intermediate
    out = _tconv_bn_relu(x, params["tconv1_w"], params["tconv1_b"],
                         params["bn1_gamma"], params["bn1_beta"],
                         params["bn1_mean"], params["bn1_var"])
    # relu(bn2(tconv2(out)))
    out = _tconv_bn_relu(out, params["tconv2_w"], params["tconv2_b"],
                         params["bn2_gamma"], params["bn2_beta"],
                         params["bn2_mean"], params["bn2_var"])
    # tanh(conv3(ReflectionPad2d(3)(out)))  -- final output in f32
    out = jnp.pad(out, ((0, 0), (0, 0), (3, 3), (3, 3)), mode="reflect")
    return conv2d_fused(out, params["conv3_w"], params["conv3_b"],
                        "tanh", jnp.float32)


# ---------------------------------------------------------------------------
# Pure-XLA f32 reference (independent of the sub-pixel decomposition)
# ---------------------------------------------------------------------------
def _tconv_input(x, stride=2, k=3, padding=1, output_padding=1):
    n, c, h, w = x.shape
    hd, wd = (h - 1) * stride + 1, (w - 1) * stride + 1
    z = jnp.zeros((n, c, hd, wd), x.dtype).at[:, :, ::stride, ::stride].set(x)
    lo = k - 1 - padding
    hi = k - 1 - padding + output_padding
    return jnp.pad(z, ((0, 0), (0, 0), (lo, hi), (lo, hi)))


def _tconv_weight_as_conv(w_t):
    return jnp.flip(w_t, (2, 3)).transpose(1, 0, 2, 3)


def _reference_forward(params, x):
    def conv(xp, w, b):
        y = lax.conv_general_dilated(
            xp.astype(jnp.float32), w.astype(jnp.float32),
            window_strides=(1, 1), padding="VALID",
            dimension_numbers=("NCHW", "OIHW", "NCHW"),
            precision=lax.Precision.HIGHEST)
        return y + b[None, :, None, None]

    w1 = _tconv_weight_as_conv(params["tconv1_w"])
    s1, sh1 = _bn_fold(params["tconv1_b"], params["bn1_gamma"], params["bn1_beta"],
                       params["bn1_mean"], params["bn1_var"])
    out = jax.nn.relu(conv(_tconv_input(x), w1 * s1[:, None, None, None], sh1))
    w2 = _tconv_weight_as_conv(params["tconv2_w"])
    s2, sh2 = _bn_fold(params["tconv2_b"], params["bn2_gamma"], params["bn2_beta"],
                       params["bn2_mean"], params["bn2_var"])
    out = jax.nn.relu(conv(_tconv_input(out), w2 * s2[:, None, None, None], sh2))
    out = jnp.pad(out, ((0, 0), (0, 0), (3, 3), (3, 3)), mode="reflect")
    return jnp.tanh(conv(out, params["conv3_w"], params["conv3_b"]))


if __name__ == "__main__":
    sc_channel, out_channel = 8, 3
    key = jax.random.PRNGKey(0)
    kp, kx = jax.random.split(key)
    params = init_params(kp, sc_channel, out_channel)
    x = jax.random.normal(kx, (2, sc_channel, 16, 16), jnp.float32)   # NCHW

    y = jax.block_until_ready(upsample_forward(params, x))

    assert y.shape == (2, out_channel, 64, 64), y.shape
    assert bool(jnp.all(jnp.isfinite(y)))
    assert bool(jnp.all(jnp.abs(y) <= 1.0))          # tanh range

    y_ref = jax.block_until_ready(_reference_forward(params, x))
    max_err = float(jnp.max(jnp.abs(y - y_ref)))
    assert max_err < 0.15, max_err                   # bf16 weights+activations, 3 layers
    print("KERNEL_OK")
</pallas_src>

<mosaic_0001>
module attributes {stable_mosaic.version = 11 : i64} {
  func.func @_conv_tap_kernel(%arg0: i32, %arg1: i32, %arg2: memref<1x8x384xbf16, #tpu.memory_space<vmem>>, %arg3: memref<1x8x384xbf16, #tpu.memory_space<vmem>>, %arg4: memref<16x32xbf16, #tpu.memory_space<vmem>>, %arg5: memref<16x1xf32, #tpu.memory_space<vmem>>, %arg6: memref<1x16x384xbf16, #tpu.memory_space<vmem>>) attributes {dimension_semantics = [#tpu.dimension_semantics<parallel>, #tpu.dimension_semantics<parallel>], iteration_bounds = array<i64: 2, 1>, scalar_prefetch = 0 : i64, scratch_operands = 0 : i64, tpu.core_type = #tpu.core_type<tc>, window_params = [{transform_indices = @transform_0, window_bounds = array<i64: 1, 8, 384>}, {transform_indices = @transform_1, window_bounds = array<i64: 1, 8, 384>}, {pipeline_mode = #tpu.pipeline_mode<synchronous>, transform_indices = @transform_2, window_bounds = array<i64: 16, 32>}, {pipeline_mode = #tpu.pipeline_mode<synchronous>, transform_indices = @transform_3, window_bounds = array<i64: 16, 1>}, {transform_indices = @transform_4, window_bounds = array<i64: 1, 16, 384>}]} {
    %c0 = arith.constant 0 : index
    %c0_0 = arith.constant 0 : index
    %c0_1 = arith.constant 0 : index
    %0 = vector.load %arg2[%c0, %c0_0, %c0_1] : memref<1x8x384xbf16, #tpu.memory_space<vmem>>, vector<1x8x384xbf16>
    %1 = vector.shape_cast %0 : vector<1x8x384xbf16> to vector<8x384xbf16>
    %c0_2 = arith.constant 0 : index
    %c0_3 = arith.constant 0 : index
    %c0_4 = arith.constant 0 : index
    %2 = vector.load %arg3[%c0_2, %c0_3, %c0_4] : memref<1x8x384xbf16, #tpu.memory_space<vmem>>, vector<1x8x384xbf16>
    %3 = vector.shape_cast %2 : vector<1x8x384xbf16> to vector<8x384xbf16>
    %4 = tpu.concatenate %1, %3 in 1 : vector<8x384xbf16>, vector<8x384xbf16> -> vector<8x768xbf16>
    %cst = arith.constant 0.000000e+00 : f32
    %5 = vector.broadcast %cst : f32 to vector<16x384xf32>
    %c0_5 = arith.constant 0 : index
    %c0_6 = arith.constant 0 : index
    %6 = vector.load %arg4[%c0_5, %c0_6] : memref<16x32xbf16, #tpu.memory_space<vmem>>, vector<16x8xbf16>
    %7 = vector.extract_strided_slice %4 {offsets = [0, 0], sizes = [8, 384], strides = [1, 1]} : vector<8x768xbf16> to vector<8x384xbf16>
    %cst_7 = arith.constant dense<0.000000e+00> : vector<16x384xf32>
    %8 = tpu.matmul %6, %7, %cst_7 {dimension_numbers = #tpu.dot_dimension_numbers<[1], [0], [0], [1], [0, 0, 1, 1], [], []>} : vector<16x8xbf16>, vector<8x384xbf16>, vector<16x384xf32> -> vector<16x384xf32>
    %9 = arith.addf %5, %8 : vector<16x384xf32>
    %c0_8 = arith.constant 0 : index
    %c8 = arith.constant 8 : index
    %10 = vector.load %arg4[%c0_8, %c8] : memref<16x32xbf16, #tpu.memory_space<vmem>>, vector<16x8xbf16>
    %11 = vector.extract_strided_slice %4 {offsets = [0, 1], sizes = [8, 384], strides = [1, 1]} : vector<8x768xbf16> to vector<8x384xbf16>
    %cst_9 = arith.constant dense<0.000000e+00> : vector<16x384xf32>
    %12 = tpu.matmul %10, %11, %cst_9 {dimension_numbers = #tpu.dot_dimension_numbers<[1], [0], [0], [1], [0, 0, 1, 1], [], []>} : vector<16x8xbf16>, vector<8x384xbf16>, vector<16x384xf32> -> vector<16x384xf32>
    %13 = arith.addf %9, %12 : vector<16x384xf32>
    %c0_10 = arith.constant 0 : index
    %c16 = arith.constant 16 : index
    %14 = vector.load %arg4[%c0_10, %c16] : memref<16x32xbf16, #tpu.memory_space<vmem>>, vector<16x8xbf16>
    %15 = vector.extract_strided_slice %4 {offsets = [0, 17], sizes = [8, 384], strides = [1, 1]} : vector<8x768xbf16> to vector<8x384xbf16>
    %cst_11 = arith.constant dense<0.000000e+00> : vector<16x384xf32>
    %16 = tpu.matmul %14, %15, %cst_11 {dimension_numbers = #tpu.dot_dimension_numbers<[1], [0], [0], [1], [0, 0, 1, 1], [], []>} : vector<16x8xbf16>, vector<8x384xbf16>, vector<16x384xf32> -> vector<16x384xf32>
    %17 = arith.addf %13, %16 : vector<16x384xf32>
    %c0_12 = arith.constant 0 : index
    %c24 = arith.constant 24 : index
    %18 = vector.load %arg4[%c0_12, %c24] : memref<16x32xbf16, #tpu.memory_space<vmem>>, vector<16x8xbf16>
    %19 = vector.extract_strided_slice %4 {offsets = [0, 18], sizes = [8, 384], strides = [1, 1]} : vector<8x768xbf16> to vector<8x384xbf16>
    %cst_13 = arith.constant dense<0.000000e+00> : vector<16x384xf32>
    %20 = tpu.matmul %18, %19, %cst_13 {dimension_numbers = #tpu.dot_dimension_numbers<[1], [0], [0], [1], [0, 0, 1, 1], [], []>} : vector<16x8xbf16>, vector<8x384xbf16>, vector<16x384xf32> -> vector<16x384xf32>
    %21 = arith.addf %17, %20 : vector<16x384xf32>
    %c0_14 = arith.constant 0 : index
    %c0_15 = arith.constant 0 : index
    %22 = vector.load %arg5[%c0_14, %c0_15] : memref<16x1xf32, #tpu.memory_space<vmem>>, vector<16x1xf32>
    %23 = vector.broadcast %22 : vector<16x1xf32> to vector<16x384xf32>
    %24 = arith.addf %21, %23 : vector<16x384xf32>
    %cst_16 = arith.constant 0.000000e+00 : f32
    %25 = vector.broadcast %cst_16 : f32 to vector<16x384xf32>
    %26 = arith.maximumf %24, %25 : vector<16x384xf32>
    %27 = arith.truncf %26 : vector<16x384xf32> to vector<16x384xbf16>
    %c0_17 = arith.constant 0 : index
    %c0_18 = arith.constant 0 : index
    %c0_19 = arith.constant 0 : index
    %28 = vector.load %arg6[%c0_17, %c0_18, %c0_19] : memref<1x16x384xbf16, #tpu.memory_space<vmem>>, vector<1x16x384xbf16>
    %29 = vector.shape_cast %28 : vector<1x16x384xbf16> to vector<16x384xbf16>
    %30 = vector.shape_cast %27 : vector<16x384xbf16> to vector<1x16x384xbf16>
    tpu.vector_store %arg6[%c0_17, %c0_18, %c0_19], %30 {strides = array<i32>} : memref<1x16x384xbf16, #tpu.memory_space<vmem>>, vector<1x16x384xbf16>,
    return
  }
  func.func @transform_0(%arg0: i32, %arg1: i32) -> (i32, i32, i32) {
    %c0_i32 = arith.constant 0 : i32
    %c0_i32_0 = arith.constant 0 : i32
    return %arg0, %c0_i32, %arg1 : i32, i32, i32
  }
  func.func @transform_1(%arg0: i32, %arg1: i32) -> (i32, i32, i32) {
    %c1_i32 = arith.constant 1 : i32
    %0 = arith.addi %arg1, %c1_i32 : i32
    %c0_i32 = arith.constant 0 : i32
    %c0_i32_0 = arith.constant 0 : i32
    return %arg0, %c0_i32, %0 : i32, i32, i32
  }
  func.func @transform_2(%arg0: i32, %arg1: i32) -> (i32, i32) {
    %c0_i32 = arith.constant 0 : i32
    %c0_i32_0 = arith.constant 0 : i32
    %c0_i32_1 = arith.constant 0 : i32
    return %c0_i32, %c0_i32_0 : i32, i32
  }
  func.func @transform_3(%arg0: i32, %arg1: i32) -> (i32, i32) {
    %c0_i32 = arith.constant 0 : i32
    %c0_i32_0 = arith.constant 0 : i32
    %c0_i32_1 = arith.constant 0 : i32
    return %c0_i32, %c0_i32_0 : i32, i32
  }
  func.func @transform_4(%arg0: i32, %arg1: i32) -> (i32, i32, i32) {
    %c0_i32 = arith.constant 0 : i32
    %c0_i32_0 = arith.constant 0 : i32
    return %arg0, %c0_i32, %arg1 : i32, i32, i32
  }
}

module attributes {stable_mosaic.version = 11 : i64} {
  func.func @_conv_tap_kernel(%arg0: i32, %arg1: i32, %arg2: memref<1x8x640xbf16, #tpu.memory_space<vmem>>, %arg3: memref<1x8x640xbf16, #tpu.memory_space<vmem>>, %arg4: memref<8x32xbf16, #tpu.memory_space<vmem>>, %arg5: memref<8x1xf32, #tpu.memory_space<vmem>>, %arg6: memref<1x8x640xbf16, #tpu.memory_space<vmem>>) attributes {dimension_semantics = [#tpu.dimension_semantics<parallel>, #tpu.dimension_semantics<parallel>], iteration_bounds = array<i64: 2, 2>, scalar_prefetch = 0 : i64, scratch_operands = 0 : i64, tpu.core_type = #tpu.core_type<tc>, window_params = [{transform_indices = @transform_0, window_bounds = array<i64: 1, 8, 640>}, {transform_indices = @transform_1, window_bounds = array<i64: 1, 8, 640>}, {pipeline_mode = #tpu.pipeline_mode<synchronous>, transform_indices = @transform_2, window_bounds = array<i64: 8, 32>}, {pipeline_mode = #tpu.pipeline_mode<synchronous>, transform_indices = @transform_3, window_bounds = array<i64: 8, 1>}, {transform_indices = @transform_4, window_bounds = array<i64: 1, 8, 640>}]} {
    %c0 = arith.constant 0 : index
    %c0_0 = arith.constant 0 : index
    %c0_1 = arith.constant 0 : index
    %0 = vector.load %arg2[%c0, %c0_0, %c0_1] : memref<1x8x640xbf16, #tpu.memory_space<vmem>>, vector<1x8x640xbf16>
    %1 = vector.shape_cast %0 : vector<1x8x640xbf16> to vector<8x640xbf16>
    %c0_2 = arith.constant 0 : index
    %c0_3 = arith.constant 0 : index
    %c0_4 = arith.constant 0 : index
    %2 = vector.load %arg3[%c0_2, %c0_3, %c0_4] : memref<1x8x640xbf16, #tpu.memory_space<vmem>>, vector<1x8x640xbf16>
    %3 = vector.shape_cast %2 : vector<1x8x640xbf16> to vector<8x640xbf16>
    %4 = tpu.concatenate %1, %3 in 1 : vector<8x640xbf16>, vector<8x640xbf16> -> vector<8x1280xbf16>
    %cst = arith.constant 0.000000e+00 : f32
    %5 = vector.broadcast %cst : f32 to vector<8x640xf32>
    %c0_5 = arith.constant 0 : index
    %c0_6 = arith.constant 0 : index
    %6 = vector.load %arg4[%c0_5, %c0_6] : memref<8x32xbf16, #tpu.memory_space<vmem>>, vector<8x8xbf16>
    %7 = vector.extract_strided_slice %4 {offsets = [0, 0], sizes = [8, 640], strides = [1, 1]} : vector<8x1280xbf16> to vector<8x640xbf16>
    %cst_7 = arith.constant dense<0.000000e+00> : vector<8x640xf32>
    %8 = tpu.matmul %6, %7, %cst_7 {dimension_numbers = #tpu.dot_dimension_numbers<[1], [0], [0], [1], [0, 0, 1, 1], [], []>} : vector<8x8xbf16>, vector<8x640xbf16>, vector<8x640xf32> -> vector<8x640xf32>
    %9 = arith.addf %5, %8 : vector<8x640xf32>
    %c0_8 = arith.constant 0 : index
    %c8 = arith.constant 8 : index
    %10 = vector.load %arg4[%c0_8, %c8] : memref<8x32xbf16, #tpu.memory_space<vmem>>, vector<8x8xbf16>
    %11 = vector.extract_strided_slice %4 {offsets = [0, 1], sizes = [8, 640], strides = [1, 1]} : vector<8x1280xbf16> to vector<8x640xbf16>
    %cst_9 = arith.constant dense<0.000000e+00> : vector<8x640xf32>
    %12 = tpu.matmul %10, %11, %cst_9 {dimension_numbers = #tpu.dot_dimension_numbers<[1], [0], [0], [1], [0, 0, 1, 1], [], []>} : vector<8x8xbf16>, vector<8x640xbf16>, vector<8x640xf32> -> vector<8x640xf32>
    %13 = arith.addf %9, %12 : vector<8x640xf32>
    %c0_10 = arith.constant 0 : index
    %c16 = arith.constant 16 : index
    %14 = vector.load %arg4[%c0_10, %c16] : memref<8x32xbf16, #tpu.memory_space<vmem>>, vector<8x8xbf16>
    %15 = vector.extract_strided_slice %4 {offsets = [0, 33], sizes = [8, 640], strides = [1, 1]} : vector<8x1280xbf16> to vector<8x640xbf16>
    %cst_11 = arith.constant dense<0.000000e+00> : vector<8x640xf32>
    %16 = tpu.matmul %14, %15, %cst_11 {dimension_numbers = #tpu.dot_dimension_numbers<[1], [0], [0], [1], [0, 0, 1, 1], [], []>} : vector<8x8xbf16>, vector<8x640xbf16>, vector<8x640xf32> -> vector<8x640xf32>
    %17 = arith.addf %13, %16 : vector<8x640xf32>
    %c0_12 = arith.constant 0 : index
    %c24 = arith.constant 24 : index
    %18 = vector.load %arg4[%c0_12, %c24] : memref<8x32xbf16, #tpu.memory_space<vmem>>, vector<8x8xbf16>
    %19 = vector.extract_strided_slice %4 {offsets = [0, 34], sizes = [8, 640], strides = [1, 1]} : vector<8x1280xbf16> to vector<8x640xbf16>
    %cst_13 = arith.constant dense<0.000000e+00> : vector<8x640xf32>
    %20 = tpu.matmul %18, %19, %cst_13 {dimension_numbers = #tpu.dot_dimension_numbers<[1], [0], [0], [1], [0, 0, 1, 1], [], []>} : vector<8x8xbf16>, vector<8x640xbf16>, vector<8x640xf32> -> vector<8x640xf32>
    %21 = arith.addf %17, %20 : vector<8x640xf32>
    %c0_14 = arith.constant 0 : index
    %c0_15 = arith.constant 0 : index
    %22 = vector.load %arg5[%c0_14, %c0_15] : memref<8x1xf32, #tpu.memory_space<vmem>>, vector<8x1xf32>
    %23 = vector.broadcast %22 : vector<8x1xf32> to vector<8x640xf32>
    %24 = arith.addf %21, %23 : vector<8x640xf32>
    %cst_16 = arith.constant 0.000000e+00 : f32
    %25 = vector.broadcast %cst_16 : f32 to vector<8x640xf32>
    %26 = arith.maximumf %24, %25 : vector<8x640xf32>
    %27 = arith.truncf %26 : vector<8x640xf32> to vector<8x640xbf16>
    %c0_17 = arith.constant 0 : index
    %c0_18 = arith.constant 0 : index
    %c0_19 = arith.constant 0 : index
    %28 = vector.load %arg6[%c0_17, %c0_18, %c0_19] : memref<1x8x640xbf16, #tpu.memory_space<vmem>>, vector<1x8x640xbf16>
    %29 = vector.shape_cast %28 : vector<1x8x640xbf16> to vector<8x640xbf16>
    %30 = vector.shape_cast %27 : vector<8x640xbf16> to vector<1x8x640xbf16>
    tpu.vector_store %arg6[%c0_17, %c0_18, %c0_19], %30 {strides = array<i32>} : memref<1x8x640xbf16, #tpu.memory_space<vmem>>, vector<1x8x640xbf16>,
    return
  }
  func.func @transform_0(%arg0: i32, %arg1: i32) -> (i32, i32, i32) {
    %c0_i32 = arith.constant 0 : i32
    %c0_i32_0 = arith.constant 0 : i32
    return %arg0, %c0_i32, %arg1 : i32, i32, i32
  }
  func.func @transform_1(%arg0: i32, %arg1: i32) -> (i32, i32, i32) {
    %c1_i32 = arith.constant 1 : i32
    %0 = arith.addi %arg1, %c1_i32 : i32
    %c0_i32 = arith.constant 0 : i32
    %c0_i32_0 = arith.constant 0 : i32
    return %arg0, %c0_i32, %0 : i32, i32, i32
  }
  func.func @transform_2(%arg0: i32, %arg1: i32) -> (i32, i32) {
    %c0_i32 = arith.constant 0 : i32
    %c0_i32_0 = arith.constant 0 : i32
    %c0_i32_1 = arith.constant 0 : i32
    return %c0_i32, %c0_i32_0 : i32, i32
  }
  func.func @transform_3(%arg0: i32, %arg1: i32) -> (i32, i32) {
    %c0_i32 = arith.constant 0 : i32
    %c0_i32_0 = arith.constant 0 : i32
    %c0_i32_1 = arith.constant 0 : i32
    return %c0_i32, %c0_i32_0 : i32, i32
  }
  func.func @transform_4(%arg0: i32, %arg1: i32) -> (i32, i32, i32) {
    %c0_i32 = arith.constant 0 : i32
    %c0_i32_0 = arith.constant 0 : i32
    return %arg0, %c0_i32, %arg1 : i32, i32, i32
  }
}

module attributes {stable_mosaic.version = 11 : i64} {
  func.func @_conv_tap_kernel(%arg0: i32, %arg1: i32, %arg2: memref<1x8x896xbf16, #tpu.memory_space<vmem>>, %arg3: memref<1x8x896xbf16, #tpu.memory_space<vmem>>, %arg4: memref<8x392xbf16, #tpu.memory_space<vmem>>, %arg5: memref<8x1xf32, #tpu.memory_space<vmem>>, %arg6: memref<1x8x896xf32, #tpu.memory_space<vmem>>) attributes {dimension_semantics = [#tpu.dimension_semantics<parallel>, #tpu.dimension_semantics<parallel>], iteration_bounds = array<i64: 2, 5>, scalar_prefetch = 0 : i64, scratch_operands = 0 : i64, tpu.core_type = #tpu.core_type<tc>, window_params = [{transform_indices = @transform_0, window_bounds = array<i64: 1, 8, 896>}, {transform_indices = @transform_1, window_bounds = array<i64: 1, 8, 896>}, {pipeline_mode = #tpu.pipeline_mode<synchronous>, transform_indices = @transform_2, window_bounds = array<i64: 8, 392>}, {pipeline_mode = #tpu.pipeline_mode<synchronous>, transform_indices = @transform_3, window_bounds = array<i64: 8, 1>}, {transform_indices = @transform_4, window_bounds = array<i64: 1, 8, 896>}]} {
    %c0 = arith.constant 0 : index
    %c0_0 = arith.constant 0 : index
    %c0_1 = arith.constant 0 : index
    %0 = vector.load %arg2[%c0, %c0_0, %c0_1] : memref<1x8x896xbf16, #tpu.memory_space<vmem>>, vector<1x8x896xbf16>
    %1 = vector.shape_cast %0 : vector<1x8x896xbf16> to vector<8x896xbf16>
    %c0_2 = arith.constant 0 : index
    %c0_3 = arith.constant 0 : index
    %c0_4 = arith.constant 0 : index
    %2 = vector.load %arg3[%c0_2, %c0_3, %c0_4] : memref<1x8x896xbf16, #tpu.memory_space<vmem>>, vector<1x8x896xbf16>
    %3 = vector.shape_cast %2 : vector<1x8x896xbf16> to vector<8x896xbf16>
    %4 = tpu.concatenate %1, %3 in 1 : vector<8x896xbf16>, vector<8x896xbf16> -> vector<8x1792xbf16>
    %cst = arith.constant 0.000000e+00 : f32
    %5 = vector.broadcast %cst : f32 to vector<8x896xf32>
    %c0_5 = arith.constant 0 : index
    %c0_6 = arith.constant 0 : index
    %6 = vector.load %arg4[%c0_5, %c0_6] : memref<8x392xbf16, #tpu.memory_space<vmem>>, vector<8x8xbf16>
    %7 = vector.extract_strided_slice %4 {offsets = [0, 0], sizes = [8, 896], strides = [1, 1]} : vector<8x1792xbf16> to vector<8x896xbf16>
    %cst_7 = arith.constant dense<0.000000e+00> : vector<8x896xf32>
    %8 = tpu.matmul %6, %7, %cst_7 {dimension_numbers = #tpu.dot_dimension_numbers<[1], [0], [0], [1], [0, 0, 1, 1], [], []>} : vector<8x8xbf16>, vector<8x896xbf16>, vector<8x896xf32> -> vector<8x896xf32>
    %9 = arith.addf %5, %8 : vector<8x896xf32>
    %c0_8 = arith.constant 0 : index
    %c8 = arith.constant 8 : index
    %10 = vector.load %arg4[%c0_8, %c8] : memref<8x392xbf16, #tpu.memory_space<vmem>>, vector<8x8xbf16>
    %11 = vector.extract_strided_slice %4 {offsets = [0, 1], sizes = [8, 896], strides = [1, 1]} : vector<8x1792xbf16> to vector<8x896xbf16>
    %cst_9 = arith.constant dense<0.000000e+00> : vector<8x896xf32>
    %12 = tpu.matmul %10, %11, %cst_9 {dimension_numbers = #tpu.dot_dimension_numbers<[1], [0], [0], [1], [0, 0, 1, 1], [], []>} : vector<8x8xbf16>, vector<8x896xbf16>, vector<8x896xf32> -> vector<8x896xf32>
    %13 = arith.addf %9, %12 : vector<8x896xf32>
    %c0_10 = arith.constant 0 : index
    %c16 = arith.constant 16 : index
    %14 = vector.load %arg4[%c0_10, %c16] : memref<8x392xbf16, #tpu.memory_space<vmem>>, vector<8x8xbf16>
    %15 = vector.extract_strided_slice %4 {offsets = [0, 2], sizes = [8, 896], strides = [1, 1]} : vector<8x1792xbf16> to vector<8x896xbf16>
    %cst_11 = arith.constant dense<0.000000e+00> : vector<8x896xf32>
    %16 = tpu.matmul %14, %15, %cst_11 {dimension_numbers = #tpu.dot_dimension_numbers<[1], [0], [0], [1], [0, 0, 1, 1], [], []>} : vector<8x8xbf16>, vector<8x896xbf16>, vector<8x896xf32> -> vector<8x896xf32>
    %17 = arith.addf %13, %16 : vector<8x896xf32>
    %c0_12 = arith.constant 0 : index
    %c24 = arith.constant 24 : index
    %18 = vector.load %arg4[%c0_12, %c24] : memref<8x392xbf16, #tpu.memory_space<vmem>>, vector<8x8xbf16>
    %19 = vector.extract_strided_slice %4 {offsets = [0, 3], sizes = [8, 896], strides = [1, 1]} : vector<8x1792xbf16> to vector<8x896xbf16>
    %cst_13 = arith.constant dense<0.000000e+00> : vector<8x896xf32>
    %20 = tpu.matmul %18, %19, %cst_13 {dimension_numbers = #tpu.dot_dimension_numbers<[1], [0], [0], [1], [0, 0, 1, 1], [], []>} : vector<8x8xbf16>, vector<8x896xbf16>, vector<8x896xf32> -> vector<8x896xf32>
    %21 = arith.addf %17, %20 : vector<8x896xf32>
    %c0_14 = arith.constant 0 : index
    %c32 = arith.constant 32 : index
    %22 = vector.load %arg4[%c0_14, %c32] : memref<8x392xbf16, #tpu.memory_space<vmem>>, vector<8x8xbf16>
    %23 = vector.extract_strided_slice %4 {offsets = [0, 4], sizes = [8, 896], strides = [1, 1]} : vector<8x1792xbf16> to vector<8x896xbf16>
    %cst_15 = arith.constant dense<0.000000e+00> : vector<8x896xf32>
    %24 = tpu.matmul %22, %23, %cst_15 {dimension_numbers = #tpu.dot_dimension_numbers<[1], [0], [0], [1], [0, 0, 1, 1], [], []>} : vector<8x8xbf16>, vector<8x896xbf16>, vector<8x896xf32> -> vector<8x896xf32>
    %25 = arith.addf %21, %24 : vector<8x896xf32>
    %c0_16 = arith.constant 0 : index
    %c40 = arith.constant 40 : index
    %26 = vector.load %arg4[%c0_16, %c40] : memref<8x392xbf16, #tpu.memory_space<vmem>>, vector<8x8xbf16>
    %27 = vector.extract_strided_slice %4 {offsets = [0, 5], sizes = [8, 896], strides = [1, 1]} : vector<8x1792xbf16> to vector<8x896xbf16>
    %cst_17 = arith.constant dense<0.000000e+00> : vector<8x896xf32>
    %28 = tpu.matmul %26, %27, %cst_17 {dimension_numbers = #tpu.dot_dimension_numbers<[1], [0], [0], [1], [0, 0, 1, 1], [], []>} : vector<8x8xbf16>, vector<8x896xbf16>, vector<8x896xf32> -> vector<8x896xf32>
    %29 = arith.addf %25, %28 : vector<8x896xf32>
    %c0_18 = arith.constant 0 : index
    %c48 = arith.constant 48 : index
    %30 = vector.load %arg4[%c0_18, %c48] : memref<8x392xbf16, #tpu.memory_space<vmem>>, vector<8x8xbf16>
    %31 = vector.extract_strided_slice %4 {offsets = [0, 6], sizes = [8, 896], strides = [1, 1]} : vector<8x1792xbf16> to vector<8x896xbf16>
    %cst_19 = arith.constant dense<0.000000e+00> : vector<8x896xf32>
    %32 = tpu.matmul %30, %31, %cst_19 {dimension_numbers = #tpu.dot_dimension_numbers<[1], [0], [0], [1], [0, 0, 1, 1], [], []>} : vector<8x8xbf16>, vector<8x896xbf16>, vector<8x896xf32> -> vector<8x896xf32>
    %33 = arith.addf %29, %32 : vector<8x896xf32>
    %c0_20 = arith.constant 0 : index
    %c56 = arith.constant 56 : index
    %34 = vector.load %arg4[%c0_20, %c56] : memref<8x392xbf16, #tpu.memory_space<vmem>>, vector<8x8xbf16>
    %35 = vector.extract_strided_slice %4 {offsets = [0, 70], sizes = [8, 896], strides = [1, 1]} : vector<8x1792xbf16> to vector<8x896xbf16>
    %cst_21 = arith.constant dense<0.000000e+00> : vector<8x896xf32>
    %36 = tpu.matmul %34, %35, %cst_21 {dimension_numbers = #tpu.dot_dimension_numbers<[1], [0], [0], [1], [0, 0, 1, 1], [], []>} : vector<8x8xbf16>, vector<8x896xbf16>, vector<8x896xf32> -> vector<8x896xf32>
    %37 = arith.addf %33, %36 : vector<8x896xf32>
    %c0_22 = arith.constant 0 : index
    %c64 = arith.constant 64 : index
    %38 = vector.load %arg4[%c0_22, %c64] : memref<8x392xbf16, #tpu.memory_space<vmem>>, vector<8x8xbf16>
    %39 = vector.extract_strided_slice %4 {offsets = [0, 71], sizes = [8, 896], strides = [1, 1]} : vector<8x1792xbf16> to vector<8x896xbf16>
    %cst_23 = arith.constant dense<0.000000e+00> : vector<8x896xf32>
    %40 = tpu.matmul %38, %39, %cst_23 {dimension_numbers = #tpu.dot_dimension_numbers<[1], [0], [0], [1], [0, 0, 1, 1], [], []>} : vector<8x8xbf16>, vector<8x896xbf16>, vector<8x896xf32> -> vector<8x896xf32>
    %41 = arith.addf %37, %40 : vector<8x896xf32>
    %c0_24 = arith.constant 0 : index
    %c72 = arith.constant 72 : index
    %42 = vector.load %arg4[%c0_24, %c72] : memref<8x392xbf16, #tpu.memory_space<vmem>>, vector<8x8xbf16>
    %43 = vector.extract_strided_slice %4 {offsets = [0, 72], sizes = [8, 896], strides = [1, 1]} : vector<8x1792xbf16> to vector<8x896xbf16>
    %cst_25 = arith.constant dense<0.000000e+00> : vector<8x896xf32>
    %44 = tpu.matmul %42, %43, %cst_25 {dimension_numbers = #tpu.dot_dimension_numbers<[1], [0], [0], [1], [0, 0, 1, 1], [], []>} : vector<8x8xbf16>, vector<8x896xbf16>, vector<8x896xf32> -> vector<8x896xf32>
    %45 = arith.addf %41, %44 : vector<8x896xf32>
    %c0_26 = arith.constant 0 : index
    %c80 = arith.constant 80 : index
    %46 = vector.load %arg4[%c0_26, %c80] : memref<8x392xbf16, #tpu.memory_space<vmem>>, vector<8x8xbf16>
    %47 = vector.extract_strided_slice %4 {offsets = [0, 73], sizes = [8, 896], strides = [1, 1]} : vector<8x1792xbf16> to vector<8x896xbf16>
    %cst_27 = arith.constant dense<0.000000e+00> : vector<8x896xf32>
    %48 = tpu.matmul %46, %47, %cst_27 {dimension_numbers = #tpu.dot_dimension_numbers<[1], [0], [0], [1], [0, 0, 1, 1], [], []>} : vector<8x8xbf16>, vector<8x896xbf16>, vector<8x896xf32> -> vector<8x896xf32>
    %49 = arith.addf %45, %48 : vector<8x896xf32>
    %c0_28 = arith.constant 0 : index
    %c88 = arith.constant 88 : index
    %50 = vector.load %arg4[%c0_28, %c88] : memref<8x392xbf16, #tpu.memory_space<vmem>>, vector<8x8xbf16>
    %51 = vector.extract_strided_slice %4 {offsets = [0, 74], sizes = [8, 896], strides = [1, 1]} : vector<8x1792xbf16> to vector<8x896xbf16>
    %cst_29 = arith.constant dense<0.000000e+00> : vector<8x896xf32>
    %52 = tpu.matmul %50, %51, %cst_29 {dimension_numbers = #tpu.dot_dimension_numbers<[1], [0], [0], [1], [0, 0, 1, 1], [], []>} : vector<8x8xbf16>, vector<8x896xbf16>, vector<8x896xf32> -> vector<8x896xf32>
    %53 = arith.addf %49, %52 : vector<8x896xf32>
    %c0_30 = arith.constant 0 : index
    %c96 = arith.constant 96 : index
    %54 = vector.load %arg4[%c0_30, %c96] : memref<8x392xbf16, #tpu.memory_space<vmem>>, vector<8x8xbf16>
    %55 = vector.extract_strided_slice %4 {offsets = [0, 75], sizes = [8, 896], strides = [1, 1]} : vector<8x1792xbf16> to vector<8x896xbf16>
    %cst_31 = arith.constant dense<0.000000e+00> : vector<8x896xf32>
    %56 = tpu.matmul %54, %55, %cst_31 {dimension_numbers = #tpu.dot_dimension_numbers<[1], [0], [0], [1], [0, 0, 1, 1], [], []>} : vector<8x8xbf16>, vector<8x896xbf16>, vector<8x896xf32> -> vector<8x896xf32>
    %57 = arith.addf %53, %56 : vector<8x896xf32>
    %c0_32 = arith.constant 0 : index
    %c104 = arith.constant 104 : index
    %58 = vector.load %arg4[%c0_32, %c104] : memref<8x392xbf16, #tpu.memory_space<vmem>>, vector<8x8xbf16>
    %59 = vector.extract_strided_slice %4 {offsets = [0, 76], sizes = [8, 896], strides = [1, 1]} : vector<8x1792xbf16> to vector<8x896xbf16>
    %cst_33 = arith.constant dense<0.000000e+00> : vector<8x896xf32>
    %60 = tpu.matmul %58, %59, %cst_33 {dimension_numbers = #tpu.dot_dimension_numbers<[1], [0], [0], [1], [0, 0, 1, 1], [], []>} : vector<8x8xbf16>, vector<8x896xbf16>, vector<8x896xf32> -> vector<8x896xf32>
    %61 = arith.addf %57, %60 : vector<8x896xf32>
    %c0_34 = arith.constant 0 : index
    %c112 = arith.constant 112 : index
    %62 = vector.load %arg4[%c0_34, %c112] : memref<8x392xbf16, #tpu.memory_space<vmem>>, vector<8x8xbf16>
    %63 = vector.extract_strided_slice %4 {offsets = [0, 140], sizes = [8, 896], strides = [1, 1]} : vector<8x1792xbf16> to vector<8x896xbf16>
    %cst_35 = arith.constant dense<0.000000e+00> : vector<8x896xf32>
    %64 = tpu.matmul %62, %63, %cst_35 {dimension_numbers = #tpu.dot_dimension_numbers<[1], [0], [0], [1], [0, 0, 1, 1], [], []>} : vector<8x8xbf16>, vector<8x896xbf16>, vector<8x896xf32> -> vector<8x896xf32>
    %65 = arith.addf %61, %64 : vector<8x896xf32>
    %c0_36 = arith.constant 0 : index
    %c120 = arith.constant 120 : index
    %66 = vector.load %arg4[%c0_36, %c120] : memref<8x392xbf16, #tpu.memory_space<vmem>>, vector<8x8xbf16>
    %67 = vector.extract_strided_slice %4 {offsets = [0, 141], sizes = [8, 896], strides = [1, 1]} : vector<8x1792xbf16> to vector<8x896xbf16>
    %cst_37 = arith.constant dense<0.000000e+00> : vector<8x896xf32>
    %68 = tpu.matmul %66, %67, %cst_37 {dimension_numbers = #tpu.dot_dimension_numbers<[1], [0], [0], [1], [0, 0, 1, 1], [], []>} : vector<8x8xbf16>, vector<8x896xbf16>, vector<8x896xf32> -> vector<8x896xf32>
    %69 = arith.addf %65, %68 : vector<8x896xf32>
    %c0_38 = arith.constant 0 : index
    %c128 = arith.constant 128 : index
    %70 = vector.load %arg4[%c0_38, %c128] : memref<8x392xbf16, #tpu.memory_space<vmem>>, vector<8x8xbf16>
    %71 = vector.extract_strided_slice %4 {offsets = [0, 142], sizes = [8, 896], strides = [1, 1]} : vector<8x1792xbf16> to vector<8x896xbf16>
    %cst_39 = arith.constant dense<0.000000e+00> : vector<8x896xf32>
    %72 = tpu.matmul %70, %71, %cst_39 {dimension_numbers = #tpu.dot_dimension_numbers<[1], [0], [0], [1], [0, 0, 1, 1], [], []>} : vector<8x8xbf16>, vector<8x896xbf16>, vector<8x896xf32> -> vector<8x896xf32>
    %73 = arith.addf %69, %72 : vector<8x896xf32>
    %c0_40 = arith.constant 0 : index
    %c136 = arith.constant 136 : index
    %74 = vector.load %arg4[%c0_40, %c136] : memref<8x392xbf16, #tpu.memory_space<vmem>>, vector<8x8xbf16>
    %75 = vector.extract_strided_slice %4 {offsets = [0, 143], sizes = [8, 896], strides = [1, 1]} : vector<8x1792xbf16> to vector<8x896xbf16>
    %cst_41 = arith.constant dense<0.000000e+00> : vector<8x896xf32>
    %76 = tpu.matmul %74, %75, %cst_41 {dimension_numbers = #tpu.dot_dimension_numbers<[1], [0], [0], [1], [0, 0, 1, 1], [], []>} : vector<8x8xbf16>, vector<8x896xbf16>, vector<8x896xf32> -> vector<8x896xf32>
    %77 = arith.addf %73, %76 : vector<8x896xf32>
    %c0_42 = arith.constant 0 : index
    %c144 = arith.constant 144 : index
    %78 = vector.load %arg4[%c0_42, %c144] : memref<8x392xbf16, #tpu.memory_space<vmem>>, vector<8x8xbf16>
    %79 = vector.extract_strided_slice %4 {offsets = [0, 144], sizes = [8, 896], strides = [1, 1]} : vector<8x1792xbf16> to vector<8x896xbf16>
    %cst_43 = arith.constant dense<0.000000e+00> : vector<8x896xf32>
    %80 = tpu.matmul %78, %79, %cst_43 {dimension_numbers = #tpu.dot_dimension_numbers<[1], [0], [0], [1], [0, 0, 1, 1], [], []>} : vector<8x8xbf16>, vector<8x896xbf16>, vector<8x896xf32> -> vector<8x896xf32>
    %81 = arith.addf %77, %80 : vector<8x896xf32>
    %c0_44 = arith.constant 0 : index
    %c152 = arith.constant 152 : index
    %82 = vector.load %arg4[%c0_44, %c152] : memref<8x392xbf16, #tpu.memory_space<vmem>>, vector<8x8xbf16>
    %83 = vector.extract_strided_slice %4 {offsets = [0, 145], sizes = [8, 896], strides = [1, 1]} : vector<8x1792xbf16> to vector<8x896xbf16>
    %cst_45 = arith.constant dense<0.000000e+00> : vector<8x896xf32>
    %84 = tpu.matmul %82, %83, %cst_45 {dimension_numbers = #tpu.dot_dimension_numbers<[1], [0], [0], [1], [0, 0, 1, 1], [], []>} : vector<8x8xbf16>, vector<8x896xbf16>, vector<8x896xf32> -> vector<8x896xf32>
    %85 = arith.addf %81, %84 : vector<8x896xf32>
    %c0_46 = arith.constant 0 : index
    %c160 = arith.constant 160 : index
    %86 = vector.load %arg4[%c0_46, %c160] : memref<8x392xbf16, #tpu.memory_space<vmem>>, vector<8x8xbf16>
    %87 = vector.extract_strided_slice %4 {offsets = [0, 146], sizes = [8, 896], strides = [1, 1]} : vector<8x1792xbf16> to vector<8x896xbf16>
    %cst_47 = arith.constant dense<0.000000e+00> : vector<8x896xf32>
    %88 = tpu.matmul %86, %87, %cst_47 {dimension_numbers = #tpu.dot_dimension_numbers<[1], [0], [0], [1], [0, 0, 1, 1], [], []>} : vector<8x8xbf16>, vector<8x896xbf16>, vector<8x896xf32> -> vector<8x896xf32>
    %89 = arith.addf %85, %88 : vector<8x896xf32>
    %c0_48 = arith.constant 0 : index
    %c168 = arith.constant 168 : index
    %90 = vector.load %arg4[%c0_48, %c168] : memref<8x392xbf16, #tpu.memory_space<vmem>>, vector<8x8xbf16>
    %91 = vector.extract_strided_slice %4 {offsets = [0, 210], sizes = [8, 896], strides = [1, 1]} : vector<8x1792xbf16> to vector<8x896xbf16>
    %cst_49 = arith.constant dense<0.000000e+00> : vector<8x896xf32>
    %92 = tpu.matmul %90, %91, %cst_49 {dimension_numbers = #tpu.dot_dimension_numbers<[1], [0], [0], [1], [0, 0, 1, 1], [], []>} : vector<8x8xbf16>, vector<8x896xbf16>, vector<8x896xf32> -> vector<8x896xf32>
    %93 = arith.addf %89, %92 : vector<8x896xf32>
    %c0_50 = arith.constant 0 : index
    %c176 = arith.constant 176 : index
    %94 = vector.load %arg4[%c0_50, %c176] : memref<8x392xbf16, #tpu.memory_space<vmem>>, vector<8x8xbf16>
    %95 = vector.extract_strided_slice %4 {offsets = [0, 211], sizes = [8, 896], strides = [1, 1]} : vector<8x1792xbf16> to vector<8x896xbf16>
    %cst_51 = arith.constant dense<0.000000e+00> : vector<8x896xf32>
    %96 = tpu.matmul %94, %95, %cst_51 {dimension_numbers = #tpu.dot_dimension_numbers<[1], [0], [0], [1], [0, 0, 1, 1], [], []>} : vector<8x8xbf16>, vector<8x896xbf16>, vector<8x896xf32> -> vector<8x896xf32>
    %97 = arith.addf %93, %96 : vector<8x896xf32>
    %c0_52 = arith.constant 0 : index
    %c184 = arith.constant 184 : index
    %98 = vector.load %arg4[%c0_52, %c184] : memref<8x392xbf16, #tpu.memory_space<vmem>>, vector<8x8xbf16>
    %99 = vector.extract_strided_slice %4 {offsets = [0, 212], sizes = [8, 896], strides = [1, 1]} : vector<8x1792xbf16> to vector<8x896xbf16>
    %cst_53 = arith.constant dense<0.000000e+00> : vector<8x896xf32>
    %100 = tpu.matmul %98, %99, %cst_53 {dimension_numbers = #tpu.dot_dimension_numbers<[1], [0], [0], [1], [0, 0, 1, 1], [], []>} : vector<8x8xbf16>, vector<8x896xbf16>, vector<8x896xf32> -> vector<8x896xf32>
    %101 = arith.addf %97, %100 : vector<8x896xf32>
    %c0_54 = arith.constant 0 : index
    %c192 = arith.constant 192 : index
    %102 = vector.load %arg4[%c0_54, %c192] : memref<8x392xbf16, #tpu.memory_space<vmem>>, vector<8x8xbf16>
    %103 = vector.extract_strided_slice %4 {offsets = [0, 213], sizes = [8, 896], strides = [1, 1]} : vector<8x1792xbf16> to vector<8x896xbf16>
    %cst_55 = arith.constant dense<0.000000e+00> : vector<8x896xf32>
    %104 = tpu.matmul %102, %103, %cst_55 {dimension_numbers = #tpu.dot_dimension_numbers<[1], [0], [0], [1], [0, 0, 1, 1], [], []>} : vector<8x8xbf16>, vector<8x896xbf16>, vector<8x896xf32> -> vector<8x896xf32>
    %105 = arith.addf %101, %104 : vector<8x896xf32>
    %c0_56 = arith.constant 0 : index
    %c200 = arith.constant 200 : index
    %106 = vector.load %arg4[%c0_56, %c200] : memref<8x392xbf16, #tpu.memory_space<vmem>>, vector<8x8xbf16>
    %107 = vector.extract_strided_slice %4 {offsets = [0, 214], sizes = [8, 896], strides = [1, 1]} : vector<8x1792xbf16> to vector<8x896xbf16>
    %cst_57 = arith.constant dense<0.000000e+00> : vector<8x896xf32>
    %108 = tpu.matmul %106, %107, %cst_57 {dimension_numbers = #tpu.dot_dimension_numbers<[1], [0], [0], [1], [0, 0, 1, 1], [], []>} : vector<8x8xbf16>, vector<8x896xbf16>, vector<8x896xf32> -> vector<8x896xf32>
    %109 = arith.addf %105, %108 : vector<8x896xf32>
    %c0_58 = arith.constant 0 : index
    %c208 = arith.constant 208 : index
    %110 = vector.load %arg4[%c0_58, %c208] : memref<8x392xbf16, #tpu.memory_space<vmem>>, vector<8x8xbf16>
    %111 = vector.extract_strided_slice %4 {offsets = [0, 215], sizes = [8, 896], strides = [1, 1]} : vector<8x1792xbf16> to vector<8x896xbf16>
    %cst_59 = arith.constant dense<0.000000e+00> : vector<8x896xf32>
    %112 = tpu.matmul %110, %111, %cst_59 {dimension_numbers = #tpu.dot_dimension_numbers<[1], [0], [0], [1], [0, 0, 1, 1], [], []>} : vector<8x8xbf16>, vector<8x896xbf16>, vector<8x896xf32> -> vector<8x896xf32>
    %113 = arith.addf %109, %112 : vector<8x896xf32>
    %c0_60 = arith.constant 0 : index
    %c216 = arith.constant 216 : index
    %114 = vector.load %arg4[%c0_60, %c216] : memref<8x392xbf16, #tpu.memory_space<vmem>>, vector<8x8xbf16>
    %115 = vector.extract_strided_slice %4 {offsets = [0, 216], sizes = [8, 896], strides = [1, 1]} : vector<8x1792xbf16> to vector<8x896xbf16>
    %cst_61 = arith.constant dense<0.000000e+00> : vector<8x896xf32>
    %116 = tpu.matmul %114, %115, %cst_61 {dimension_numbers = #tpu.dot_dimension_numbers<[1], [0], [0], [1], [0, 0, 1, 1], [], []>} : vector<8x8xbf16>, vector<8x896xbf16>, vector<8x896xf32> -> vector<8x896xf32>
    %117 = arith.addf %113, %116 : vector<8x896xf32>
    %c0_62 = arith.constant 0 : index
    %c224 = arith.constant 224 : index
    %118 = vector.load %arg4[%c0_62, %c224] : memref<8x392xbf16, #tpu.memory_space<vmem>>, vector<8x8xbf16>
    %119 = vector.extract_strided_slice %4 {offsets = [0, 280], sizes = [8, 896], strides = [1, 1]} : vector<8x1792xbf16> to vector<8x896xbf16>
    %cst_63 = arith.constant dense<0.000000e+00> : vector<8x896xf32>
    %120 = tpu.matmul %118, %119, %cst_63 {dimension_numbers = #tpu.dot_dimension_numbers<[1], [0], [0], [1], [0, 0, 1, 1], [], []>} : vector<8x8xbf16>, vector<8x896xbf16>, vector<8x896xf32> -> vector<8x896xf32>
    %121 = arith.addf %117, %120 : vector<8x896xf32>
    %c0_64 = arith.constant 0 : index
    %c232 = arith.constant 232 : index
    %122 = vector.load %arg4[%c0_64, %c232] : memref<8x392xbf16, #tpu.memory_space<vmem>>, vector<8x8xbf16>
    %123 = vector.extract_strided_slice %4 {offsets = [0, 281], sizes = [8, 896], strides = [1, 1]} : vector<8x1792xbf16> to vector<8x896xbf16>
    %cst_65 = arith.constant dense<0.000000e+00> : vector<8x896xf32>
    %124 = tpu.matmul %122, %123, %cst_65 {dimension_numbers = #tpu.dot_dimension_numbers<[1], [0], [0], [1], [0, 0, 1, 1], [], []>} : vector<8x8xbf16>, vector<8x896xbf16>, vector<8x896xf32> -> vector<8x896xf32>
    %125 = arith.addf %121, %124 : vector<8x896xf32>
    %c0_66 = arith.constant 0 : index
    %c240 = arith.constant 240 : index
    %126 = vector.load %arg4[%c0_66, %c240] : memref<8x392xbf16, #tpu.memory_space<vmem>>, vector<8x8xbf16>
    %127 = vector.extract_strided_slice %4 {offsets = [0, 282], sizes = [8, 896], strides = [1, 1]} : vector<8x1792xbf16> to vector<8x896xbf16>
    %cst_67 = arith.constant dense<0.000000e+00> : vector<8x896xf32>
    %128 = tpu.matmul %126, %127, %cst_67 {dimension_numbers = #tpu.dot_dimension_numbers<[1], [0], [0], [1], [0, 0, 1, 1], [], []>} : vector<8x8xbf16>, vector<8x896xbf16>, vector<8x896xf32> -> vector<8x896xf32>
    %129 = arith.addf %125, %128 : vector<8x896xf32>
    %c0_68 = arith.constant 0 : index
    %c248 = arith.constant 248 : index
    %130 = vector.load %arg4[%c0_68, %c248] : memref<8x392xbf16, #tpu.memory_space<vmem>>, vector<8x8xbf16>
    %131 = vector.extract_strided_slice %4 {offsets = [0, 283], sizes = [8, 896], strides = [1, 1]} : vector<8x1792xbf16> to vector<8x896xbf16>
    %cst_69 = arith.constant dense<0.000000e+00> : vector<8x896xf32>
    %132 = tpu.matmul %130, %131, %cst_69 {dimension_numbers = #tpu.dot_dimension_numbers<[1], [0], [0], [1], [0, 0, 1, 1], [], []>} : vector<8x8xbf16>, vector<8x896xbf16>, vector<8x896xf32> -> vector<8x896xf32>
    %133 = arith.addf %129, %132 : vector<8x896xf32>
    %c0_70 = arith.constant 0 : index
    %c256 = arith.constant 256 : index
    %134 = vector.load %arg4[%c0_70, %c256] : memref<8x392xbf16, #tpu.memory_space<vmem>>, vector<8x8xbf16>
    %135 = vector.extract_strided_slice %4 {offsets = [0, 284], sizes = [8, 896], strides = [1, 1]} : vector<8x1792xbf16> to vector<8x896xbf16>
    %cst_71 = arith.constant dense<0.000000e+00> : vector<8x896xf32>
    %136 = tpu.matmul %134, %135, %cst_71 {dimension_numbers = #tpu.dot_dimension_numbers<[1], [0], [0], [1], [0, 0, 1, 1], [], []>} : vector<8x8xbf16>, vector<8x896xbf16>, vector<8x896xf32> -> vector<8x896xf32>
    %137 = arith.addf %133, %136 : vector<8x896xf32>
    %c0_72 = arith.constant 0 : index
    %c264 = arith.constant 264 : index
    %138 = vector.load %arg4[%c0_72, %c264] : memref<8x392xbf16, #tpu.memory_space<vmem>>, vector<8x8xbf16>
    %139 = vector.extract_strided_slice %4 {offsets = [0, 285], sizes = [8, 896], strides = [1, 1]} : vector<8x1792xbf16> to vector<8x896xbf16>
    %cst_73 = arith.constant dense<0.000000e+00> : vector<8x896xf32>
    %140 = tpu.matmul %138, %139, %cst_73 {dimension_numbers = #tpu.dot_dimension_numbers<[1], [0], [0], [1], [0, 0, 1, 1], [], []>} : vector<8x8xbf16>, vector<8x896xbf16>, vector<8x896xf32> -> vector<8x896xf32>
    %141 = arith.addf %137, %140 : vector<8x896xf32>
    %c0_74 = arith.constant 0 : index
    %c272 = arith.constant 272 : index
    %142 = vector.load %arg4[%c0_74, %c272] : memref<8x392xbf16, #tpu.memory_space<vmem>>, vector<8x8xbf16>
    %143 = vector.extract_strided_slice %4 {offsets = [0, 286], sizes = [8, 896], strides = [1, 1]} : vector<8x1792xbf16> to vector<8x896xbf16>
    %cst_75 = arith.constant dense<0.000000e+00> : vector<8x896xf32>
    %144 = tpu.matmul %142, %143, %cst_75 {dimension_numbers = #tpu.dot_dimension_numbers<[1], [0], [0], [1], [0, 0, 1, 1], [], []>} : vector<8x8xbf16>, vector<8x896xbf16>, vector<8x896xf32> -> vector<8x896xf32>
    %145 = arith.addf %141, %144 : vector<8x896xf32>
    %c0_76 = arith.constant 0 : index
    %c280 = arith.constant 280 : index
    %146 = vector.load %arg4[%c0_76, %c280] : memref<8x392xbf16, #tpu.memory_space<vmem>>, vector<8x8xbf16>
    %147 = vector.extract_strided_slice %4 {offsets = [0, 350], sizes = [8, 896], strides = [1, 1]} : vector<8x1792xbf16> to vector<8x896xbf16>
    %cst_77 = arith.constant dense<0.000000e+00> : vector<8x896xf32>
    %148 = tpu.matmul %146, %147, %cst_77 {dimension_numbers = #tpu.dot_dimension_numbers<[1], [0], [0], [1], [0, 0, 1, 1], [], []>} : vector<8x8xbf16>, vector<8x896xbf16>, vector<8x896xf32> -> vector<8x896xf32>
    %149 = arith.addf %145, %148 : vector<8x896xf32>
    %c0_78 = arith.constant 0 : index
    %c288 = arith.constant 288 : index
    %150 = vector.load %arg4[%c0_78, %c288] : memref<8x392xbf16, #tpu.memory_space<vmem>>, vector<8x8xbf16>
    %151 = vector.extract_strided_slice %4 {offsets = [0, 351], sizes = [8, 896], strides = [1, 1]} : vector<8x1792xbf16> to vector<8x896xbf16>
    %cst_79 = arith.constant dense<0.000000e+00> : vector<8x896xf32>
    %152 = tpu.matmul %150, %151, %cst_79 {dimension_numbers = #tpu.dot_dimension_numbers<[1], [0], [0], [1], [0, 0, 1, 1], [], []>} : vector<8x8xbf16>, vector<8x896xbf16>, vector<8x896xf32> -> vector<8x896xf32>
    %153 = arith.addf %149, %152 : vector<8x896xf32>
    %c0_80 = arith.constant 0 : index
    %c296 = arith.constant 296 : index
    %154 = vector.load %arg4[%c0_80, %c296] : memref<8x392xbf16, #tpu.memory_space<vmem>>, vector<8x8xbf16>
    %155 = vector.extract_strided_slice %4 {offsets = [0, 352], sizes = [8, 896], strides = [1, 1]} : vector<8x1792xbf16> to vector<8x896xbf16>
    %cst_81 = arith.constant dense<0.000000e+00> : vector<8x896xf32>
    %156 = tpu.matmul %154, %155, %cst_81 {dimension_numbers = #tpu.dot_dimension_numbers<[1], [0], [0], [1], [0, 0, 1, 1], [], []>} : vector<8x8xbf16>, vector<8x896xbf16>, vector<8x896xf32> -> vector<8x896xf32>
    %157 = arith.addf %153, %156 : vector<8x896xf32>
    %c0_82 = arith.constant 0 : index
    %c304 = arith.constant 304 : index
    %158 = vector.load %arg4[%c0_82, %c304] : memref<8x392xbf16, #tpu.memory_space<vmem>>, vector<8x8xbf16>
    %159 = vector.extract_strided_slice %4 {offsets = [0, 353], sizes = [8, 896], strides = [1, 1]} : vector<8x1792xbf16> to vector<8x896xbf16>
    %cst_83 = arith.constant dense<0.000000e+00> : vector<8x896xf32>
    %160 = tpu.matmul %158, %159, %cst_83 {dimension_numbers = #tpu.dot_dimension_numbers<[1], [0], [0], [1], [0, 0, 1, 1], [], []>} : vector<8x8xbf16>, vector<8x896xbf16>, vector<8x896xf32> -> vector<8x896xf32>
    %161 = arith.addf %157, %160 : vector<8x896xf32>
    %c0_84 = arith.constant 0 : index
    %c312 = arith.constant 312 : index
    %162 = vector.load %arg4[%c0_84, %c312] : memref<8x392xbf16, #tpu.memory_space<vmem>>, vector<8x8xbf16>
    %163 = vector.extract_strided_slice %4 {offsets = [0, 354], sizes = [8, 896], strides = [1, 1]} : vector<8x1792xbf16> to vector<8x896xbf16>
    %cst_85 = arith.constant dense<0.000000e+00> : vector<8x896xf32>
    %164 = tpu.matmul %162, %163, %cst_85 {dimension_numbers = #tpu.dot_dimension_numbers<[1], [0], [0], [1], [0, 0, 1, 1], [], []>} : vector<8x8xbf16>, vector<8x896xbf16>, vector<8x896xf32> -> vector<8x896xf32>
    %165 = arith.addf %161, %164 : vector<8x896xf32>
    %c0_86 = arith.constant 0 : index
    %c320 = arith.constant 320 : index
    %166 = vector.load %arg4[%c0_86, %c320] : memref<8x392xbf16, #tpu.memory_space<vmem>>, vector<8x8xbf16>
    %167 = vector.extract_strided_slice %4 {offsets = [0, 355], sizes = [8, 896], strides = [1, 1]} : vector<8x1792xbf16> to vector<8x896xbf16>
    %cst_87 = arith.constant dense<0.000000e+00> : vector<8x896xf32>
    %168 = tpu.matmul %166, %167, %cst_87 {dimension_numbers = #tpu.dot_dimension_numbers<[1], [0], [0], [1], [0, 0, 1, 1], [], []>} : vector<8x8xbf16>, vector<8x896xbf16>, vector<8x896xf32> -> vector<8x896xf32>
    %169 = arith.addf %165, %168 : vector<8x896xf32>
    %c0_88 = arith.constant 0 : index
    %c328 = arith.constant 328 : index
    %170 = vector.load %arg4[%c0_88, %c328] : memref<8x392xbf16, #tpu.memory_space<vmem>>, vector<8x8xbf16>
    %171 = vector.extract_strided_slice %4 {offsets = [0, 356], sizes = [8, 896], strides = [1, 1]} : vector<8x1792xbf16> to vector<8x896xbf16>
    %cst_89 = arith.constant dense<0.000000e+00> : vector<8x896xf32>
    %172 = tpu.matmul %170, %171, %cst_89 {dimension_numbers = #tpu.dot_dimension_numbers<[1], [0], [0], [1], [0, 0, 1, 1], [], []>} : vector<8x8xbf16>, vector<8x896xbf16>, vector<8x896xf32> -> vector<8x896xf32>
    %173 = arith.addf %169, %172 : vector<8x896xf32>
    %c0_90 = arith.constant 0 : index
    %c336 = arith.constant 336 : index
    %174 = vector.load %arg4[%c0_90, %c336] : memref<8x392xbf16, #tpu.memory_space<vmem>>, vector<8x8xbf16>
    %175 = vector.extract_strided_slice %4 {offsets = [0, 420], sizes = [8, 896], strides = [1, 1]} : vector<8x1792xbf16> to vector<8x896xbf16>
    %cst_91 = arith.constant dense<0.000000e+00> : vector<8x896xf32>
    %176 = tpu.matmul %174, %175, %cst_91 {dimension_numbers = #tpu.dot_dimension_numbers<[1], [0], [0], [1], [0, 0, 1, 1], [], []>} : vector<8x8xbf16>, vector<8x896xbf16>, vector<8x896xf32> -> vector<8x896xf32>
    %177 = arith.addf %173, %176 : vector<8x896xf32>
    %c0_92 = arith.constant 0 : index
    %c344 = arith.constant 344 : index
    %178 = vector.load %arg4[%c0_92, %c344] : memref<8x392xbf16, #tpu.memory_space<vmem>>, vector<8x8xbf16>
    %179 = vector.extract_strided_slice %4 {offsets = [0, 421], sizes = [8, 896], strides = [1, 1]} : vector<8x1792xbf16> to vector<8x896xbf16>
    %cst_93 = arith.constant dense<0.000000e+00> : vector<8x896xf32>
    %180 = tpu.matmul %178, %179, %cst_93 {dimension_numbers = #tpu.dot_dimension_numbers<[1], [0], [0], [1], [0, 0, 1, 1], [], []>} : vector<8x8xbf16>, vector<8x896xbf16>, vector<8x896xf32> -> vector<8x896xf32>
    %181 = arith.addf %177, %180 : vector<8x896xf32>
    %c0_94 = arith.constant 0 : index
    %c352 = arith.constant 352 : index
    %182 = vector.load %arg4[%c0_94, %c352] : memref<8x392xbf16, #tpu.memory_space<vmem>>, vector<8x8xbf16>
    %183 = vector.extract_strided_slice %4 {offsets = [0, 422], sizes = [8, 896], strides = [1, 1]} : vector<8x1792xbf16> to vector<8x896xbf16>
    %cst_95 = arith.constant dense<0.000000e+00> : vector<8x896xf32>
    %184 = tpu.matmul %182, %183, %cst_95 {dimension_numbers = #tpu.dot_dimension_numbers<[1], [0], [0], [1], [0, 0, 1, 1], [], []>} : vector<8x8xbf16>, vector<8x896xbf16>, vector<8x896xf32> -> vector<8x896xf32>
    %185 = arith.addf %181, %184 : vector<8x896xf32>
    %c0_96 = arith.constant 0 : index
    %c360 = arith.constant 360 : index
    %186 = vector.load %arg4[%c0_96, %c360] : memref<8x392xbf16, #tpu.memory_space<vmem>>, vector<8x8xbf16>
    %187 = vector.extract_strided_slice %4 {offsets = [0, 423], sizes = [8, 896], strides = [1, 1]} : vector<8x1792xbf16> to vector<8x896xbf16>
    %cst_97 = arith.constant dense<0.000000e+00> : vector<8x896xf32>
    %188 = tpu.matmul %186, %187, %cst_97 {dimension_numbers = #tpu.dot_dimension_numbers<[1], [0], [0], [1], [0, 0, 1, 1], [], []>} : vector<8x8xbf16>, vector<8x896xbf16>, vector<8x896xf32> -> vector<8x896xf32>
    %189 = arith.addf %185, %188 : vector<8x896xf32>
    %c0_98 = arith.constant 0 : index
    %c368 = arith.constant 368 : index
    %190 = vector.load %arg4[%c0_98, %c368] : memref<8x392xbf16, #tpu.memory_space<vmem>>, vector<8x8xbf16>
    %191 = vector.extract_strided_slice %4 {offsets = [0, 424], sizes = [8, 896], strides = [1, 1]} : vector<8x1792xbf16> to vector<8x896xbf16>
    %cst_99 = arith.constant dense<0.000000e+00> : vector<8x896xf32>
    %192 = tpu.matmul %190, %191, %cst_99 {dimension_numbers = #tpu.dot_dimension_numbers<[1], [0], [0], [1], [0, 0, 1, 1], [], []>} : vector<8x8xbf16>, vector<8x896xbf16>, vector<8x896xf32> -> vector<8x896xf32>
    %193 = arith.addf %189, %192 : vector<8x896xf32>
    %c0_100 = arith.constant 0 : index
    %c376 = arith.constant 376 : index
    %194 = vector.load %arg4[%c0_100, %c376] : memref<8x392xbf16, #tpu.memory_space<vmem>>, vector<8x8xbf16>
    %195 = vector.extract_strided_slice %4 {offsets = [0, 425], sizes = [8, 896], strides = [1, 1]} : vector<8x1792xbf16> to vector<8x896xbf16>
    %cst_101 = arith.constant dense<0.000000e+00> : vector<8x896xf32>
    %196 = tpu.matmul %194, %195, %cst_101 {dimension_numbers = #tpu.dot_dimension_numbers<[1], [0], [0], [1], [0, 0, 1, 1], [], []>} : vector<8x8xbf16>, vector<8x896xbf16>, vector<8x896xf32> -> vector<8x896xf32>
    %197 = arith.addf %193, %196 : vector<8x896xf32>
    %c0_102 = arith.constant 0 : index
    %c384 = arith.constant 384 : index
    %198 = vector.load %arg4[%c0_102, %c384] : memref<8x392xbf16, #tpu.memory_space<vmem>>, vector<8x8xbf16>
    %199 = vector.extract_strided_slice %4 {offsets = [0, 426], sizes = [8, 896], strides = [1, 1]} : vector<8x1792xbf16> to vector<8x896xbf16>
    %cst_103 = arith.constant dense<0.000000e+00> : vector<8x896xf32>
    %200 = tpu.matmul %198, %199, %cst_103 {dimension_numbers = #tpu.dot_dimension_numbers<[1], [0], [0], [1], [0, 0, 1, 1], [], []>} : vector<8x8xbf16>, vector<8x896xbf16>, vector<8x896xf32> -> vector<8x896xf32>
    %201 = arith.addf %197, %200 : vector<8x896xf32>
    %c0_104 = arith.constant 0 : index
    %c0_105 = arith.constant 0 : index
    %202 = vector.load %arg5[%c0_104, %c0_105] : memref<8x1xf32, #tpu.memory_space<vmem>>, vector<8x1xf32>
    %203 = vector.broadcast %202 : vector<8x1xf32> to vector<8x896xf32>
    %204 = arith.addf %201, %203 : vector<8x896xf32>
    %205 = math.tanh %204 : vector<8x896xf32>
    %c0_106 = arith.constant 0 : index
    %c0_107 = arith.constant 0 : index
    %c0_108 = arith.constant 0 : index
    %206 = vector.load %arg6[%c0_106, %c0_107, %c0_108] : memref<1x8x896xf32, #tpu.memory_space<vmem>>, vector<1x8x896xf32>
    %207 = vector.shape_cast %206 : vector<1x8x896xf32> to vector<8x896xf32>
    %208 = vector.shape_cast %205 : vector<8x896xf32> to vector<1x8x896xf32>
    tpu.vector_store %arg6[%c0_106, %c0_107, %c0_108], %208 {strides = array<i32>} : memref<1x8x896xf32, #tpu.memory_space<vmem>>, vector<1x8x896xf32>,
    return
  }
  func.func @transform_0(%arg0: i32, %arg1: i32) -> (i32, i32, i32) {
    %c0_i32 = arith.constant 0 : i32
    %c0_i32_0 = arith.constant 0 : i32
    return %arg0, %c0_i32, %arg1 : i32, i32, i32
  }
  func.func @transform_1(%arg0: i32, %arg1: i32) -> (i32, i32, i32) {
    %c1_i32 = arith.constant 1 : i32
    %0 = arith.addi %arg1, %c1_i32 : i32
    %c0_i32 = arith.constant 0 : i32
    %c0_i32_0 = arith.constant 0 : i32
    return %arg0, %c0_i32, %0 : i32, i32, i32
  }
  func.func @transform_2(%arg0: i32, %arg1: i32) -> (i32, i32) {
    %c0_i32 = arith.constant 0 : i32
    %c0_i32_0 = arith.constant 0 : i32
    %c0_i32_1 = arith.constant 0 : i32
    return %c0_i32, %c0_i32_0 : i32, i32
  }
  func.func @transform_3(%arg0: i32, %arg1: i32) -> (i32, i32) {
    %c0_i32 = arith.constant 0 : i32
    %c0_i32_0 = arith.constant 0 : i32
    %c0_i32_1 = arith.constant 0 : i32
    return %c0_i32, %c0_i32_0 : i32, i32
  }
  func.func @transform_4(%arg0: i32, %arg1: i32) -> (i32, i32, i32) {
    %c0_i32 = arith.constant 0 : i32
    %c0_i32_0 = arith.constant 0 : i32
    return %arg0, %c0_i32, %arg1 : i32, i32, i32
  }
}

</mosaic_0001>

<bundles_post_ra>
// kernel: tile.23
= control target key start
LH: loop header
LB: loop body
LE: loop exit
PB: predicated region body
PF: predicated region fallthrough
CT: control target
= control target key end

     0   :  { %s22_s0 = inlined_call_operand.vmem [shape: f32[4], index: 0, kind: input, shape index: {}]   ;;  %s23_s1 = inlined_call_operand.vmem [shape: f32[4,4], index: 1, kind: output, shape index: {}]  }
   0x1   :  { %v4_v0 = vld [vmem:[%s22_s0] ss:$0 sm:$0xff] }
   0x2   :  { %5 = vst [vmem:[%s23_s1] sm:$0xf] %v4_v0 }

// kernel: mul.12
= control target key start
LH: loop header
LB: loop body
LE: loop exit
PB: predicated region body
PF: predicated region fallthrough
CT: control target
= control target key end

     0   :  { %vm8_vm0 = vcmask 31744   ;;  %s40_s8 = smov 4   ;;  %s41_s9 = smov 8   ;;  %vm14_vm1 = vcmask 130144   ;;  %vm20_vm2 = vcmask 97344   ;;  %vm26_vm3 = vcmask 64544   ;;  %s58_s0 = inlined_call_operand.vmem [shape: f32[4,4], index: 0, kind: input, shape index: {}]   ;;  %s59_s1 = inlined_call_operand.vmem [shape: f32[16], index: 1, kind: output, shape index: {}]  }
   0x1   :  { %v5_v0 = vld [vmem:[%s58_s0] sm:$0xf]  ;;  %s39_s0 = smov 12  }
   0x2   :  { %6 = vst [vmem:[#allocation1] sm:$0xf] %v5_v0 }
   0x9   :  { %v11_v1 = vld [vmem:[#allocation1 + $0x3] sm:$0x1]   ;;  %v23_v2 = vld [vmem:[#allocation1 + $0x1] sm:$0x1]   ;;  %v7_v3 = vld [vmem:[#allocation1] sm:$0x1]  }
   0xa   :  { %12 = vrot.lane.b32.xlu0 %v11_v1, %s39_s0  ;;  %24 = vrot.lane.b32.xlu1 %v23_v2, %s40_s8  ;;  %v17_v4 = vld [vmem:[#allocation1 + $0x2] sm:$0x1]   ;;  %9 = vst.msk [vmem:[#allocation0] sm:$0x1] %vm8_vm0, %v7_v3  }
   0xe   :  { %18 = vrot.lane.b32.xlu0 %v17_v4, %s41_s9 }
  0x7c   :  { %v13_v5 = vpop.permute.xlu0 %12   ;;  %v25_v6 = vpop.permute.xlu1 %24  }
  0x7d   :  { %15 = vst.msk [vmem:[#allocation0] sm:$0x1] %vm14_vm1, %v13_v5  }
  0x80   :  { %v19_v7 = vpop.permute.xlu0 %18  }
  0x81   :  { %21 = vst.msk [vmem:[#allocation0] sm:$0x1] %vm20_vm2, %v19_v7  }
  0x82   :  { %27 = vst.msk [vmem:[#allocation0] sm:$0x1] %vm26_vm3, %v25_v6  }
  0x89   :  { %v32_v8 = vld [vmem:[#allocation0] sm:$0x1] }
  0x8a   :  { %35 = vst [vmem:[%s59_s1] sm:$0x1] %v32_v8 }

// kernel: upsample_forward.3
= control target key start
LH: loop header
LB: loop body
LE: loop exit
PB: predicated region body
PF: predicated region fallthrough
CT: control target
= control target key end

     0   :  { %s1065_s15 = smov 0   ;;  %s1067_s16 = smov 0   ;;  %s1153_s0 = inlined_call_operand.vmem [shape: bf16[2,8,768], index: 0, kind: input, shape index: {}, may-alias: {0,1}]   ;;  %s1154_s1 = inlined_call_operand.vmem [shape: bf16[2,8,768], index: 1, kind: input, shape index: {}, may-alias: {0,1}]   ;;  %s1155_s2 = inlined_call_operand.vmem [shape: bf16[16,32], index: 2, kind: input, shape index: {}]   ;;  %s1156_s3 = inlined_call_operand.vmem [shape: f32[16,1], index: 3, kind: input, shape index: {}]   ;;  %s1157_s4 = inlined_call_operand.vmem [shape: bf16[2,16,384], index: 4, kind: output, shape index: {}]  }
   0x1   :  { %s1069_s17 = smov 0  }
   0x2 LB: > { %s26_s18 = sadd.s32 1, %s1025_s16  ;;  %p899_p0 = scmp.ge.s32.totalorder %s1029_s17, 1  ;;  %s1029_s17 = sphi %s1069_s17, %s14_s17   ;;  %s1025_s16 = sphi %s1067_s16, %s1159_s16   ;;  %s1021_s15 = sphi %s1065_s15, %s1158_s15  }
   0x3   : > { %p28_p1 = scmp.ge.s32.totalorder %s26_s18, 2  ;;  %p204_p2 = scmp.lt.s32.totalorder %s1029_s17, 3 }
   0x5   : > { %s1161_s18 = smov (%p28_p1, %s26_s18), 0  ;;  %p205_p3 = pnand %p899_p0, %p204_p2 }
   0x6   : > { %p249_p4 = scmp.lt.s32.totalorder (!%p205_p3), %s1021_s15, 1  ;;  %s1034_s27 = smov (!%p205_p3), 127  }
   0x7   : > { %208 = sbr.rel (%p205_p3) target bundleno = 375 (0x177), region = 36  ;;  %s1035_s30 = smov (!%p205_p3), 111  }
   0x8   : > { %s1036_s5 = smov (!%p205_p3), 120   ;;  %s1037_s6 = smov (!%p205_p3), 112  }
   0x9   : > { %s1038_s7 = smov (!%p205_p3), 110   ;;  %s1039_s10 = smov (!%p205_p3), 104  }
   0xc   : > { %s1163_s15 = smov (!%p249_p4, %s1021_s15), 1  ;;  %v1031_v0 = vmov 0.0   ;;  %vm1032_vm0 = vmmov 0   ;;  %v1033_v1 = vmov 0   ;;  %v1006_v7 = vld [vmem:[%s1155_s2] sm:$0xff]   ;;  %v743_v9 = vld [vmem:[%s1156_s3 + $0x8] sm:$0xff] }
   0xd   : > { %940 = vmatprep.subr.bf16.mxu1 %v1031_v0  ;;  %s1084_s19 = smul.u32 24, %s1163_s15  ;;  %942 = vmatprep.mubr.msk.bf16.mxu1 %vm1032_vm0, %v1031_v0  ;;  %v742_v8 = vld [vmem:[%s1156_s3] sm:$0xff]  ;;  %vm312_vm1 = vcmask 1039360   ;;  %vm320_vm2 = vcmask 1043456   ;;  %vm316_vm3 = vcmask 64512   ;;  %vm520_vm4 = vcmask 908288  }
   0xe   : > { %362 = vmatprep.mubr.bf16.mxu0 %v1033_v1  ;;  %1000 = vset.pattern.permute.xlu1 %v1033_v1  ;;  %vm636_vm5 = vcmask 900096  }
   0xf   : > { %s256_s22 = scalar_lea.vmem %s1153_s0, %s1084_s19  ;;  %s927_s23 = sadd.s32 12, %s1084_s19  ;;  %1001 = vset.pattern.permute.xlu0 %v1033_v1 }
  0x10   : > { %v1002_v2 = vld [vmem:[%s256_s22 + $0x8] ss:$0 sps:$4 sm:$0xff]   ;;  %v281_v3 = vld [vmem:[%s256_s22] sm:$0xff]  ;;  %s267_s26 = scalar_lea.vmem %s1154_s1, %s927_s23  ;;  %s278_s15 = scalar_lea.vmem %s1157_s4, %s1084_s19 }
  0x11   : > { %v903_v4 = vcombine.low %v281_v3, %v281_v3  ;;  %308 = vrot.lane.b32.xlu1 %v1002_v2, %s1034_s27  ;;  %v1004_v5 = vld [vmem:[%s267_s26] ss:$0 sps:$4 sm:$0xff]   ;;  %v904_v6 = vcombine.high %v281_v3, %v281_v3  ;;  %v424_v20 = vsel %vm320_vm2, %v1002_v2, 0 }
  0x13   : > { %304 = vrot.lane.b32.xlu0 %v903_v4, %s1034_s27  ;;  %v418_v22 = vsel %vm320_vm2, %v903_v4, 0 }
  0x15   : > { %310 = vrot.lane.b32.xlu1 %v1004_v5, %s1034_s27 }
  0x17   : > { %306 = vrot.lane.b32.xlu0 %v904_v6, %s1034_s27 }
  0x19   : > { %512 = vrot.lane.b32.xlu1 %v903_v4, %s1035_s30 }
  0x1b   : > { %302 = vrot.lane.b32.xlu0 %v1006_v7, %s1036_s5 }
  0x1d   : > { %516 = vrot.lane.b32.xlu1 %v1002_v2, %s1035_s30 }
  0x1f   : > { %514 = vrot.lane.b32.xlu0 %v904_v6, %s1035_s30 }
  0x21   : > { %510 = vrot.lane.b32.xlu1 %v1006_v7, %s1037_s6 }
  0x23   : > { %518 = vrot.lane.b32.xlu0 %v1004_v5, %s1035_s30 }
  0x25   : > { %630 = vrot.lane.b32.xlu1 %v904_v6, %s1038_s7 }
  0x27   : > { %628 = vrot.lane.b32.xlu0 %v903_v4, %s1038_s7 }
  0x29   : > { %634 = vrot.lane.b32.xlu1 %v1004_v5, %s1038_s7 }
  0x2b   : > { %632 = vrot.lane.b32.xlu0 %v1002_v2, %s1038_s7 }
  0x2d   : > { %746 = vperm.xlu1 %1000, %v742_v8  }
  0x2f   : > { %626 = vrot.lane.b32.xlu0 %v1006_v7, %s1039_s10 }
  0x33   : > { %751 = vperm.xlu0 %1001, %v743_v9  }
  0x83   : > { %v309_v10 = vpop.permute.xlu1 %308 }
  0x85   : > { %v305_v11 = vpop.permute.xlu0 %304 }
  0x87   : > { %v311_v12 = vpop.permute.xlu1 %310 }
  0x88   : > { %v315_v14 = vsel %vm312_vm1, %v309_v10, %v311_v12 }
  0x89   : > { %v307_v13 = vpop.permute.xlu0 %306  ;;  %v328_v17 = vsel %vm320_vm2, %v315_v14, 0 }
  0x8a   : > { %v314_v15 = vsel %vm312_vm1, %v307_v13, %v309_v10  ;;  %v313_v16 = vsel %vm312_vm1, %v305_v11, %v307_v13  ;;  %941 = vmatpush3.bf16.msra.mxu1 %v328_v17 }
  0x8b   : > { %908 = vmatprep.subr.msk.bf16.mxu0 %vm320_vm2, %v314_v15  ;;  %v322_v18 = vsel %vm320_vm2, %v313_v16, 0  ;;  %v513_v19 = vpop.permute.xlu1 %512  ;;  %946 = vmatprep.subr.bf16.mxu1 %v1031_v0 }
  0x8c   : > { %345 = vmatpush1.bf16.msra.mxu0 %v322_v18 }
  0x8d   : > { %v303_v21 = vpop.permute.xlu0 %302  ;;  %911 = vmatprep.subr.msk.bf16.mxu0 %vm320_vm2, %v904_v6 }
  0x8e   : > { %943 = vmatmul.mubr.msk.bf16.vlgmr.msra.gmra.mxu1 %vm316_vm3, %v303_v21 }
  0x8f   : > { %909 = vmatmul.mubr.msk.bf16.vlgmr.msra.gmra.mxu0 %vm316_vm3, %v303_v21  ;;  %947 = vmatpush3.bf16.msra.mxu1 %v424_v20  ;;  %v517_v23 = vpop.permute.xlu1 %516 }
  0x90   : > { %441 = vmatpush1.bf16.msra.mxu0 %v418_v22  ;;  %458 = vmatprep.mubr.bf16.mxu0 %v1033_v1 }
  0x91   : > { %v515_v24 = vpop.permute.xlu0 %514  ;;  %948 = vmatprep.mubr.msk.bf16.mxu1 %vm1032_vm0, %v1031_v0  ;;  %952 = vmatprep.subr.bf16.mxu1 %v1031_v0 }
  0x92   : > { %v521_v25 = vsel %vm520_vm4, %v513_v19, %v515_v24  ;;  %v522_v26 = vsel %vm520_vm4, %v515_v24, %v517_v23 }
  0x93   : > { %914 = vmatprep.subr.msk.bf16.mxu0 %vm320_vm2, %v522_v26  ;;  %v511_v27 = vpop.permute.xlu1 %510  ;;  %v528_v28 = vsel %vm320_vm2, %v521_v25, 0 }
  0x95   : > { %v519_v29 = vpop.permute.xlu0 %518 }
  0x96   : > { %v523_v30 = vsel %vm520_vm4, %v517_v23, %v519_v29  ;;  %949 = vmatmul.mubr.msk.bf16.vlgmr.msra.gmra.mxu1 %vm316_vm3, %v1006_v7 }
  0x97   : > { %v534_v31 = vsel %vm320_vm2, %v523_v30, 0  ;;  %912 = vmatmul.mubr.msk.bf16.vlgmr.msra.gmra.mxu0 %vm316_vm3, %v1006_v7  ;;  %954 = vmatprep.mubr.msk.bf16.mxu1 %vm1032_vm0, %v1031_v0  ;;  %v631_v32 = vpop.permute.xlu1 %630 }
  0x98   : > { %551 = vmatpush1.bf16.msra.mxu0 %v528_v28  ;;  %953 = vmatpush3.bf16.msra.mxu1 %v534_v31 }
  0x99   : > { %v629_v33 = vpop.permute.xlu0 %628  ;;  %568 = vmatprep.mubr.bf16.mxu0 %v1033_v1  ;;  %958 = vmatprep.subr.bf16.mxu1 %v1031_v0 }
  0x9a   : > { %v637_v34 = vsel %vm636_vm5, %v629_v33, %v631_v32 }
  0x9b   : > { %v635_v35 = vpop.permute.xlu1 %634  ;;  %v644_v36 = vsel %vm320_vm2, %v637_v34, 0 }
  0x9d   : > { %v633_v37 = vpop.permute.xlu0 %632 }
  0x9e   : > { %v638_v38 = vsel %vm636_vm5, %v631_v32, %v633_v37  ;;  %v639_v39 = vsel %vm636_vm5, %v633_v37, %v635_v35  ;;  %955 = vmatmul.mubr.msk.bf16.vlgmr.msra.gmra.mxu1 %vm316_vm3, %v511_v27 }
  0x9f   : > { %v650_v40 = vsel %vm320_vm2, %v639_v39, 0  ;;  %915 = vmatmul.mubr.msk.bf16.vlgmr.msra.gmra.mxu0 %vm316_vm3, %v511_v27  ;;  %917 = vmatprep.subr.msk.bf16.mxu0 %vm320_vm2, %v638_v38 }
  0xa0   : > { %667 = vmatpush1.bf16.msra.mxu0 %v644_v36  ;;  %959 = vmatpush3.bf16.msra.mxu1 %v650_v40 }
  0xa1   : > { %960 = vmatprep.mubr.msk.bf16.mxu1 %vm1032_vm0, %v1031_v0  ;;  %684 = vmatprep.mubr.bf16.mxu0 %v1033_v1  ;;  %v627_v41 = vpop.permute.xlu0 %626 }
  0xa6   : > { %961 = vmatmul.mubr.msk.bf16.vlgmr.msra.gmra.mxu1 %vm316_vm3, %v627_v41 }
  0xa7   : > { %918 = vmatmul.mubr.msk.bf16.vlgmr.msra.gmra.mxu0 %vm316_vm3, %v627_v41 }
  0xa8   : > { %v747_v8 = vpop.permute.xlu1 %746 }
  0xae   : > { %v752_v24 = vpop.permute.xlu0 %751 }
 0x14e   : > { %v407_v42 = vpop.f32.mrf.mxu1 }
 0x14f   : > { %v364_v43 = vpop.f32.mrf.mxu0 }
 0x150   : > { %v944_v44 = vpop.f32.mrf.mxu1 }
 0x151   : > { %v366_v45 = vpop.f32.mrf.mxu0 }
 0x152   : > { %v410_v46 = vpop.f32.mrf.mxu1 }
 0x153   : > { %v368_v47 = vpop.f32.mrf.mxu0 }
 0x154   : > { %v945_v48 = vpop.f32.mrf.mxu1 }
 0x155   : > { %v370_v49 = vpop.f32.mrf.mxu0 }
 0x156   : > { %v503_v50 = vpop.f32.mrf.mxu1 }
 0x157   : > { %v460_v51 = vpop.f32.mrf.mxu0  ;;  %v504_v63 = vadd.f32 %v503_v50, %v407_v42 }
 0x158   : > { %v950_v52 = vpop.f32.mrf.mxu1  ;;  %v461_v1 = vadd.f32 %v460_v51, %v364_v43 }
 0x159   : > { %v462_v53 = vpop.f32.mrf.mxu0 }
 0x15a   : > { %v506_v54 = vpop.f32.mrf.mxu1  ;;  %v463_v5 = vadd.f32 %v462_v53, %v366_v45 }
 0x15b   : > { %v464_v55 = vpop.f32.mrf.mxu0  ;;  %v507_v9 = vadd.f32 %v506_v54, %v410_v46 }
 0x15c   : > { %v951_v56 = vpop.f32.mrf.mxu1  ;;  %v465_v12 = vadd.f32 %v464_v55, %v368_v47 }
 0x15d   : > { %v466_v57 = vpop.f32.mrf.mxu0 }
 0x15e   : > { %v613_v58 = vpop.f32.mrf.mxu1  ;;  %v467_v19 = vadd.f32 %v466_v57, %v370_v49 }
 0x15f   : > { %v570_v59 = vpop.f32.mrf.mxu0  ;;  %v622_v3 = vadd.f32 %v613_v58, %v504_v63 }
 0x160   : > { %v956_v60 = vpop.f32.mrf.mxu1  ;;  %v620_v6 = vadd.f32 %v570_v59, %v461_v1 }
 0x161   : > { %v572_v61 = vpop.f32.mrf.mxu0 }
 0x162   : > { %v616_v62 = vpop.f32.mrf.mxu1  ;;  %v621_v13 = vadd.f32 %v572_v61, %v463_v5 }
 0x163   : > { %v574_v0 = vpop.f32.mrf.mxu0  ;;  %v625_v16 = vadd.f32 %v616_v62, %v507_v9 }
 0x164   : > { %v957_v2 = vpop.f32.mrf.mxu1  ;;  %v623_v20 = vadd.f32 %v574_v0, %v465_v12 }
 0x165   : > { %v576_v4 = vpop.f32.mrf.mxu0 }
 0x166   : > { %v729_v7 = vpop.f32.mrf.mxu1  ;;  %v624_v28 = vadd.f32 %v576_v4, %v467_v19 }
 0x167   : > { %v686_v10 = vpop.f32.mrf.mxu0  ;;  %v738_v11 = vadd.f32 %v729_v7, %v622_v3 }
 0x168   : > { %v736_v14 = vadd.f32 %v686_v10, %v620_v6  ;;  %v962_v15 = vpop.f32.mrf.mxu1 }
 0x169   : > { %v756_v17 = vadd.f32 %v747_v8, %v738_v11  ;;  %v688_v18 = vpop.f32.mrf.mxu0 }
 0x16a   : > { %v754_v21 = vadd.f32 %v747_v8, %v736_v14  ;;  %v737_v22 = vadd.f32 %v688_v18, %v621_v13  ;;  %v732_v23 = vpop.f32.mrf.mxu1 }
 0x16b   : > { %v762_v25 = vmax.f32 %v756_v17, 0.0  ;;  %v690_v26 = vpop.f32.mrf.mxu0  ;;  %v741_v27 = vadd.f32 %v732_v23, %v625_v16 }
 0x16c   : > { %v755_v29 = vadd.f32 %v747_v8, %v737_v22  ;;  %v739_v30 = vadd.f32 %v690_v26, %v623_v20  ;;  %v963_v31 = vpop.f32.mrf.mxu1  ;;  %v760_v35 = vmax.f32 %v754_v21, 0.0 }
 0x16d   : > { %v929_v32 = vpack.c.bf16 %v762_v25, %v762_v25  ;;  %v759_v33 = vadd.f32 %v752_v24, %v741_v27  ;;  %v692_v34 = vpop.f32.mrf.mxu0 }
 0x16e   : > { %v761_v36 = vmax.f32 %v755_v29, 0.0  ;;  %v757_v37 = vadd.f32 %v752_v24, %v739_v30  ;;  %v740_v38 = vadd.f32 %v692_v34, %v624_v28 }
 0x16f   : > { %787 = vst [vmem:[%s278_s15 + $0x8] sm:$0xf] %v929_v32  ;;  %v765_v39 = vmax.f32 %v759_v33, 0.0 }
 0x170   : > { %v928_v40 = vpack.c.bf16 %v761_v36, %v760_v35  ;;  %v758_v41 = vadd.f32 %v752_v24, %v740_v38  ;;  %v763_v43 = vmax.f32 %v757_v37, 0.0 }
 0x171   : > { %v931_v42 = vpack.c.bf16 %v765_v39, %v765_v39 }
 0x172   : > { %786 = vst [vmem:[%s278_s15] sm:$0xff] %v928_v40  ;;  %v764_v44 = vmax.f32 %v758_v41, 0.0 }
 0x173   : > { %789 = vst [vmem:[%s278_s15 + $0x14] sm:$0xf] %v931_v42 }
 0x174   : > { %v930_v45 = vpack.c.bf16 %v764_v44, %v763_v43 }
 0x176   : > { %788 = vst [vmem:[%s278_s15 + $0xc] sm:$0xff] %v930_v45 }
 0x177 PF: > { %s14_s17 = sadd.s32 1, %s1029_s17   ;;  %s1158_s15 = smov %s1025_s16 }
 0x178   : > { %p11_p5 = scmp.ge.s32.totalorder %s14_s17, 4   ;;  %s1159_s16 = smov %s1161_s18 }
 0x17a   :  { %13 = sbr.rel (!%p11_p5) target bundleno = 2 (0x2), region = 69 }

// kernel: tile.33
= control target key start
LH: loop header
LB: loop body
LE: loop exit
PB: predicated region body
PF: predicated region fallthrough
CT: control target
= control target key end

     0   :  { %s22_s0 = inlined_call_operand.vmem [shape: f32[2], index: 0, kind: input, shape index: {}]   ;;  %s23_s1 = inlined_call_operand.vmem [shape: f32[4,2], index: 1, kind: output, shape index: {}]  }
   0x1   :  { %v4_v0 = vld [vmem:[%s22_s0] ss:$0 sm:$0xff] }
   0x2   :  { %5 = vst [vmem:[%s23_s1] sm:$0xf] %v4_v0 }

// kernel: mul.17
= control target key start
LH: loop header
LB: loop body
LE: loop exit
PB: predicated region body
PF: predicated region fallthrough
CT: control target
= control target key end

     0   :  { %vm8_vm0 = vcmask 15360   ;;  %s40_s8 = smov 2   ;;  %s41_s9 = smov 4   ;;  %vm14_vm1 = vcmask 64560   ;;  %vm20_vm2 = vcmask 48160   ;;  %vm26_vm3 = vcmask 31760   ;;  %s58_s0 = inlined_call_operand.vmem [shape: f32[4,2], index: 0, kind: input, shape index: {}]   ;;  %s59_s1 = inlined_call_operand.vmem [shape: f32[8], index: 1, kind: output, shape index: {}]  }
   0x1   :  { %v5_v0 = vld [vmem:[%s58_s0] sm:$0xf]  ;;  %s39_s0 = smov 6  }
   0x2   :  { %6 = vst [vmem:[#allocation1] sm:$0xf] %v5_v0 }
   0x9   :  { %v11_v1 = vld [vmem:[#allocation1 + $0x3] sm:$0x1]   ;;  %v23_v2 = vld [vmem:[#allocation1 + $0x1] sm:$0x1]   ;;  %v7_v3 = vld [vmem:[#allocation1] sm:$0x1]  }
   0xa   :  { %12 = vrot.lane.b32.xlu0 %v11_v1, %s39_s0  ;;  %24 = vrot.lane.b32.xlu1 %v23_v2, %s40_s8  ;;  %v17_v4 = vld [vmem:[#allocation1 + $0x2] sm:$0x1]   ;;  %9 = vst.msk [vmem:[#allocation0] sm:$0x1] %vm8_vm0, %v7_v3  }
   0xe   :  { %18 = vrot.lane.b32.xlu0 %v17_v4, %s41_s9 }
  0x7c   :  { %v13_v5 = vpop.permute.xlu0 %12   ;;  %v25_v6 = vpop.permute.xlu1 %24  }
  0x7d   :  { %15 = vst.msk [vmem:[#allocation0] sm:$0x1] %vm14_vm1, %v13_v5  }
  0x80   :  { %v19_v7 = vpop.permute.xlu0 %18  }
  0x81   :  { %21 = vst.msk [vmem:[#allocation0] sm:$0x1] %vm20_vm2, %v19_v7  }
  0x82   :  { %27 = vst.msk [vmem:[#allocation0] sm:$0x1] %vm26_vm3, %v25_v6  }
  0x89   :  { %v32_v8 = vld [vmem:[#allocation0] sm:$0x1] }
  0x8a   :  { %35 = vst [vmem:[%s59_s1] sm:$0x1] %v32_v8 }

// kernel: upsample_forward.4
= control target key start
LH: loop header
LB: loop body
LE: loop exit
PB: predicated region body
PF: predicated region fallthrough
CT: control target
= control target key end

     0   :  { %s1294_s15 = smov 0   ;;  %s1296_s16 = smov 0   ;;  %s1464_s0 = inlined_call_operand.vmem [shape: bf16[2,8,1920], index: 0, kind: input, shape index: {}, may-alias: {0,1}]   ;;  %s1465_s1 = inlined_call_operand.vmem [shape: bf16[2,8,1920], index: 1, kind: input, shape index: {}, may-alias: {0,1}]   ;;  %s1466_s2 = inlined_call_operand.vmem [shape: bf16[8,32], index: 2, kind: input, shape index: {}]   ;;  %s1467_s3 = inlined_call_operand.vmem [shape: f32[8,1], index: 3, kind: input, shape index: {}]   ;;  %s1468_s4 = inlined_call_operand.vmem [shape: bf16[2,8,1280], index: 4, kind: output, shape index: {}]  }
   0x1   :  { %s1298_s17 = smov 0   ;;  %s1300_s18 = smov 0  }
   0x2   :  { %s1302_s19 = smov 0  }
   0x3 LB: > { %s23_s20 = sadd.s32 1, %s1250_s17  ;;  %s26_s21 = sadd.s32 1, %s1254_s18  ;;  %s1258_s19 = sphi %s1302_s19, %s14_s19   ;;  %s1254_s18 = sphi %s1300_s18, %s1472_s18   ;;  %s1250_s17 = sphi %s1298_s17, %s1471_s17   ;;  %s1246_s16 = sphi %s1296_s16, %s1470_s16   ;;  %s1242_s15 = sphi %s1294_s15, %s1469_s15  }
   0x4   : > { %p24_p0 = scmp.ge.s32.totalorder %s23_s20, 2  ;;  %p1089_p1 = scmp.ge.s32.totalorder %s1258_s19, 1 }
   0x5   : > { %p204_p2 = scmp.lt.s32.totalorder %s1258_s19, 5 }
   0x6   : > { %s1474_s20 = smov (%p24_p0, %s23_s20), 0  ;;  %s1476_s21 = smov (!%p24_p0, %s26_s21), %s1254_s18 }
   0x7   : > { %p205_p3 = pnand %p1089_p1, %p204_p2  ;;  %p28_p4 = scmp.ge.s32.totalorder %s1476_s21, 2 }
   0x8   : > { %s1324_s22 = smul.u32 (!%p205_p3), 5, %s1242_s15  ;;  %p249_p5 = scmp.lt.s32.totalorder (!%p205_p3), %s1246_s16, 1 }
   0x9   : > { %s1478_s21 = smov (%p28_p4, %s1476_s21), 0  ;;  %208 = sbr.rel (%p205_p3) target bundleno = 394 (0x18a), region = 36 }
   0xa   : > { %p251_p6 = scmp.lt.s32.totalorder (!%p205_p3), %s1324_s22, 14  ;;  %s258_s23 = sadd.s32 (!%p205_p3), 1, %s1242_s15 }
   0xb   : > { %s259_s26 = smul.u32 (!%p205_p3), 5, %s258_s23  ;;  %s1261_s7 = smov (!%p205_p3), 127  }
   0xc   : > { %s1262_s14 = smov (!%p205_p3), 120   ;;  %s1263_s15 = smov (!%p205_p3), 95  }
   0xd   : > { %p262_p7 = scmp.lt.s32.totalorder (!%p205_p3), %s259_s26, 14  ;;  %s1264_s23 = smov (!%p205_p3), 112  }
   0xe   : > { %s1480_s16 = smov (!%p249_p5, %s1246_s16), 1  ;;  %v1260_v0 = vmov 0   ;;  %v1349_v7 = vld [vmem:[%s1466_s2] sm:$0xf]  ;;  %vm319_vm0 = vcmask 1039360   ;;  %vm329_vm1 = vcmask 1043456  }
   0xf   : > { %s1160_s24 = smul.u32 15, %s1480_s16  ;;  %377 = vmatprep.mubr.bf16.mxu0 %v1260_v0  ;;  %418 = vmatprep.mubr.bf16.mxu1 %v1260_v0  ;;  %s1482_s26 = smov (!%p262_p7, %s259_s26), 14  ;;  %v1099_v9 = vcombine.low %v1349_v7, %v1349_v7  ;;  %v937_v11 = vld [vmem:[%s1467_s3] sm:$0xff]  ;;  %vm325_vm2 = vcmask 64512   ;;  %v1267_v22 = vmov 0.0   ;;  %vm1268_vm3 = vmmov 0  }
  0x10   : > { %s252_s25 = scalar_select %p251_p6, %s1324_s22, 14  ;;  %1211 = vset.pattern.permute.xlu1 %v1260_v0  ;;  %1212 = vset.pattern.permute.xlu0 %v1260_v0  ;;  %vm621_vm4 = vcmask 777216   ;;  %vm786_vm5 = vcmask 769024  }
  0x11   : > { %s265_s6 = sadd.s32 %s1160_s24, %s1482_s26  ;;  %p273_p8 = scmp.lt.s32.totalorder %s1324_s22, 9 }
  0x12   : > { %s254_s27 = sadd.s32 %s1160_s24, %s252_s25  ;;  %s1091_s8 = sshll.u32 %s265_s6, 2 }
  0x13   : > { %s1090_s28 = sshll.u32 %s254_s27, 2  ;;  %s267_s13 = scalar_lea.vmem %s1465_s1, %s1091_s8 }
  0x14   : > { %s256_s5 = scalar_lea.vmem %s1464_s0, %s1090_s28  ;;  %v1219_v10 = vld [vmem:[%s267_s13] ss:$0 sps:$4 sm:$0xff]   ;;  %s1265_s24 = smov 94  }
  0x15   : > { %v281_v1 = vld [vmem:[%s256_s5] sm:$0xff]  ;;  %v282_v2 = vld [vmem:[%s256_s5 + $0x8] sm:$0xff]  ;;  %v1355_v8 = vld [vmem:[%s256_s5 + $0x10] ss:$0 sps:$4 sm:$0xff]   ;;  %s1266_s25 = smov 104   ;;  %s1161_s28 = smul.u32 10, %s1480_s16 }
  0x16   : > { %v1338_v3 = vcombine.low %v281_v1, %v281_v1  ;;  %v1340_v4 = vcombine.low %v282_v2, %v282_v2  ;;  %v1094_v5 = vcombine.high %v281_v1, %v281_v1  ;;  %v1344_v6 = vcombine.high %v282_v2, %v282_v2  ;;  %s1484_s22 = smov (!%p273_p8, %s1324_s22), 9 }
  0x17   : > { %v483_v36 = vsel %vm329_vm1, %v1355_v8, 0  ;;  %s276_s29 = sadd.s32 %s1161_s28, %s1484_s22 }
  0x18   : > { %307 = vrot.lane.b32.xlu0 %v1338_v3, %s1261_s7  ;;  %311 = vrot.lane.b32.xlu1 %v1340_v4, %s1261_s7  ;;  %v471_v27 = vsel %vm329_vm1, %v1338_v3, 0  ;;  %v477_v32 = vsel %vm329_vm1, %v1340_v4, 0  ;;  %s1092_s16 = sshll.u32 %s276_s29, 2 }
  0x19   : > { %s278_s5 = scalar_lea.vmem %s1468_s4, %s1092_s16 }
  0x1c   : > { %309 = vrot.lane.b32.xlu0 %v1094_v5, %s1261_s7  ;;  %313 = vrot.lane.b32.xlu1 %v1344_v6, %s1261_s7 }
  0x20   : > { %315 = vrot.lane.b32.xlu0 %v1355_v8, %s1261_s7  ;;  %305 = vrot.lane.b32.xlu1 %v1099_v9, %s1262_s14 }
  0x24   : > { %317 = vrot.lane.b32.xlu0 %v1219_v10, %s1261_s7  ;;  %609 = vrot.lane.b32.xlu1 %v1338_v3, %s1263_s15 }
  0x28   : > { %611 = vrot.lane.b32.xlu0 %v1094_v5, %s1263_s15  ;;  %613 = vrot.lane.b32.xlu1 %v1340_v4, %s1263_s15 }
  0x2c   : > { %615 = vrot.lane.b32.xlu0 %v1344_v6, %s1263_s15  ;;  %617 = vrot.lane.b32.xlu1 %v1355_v8, %s1263_s15 }
  0x30   : > { %607 = vrot.lane.b32.xlu0 %v1099_v9, %s1264_s23  ;;  %619 = vrot.lane.b32.xlu1 %v1219_v10, %s1263_s15 }
  0x34   : > { %774 = vrot.lane.b32.xlu0 %v1338_v3, %s1265_s24  ;;  %776 = vrot.lane.b32.xlu1 %v1094_v5, %s1265_s24 }
  0x38   : > { %778 = vrot.lane.b32.xlu0 %v1340_v4, %s1265_s24  ;;  %772 = vrot.lane.b32.xlu1 %v1099_v9, %s1266_s25 }
  0x3c   : > { %780 = vrot.lane.b32.xlu0 %v1344_v6, %s1265_s24  ;;  %782 = vrot.lane.b32.xlu1 %v1355_v8, %s1265_s24 }
  0x40   : > { %784 = vrot.lane.b32.xlu0 %v1219_v10, %s1265_s24  ;;  %940 = vperm.xlu1 %1211, %v937_v11  }
  0x8a   : > { %v308_v12 = vpop.permute.xlu0 %307  ;;  %v312_v13 = vpop.permute.xlu1 %311 }
  0x8e   : > { %v310_v14 = vpop.permute.xlu0 %309  ;;  %v314_v15 = vpop.permute.xlu1 %313 }
  0x8f   : > { %v321_v16 = vsel %vm319_vm0, %v310_v14, %v312_v13  ;;  %v320_v17 = vsel %vm319_vm0, %v308_v12, %v310_v14  ;;  %v322_v19 = vsel %vm319_vm0, %v312_v13, %v314_v15 }
  0x90   : > { %1100 = vmatprep.subr.msk.bf16.mxu0 %vm329_vm1, %v321_v16  ;;  %v331_v18 = vsel %vm329_vm1, %v320_v17, 0  ;;  %v337_v24 = vsel %vm329_vm1, %v322_v19, 0 }
  0x91   : > { %360 = vmatpush1.bf16.msra.mxu0 %v331_v18 }
  0x92   : > { %v316_v20 = vpop.permute.xlu0 %315  ;;  %v306_v21 = vpop.permute.xlu1 %305  ;;  %1136 = vmatprep.subr.bf16.mxu0 %v1267_v22 }
  0x93   : > { %v323_v23 = vsel %vm319_vm0, %v314_v15, %v316_v20 }
  0x94   : > { %1101 = vmatmul.mubr.msk.bf16.vlgmr.msra.gmra.mxu0 %vm325_vm2, %v306_v21  ;;  %1102 = vmatprep.subr.msk.bf16.mxu1 %vm329_vm1, %v323_v23 }
  0x95   : > { %401 = vmatpush1.bf16.msra.mxu1 %v337_v24  ;;  %1138 = vmatprep.mubr.msk.bf16.mxu0 %vm1268_vm3, %v1267_v22 }
  0x96   : > { %v318_v25 = vpop.permute.xlu0 %317  ;;  %v610_v26 = vpop.permute.xlu1 %609  ;;  %1105 = vmatprep.subr.msk.bf16.mxu1 %vm329_vm1, %v1094_v5 }
  0x97   : > { %v324_v28 = vsel %vm319_vm0, %v316_v20, %v318_v25 }
  0x98   : > { %v343_v29 = vsel %vm329_vm1, %v324_v28, 0  ;;  %1103 = vmatmul.mubr.msk.bf16.vlgmr.msra.gmra.mxu1 %vm325_vm2, %v306_v21 }
  0x99   : > { %1137 = vmatpush3.bf16.msra.mxu0 %v343_v29  ;;  %500 = vmatpush1.bf16.msra.mxu1 %v471_v27 }
  0x9a   : > { %v612_v30 = vpop.permute.xlu0 %611  ;;  %v614_v31 = vpop.permute.xlu1 %613  ;;  %517 = vmatprep.mubr.bf16.mxu1 %v1260_v0  ;;  %1107 = vmatprep.subr.msk.bf16.mxu0 %vm329_vm1, %v1344_v6 }
  0x9b   : > { %v623_v33 = vsel %vm621_vm4, %v612_v30, %v614_v31  ;;  %1142 = vmatprep.subr.bf16.mxu1 %v1267_v22  ;;  %v622_v37 = vsel %vm621_vm4, %v610_v26, %v612_v30 }
  0x9c   : > { %1139 = vmatmul.mubr.msk.bf16.vlgmr.msra.gmra.mxu0 %vm325_vm2, %v306_v21  ;;  %v631_v39 = vsel %vm329_vm1, %v622_v37, 0 }
  0x9d   : > { %541 = vmatpush1.bf16.msra.mxu0 %v477_v32  ;;  %558 = vmatprep.mubr.bf16.mxu0 %v1260_v0 }
  0x9e   : > { %v616_v34 = vpop.permute.xlu0 %615  ;;  %v618_v35 = vpop.permute.xlu1 %617  ;;  %1110 = vmatprep.subr.msk.bf16.mxu0 %vm329_vm1, %v623_v33 }
  0x9f   : > { %v625_v38 = vsel %vm621_vm4, %v616_v34, %v618_v35  ;;  %v624_v42 = vsel %vm621_vm4, %v614_v31, %v616_v34 }
  0xa0   : > { %1106 = vmatmul.mubr.msk.bf16.vlgmr.msra.gmra.mxu1 %vm325_vm2, %v1349_v7  ;;  %v637_v43 = vsel %vm329_vm1, %v624_v42, 0 }
  0xa1   : > { %1143 = vmatpush3.bf16.msra.mxu1 %v483_v36  ;;  %1144 = vmatprep.mubr.msk.bf16.mxu1 %vm1268_vm3, %v1267_v22 }
  0xa2   : > { %v608_v40 = vpop.permute.xlu0 %607  ;;  %v620_v41 = vpop.permute.xlu1 %619  ;;  %1112 = vmatprep.subr.msk.bf16.mxu1 %vm329_vm1, %v625_v38 }
  0xa3   : > { %v626_v46 = vsel %vm621_vm4, %v618_v35, %v620_v41 }
  0xa4   : > { %1108 = vmatmul.mubr.msk.bf16.vlgmr.msra.gmra.mxu0 %vm325_vm2, %v1349_v7  ;;  %v643_v47 = vsel %vm329_vm1, %v626_v46, 0 }
  0xa5   : > { %660 = vmatpush1.bf16.msra.mxu0 %v631_v39  ;;  %677 = vmatprep.mubr.bf16.mxu0 %v1260_v0 }
  0xa6   : > { %v775_v44 = vpop.permute.xlu0 %774  ;;  %v777_v45 = vpop.permute.xlu1 %776  ;;  %1148 = vmatprep.subr.bf16.mxu0 %v1267_v22 }
  0xa7   : > { %v787_v50 = vsel %vm786_vm5, %v775_v44, %v777_v45 }
  0xa8   : > { %1145 = vmatmul.mubr.msk.bf16.vlgmr.msra.gmra.mxu1 %vm325_vm2, %v1349_v7  ;;  %v796_v52 = vsel %vm329_vm1, %v787_v50, 0 }
  0xa9   : > { %701 = vmatpush1.bf16.msra.mxu1 %v637_v43  ;;  %718 = vmatprep.mubr.bf16.mxu1 %v1260_v0 }
  0xaa   : > { %v779_v48 = vpop.permute.xlu0 %778  ;;  %v773_v49 = vpop.permute.xlu1 %772 }
  0xab   : > { %v788_v51 = vsel %vm786_vm5, %v777_v45, %v779_v48 }
  0xac   : > { %1111 = vmatmul.mubr.msk.bf16.vlgmr.msra.gmra.mxu0 %vm325_vm2, %v608_v40  ;;  %1115 = vmatprep.subr.msk.bf16.mxu1 %vm329_vm1, %v788_v51 }
  0xad   : > { %1149 = vmatpush3.bf16.msra.mxu0 %v643_v47  ;;  %1150 = vmatprep.mubr.msk.bf16.mxu0 %vm1268_vm3, %v1267_v22 }
  0xae   : > { %v781_v53 = vpop.permute.xlu0 %780  ;;  %v783_v54 = vpop.permute.xlu1 %782 }
  0xaf   : > { %v789_v55 = vsel %vm786_vm5, %v779_v48, %v781_v53  ;;  %v790_v56 = vsel %vm786_vm5, %v781_v53, %v783_v54 }
  0xb0   : > { %1113 = vmatmul.mubr.msk.bf16.vlgmr.msra.gmra.mxu1 %vm325_vm2, %v608_v40  ;;  %1117 = vmatprep.subr.msk.bf16.mxu0 %vm329_vm1, %v790_v56  ;;  %v802_v57 = vsel %vm329_vm1, %v789_v55, 0 }
  0xb1   : > { %825 = vmatpush1.bf16.msra.mxu1 %v796_v52  ;;  %842 = vmatprep.mubr.bf16.mxu1 %v1260_v0 }
  0xb2   : > { %v785_v58 = vpop.permute.xlu0 %784  ;;  %1154 = vmatprep.subr.bf16.mxu1 %v1267_v22 }
  0xb3   : > { %v791_v59 = vsel %vm786_vm5, %v783_v54, %v785_v58 }
  0xb4   : > { %1151 = vmatmul.mubr.msk.bf16.vlgmr.msra.gmra.mxu0 %vm325_vm2, %v608_v40  ;;  %v808_v60 = vsel %vm329_vm1, %v791_v59, 0 }
  0xb5   : > { %866 = vmatpush1.bf16.msra.mxu0 %v802_v57  ;;  %883 = vmatprep.mubr.bf16.mxu0 %v1260_v0 }
  0xb8   : > { %1116 = vmatmul.mubr.msk.bf16.vlgmr.msra.gmra.mxu1 %vm325_vm2, %v773_v49 }
  0xb9   : > { %1155 = vmatpush3.bf16.msra.mxu1 %v808_v60  ;;  %1156 = vmatprep.mubr.msk.bf16.mxu1 %vm1268_vm3, %v1267_v22 }
  0xbb   : > { %v941_v34 = vpop.permute.xlu1 %940 }
  0xbc   : > { %1118 = vmatmul.mubr.msk.bf16.vlgmr.msra.gmra.mxu0 %vm325_vm2, %v773_v49 }
  0xc0   : > { %1157 = vmatmul.mubr.msk.bf16.vlgmr.msra.gmra.mxu1 %vm325_vm2, %v773_v49 }
 0x154   : > { %v379_v61 = vpop.f32.mrf.mxu0 }
 0x156   : > { %v381_v62 = vpop.f32.mrf.mxu0 }
 0x158   : > { %v383_v63 = vpop.f32.mrf.mxu0  ;;  %v420_v1 = vpop.f32.mrf.mxu1 }
 0x15a   : > { %v384_v2 = vpop.f32.mrf.mxu0  ;;  %v422_v3 = vpop.f32.mrf.mxu1 }
 0x15c   : > { %v424_v4 = vpop.f32.mrf.mxu1  ;;  %v461_v0 = vpop.f32.mrf.mxu0 }
 0x15e   : > { %v425_v5 = vpop.f32.mrf.mxu1  ;;  %v1140_v6 = vpop.f32.mrf.mxu0 }
 0x160   : > { %v464_v7 = vpop.f32.mrf.mxu0  ;;  %v519_v8 = vpop.f32.mrf.mxu1 }
 0x161   : > { %v520_v29 = vadd.f32 %v519_v8, %v379_v61 }
 0x162   : > { %v1141_v9 = vpop.f32.mrf.mxu0  ;;  %v521_v10 = vpop.f32.mrf.mxu1 }
 0x163   : > { %v522_v32 = vadd.f32 %v521_v10, %v381_v62 }
 0x164   : > { %v523_v11 = vpop.f32.mrf.mxu1  ;;  %v560_v12 = vpop.f32.mrf.mxu0 }
 0x165   : > { %v561_v37 = vadd.f32 %v560_v12, %v420_v1 }
 0x166   : > { %v524_v13 = vpop.f32.mrf.mxu1  ;;  %v562_v14 = vpop.f32.mrf.mxu0 }
 0x167   : > { %v563_v42 = vadd.f32 %v562_v14, %v422_v3 }
 0x168   : > { %v564_v15 = vpop.f32.mrf.mxu0  ;;  %v601_v16 = vpop.f32.mrf.mxu1 }
 0x169   : > { %v602_v46 = vadd.f32 %v601_v16, %v461_v0 }
 0x16a   : > { %v565_v17 = vpop.f32.mrf.mxu0  ;;  %v1146_v18 = vpop.f32.mrf.mxu1 }
 0x16c   : > { %v604_v19 = vpop.f32.mrf.mxu1  ;;  %v679_v20 = vpop.f32.mrf.mxu0 }
 0x16d   : > { %v767_v33 = vadd.f32 %v679_v20, %v520_v29 }
 0x16e   : > { %v1147_v21 = vpop.f32.mrf.mxu1  ;;  %v681_v22 = vpop.f32.mrf.mxu0 }
 0x16f   : > { %v768_v38 = vadd.f32 %v681_v22, %v522_v32 }
 0x170   : > { %v683_v23 = vpop.f32.mrf.mxu0  ;;  %v720_v24 = vpop.f32.mrf.mxu1 }
 0x171   : > { %v769_v43 = vadd.f32 %v720_v24, %v561_v37 }
 0x172   : > { %v684_v25 = vpop.f32.mrf.mxu0  ;;  %v722_v26 = vpop.f32.mrf.mxu1 }
 0x173   : > { %v770_v49 = vadd.f32 %v722_v26, %v563_v42 }
 0x174   : > { %v724_v27 = vpop.f32.mrf.mxu1  ;;  %v761_v28 = vpop.f32.mrf.mxu0 }
 0x175   : > { %v771_v52 = vadd.f32 %v761_v28, %v602_v46 }
 0x176   : > { %v725_v30 = vpop.f32.mrf.mxu1  ;;  %v1152_v31 = vpop.f32.mrf.mxu0 }
 0x178   : > { %v764_v35 = vpop.f32.mrf.mxu0  ;;  %v844_v36 = vpop.f32.mrf.mxu1 }
 0x179   : > { %v932_v39 = vadd.f32 %v844_v36, %v767_v33 }
 0x17a   : > { %v1153_v40 = vpop.f32.mrf.mxu0  ;;  %v846_v41 = vpop.f32.mrf.mxu1 }
 0x17b   : > { %v943_v44 = vadd.f32 %v941_v34, %v932_v39  ;;  %v933_v45 = vadd.f32 %v846_v41, %v768_v38 }
 0x17c   : > { %v848_v47 = vpop.f32.mrf.mxu1  ;;  %v885_v48 = vpop.f32.mrf.mxu0 }
 0x17d   : > { %v944_v50 = vadd.f32 %v941_v34, %v933_v45  ;;  %v934_v51 = vadd.f32 %v885_v48, %v769_v43  ;;  %v948_v55 = vmax.f32 %v943_v44, 0.0 }
 0x17e   : > { %v849_v53 = vpop.f32.mrf.mxu1  ;;  %v887_v54 = vpop.f32.mrf.mxu0 }
 0x17f   : > { %v949_v56 = vmax.f32 %v944_v50, 0.0  ;;  %v945_v57 = vadd.f32 %v941_v34, %v934_v51  ;;  %v935_v58 = vadd.f32 %v887_v54, %v770_v49 }
 0x180   : > { %v889_v59 = vpop.f32.mrf.mxu0  ;;  %v926_v60 = vpop.f32.mrf.mxu1 }
 0x181   : > { %v1125_v61 = vpack.c.bf16 %v949_v56, %v948_v55  ;;  %v946_v62 = vadd.f32 %v941_v34, %v935_v58  ;;  %v936_v63 = vadd.f32 %v926_v60, %v771_v52  ;;  %v950_v3 = vmax.f32 %v945_v57, 0.0 }
 0x182   : > { %v890_v1 = vpop.f32.mrf.mxu0  ;;  %v1158_v2 = vpop.f32.mrf.mxu1 }
 0x183   : > { %974 = vst [vmem:[%s278_s5] sm:$0xff] %v1125_v61  ;;  %v951_v4 = vmax.f32 %v946_v62, 0.0  ;;  %v947_v0 = vadd.f32 %v941_v34, %v936_v63 }
 0x184   : > { %v929_v5 = vpop.f32.mrf.mxu1 }
 0x185   : > { %v1126_v6 = vpack.c.bf16 %v951_v4, %v950_v3  ;;  %v952_v7 = vmax.f32 %v947_v0, 0.0 }
 0x186   : > { %v1159_v8 = vpop.f32.mrf.mxu1 }
 0x187   : > { %975 = vst [vmem:[%s278_s5 + $0x8] sm:$0xff] %v1126_v6  ;;  %v1127_v9 = vpack.c.bf16 %v952_v7, %v952_v7 }
 0x189   : > { %976 = vst [vmem:[%s278_s5 + $0x10] sm:$0xf] %v1127_v9 }
 0x18a PF: > { %s14_s19 = sadd.s32 1, %s1258_s19   ;;  %s1469_s15 = smov %s1250_s17 }
 0x18b   : > { %p11_p9 = scmp.ge.s32.totalorder %s14_s19, 6   ;;  %s1470_s16 = smov %s1254_s18 }
 0x18c   : > { %s1471_s17 = smov %s1474_s20  ;;  %s1472_s18 = smov %s1478_s21 }
 0x18d   :  { %13 = sbr.rel (!%p11_p9) target bundleno = 3 (0x3), region = 69 }

// kernel: upsample_forward.5
= control target key start
LH: loop header
LB: loop body
LE: loop exit
PB: predicated region body
PF: predicated region fallthrough
CT: control target
= control target key end

     0   :  { %s12221_s15 = smov 0   ;;  %s12223_s16 = smov 0   ;;  %s15160_s0 = inlined_call_operand.vmem [shape: bf16[2,8,5376], index: 0, kind: input, shape index: {}, may-alias: {0,1}]   ;;  %s15161_s1 = inlined_call_operand.vmem [shape: bf16[2,8,5376], index: 1, kind: input, shape index: {}, may-alias: {0,1}]   ;;  %s15162_s2 = inlined_call_operand.vmem [shape: bf16[8,392], index: 2, kind: input, shape index: {}]   ;;  %s15163_s3 = inlined_call_operand.vmem [shape: f32[8,1], index: 3, kind: input, shape index: {}]   ;;  %s15164_s4 = inlined_call_operand.vmem [shape: f32[2,8,4480], index: 4, kind: output, shape index: {}]  }
   0x1   :  { %s12225_s17 = smov 0   ;;  %s12227_s18 = smov 0  }
   0x2   :  { %s12229_s19 = smov 0  }
   0x3 LB: > { %s23_s20 = sadd.s32 1, %s12126_s17  ;;  %s26_s21 = sadd.s32 1, %s12130_s18  ;;  %s12134_s19 = sphi %s12229_s19, %s14_s19   ;;  %s12130_s18 = sphi %s12227_s18, %s15175_s18   ;;  %s12126_s17 = sphi %s12225_s17, %s15174_s17   ;;  %s12122_s16 = sphi %s12223_s16, %s15173_s16   ;;  %s12118_s15 = sphi %s12221_s15, %s15172_s15  }
   0x4   : > { %p24_p0 = scmp.ge.s32.totalorder %s23_s20, 5  ;;  %p11203_p1 = scmp.ge.s32.totalorder %s12134_s19, 1 }
   0x5   : > { %p204_p2 = scmp.lt.s32.totalorder %s12134_s19, 11 }
   0x6   : > { %s15177_s20 = smov (%p24_p0, %s23_s20), 0  ;;  %s15179_s21 = smov (!%p24_p0, %s26_s21), %s12130_s18 }
   0x7   : > { %p205_p3 = pnand %p11203_p1, %p204_p2  ;;  %p28_p4 = scmp.ge.s32.totalorder %s15179_s21, 2 }
   0x8   : > { %s12256_s24 = smul.u32 (!%p205_p3), 7, %s12118_s15  ;;  %p249_p5 = scmp.lt.s32.totalorder (!%p205_p3), %s12122_s16, 1 }
   0x9   : > { %s15181_s21 = smov (%p28_p4, %s15179_s21), 0  ;;  %208 = sbr.rel (%p205_p3) target bundleno = 1212 (0x4bc), region = 36 }
   0xa   : > { %s258_s25 = sadd.s32 (!%p205_p3), 1, %s12118_s15  ;;  %p251_p6 = scmp.lt.s32.totalorder (!%p205_p3), %s12256_s24, 41 }
   0xb   : > { %s259_s26 = smul.u32 (!%p205_p3), 7, %s258_s25  ;;  %s12136_s27 = smov (!%p205_p3), 120  }
   0xc   : > { %s12138_s9 = smov (!%p205_p3), 127   ;;  %s12139_s15 = smov (!%p205_p3), 126  }
   0xd   : > { %p262_p7 = scmp.lt.s32.totalorder (!%p205_p3), %s259_s26, 41  ;;  %s12140_s22 = smov (!%p205_p3), 112  }
   0xe   : > { %v12254_v0 = vld [vmem:[%s15162_s2] sm:$0xf]  ;;  %s15183_s16 = smov (!%p249_p5, %s12122_s16), 1  ;;  %v12137_v2 = vmov 0   ;;  %s12141_s23 = smov 125   ;;  %vm337_vm0 = vcmask 1039360  }
   0xf   : > { %v12260_v1 = vcombine.low %v12254_v0, %v12254_v0  ;;  %s252_s28 = scalar_select %p251_p6, %s12256_s24, 41  ;;  %403 = vmatprep.mubr.bf16.mxu0 %v12137_v2  ;;  %444 = vmatprep.mubr.bf16.mxu1 %v12137_v2  ;;  %vm349_vm1 = vcmask 1043456   ;;  %vm345_vm2 = vcmask 64512   ;;  %v12152_v32 = vmov 0.0  }
  0x10   : > { %s11958_s29 = smul.u32 42, %s15183_s16  ;;  %s15185_s26 = smov (!%p262_p7, %s259_s26), 41  ;;  %12060 = vset.pattern.permute.xlu1 %v12137_v2  ;;  %12061 = vset.pattern.permute.xlu0 %v12137_v2  ;;  %vm12153_vm3 = vmmov 0   ;;  %vm739_vm4 = vcmask 1031168   ;;  %vm959_vm5 = vcmask 1022976   ;;  %vm1179_vm6 = vcmask 1014784  }
  0x11   : > { %319 = vrot.lane.b32.xlu1 %v12260_v1, %s12136_s27  ;;  %s12142_s25 = smov 104   ;;  %s12148_s6 = smov 80   ;;  %vm1399_vm7 = vcmask 1006592   ;;  %vm1619_vm8 = vcmask 998400   ;;  %vm1839_vm9 = vcmask 474112   ;;  %vm2059_vm10 = vcmask 465920  }
  0x12   : > { %s254_s30 = sadd.s32 %s11958_s29, %s252_s28  ;;  %s265_s10 = sadd.s32 %s11958_s29, %s15185_s26  ;;  %vm2279_vm11 = vcmask 457728   ;;  %vm2499_vm12 = vcmask 449536   ;;  %vm2719_vm13 = vcmask 441344   ;;  %vm2939_vm14 = vcmask 433152  }
  0x13   : > { %s11204_s5 = sshll.u32 %s254_s30, 2  ;;  %s11205_s11 = sshll.u32 %s265_s10, 2  ;;  %vm3159_vm15 = vcmask 424960  }
  0x14   : > { %s12272_s8 = scalar_lea.vmem %s15160_s0, %s11204_s5  ;;  %s12301_s14 = scalar_lea.vmem %s15161_s1, %s11205_s11 }
  0x15   : > { %v282_v3 = vld [vmem:[%s12272_s8 + $0x8] sm:$0xff]  ;;  %v281_v5 = vld [vmem:[%s12272_s8] sm:$0xff]  ;;  %v283_v9 = vld [vmem:[%s12272_s8 + $0x10] sm:$0xff]  ;;  %s12143_s26 = smov 124   ;;  %s12144_s28 = smov 96  }
  0x16   : > { %v12279_v4 = vcombine.low %v282_v3, %v282_v3  ;;  %v12282_v6 = vcombine.low %v281_v5, %v281_v5  ;;  %v12284_v7 = vcombine.high %v282_v3, %v282_v3  ;;  %v12287_v8 = vcombine.high %v281_v5, %v281_v5  ;;  %v12292_v10 = vld [vmem:[%s12272_s8 + $0x18] ss:$0 sps:$4 sm:$0xff]   ;;  %v12308_v13 = vld [vmem:[%s12301_s14] sm:$0xff]  ;;  %s12145_s29 = smov 123   ;;  %s12146_s30 = smov 88  }
  0x17   : > { %v12295_v11 = vcombine.low %v283_v9, %v283_v9  ;;  %v12304_v12 = vcombine.high %v283_v9, %v283_v9  ;;  %v12313_v14 = vcombine.low %v12308_v13, %v12308_v13  ;;  %s12147_s5 = smov 122   ;;  %s12149_s7 = smov 58   ;;  %v556_v48 = vsel %vm349_vm1, %v12292_v10, 0 }
  0x18   : > { %325 = vrot.lane.b32.xlu1 %v12279_v4, %s12138_s9  ;;  %321 = vrot.lane.b32.xlu0 %v12282_v6, %s12138_s9  ;;  %s12151_s10 = smov 57   ;;  %v538_v36 = vsel %vm349_vm1, %v12282_v6, 0  ;;  %v544_v41 = vsel %vm349_vm1, %v12279_v4, 0  ;;  %s12154_s11 = smov 64  }
  0x19   : > { %v550_v44 = vsel %vm349_vm1, %v12295_v11, 0  ;;  %s12155_s12 = smov 56   ;;  %s12156_s13 = smov 55  }
  0x1a   : > { %p273_p8 = scmp.lt.s32.totalorder %s12256_s24, 34 }
  0x1c   : > { %327 = vrot.lane.b32.xlu1 %v12284_v7, %s12138_s9  ;;  %323 = vrot.lane.b32.xlu0 %v12287_v8, %s12138_s9  ;;  %s15187_s24 = smov (!%p273_p8, %s12256_s24), 34 }
  0x20   : > { %333 = vrot.lane.b32.xlu1 %v12292_v10, %s12138_s9  ;;  %329 = vrot.lane.b32.xlu0 %v12295_v11, %s12138_s9 }
  0x24   : > { %723 = vrot.lane.b32.xlu1 %v12282_v6, %s12139_s15  ;;  %331 = vrot.lane.b32.xlu0 %v12304_v12, %s12138_s9 }
  0x28   : > { %727 = vrot.lane.b32.xlu1 %v12279_v4, %s12139_s15  ;;  %335 = vrot.lane.b32.xlu0 %v12313_v14, %s12138_s9  ;;  %s12150_s9 = smov 72  }
  0x2c   : > { %731 = vrot.lane.b32.xlu1 %v12295_v11, %s12139_s15  ;;  %725 = vrot.lane.b32.xlu0 %v12287_v8, %s12139_s15 }
  0x30   : > { %733 = vrot.lane.b32.xlu1 %v12304_v12, %s12139_s15  ;;  %729 = vrot.lane.b32.xlu0 %v12284_v7, %s12139_s15 }
  0x34   : > { %737 = vrot.lane.b32.xlu1 %v12313_v14, %s12139_s15  ;;  %721 = vrot.lane.b32.xlu0 %v12260_v1, %s12140_s22 }
  0x38   : > { %945 = vrot.lane.b32.xlu1 %v12287_v8, %s12141_s23  ;;  %735 = vrot.lane.b32.xlu0 %v12292_v10, %s12139_s15  ;;  %s12157_s15 = smov 48  }
  0x3c   : > { %949 = vrot.lane.b32.xlu1 %v12284_v7, %s12141_s23  ;;  %943 = vrot.lane.b32.xlu0 %v12282_v6, %s12141_s23 }
  0x40   : > { %941 = vrot.lane.b32.xlu1 %v12260_v1, %s12142_s25  ;;  %947 = vrot.lane.b32.xlu0 %v12279_v4, %s12141_s23 }
  0x44   : > { %955 = vrot.lane.b32.xlu1 %v12292_v10, %s12141_s23  ;;  %951 = vrot.lane.b32.xlu0 %v12295_v11, %s12141_s23 }
  0x48   : > { %1163 = vrot.lane.b32.xlu1 %v12282_v6, %s12143_s26  ;;  %953 = vrot.lane.b32.xlu0 %v12304_v12, %s12141_s23 }
  0x4c   : > { %1167 = vrot.lane.b32.xlu1 %v12279_v4, %s12143_s26  ;;  %957 = vrot.lane.b32.xlu0 %v12313_v14, %s12141_s23  ;;  %s12158_s23 = smov 54  }
  0x50   : > { %1171 = vrot.lane.b32.xlu1 %v12295_v11, %s12143_s26  ;;  %1165 = vrot.lane.b32.xlu0 %v12287_v8, %s12143_s26 }
  0x54   : > { %1173 = vrot.lane.b32.xlu1 %v12304_v12, %s12143_s26  ;;  %1169 = vrot.lane.b32.xlu0 %v12284_v7, %s12143_s26 }
  0x58   : > { %1177 = vrot.lane.b32.xlu1 %v12313_v14, %s12143_s26  ;;  %1161 = vrot.lane.b32.xlu0 %v12260_v1, %s12144_s28 }
  0x5c   : > { %1385 = vrot.lane.b32.xlu1 %v12287_v8, %s12145_s29  ;;  %1175 = vrot.lane.b32.xlu0 %v12292_v10, %s12143_s26  ;;  %s12159_s26 = smov 40  }
  0x60   : > { %1389 = vrot.lane.b32.xlu1 %v12284_v7, %s12145_s29  ;;  %1383 = vrot.lane.b32.xlu0 %v12282_v6, %s12145_s29 }
  0x64   : > { %1381 = vrot.lane.b32.xlu1 %v12260_v1, %s12146_s30  ;;  %1387 = vrot.lane.b32.xlu0 %v12279_v4, %s12145_s29 }
  0x68   : > { %1395 = vrot.lane.b32.xlu1 %v12292_v10, %s12145_s29  ;;  %1391 = vrot.lane.b32.xlu0 %v12295_v11, %s12145_s29 }
  0x6c   : > { %1603 = vrot.lane.b32.xlu1 %v12282_v6, %s12147_s5  ;;  %1393 = vrot.lane.b32.xlu0 %v12304_v12, %s12145_s29 }
  0x70   : > { %1607 = vrot.lane.b32.xlu1 %v12279_v4, %s12147_s5  ;;  %1397 = vrot.lane.b32.xlu0 %v12313_v14, %s12145_s29  ;;  %s12160_s29 = smov 53  }
  0x74   : > { %1611 = vrot.lane.b32.xlu1 %v12295_v11, %s12147_s5  ;;  %1605 = vrot.lane.b32.xlu0 %v12287_v8, %s12147_s5 }
  0x78   : > { %1613 = vrot.lane.b32.xlu1 %v12304_v12, %s12147_s5  ;;  %1609 = vrot.lane.b32.xlu0 %v12284_v7, %s12147_s5 }
  0x7c   : > { %1617 = vrot.lane.b32.xlu1 %v12313_v14, %s12147_s5  ;;  %1601 = vrot.lane.b32.xlu0 %v12260_v1, %s12148_s6 }
  0x80   : > { %1825 = vrot.lane.b32.xlu1 %v12287_v8, %s12149_s7  ;;  %1615 = vrot.lane.b32.xlu0 %v12292_v10, %s12147_s5  ;;  %s12161_s5 = smov 32  }
  0x83   : > { %v12370_v15 = vpop.permute.xlu1 %319 }
  0x84   : > { %1829 = vrot.lane.b32.xlu1 %v12284_v7, %s12149_s7  ;;  %1823 = vrot.lane.b32.xlu0 %v12282_v6, %s12149_s7 }
  0x88   : > { %1821 = vrot.lane.b32.xlu1 %v12260_v1, %s12150_s9  ;;  %1827 = vrot.lane.b32.xlu0 %v12279_v4, %s12149_s7 }
  0x8a   : > { %v326_v16 = vpop.permute.xlu1 %325  ;;  %v322_v17 = vpop.permute.xlu0 %321 }
  0x8c   : > { %1835 = vrot.lane.b32.xlu1 %v12292_v10, %s12149_s7  ;;  %1831 = vrot.lane.b32.xlu0 %v12295_v11, %s12149_s7 }
  0x8e   : > { %v328_v18 = vpop.permute.xlu1 %327  ;;  %v324_v19 = vpop.permute.xlu0 %323 }
  0x8f   : > { %v339_v20 = vsel %vm337_vm0, %v324_v19, %v326_v16  ;;  %v338_v21 = vsel %vm337_vm0, %v322_v17, %v324_v19  ;;  %v340_v25 = vsel %vm337_vm0, %v326_v16, %v328_v18 }
  0x90   : > { %2043 = vrot.lane.b32.xlu1 %v12282_v6, %s12151_s10  ;;  %1833 = vrot.lane.b32.xlu0 %v12304_v12, %s12149_s7  ;;  %v351_v22 = vsel %vm349_vm1, %v338_v21, 0  ;;  %v357_v27 = vsel %vm349_vm1, %v340_v25, 0 }
  0x91   : > { %11219 = vmatprep.subr.msk.bf16.mxu0 %vm349_vm1, %v339_v20 }
  0x92   : > { %386 = vmatpush1.bf16.msra.mxu0 %v351_v22  ;;  %v334_v23 = vpop.permute.xlu1 %333  ;;  %v330_v24 = vpop.permute.xlu0 %329 }
  0x93   : > { %v341_v26 = vsel %vm337_vm0, %v328_v18, %v330_v24 }
  0x94   : > { %2047 = vrot.lane.b32.xlu1 %v12279_v4, %s12151_s10  ;;  %1837 = vrot.lane.b32.xlu0 %v12313_v14, %s12149_s7  ;;  %s12162_s7 = smov 52  }
  0x95   : > { %11220 = vmatmul.mubr.msk.bf16.vlgmr.msra.gmra.mxu0 %vm345_vm2, %v12370_v15  ;;  %11221 = vmatprep.subr.msk.bf16.mxu1 %vm349_vm1, %v341_v26 }
  0x96   : > { %v724_v28 = vpop.permute.xlu1 %723  ;;  %485 = vmatprep.mubr.bf16.mxu0 %v12137_v2  ;;  %427 = vmatpush1.bf16.msra.mxu1 %v357_v27  ;;  %v332_v29 = vpop.permute.xlu0 %331 }
  0x97   : > { %v342_v30 = vsel %vm337_vm0, %v330_v24, %v332_v29  ;;  %v343_v31 = vsel %vm337_vm0, %v332_v29, %v334_v23  ;;  %11664 = vmatprep.subr.bf16.mxu1 %v12152_v32 }
  0x98   : > { %2051 = vrot.lane.b32.xlu1 %v12295_v11, %s12151_s10  ;;  %2045 = vrot.lane.b32.xlu0 %v12287_v8, %s12151_s10  ;;  %v363_v33 = vsel %vm349_vm1, %v342_v30, 0 }
  0x99   : > { %11223 = vmatprep.subr.msk.bf16.mxu0 %vm349_vm1, %v343_v31  ;;  %11222 = vmatmul.mubr.msk.bf16.vlgmr.msra.gmra.mxu1 %vm345_vm2, %v12370_v15 }
  0x9a   : > { %468 = vmatpush1.bf16.msra.mxu0 %v363_v33  ;;  %v728_v34 = vpop.permute.xlu1 %727  ;;  %v336_v35 = vpop.permute.xlu0 %335  ;;  %11666 = vmatprep.mubr.msk.bf16.mxu1 %vm12153_vm3, %v12152_v32 }
  0x9b   : > { %11226 = vmatprep.subr.msk.bf16.mxu0 %vm349_vm1, %v12287_v8  ;;  %v344_v37 = vsel %vm337_vm0, %v334_v23, %v336_v35  ;;  %vm3379_vm0 = vcmask 949248  }
  0x9c   : > { %2053 = vrot.lane.b32.xlu1 %v12304_v12, %s12151_s10  ;;  %v369_v38 = vsel %vm349_vm1, %v344_v37, 0  ;;  %2049 = vrot.lane.b32.xlu0 %v12284_v7, %s12151_s10 }
  0x9d   : > { %11224 = vmatmul.mubr.msk.bf16.vlgmr.msra.gmra.mxu0 %vm345_vm2, %v12370_v15  ;;  %11665 = vmatpush3.bf16.msra.mxu1 %v369_v38 }
  0x9e   : > { %v732_v39 = vpop.permute.xlu1 %731  ;;  %573 = vmatpush1.bf16.msra.mxu0 %v538_v36  ;;  %v726_v40 = vpop.permute.xlu0 %725  ;;  %590 = vmatprep.mubr.bf16.mxu0 %v12137_v2 }
  0x9f   : > { %11228 = vmatprep.subr.msk.bf16.mxu1 %vm349_vm1, %v12284_v7  ;;  %11230 = vmatprep.subr.msk.bf16.mxu0 %vm349_vm1, %v12304_v12  ;;  %v741_v45 = vsel %vm739_vm4, %v726_v40, %v728_v34  ;;  %v740_v49 = vsel %vm739_vm4, %v724_v28, %v726_v40 }
  0xa0   : > { %2057 = vrot.lane.b32.xlu1 %v12313_v14, %s12151_s10  ;;  %2041 = vrot.lane.b32.xlu0 %v12260_v1, %s12154_s11  ;;  %v751_v54 = vsel %vm349_vm1, %v740_v49, 0 }
  0xa1   : > { %11667 = vmatmul.mubr.msk.bf16.vlgmr.msra.gmra.mxu1 %vm345_vm2, %v12370_v15 }
  0xa2   : > { %v734_v42 = vpop.permute.xlu1 %733  ;;  %v730_v43 = vpop.permute.xlu0 %729  ;;  %614 = vmatpush1.bf16.msra.mxu1 %v544_v41  ;;  %631 = vmatprep.mubr.bf16.mxu1 %v12137_v2 }
  0xa3   : > { %11670 = vmatprep.subr.bf16.mxu1 %v12152_v32  ;;  %v743_v51 = vsel %vm739_vm4, %v730_v43, %v732_v39  ;;  %v742_v56 = vsel %vm739_vm4, %v728_v34, %v730_v43  ;;  %v744_v58 = vsel %vm739_vm4, %v732_v39, %v734_v42 }
  0xa4   : > { %2265 = vrot.lane.b32.xlu1 %v12287_v8, %s12155_s12  ;;  %2055 = vrot.lane.b32.xlu0 %v12292_v10, %s12151_s10  ;;  %v757_v59 = vsel %vm349_vm1, %v742_v56, 0  ;;  %v763_v63 = vsel %vm349_vm1, %v744_v58, 0  ;;  %s15168_s10 = smov 24  }
  0xa5   : > { %11227 = vmatmul.mubr.msk.bf16.vlgmr.msra.gmra.mxu0 %vm345_vm2, %v12254_v0 }
  0xa6   : > { %655 = vmatpush1.bf16.msra.mxu0 %v550_v44  ;;  %v738_v46 = vpop.permute.xlu1 %737  ;;  %672 = vmatprep.mubr.bf16.mxu0 %v12137_v2  ;;  %v12452_v47 = vpop.permute.xlu0 %721 }
  0xa7   : > { %11233 = vmatprep.subr.msk.bf16.mxu0 %vm349_vm1, %v741_v45 }
  0xa8   : > { %2269 = vrot.lane.b32.xlu1 %v12284_v7, %s12155_s12  ;;  %2263 = vrot.lane.b32.xlu0 %v12282_v6, %s12155_s12 }
  0xa9   : > { %11229 = vmatmul.mubr.msk.bf16.vlgmr.msra.gmra.mxu1 %vm345_vm2, %v12254_v0 }
  0xaa   : > { %v946_v50 = vpop.permute.xlu1 %945  ;;  %11671 = vmatpush3.bf16.msra.mxu1 %v556_v48  ;;  %v736_v52 = vpop.permute.xlu0 %735  ;;  %11672 = vmatprep.mubr.msk.bf16.mxu1 %vm12153_vm3, %v12152_v32 }
  0xab   : > { %11235 = vmatprep.subr.msk.bf16.mxu1 %vm349_vm1, %v743_v51  ;;  %v745_v53 = vsel %vm739_vm4, %v734_v42, %v736_v52  ;;  %v746_v3 = vsel %vm739_vm4, %v736_v52, %v738_v46  ;;  %vm3599_vm4 = vcmask 941056  }
  0xac   : > { %2261 = vrot.lane.b32.xlu1 %v12260_v1, %s12155_s12  ;;  %2267 = vrot.lane.b32.xlu0 %v12279_v4, %s12155_s12  ;;  %v769_v16 = vsel %vm349_vm1, %v746_v3, 0 }
  0xad   : > { %11231 = vmatmul.mubr.msk.bf16.vlgmr.msra.gmra.mxu0 %vm345_vm2, %v12254_v0 }
  0xae   : > { %786 = vmatpush1.bf16.msra.mxu0 %v751_v54  ;;  %v950_v55 = vpop.permute.xlu1 %949  ;;  %803 = vmatprep.mubr.bf16.mxu0 %v12137_v2  ;;  %v944_v57 = vpop.permute.xlu0 %943 }
  0xaf   : > { %11237 = vmatprep.subr.msk.bf16.mxu0 %vm349_vm1, %v745_v53  ;;  %v960_v15 = vsel %vm959_vm5, %v944_v57, %v946_v50 }
  0xb0   : > { %2275 = vrot.lane.b32.xlu1 %v12292_v10, %s12155_s12  ;;  %2271 = vrot.lane.b32.xlu0 %v12295_v11, %s12155_s12  ;;  %v971_v20 = vsel %vm349_vm1, %v960_v15, 0 }
  0xb1   : > { %11673 = vmatmul.mubr.msk.bf16.vlgmr.msra.gmra.mxu1 %vm345_vm2, %v12254_v0 }
  0xb2   : > { %v12486_v60 = vpop.permute.xlu1 %941  ;;  %827 = vmatpush1.bf16.msra.mxu1 %v757_v59  ;;  %v948_v61 = vpop.permute.xlu0 %947  ;;  %844 = vmatprep.mubr.bf16.mxu1 %v12137_v2 }
  0xb3   : > { %v961_v62 = vsel %vm959_vm5, %v946_v50, %v948_v61  ;;  %11676 = vmatprep.subr.bf16.mxu1 %v12152_v32  ;;  %v962_v22 = vsel %vm959_vm5, %v948_v61, %v950_v55 }
  0xb4   : > { %2483 = vrot.lane.b32.xlu1 %v12282_v6, %s12156_s13  ;;  %2273 = vrot.lane.b32.xlu0 %v12304_v12, %s12155_s12  ;;  %v977_v25 = vsel %vm349_vm1, %v962_v22, 0 }
  0xb5   : > { %11234 = vmatmul.mubr.msk.bf16.vlgmr.msra.gmra.mxu0 %vm345_vm2, %v12452_v47 }
  0xb6   : > { %868 = vmatpush1.bf16.msra.mxu0 %v763_v63  ;;  %v956_v0 = vpop.permute.xlu1 %955  ;;  %885 = vmatprep.mubr.bf16.mxu0 %v12137_v2  ;;  %v952_v5 = vpop.permute.xlu0 %951 }
  0xb7   : > { %11240 = vmatprep.subr.msk.bf16.mxu0 %vm349_vm1, %v961_v62  ;;  %v963_v9 = vsel %vm959_vm5, %v950_v55, %v952_v5 }
  0xb8   : > { %2487 = vrot.lane.b32.xlu1 %v12279_v4, %s12156_s13  ;;  %2277 = vrot.lane.b32.xlu0 %v12313_v14, %s12155_s12 }
  0xb9   : > { %11236 = vmatmul.mubr.msk.bf16.vlgmr.msra.gmra.mxu1 %vm345_vm2, %v12452_v47 }
  0xba   : > { %v1164_v17 = vpop.permute.xlu1 %1163  ;;  %11677 = vmatpush3.bf16.msra.mxu1 %v769_v16  ;;  %v954_v18 = vpop.permute.xlu0 %953  ;;  %11678 = vmatprep.mubr.msk.bf16.mxu1 %vm12153_vm3, %v12152_v32 }
  0xbb   : > { %11242 = vmatprep.subr.msk.bf16.mxu1 %vm349_vm1, %v963_v9  ;;  %v965_v19 = vsel %vm959_vm5, %v954_v18, %v956_v0  ;;  %v964_v24 = vsel %vm959_vm5, %v952_v5, %v954_v18 }
  0xbc   : > { %2491 = vrot.lane.b32.xlu1 %v12295_v11, %s12156_s13  ;;  %2485 = vrot.lane.b32.xlu0 %v12287_v8, %s12156_s13  ;;  %v983_v29 = vsel %vm349_vm1, %v964_v24, 0 }
  0xbd   : > { %11238 = vmatmul.mubr.msk.bf16.vlgmr.msra.gmra.mxu0 %vm345_vm2, %v12452_v47 }
  0xbe   : > { %1006 = vmatpush1.bf16.msra.mxu0 %v971_v20  ;;  %v1168_v21 = vpop.permute.xlu1 %1167  ;;  %1023 = vmatprep.mubr.bf16.mxu0 %v12137_v2  ;;  %v958_v23 = vpop.permute.xlu0 %957 }
  0xbf   : > { %11244 = vmatprep.subr.msk.bf16.mxu0 %vm349_vm1, %v965_v19  ;;  %v966_v31 = vsel %vm959_vm5, %v956_v0, %v958_v23  ;;  %vm3818_vm5 = vcmask 932864  }
  0xc0   : > { %2493 = vrot.lane.b32.xlu1 %v12304_v12, %s12156_s13  ;;  %2489 = vrot.lane.b32.xlu0 %v12284_v7, %s12156_s13  ;;  %v989_v35 = vsel %vm349_vm1, %v966_v31, 0 }
  0xc1   : > { %11679 = vmatmul.mubr.msk.bf16.vlgmr.msra.gmra.mxu1 %vm345_vm2, %v12452_v47 }
  0xc2   : > { %v1172_v26 = vpop.permute.xlu1 %1171  ;;  %1047 = vmatpush1.bf16.msra.mxu1 %v977_v25  ;;  %v1166_v27 = vpop.permute.xlu0 %1165  ;;  %1064 = vmatprep.mubr.bf16.mxu1 %v12137_v2 }
  0xc3   : > { %v1181_v28 = vsel %vm1179_vm6, %v1166_v27, %v1168_v21  ;;  %11682 = vmatprep.subr.bf16.mxu1 %v12152_v32  ;;  %v1180_v36 = vsel %vm1179_vm6, %v1164_v17, %v1166_v27 }
  0xc4   : > { %2497 = vrot.lane.b32.xlu1 %v12313_v14, %s12156_s13  ;;  %2481 = vrot.lane.b32.xlu0 %v12260_v1, %s12157_s15  ;;  %v1191_v39 = vsel %vm349_vm1, %v1180_v36, 0 }
  0xc5   : > { %11241 = vmatmul.mubr.msk.bf16.vlgmr.msra.gmra.mxu0 %vm345_vm2, %v12486_v60 }
  0xc6   : > { %1088 = vmatpush1.bf16.msra.mxu0 %v983_v29  ;;  %v1174_v30 = vpop.permute.xlu1 %1173  ;;  %1105 = vmatprep.mubr.bf16.mxu0 %v12137_v2  ;;  %v1170_v33 = vpop.permute.xlu0 %1169 }
  0xc7   : > { %11247 = vmatprep.subr.msk.bf16.mxu0 %vm349_vm1, %v1181_v28  ;;  %v1183_v34 = vsel %vm1179_vm6, %v1170_v33, %v1172_v26  ;;  %v1182_v41 = vsel %vm1179_vm6, %v1168_v21, %v1170_v33  ;;  %v1184_v44 = vsel %vm1179_vm6, %v1172_v26, %v1174_v30 }
  0xc8   : > { %2705 = vrot.lane.b32.xlu1 %v12287_v8, %s12158_s23  ;;  %2495 = vrot.lane.b32.xlu0 %v12292_v10, %s12156_s13  ;;  %v1197_v45 = vsel %vm349_vm1, %v1182_v41, 0  ;;  %v1203_v48 = vsel %vm349_vm1, %v1184_v44, 0  ;;  %s12164_s13 = smov 116  }
  0xc9   : > { %11243 = vmatmul.mubr.msk.bf16.vlgmr.msra.gmra.mxu1 %vm345_vm2, %v12486_v60 }
  0xca   : > { %v1178_v37 = vpop.permute.xlu1 %1177  ;;  %11683 = vmatpush3.bf16.msra.mxu1 %v989_v35  ;;  %v12554_v38 = vpop.permute.xlu0 %1161  ;;  %11684 = vmatprep.mubr.msk.bf16.mxu1 %vm12153_vm3, %v12152_v32 }
  0xcb   : > { %11249 = vmatprep.subr.msk.bf16.mxu1 %vm349_vm1, %v1183_v34 }
  0xcc   : > { %2709 = vrot.lane.b32.xlu1 %v12284_v7, %s12158_s23  ;;  %2703 = vrot.lane.b32.xlu0 %v12282_v6, %s12158_s23 }
  0xcd   : > { %11245 = vmatmul.mubr.msk.bf16.vlgmr.msra.gmra.mxu0 %vm345_vm2, %v12486_v60 }
  0xce   : > { %1226 = vmatpush1.bf16.msra.mxu0 %v1191_v39  ;;  %v1386_v40 = vpop.permute.xlu1 %1385  ;;  %1243 = vmatprep.mubr.bf16.mxu0 %v12137_v2  ;;  %v1176_v42 = vpop.permute.xlu0 %1175 }
  0xcf   : > { %v1185_v43 = vsel %vm1179_vm6, %v1174_v30, %v1176_v42  ;;  %v1186_v50 = vsel %vm1179_vm6, %v1176_v42, %v1178_v37  ;;  %vm4041_vm6 = vcmask 924672  }
  0xd0   : > { %2701 = vrot.lane.b32.xlu1 %v12260_v1, %s12159_s26  ;;  %2707 = vrot.lane.b32.xlu0 %v12279_v4, %s12158_s23  ;;  %v1209_v54 = vsel %vm349_vm1, %v1186_v50, 0 }
  0xd1   : > { %11251 = vmatprep.subr.msk.bf16.mxu0 %vm349_vm1, %v1185_v43  ;;  %11685 = vmatmul.mubr.msk.bf16.vlgmr.msra.gmra.mxu1 %vm345_vm2, %v12486_v60 }
  0xd2   : > { %v1390_v46 = vpop.permute.xlu1 %1389  ;;  %1267 = vmatpush1.bf16.msra.mxu1 %v1197_v45  ;;  %v1384_v47 = vpop.permute.xlu0 %1383  ;;  %1284 = vmatprep.mubr.bf16.mxu1 %v12137_v2 }
  0xd3   : > { %11688 = vmatprep.subr.bf16.mxu1 %v12152_v32  ;;  %v1400_v53 = vsel %vm1399_vm7, %v1384_v47, %v1386_v40 }
  0xd4   : > { %2715 = vrot.lane.b32.xlu1 %v12292_v10, %s12158_s23  ;;  %2711 = vrot.lane.b32.xlu0 %v12295_v11, %s12158_s23  ;;  %v1411_v58 = vsel %vm349_vm1, %v1400_v53, 0 }
  0xd5   : > { %11248 = vmatmul.mubr.msk.bf16.vlgmr.msra.gmra.mxu0 %vm345_vm2, %v12554_v38 }
  0xd6   : > { %1308 = vmatpush1.bf16.msra.mxu0 %v1203_v48  ;;  %v12587_v49 = vpop.permute.xlu1 %1381  ;;  %1325 = vmatprep.mubr.bf16.mxu0 %v12137_v2  ;;  %v1388_v51 = vpop.permute.xlu0 %1387 }
  0xd7   : > { %v1401_v52 = vsel %vm1399_vm7, %v1386_v40, %v1388_v51  ;;  %v1402_v60 = vsel %vm1399_vm7, %v1388_v51, %v1390_v46 }
  0xd8   : > { %2923 = vrot.lane.b32.xlu1 %v12282_v6, %s12160_s29  ;;  %2713 = vrot.lane.b32.xlu0 %v12304_v12, %s12158_s23  ;;  %v1417_v0 = vsel %vm349_vm1, %v1402_v60, 0 }
  0xd9   : > { %11254 = vmatprep.subr.msk.bf16.mxu0 %vm349_vm1, %v1401_v52  ;;  %11250 = vmatmul.mubr.msk.bf16.vlgmr.msra.gmra.mxu1 %vm345_vm2, %v12554_v38 }
  0xda   : > { %v1396_v55 = vpop.permute.xlu1 %1395  ;;  %11689 = vmatpush3.bf16.msra.mxu1 %v1209_v54  ;;  %v1392_v56 = vpop.permute.xlu0 %1391  ;;  %11690 = vmatprep.mubr.msk.bf16.mxu1 %vm12153_vm3, %v12152_v32 }
  0xdb   : > { %v1403_v57 = vsel %vm1399_vm7, %v1390_v46, %v1392_v56 }
  0xdc   : > { %2927 = vrot.lane.b32.xlu1 %v12279_v4, %s12160_s29  ;;  %2717 = vrot.lane.b32.xlu0 %v12313_v14, %s12158_s23  ;;  %s15167_s23 = smov 16  }
  0xdd   : > { %11252 = vmatmul.mubr.msk.bf16.vlgmr.msra.gmra.mxu0 %vm345_vm2, %v12554_v38  ;;  %11256 = vmatprep.subr.msk.bf16.mxu1 %vm349_vm1, %v1403_v57 }
  0xde   : > { %1446 = vmatpush1.bf16.msra.mxu0 %v1411_v58  ;;  %v1604_v59 = vpop.permute.xlu1 %1603  ;;  %v1394_v61 = vpop.permute.xlu0 %1393  ;;  %1463 = vmatprep.mubr.bf16.mxu0 %v12137_v2 }
  0xdf   : > { %v1405_v62 = vsel %vm1399_vm7, %v1394_v61, %v1396_v55  ;;  %v1404_v63 = vsel %vm1399_vm7, %v1392_v56, %v1394_v61  ;;  %v12725_v56 = vcombine.high %v12308_v13, %v12308_v13 }
  0xe0   : > { %2931 = vrot.lane.b32.xlu1 %v12295_v11, %s12160_s29  ;;  %2925 = vrot.lane.b32.xlu0 %v12287_v8, %s12160_s29  ;;  %v1423_v9 = vsel %vm349_vm1, %v1404_v63, 0 }
  0xe1   : > { %11258 = vmatprep.subr.msk.bf16.mxu0 %vm349_vm1, %v1405_v62  ;;  %11691 = vmatmul.mubr.msk.bf16.vlgmr.msra.gmra.mxu1 %vm345_vm2, %v12554_v38 }
  0xe2   : > { %v1608_v3 = vpop.permute.xlu1 %1607  ;;  %1487 = vmatpush1.bf16.msra.mxu1 %v1417_v0  ;;  %v1398_v5 = vpop.permute.xlu0 %1397  ;;  %1504 = vmatprep.mubr.bf16.mxu1 %v12137_v2 }
  0xe3   : > { %11694 = vmatprep.subr.bf16.mxu1 %v12152_v32  ;;  %v1406_v16 = vsel %vm1399_vm7, %v1396_v55, %v1398_v5  ;;  %vm4261_vm7 = vcmask 916480  }
  0xe4   : > { %2933 = vrot.lane.b32.xlu1 %v12304_v12, %s12160_s29  ;;  %2929 = vrot.lane.b32.xlu0 %v12284_v7, %s12160_s29  ;;  %v1429_v19 = vsel %vm349_vm1, %v1406_v16, 0 }
  0xe5   : > { %11255 = vmatmul.mubr.msk.bf16.vlgmr.msra.gmra.mxu0 %vm345_vm2, %v12587_v49 }
  0xe6   : > { %1528 = vmatpush1.bf16.msra.mxu0 %v1423_v9  ;;  %v1612_v15 = vpop.permute.xlu1 %1611  ;;  %1545 = vmatprep.mubr.bf16.mxu0 %v12137_v2  ;;  %v1606_v17 = vpop.permute.xlu0 %1605 }
  0xe7   : > { %v1621_v18 = vsel %vm1619_vm8, %v1606_v17, %v1608_v3  ;;  %v1620_v20 = vsel %vm1619_vm8, %v1604_v59, %v1606_v17 }
  0xe8   : > { %2937 = vrot.lane.b32.xlu1 %v12313_v14, %s12160_s29  ;;  %2921 = vrot.lane.b32.xlu0 %v12260_v1, %s12161_s5  ;;  %v1631_v24 = vsel %vm349_vm1, %v1620_v20, 0 }
  0xe9   : > { %11261 = vmatprep.subr.msk.bf16.mxu0 %vm349_vm1, %v1621_v18  ;;  %11257 = vmatmul.mubr.msk.bf16.vlgmr.msra.gmra.mxu1 %vm345_vm2, %v12587_v49 }
  0xea   : > { %v1614_v21 = vpop.permute.xlu1 %1613  ;;  %11695 = vmatpush3.bf16.msra.mxu1 %v1429_v19  ;;  %v1610_v22 = vpop.permute.xlu0 %1609  ;;  %11696 = vmatprep.mubr.msk.bf16.mxu1 %vm12153_vm3, %v12152_v32 }
  0xeb   : > { %v1623_v23 = vsel %vm1619_vm8, %v1610_v22, %v1612_v15  ;;  %v1622_v26 = vsel %vm1619_vm8, %v1608_v3, %v1610_v22  ;;  %v1624_v30 = vsel %vm1619_vm8, %v1612_v15, %v1614_v21 }
  0xec   : > { %3145 = vrot.lane.b32.xlu1 %v12287_v8, %s12162_s7  ;;  %2935 = vrot.lane.b32.xlu0 %v12292_v10, %s12160_s29  ;;  %v1637_v28 = vsel %vm349_vm1, %v1622_v26, 0  ;;  %s12166_s29 = smov 115  }
  0xed   : > { %11259 = vmatmul.mubr.msk.bf16.vlgmr.msra.gmra.mxu0 %vm345_vm2, %v12587_v49  ;;  %11263 = vmatprep.subr.msk.bf16.mxu1 %vm349_vm1, %v1623_v23 }
  0xee   : > { %1666 = vmatpush1.bf16.msra.mxu0 %v1631_v24  ;;  %v1618_v25 = vpop.permute.xlu1 %1617  ;;  %v1602_v27 = vpop.permute.xlu0 %1601  ;;  %1683 = vmatprep.mubr.bf16.mxu0 %v12137_v2 }
  0xf0   : > { %3149 = vrot.lane.b32.xlu1 %v12284_v7, %s12162_s7  ;;  %3143 = vrot.lane.b32.xlu0 %v12282_v6, %s12162_s7  ;;  %v1643_v6 = vsel %vm349_vm1, %v1624_v30, 0 }
  0xf1   : > { %11697 = vmatmul.mubr.msk.bf16.vlgmr.msra.gmra.mxu1 %vm345_vm2, %v12587_v49 }
  0xf2   : > { %v1826_v29 = vpop.permute.xlu1 %1825  ;;  %1707 = vmatpush1.bf16.msra.mxu1 %v1637_v28  ;;  %v1616_v31 = vpop.permute.xlu0 %1615  ;;  %1724 = vmatprep.mubr.bf16.mxu1 %v12137_v2 }
  0xf3   : > { %v1625_v33 = vsel %vm1619_vm8, %v1614_v21, %v1616_v31  ;;  %11700 = vmatprep.subr.bf16.mxu1 %v12152_v32  ;;  %v1626_v35 = vsel %vm1619_vm8, %v1616_v31, %v1618_v25  ;;  %vm4481_vm8 = vcmask 908288  }
  0xf4   : > { %3141 = vrot.lane.b32.xlu1 %v12260_v1, %s15168_s10  ;;  %3147 = vrot.lane.b32.xlu0 %v12279_v4, %s12162_s7  ;;  %v1649_v37 = vsel %vm349_vm1, %v1626_v35, 0 }
  0xf5   : > { %11262 = vmatmul.mubr.msk.bf16.vlgmr.msra.gmra.mxu0 %vm345_vm2, %v1602_v27  ;;  %11265 = vmatprep.subr.msk.bf16.mxu0 %vm349_vm1, %v1625_v33 }
  0xf6   : > { %v1830_v34 = vpop.permute.xlu1 %1829  ;;  %1765 = vmatprep.mubr.bf16.mxu0 %v12137_v2  ;;  %1748 = vmatpush1.bf16.msra.mxu0 %v1643_v6  ;;  %v1824_v36 = vpop.permute.xlu0 %1823 }
  0xf7   : > { %v1840_v39 = vsel %vm1839_vm9, %v1824_v36, %v1826_v29 }
  0xf8   : > { %3155 = vrot.lane.b32.xlu1 %v12292_v10, %s12162_s7  ;;  %3151 = vrot.lane.b32.xlu0 %v12295_v11, %s12162_s7  ;;  %v1851_v42 = vsel %vm349_vm1, %v1840_v39, 0 }
  0xf9   : > { %11264 = vmatmul.mubr.msk.bf16.vlgmr.msra.gmra.mxu1 %vm345_vm2, %v1602_v27 }
  0xfa   : > { %v12684_v38 = vpop.permute.xlu1 %1821  ;;  %11701 = vmatpush3.bf16.msra.mxu1 %v1649_v37  ;;  %v1828_v40 = vpop.permute.xlu0 %1827  ;;  %11702 = vmatprep.mubr.msk.bf16.mxu1 %vm12153_vm3, %v12152_v32 }
  0xfb   : > { %v1841_v41 = vsel %vm1839_vm9, %v1826_v29, %v1828_v40  ;;  %v1842_v44 = vsel %vm1839_vm9, %v1828_v40, %v1830_v34 }
  0xfc   : > { %3363 = vrot.lane.b32.xlu1 %v12287_v8, %s12164_s13  ;;  %3153 = vrot.lane.b32.xlu0 %v12304_v12, %s12162_s7  ;;  %v1857_v47 = vsel %vm349_vm1, %v1842_v44, 0 }
  0xfd   : > { %11266 = vmatmul.mubr.msk.bf16.vlgmr.msra.gmra.mxu0 %vm345_vm2, %v1602_v27  ;;  %11268 = vmatprep.subr.msk.bf16.mxu0 %vm349_vm1, %v1841_v41 }
  0xfe   : > { %v1836_v43 = vpop.permute.xlu1 %1835  ;;  %1903 = vmatprep.mubr.bf16.mxu0 %v12137_v2  ;;  %1886 = vmatpush1.bf16.msra.mxu0 %v1851_v42  ;;  %v1832_v45 = vpop.permute.xlu0 %1831 }
  0xff   : > { %v1843_v46 = vsel %vm1839_vm9, %v1830_v34, %v1832_v45 }
 0x100   : > { %3367 = vrot.lane.b32.xlu1 %v12284_v7, %s12164_s13  ;;  %3157 = vrot.lane.b32.xlu0 %v12313_v14, %s12162_s7  ;;  %s15165_s7 = smov 8  }
 0x101   : > { %11270 = vmatprep.subr.msk.bf16.mxu1 %vm349_vm1, %v1843_v46  ;;  %11703 = vmatmul.mubr.msk.bf16.vlgmr.msra.gmra.mxu1 %vm345_vm2, %v1602_v27  ;;  %v12827_v46 = vld [vmem:[%s12272_s8 + $0x18] ss:$0 sps:$4 sm:$0xff]  }
 0x102   : > { %v2044_v48 = vpop.permute.xlu1 %2043  ;;  %1927 = vmatpush1.bf16.msra.mxu1 %v1857_v47  ;;  %v1834_v49 = vpop.permute.xlu0 %1833  ;;  %1944 = vmatprep.mubr.bf16.mxu1 %v12137_v2 }
 0x103   : > { %v1844_v50 = vsel %vm1839_vm9, %v1832_v45, %v1834_v49  ;;  %v1845_v51 = vsel %vm1839_vm9, %v1834_v49, %v1836_v43  ;;  %11706 = vmatprep.subr.bf16.mxu1 %v12152_v32 }
 0x104   : > { %3371 = vrot.lane.b32.xlu1 %v12304_v12, %s12164_s13  ;;  %3365 = vrot.lane.b32.xlu0 %v12279_v4, %s12164_s13  ;;  %v1863_v52 = vsel %vm349_vm1, %v1844_v50, 0 }
 0x105   : > { %11269 = vmatmul.mubr.msk.bf16.vlgmr.msra.gmra.mxu0 %vm345_vm2, %v12684_v38  ;;  %11272 = vmatprep.subr.msk.bf16.mxu0 %vm349_vm1, %v1845_v51 }
 0x106   : > { %v2048_v53 = vpop.permute.xlu1 %2047  ;;  %1985 = vmatprep.mubr.bf16.mxu0 %v12137_v2  ;;  %1968 = vmatpush1.bf16.msra.mxu0 %v1863_v52  ;;  %v1838_v54 = vpop.permute.xlu0 %1837 }
 0x107   : > { %v1846_v55 = vsel %vm1839_vm9, %v1836_v43, %v1838_v54  ;;  %vm4701_vm9 = vcmask 900096  }
 0x108   : > { %3373 = vrot.lane.b32.xlu1 %v12292_v10, %s12164_s13  ;;  %v1869_v57 = vsel %vm349_vm1, %v1846_v55, 0  ;;  %3369 = vrot.lane.b32.xlu0 %v12295_v11, %s12164_s13 }
 0x109   : > { %11271 = vmatmul.mubr.msk.bf16.vlgmr.msra.gmra.mxu1 %vm345_vm2, %v12684_v38 }
 0x10a   : > { %v2052_v58 = vpop.permute.xlu1 %2051  ;;  %11707 = vmatpush3.bf16.msra.mxu1 %v1869_v57  ;;  %v2046_v59 = vpop.permute.xlu0 %2045  ;;  %11708 = vmatprep.mubr.msk.bf16.mxu1 %vm12153_vm3, %v12152_v32 }
 0x10b   : > { %v2060_v60 = vsel %vm2059_vm10, %v2044_v48, %v2046_v59  ;;  %v2061_v13 = vsel %vm2059_vm10, %v2046_v59, %v2048_v53 }
 0x10c   : > { %3377 = vrot.lane.b32.xlu1 %v12725_v56, %s12164_s13  ;;  %3361 = vrot.lane.b32.xlu0 %v12260_v1, %s15167_s23  ;;  %v2071_v61 = vsel %vm349_vm1, %v2060_v60, 0 }
 0x10d   : > { %11273 = vmatmul.mubr.msk.bf16.vlgmr.msra.gmra.mxu0 %vm345_vm2, %v12684_v38  ;;  %11275 = vmatprep.subr.msk.bf16.mxu0 %vm349_vm1, %v2061_v13 }
 0x10e   : > { %v2054_v62 = vpop.permute.xlu1 %2053  ;;  %2123 = vmatprep.mubr.bf16.mxu0 %v12137_v2  ;;  %2106 = vmatpush1.bf16.msra.mxu0 %v2071_v61  ;;  %v2050_v63 = vpop.permute.xlu0 %2049 }
 0x10f   : > { %v2062_v0 = vsel %vm2059_vm10, %v2048_v53, %v2050_v63  ;;  %v2063_v3 = vsel %vm2059_vm10, %v2050_v63, %v2052_v58  ;;  %v2064_v16 = vsel %vm2059_vm10, %v2052_v58, %v2054_v62  ;;  %v12855_v58 = vld [vmem:[%s15162_s2 + $0x4] sm:$0xf] }
 0x110   : > { %3585 = vrot.lane.b32.xlu1 %v12279_v4, %s12166_s29  ;;  %3375 = vrot.lane.b32.xlu0 %v12313_v14, %s12164_s13  ;;  %v2077_v5 = vsel %vm349_vm1, %v2062_v0, 0  ;;  %v2083_v21 = vsel %vm349_vm1, %v2064_v16, 0  ;;  %s12168_s13 = smov 114   ;;  %v12870_v63 = vcombine.low %v12855_v58, %v12855_v58 }
 0x111   : > { %11277 = vmatprep.subr.msk.bf16.mxu1 %vm349_vm1, %v2063_v3  ;;  %11709 = vmatmul.mubr.msk.bf16.vlgmr.msra.gmra.mxu1 %vm345_vm2, %v12684_v38 }
 0x112   : > { %v2058_v9 = vpop.permute.xlu1 %2057  ;;  %2147 = vmatpush1.bf16.msra.mxu1 %v2077_v5  ;;  %v2042_v15 = vpop.permute.xlu0 %2041  ;;  %2164 = vmatprep.mubr.bf16.mxu1 %v12137_v2 }
 0x113   : > { %11712 = vmatprep.subr.bf16.mxu1 %v12152_v32 }
 0x114   : > { %3589 = vrot.lane.b32.xlu1 %v12295_v11, %s12166_s29  ;;  %3583 = vrot.lane.b32.xlu0 %v12287_v8, %s12166_s29 }
 0x115   : > { %11276 = vmatmul.mubr.msk.bf16.vlgmr.msra.gmra.mxu0 %vm345_vm2, %v2042_v15 }
 0x116   : > { %v2266_v17 = vpop.permute.xlu1 %2265  ;;  %2205 = vmatprep.mubr.bf16.mxu0 %v12137_v2  ;;  %v2056_v18 = vpop.permute.xlu0 %2055 }
 0x117   : > { %v2066_v19 = vsel %vm2059_vm10, %v2056_v18, %v2058_v9  ;;  %v2065_v20 = vsel %vm2059_vm10, %v2054_v62, %v2056_v18  ;;  %vm4921_vm10 = vcmask 375808  }
 0x118   : > { %3581 = vrot.lane.b32.xlu1 %v12260_v1, %s15165_s7  ;;  %3587 = vrot.lane.b32.xlu0 %v12284_v7, %s12166_s29  ;;  %v2089_v22 = vsel %vm349_vm1, %v2066_v19, 0  ;;  %s12170_s7 = smov 111  }
 0x119   : > { %11279 = vmatprep.subr.msk.bf16.mxu0 %vm349_vm1, %v2065_v20  ;;  %11278 = vmatmul.mubr.msk.bf16.vlgmr.msra.gmra.mxu1 %vm345_vm2, %v2042_v15 }
 0x11a   : > { %2188 = vmatpush1.bf16.msra.mxu0 %v2083_v21  ;;  %v2270_v23 = vpop.permute.xlu1 %2269  ;;  %11713 = vmatpush3.bf16.msra.mxu1 %v2089_v22  ;;  %v2264_v24 = vpop.permute.xlu0 %2263 }
 0x11b   : > { %11714 = vmatprep.mubr.msk.bf16.mxu1 %vm12153_vm3, %v12152_v32  ;;  %v2280_v1 = vsel %vm2279_vm11, %v2264_v24, %v2266_v17 }
 0x11c   : > { %3595 = vrot.lane.b32.xlu1 %v12313_v14, %s12166_s29  ;;  %3591 = vrot.lane.b32.xlu0 %v12304_v12, %s12166_s29  ;;  %v2291_v28 = vsel %vm349_vm1, %v2280_v1, 0 }
 0x11d   : > { %11280 = vmatmul.mubr.msk.bf16.vlgmr.msra.gmra.mxu0 %vm345_vm2, %v2042_v15 }
 0x11e   : > { %v2262_v25 = vpop.permute.xlu1 %2261  ;;  %2343 = vmatprep.mubr.bf16.mxu0 %v12137_v2  ;;  %v2268_v26 = vpop.permute.xlu0 %2267 }
 0x11f   : > { %v2281_v27 = vsel %vm2279_vm11, %v2266_v17, %v2268_v26  ;;  %v2282_v30 = vsel %vm2279_vm11, %v2268_v26, %v2270_v23 }
 0x120   : > { %3802 = vrot.lane.b32.xlu1 %v12287_v8, %s12168_s13  ;;  %3593 = vrot.lane.b32.xlu0 %v12292_v10, %s12166_s29  ;;  %v2297_v10 = vsel %vm349_vm1, %v2282_v30, 0 }
 0x121   : > { %11282 = vmatprep.subr.msk.bf16.mxu0 %vm349_vm1, %v2281_v27  ;;  %11715 = vmatmul.mubr.msk.bf16.vlgmr.msra.gmra.mxu1 %vm345_vm2, %v2042_v15 }
 0x122   : > { %2326 = vmatpush1.bf16.msra.mxu0 %v2291_v28  ;;  %v2276_v29 = vpop.permute.xlu1 %2275  ;;  %v2272_v31 = vpop.permute.xlu0 %2271  ;;  %2384 = vmatprep.mubr.bf16.mxu1 %v12137_v2 }
 0x123   : > { %v2283_v33 = vsel %vm2279_vm11, %v2270_v23, %v2272_v31 }
 0x124   : > { %3806 = vrot.lane.b32.xlu1 %v12284_v7, %s12168_s13  ;;  %3597 = vrot.lane.b32.xlu0 %v12725_v56, %s12166_s29  ;;  %s12169_s29 = smov 113  }
 0x125   : > { %11283 = vmatmul.mubr.msk.bf16.vlgmr.msra.gmra.mxu0 %vm345_vm2, %v2262_v25  ;;  %11284 = vmatprep.subr.msk.bf16.mxu1 %vm349_vm1, %v2283_v33 }
 0x126   : > { %v2484_v6 = vpop.permute.xlu1 %2483  ;;  %2425 = vmatprep.mubr.bf16.mxu0 %v12137_v2  ;;  %2367 = vmatpush1.bf16.msra.mxu1 %v2297_v10  ;;  %v2274_v34 = vpop.permute.xlu0 %2273 }
 0x127   : > { %v2284_v35 = vsel %vm2279_vm11, %v2272_v31, %v2274_v34  ;;  %v2285_v36 = vsel %vm2279_vm11, %v2274_v34, %v2276_v29  ;;  %11718 = vmatprep.subr.bf16.mxu1 %v12152_v32 }
 0x128   : > { %3810 = vrot.lane.b32.xlu1 %v12304_v12, %s12168_s13  ;;  %3804 = vrot.lane.b32.xlu0 %v12279_v4, %s12168_s13  ;;  %v2303_v37 = vsel %vm349_vm1, %v2284_v35, 0 }
 0x129   : > { %11286 = vmatprep.subr.msk.bf16.mxu0 %vm349_vm1, %v2285_v36  ;;  %11285 = vmatmul.mubr.msk.bf16.vlgmr.msra.gmra.mxu1 %vm345_vm2, %v2262_v25 }
 0x12a   : > { %2408 = vmatpush1.bf16.msra.mxu0 %v2303_v37  ;;  %v2488_v38 = vpop.permute.xlu1 %2487  ;;  %v2278_v39 = vpop.permute.xlu0 %2277  ;;  %11720 = vmatprep.mubr.msk.bf16.mxu1 %vm12153_vm3, %v12152_v32 }
 0x12b   : > { %v2286_v40 = vsel %vm2279_vm11, %v2276_v29, %v2278_v39  ;;  %vm5141_vm11 = vcmask 367616  }
 0x12c   : > { %3814 = vrot.lane.b32.xlu1 %v12313_v14, %s12168_s13  ;;  %v2309_v41 = vsel %vm349_vm1, %v2286_v40, 0  ;;  %3808 = vrot.lane.b32.xlu0 %v12295_v11, %s12168_s13 }
 0x12d   : > { %11287 = vmatmul.mubr.msk.bf16.vlgmr.msra.gmra.mxu0 %vm345_vm2, %v2262_v25  ;;  %11719 = vmatpush3.bf16.msra.mxu1 %v2309_v41 }
 0x12e   : > { %v2492_v42 = vpop.permute.xlu1 %2491  ;;  %2563 = vmatprep.mubr.bf16.mxu0 %v12137_v2  ;;  %v2486_v43 = vpop.permute.xlu0 %2485 }
 0x12f   : > { %v2500_v44 = vsel %vm2499_vm12, %v2484_v6, %v2486_v43  ;;  %v2501_v45 = vsel %vm2499_vm12, %v2486_v43, %v2488_v38 }
 0x130   : > { %4025 = vrot.lane.b32.xlu1 %v12287_v8, %s12169_s29  ;;  %3812 = vrot.lane.b32.xlu0 %v12827_v46, %s12168_s13  ;;  %v2511_v47 = vsel %vm349_vm1, %v2500_v44, 0 }
 0x131   : > { %11289 = vmatprep.subr.msk.bf16.mxu0 %vm349_vm1, %v2501_v45  ;;  %11721 = vmatmul.mubr.msk.bf16.vlgmr.msra.gmra.mxu1 %vm345_vm2, %v2262_v25 }
 0x132   : > { %2546 = vmatpush1.bf16.msra.mxu0 %v2511_v47  ;;  %v2494_v48 = vpop.permute.xlu1 %2493  ;;  %v2490_v49 = vpop.permute.xlu0 %2489  ;;  %2604 = vmatprep.mubr.bf16.mxu1 %v12137_v2 }
 0x133   : > { %v2502_v50 = vsel %vm2499_vm12, %v2488_v38, %v2490_v49  ;;  %v2503_v51 = vsel %vm2499_vm12, %v2490_v49, %v2492_v42  ;;  %v2504_v55 = vsel %vm2499_vm12, %v2492_v42, %v2494_v48 }
 0x134   : > { %4029 = vrot.lane.b32.xlu1 %v12284_v7, %s12169_s29  ;;  %3816 = vrot.lane.b32.xlu0 %v12725_v56, %s12168_s13  ;;  %v2517_v52 = vsel %vm349_vm1, %v2502_v50, 0  ;;  %v2523_v61 = vsel %vm349_vm1, %v2504_v55, 0  ;;  %s12172_s13 = smov 46  }
 0x135   : > { %11291 = vmatprep.subr.msk.bf16.mxu1 %vm349_vm1, %v2503_v51 }
 0x136   : > { %2587 = vmatpush1.bf16.msra.mxu1 %v2517_v52  ;;  %v2498_v53 = vpop.permute.xlu1 %2497  ;;  %v2482_v54 = vpop.permute.xlu0 %2481 }
 0x137   : > { %11724 = vmatprep.subr.bf16.mxu1 %v12152_v32  ;;  %11290 = vmatmul.mubr.msk.bf16.vlgmr.msra.gmra.mxu0 %vm345_vm2, %v2482_v54 }
 0x138   : > { %4033 = vrot.lane.b32.xlu1 %v12304_v12, %s12169_s29  ;;  %4027 = vrot.lane.b32.xlu0 %v12279_v4, %s12169_s29 }
 0x139   : > { %2645 = vmatprep.mubr.bf16.mxu0 %v12137_v2  ;;  %11292 = vmatmul.mubr.msk.bf16.vlgmr.msra.gmra.mxu1 %vm345_vm2, %v2482_v54 }
 0x13a   : > { %v2706_v57 = vpop.permute.xlu1 %2705  ;;  %v2496_v59 = vpop.permute.xlu0 %2495  ;;  %11726 = vmatprep.mubr.msk.bf16.mxu1 %vm12153_vm3, %v12152_v32 }
 0x13b   : > { %v2506_v60 = vsel %vm2499_vm12, %v2496_v59, %v2498_v53  ;;  %v2505_v13 = vsel %vm2499_vm12, %v2494_v48, %v2496_v59  ;;  %vm5361_vm12 = vcmask 359424  }
 0x13c   : > { %4035 = vrot.lane.b32.xlu1 %v12827_v46, %s12169_s29  ;;  %4031 = vrot.lane.b32.xlu0 %v12295_v11, %s12169_s29  ;;  %v2529_v62 = vsel %vm349_vm1, %v2506_v60, 0 }
 0x13d   : > { %11293 = vmatprep.subr.msk.bf16.mxu0 %vm349_vm1, %v2505_v13  ;;  %11725 = vmatpush3.bf16.msra.mxu1 %v2529_v62 }
 0x13e   : > { %2628 = vmatpush1.bf16.msra.mxu0 %v2523_v61  ;;  %v2710_v0 = vpop.permute.xlu1 %2709  ;;  %v2704_v3 = vpop.permute.xlu0 %2703 }
 0x13f   : > { %v2720_v5 = vsel %vm2719_vm13, %v2704_v3, %v2706_v57 }
 0x140   : > { %4039 = vrot.lane.b32.xlu1 %v12725_v56, %s12169_s29  ;;  %4023 = vrot.lane.b32.xlu0 %v12870_v63, %s12136_s27  ;;  %v2731_v17 = vsel %vm349_vm1, %v2720_v5, 0 }
 0x141   : > { %11294 = vmatmul.mubr.msk.bf16.vlgmr.msra.gmra.mxu0 %vm345_vm2, %v2482_v54  ;;  %11727 = vmatmul.mubr.msk.bf16.vlgmr.msra.gmra.mxu1 %vm345_vm2, %v2482_v54 }
 0x142   : > { %v2702_v9 = vpop.permute.xlu1 %2701  ;;  %2783 = vmatprep.mubr.bf16.mxu0 %v12137_v2  ;;  %v2708_v15 = vpop.permute.xlu0 %2707  ;;  %2824 = vmatprep.mubr.bf16.mxu1 %v12137_v2 }
 0x143   : > { %v2721_v16 = vsel %vm2719_vm13, %v2706_v57, %v2708_v15  ;;  %v2722_v19 = vsel %vm2719_vm13, %v2708_v15, %v2710_v0 }
 0x144   : > { %4247 = vrot.lane.b32.xlu1 %v12279_v4, %s12140_s22  ;;  %4037 = vrot.lane.b32.xlu0 %v12313_v14, %s12169_s29  ;;  %v2737_v22 = vsel %vm349_vm1, %v2722_v19, 0  ;;  %s12171_s29 = smov 110  }
 0x145   : > { %11296 = vmatprep.subr.msk.bf16.mxu0 %vm349_vm1, %v2721_v16 }
 0x146   : > { %2766 = vmatpush1.bf16.msra.mxu0 %v2731_v17  ;;  %v2716_v18 = vpop.permute.xlu1 %2715  ;;  %v2712_v20 = vpop.permute.xlu0 %2711 }
 0x147   : > { %v2723_v21 = vsel %vm2719_vm13, %v2710_v0, %v2712_v20 }
 0x148   : > { %4251 = vrot.lane.b32.xlu1 %v12295_v11, %s12140_s22  ;;  %4245 = vrot.lane.b32.xlu0 %v12287_v8, %s12140_s22 }
 0x149   : > { %11297 = vmatmul.mubr.msk.bf16.vlgmr.msra.gmra.mxu0 %vm345_vm2, %v2702_v9  ;;  %11298 = vmatprep.subr.msk.bf16.mxu1 %vm349_vm1, %v2723_v21 }
 0x14a   : > { %v2924_v23 = vpop.permute.xlu1 %2923  ;;  %2865 = vmatprep.mubr.bf16.mxu0 %v12137_v2  ;;  %2807 = vmatpush1.bf16.msra.mxu1 %v2737_v22  ;;  %v2714_v24 = vpop.permute.xlu0 %2713 }
 0x14b   : > { %v2724_v1 = vsel %vm2719_vm13, %v2712_v20, %v2714_v24  ;;  %v2725_v25 = vsel %vm2719_vm13, %v2714_v24, %v2716_v18  ;;  %11730 = vmatprep.subr.bf16.mxu1 %v12152_v32 }
 0x14c   : > { %4243 = vrot.lane.b32.xlu1 %v12870_v63, %s12140_s22  ;;  %4249 = vrot.lane.b32.xlu0 %v12284_v7, %s12140_s22  ;;  %v2743_v26 = vsel %vm349_vm1, %v2724_v1, 0 }
 0x14d   : > { %11300 = vmatprep.subr.msk.bf16.mxu0 %vm349_vm1, %v2725_v25  ;;  %11299 = vmatmul.mubr.msk.bf16.vlgmr.msra.gmra.mxu1 %vm345_vm2, %v2702_v9 }
 0x14e   : > { %2848 = vmatpush1.bf16.msra.mxu0 %v2743_v26  ;;  %v2928_v27 = vpop.permute.xlu1 %2927  ;;  %v2718_v28 = vpop.permute.xlu0 %2717  ;;  %11732 = vmatprep.mubr.msk.bf16.mxu1 %vm12153_vm3, %v12152_v32 }
 0x14f   : > { %v2726_v29 = vsel %vm2719_vm13, %v2716_v18, %v2718_v28  ;;  %vm5581_vm13 = vcmask 351232  }
 0x150   : > { %4257 = vrot.lane.b32.xlu1 %v12313_v14, %s12140_s22  ;;  %v2749_v30 = vsel %vm349_vm1, %v2726_v29, 0  ;;  %4253 = vrot.lane.b32.xlu0 %v12304_v12, %s12140_s22 }
 0x151   : > { %11301 = vmatmul.mubr.msk.bf16.vlgmr.msra.gmra.mxu0 %vm345_vm2, %v2702_v9  ;;  %11731 = vmatpush3.bf16.msra.mxu1 %v2749_v30 }
 0x152   : > { %v2932_v31 = vpop.permute.xlu1 %2931  ;;  %3003 = vmatprep.mubr.bf16.mxu0 %v12137_v2  ;;  %v2926_v33 = vpop.permute.xlu0 %2925 }
 0x153   : > { %v2940_v10 = vsel %vm2939_vm14, %v2924_v23, %v2926_v33  ;;  %v2941_v6 = vsel %vm2939_vm14, %v2926_v33, %v2928_v27 }
 0x154   : > { %4465 = vrot.lane.b32.xlu1 %v12287_v8, %s12170_s7  ;;  %4255 = vrot.lane.b32.xlu0 %v12827_v46, %s12140_s22  ;;  %v2951_v35 = vsel %vm349_vm1, %v2940_v10, 0 }
 0x155   : > { %v405_v34 = vpop.f32.mrf.mxu0  ;;  %11303 = vmatprep.subr.msk.bf16.mxu0 %vm349_vm1, %v2941_v6  ;;  %11733 = vmatmul.mubr.msk.bf16.vlgmr.msra.gmra.mxu1 %vm345_vm2, %v2702_v9 }
 0x156   : > { %2986 = vmatpush1.bf16.msra.mxu0 %v2951_v35  ;;  %v2934_v36 = vpop.permute.xlu1 %2933  ;;  %v2930_v38 = vpop.permute.xlu0 %2929  ;;  %3044 = vmatprep.mubr.bf16.mxu1 %v12137_v2 }
 0x157   : > { %v407_v37 = vpop.f32.mrf.mxu0  ;;  %v2942_v39 = vsel %vm2939_vm14, %v2928_v27, %v2930_v38  ;;  %v2943_v40 = vsel %vm2939_vm14, %v2930_v38, %v2932_v31  ;;  %v2944_v50 = vsel %vm2939_vm14, %v2932_v31, %v2934_v36 }
 0x158   : > { %4469 = vrot.lane.b32.xlu1 %v12284_v7, %s12170_s7  ;;  %4259 = vrot.lane.b32.xlu0 %v12725_v56, %s12140_s22  ;;  %v2957_v42 = vsel %vm349_vm1, %v2942_v39, 0  ;;  %v2963_v13 = vsel %vm349_vm1, %v2944_v50, 0 }
 0x159   : > { %v409_v41 = vpop.f32.mrf.mxu0  ;;  %11305 = vmatprep.subr.msk.bf16.mxu1 %vm349_vm1, %v2943_v40  ;;  %v12936_v43 = vpop.f32.mrf.mxu1 }
 0x15a   : > { %3027 = vmatpush1.bf16.msra.mxu1 %v2957_v42  ;;  %v2938_v44 = vpop.permute.xlu1 %2937  ;;  %v2922_v47 = vpop.permute.xlu0 %2921 }
 0x15b   : > { %v410_v45 = vpop.f32.mrf.mxu0  ;;  %11736 = vmatprep.subr.bf16.mxu1 %v12152_v32  ;;  %v12939_v48 = vpop.f32.mrf.mxu1  ;;  %11304 = vmatmul.mubr.msk.bf16.vlgmr.msra.gmra.mxu0 %vm345_vm2, %v2922_v47 }
 0x15c   : > { %4473 = vrot.lane.b32.xlu1 %v12304_v12, %s12170_s7  ;;  %4467 = vrot.lane.b32.xlu0 %v12279_v4, %s12170_s7 }
 0x15d   : > { %v12944_v49 = vpop.f32.mrf.mxu0  ;;  %3085 = vmatprep.mubr.bf16.mxu0 %v12137_v2  ;;  %v450_v51 = vpop.f32.mrf.mxu1  ;;  %11306 = vmatmul.mubr.msk.bf16.vlgmr.msra.gmra.mxu1 %vm345_vm2, %v2922_v47 }
 0x15e   : > { %v3146_v52 = vpop.permute.xlu1 %3145  ;;  %v2936_v54 = vpop.permute.xlu0 %2935  ;;  %11738 = vmatprep.mubr.msk.bf16.mxu1 %vm12153_vm3, %v12152_v32 }
 0x15f   : > { %v12951_v53 = vpop.f32.mrf.mxu0  ;;  %v451_v55 = vpop.f32.mrf.mxu1  ;;  %v2946_v57 = vsel %vm2939_vm14, %v2936_v54, %v2938_v44  ;;  %v2945_v59 = vsel %vm2939_vm14, %v2934_v36, %v2936_v54  ;;  %vm5801_vm14 = vcmask 343040  }
 0x160   : > { %4475 = vrot.lane.b32.xlu1 %v12827_v46, %s12170_s7  ;;  %4471 = vrot.lane.b32.xlu0 %v12295_v11, %s12170_s7  ;;  %v2969_v61 = vsel %vm349_vm1, %v2946_v57, 0 }
 0x161   : > { %v491_v60 = vpop.f32.mrf.mxu0  ;;  %11307 = vmatprep.subr.msk.bf16.mxu0 %vm349_vm1, %v2945_v59  ;;  %v12964_v62 = vpop.f32.mrf.mxu1  ;;  %11737 = vmatpush3.bf16.msra.mxu1 %v2969_v61 }
 0x162   : > { %3068 = vmatpush1.bf16.msra.mxu0 %v2963_v13  ;;  %v3150_v0 = vpop.permute.xlu1 %3149  ;;  %v3144_v5 = vpop.permute.xlu0 %3143 }
 0x163   : > { %v492_v3 = vpop.f32.mrf.mxu0  ;;  %v11668_v9 = vpop.f32.mrf.mxu1  ;;  %v3160_v16 = vsel %vm3159_vm15, %v3144_v5, %v3146_v52 }
 0x164   : > { %4479 = vrot.lane.b32.xlu1 %v12725_v56, %s12170_s7  ;;  %4463 = vrot.lane.b32.xlu0 %v12870_v63, %s12142_s25  ;;  %v3171_v1 = vsel %vm349_vm1, %v3160_v16, 0 }
 0x165   : > { %v592_v15 = vpop.f32.mrf.mxu0  ;;  %11308 = vmatmul.mubr.msk.bf16.vlgmr.msra.gmra.mxu0 %vm345_vm2, %v2922_v47  ;;  %v531_v17 = vpop.f32.mrf.mxu1  ;;  %11739 = vmatmul.mubr.msk.bf16.vlgmr.msra.gmra.mxu1 %vm345_vm2, %v2922_v47 }
 0x166   : > { %v12972_v18 = vadd.f32 %v592_v15, %v405_v34  ;;  %v12975_v19 = vpop.permute.xlu1 %3141  ;;  %3223 = vmatprep.mubr.bf16.mxu0 %v12137_v2  ;;  %v3148_v20 = vpop.permute.xlu0 %3147  ;;  %3264 = vmatprep.mubr.bf16.mxu1 %v12137_v2 }
 0x167   : > { %v594_v21 = vpop.f32.mrf.mxu0  ;;  %v11669_v22 = vpop.f32.mrf.mxu1  ;;  %v3161_v24 = vsel %vm3159_vm15, %v3146_v52, %v3148_v20  ;;  %v3162_v28 = vsel %vm3159_vm15, %v3148_v20, %v3150_v0 }
 0x168   : > { %v12979_v23 = vadd.f32 %v594_v21, %v407_v37  ;;  %4687 = vrot.lane.b32.xlu1 %v12279_v4, %s12171_s29  ;;  %4477 = vrot.lane.b32.xlu0 %v12313_v14, %s12170_s7  ;;  %v3177_v37 = vsel %vm349_vm1, %v3162_v28, 0  ;;  %s12173_s7 = smov 45  }
 0x169   : > { %v596_v25 = vpop.f32.mrf.mxu0  ;;  %11310 = vmatprep.subr.msk.bf16.mxu0 %vm349_vm1, %v3161_v24  ;;  %v633_v26 = vpop.f32.mrf.mxu1 }
 0x16a   : > { %3206 = vmatpush1.bf16.msra.mxu0 %v3171_v1  ;;  %v3156_v27 = vpop.permute.xlu1 %3155  ;;  %v12990_v29 = vadd.f32 %v633_v26, %v12936_v43  ;;  %v3152_v30 = vpop.permute.xlu0 %3151 }
 0x16b   : > { %v597_v31 = vpop.f32.mrf.mxu0  ;;  %v635_v33 = vpop.f32.mrf.mxu1  ;;  %v3163_v10 = vsel %vm3159_vm15, %v3150_v0, %v3152_v30 }
 0x16c   : > { %4691 = vrot.lane.b32.xlu1 %v12295_v11, %s12171_s29  ;;  %v12996_v6 = vadd.f32 %v635_v33, %v12939_v48  ;;  %4685 = vrot.lane.b32.xlu0 %v12287_v8, %s12171_s29 }
 0x16d   : > { %v674_v34 = vpop.f32.mrf.mxu0  ;;  %11311 = vmatmul.mubr.msk.bf16.vlgmr.msra.gmra.mxu0 %vm345_vm2, %v12975_v19  ;;  %v637_v35 = vpop.f32.mrf.mxu1  ;;  %11312 = vmatprep.subr.msk.bf16.mxu1 %vm349_vm1, %v3163_v10 }
 0x16e   : > { %v13003_v36 = vadd.f32 %v674_v34, %v12944_v49  ;;  %v3364_v38 = vpop.permute.xlu1 %3363  ;;  %3305 = vmatprep.mubr.bf16.mxu0 %v12137_v2  ;;  %3247 = vmatpush1.bf16.msra.mxu1 %v3177_v37  ;;  %v3154_v39 = vpop.permute.xlu0 %3153 }
 0x16f   : > { %v676_v40 = vpop.f32.mrf.mxu0  ;;  %v638_v41 = vpop.f32.mrf.mxu1  ;;  %v3164_v42 = vsel %vm3159_vm15, %v3152_v30, %v3154_v39  ;;  %v3165_v44 = vsel %vm3159_vm15, %v3154_v39, %v3156_v27  ;;  %11742 = vmatprep.subr.bf16.mxu1 %v12152_v32 }
 0x170   : > { %v13010_v43 = vadd.f32 %v676_v40, %v12951_v53  ;;  %4683 = vrot.lane.b32.xlu1 %v12870_v63, %s12144_s28  ;;  %4689 = vrot.lane.b32.xlu0 %v12284_v7, %s12171_s29  ;;  %v3183_v47 = vsel %vm349_vm1, %v3164_v42, 0 }
 0x171   : > { %v678_v45 = vpop.f32.mrf.mxu0  ;;  %11314 = vmatprep.subr.msk.bf16.mxu0 %vm349_vm1, %v3165_v44  ;;  %v715_v48 = vpop.f32.mrf.mxu1  ;;  %11313 = vmatmul.mubr.msk.bf16.vlgmr.msra.gmra.mxu1 %vm345_vm2, %v12975_v19 }
 0x172   : > { %3288 = vmatpush1.bf16.msra.mxu0 %v3183_v47  ;;  %v3368_v49 = vpop.permute.xlu1 %3367  ;;  %v13023_v50 = vadd.f32 %v715_v48, %v12964_v62  ;;  %v3158_v51 = vpop.permute.xlu0 %3157  ;;  %11744 = vmatprep.mubr.msk.bf16.mxu1 %vm12153_vm3, %v12152_v32 }
 0x173   : > { %v679_v52 = vpop.f32.mrf.mxu0  ;;  %v11674_v53 = vpop.f32.mrf.mxu1  ;;  %v3166_v54 = vsel %vm3159_vm15, %v3156_v27, %v3158_v51  ;;  %vm6021_vm15 = vcmask 334848  }
 0x174   : > { %4697 = vrot.lane.b32.xlu1 %v12313_v14, %s12171_s29  ;;  %v3189_v55 = vsel %vm349_vm1, %v3166_v54, 0  ;;  %4693 = vrot.lane.b32.xlu0 %v12304_v12, %s12171_s29 }
 0x175   : > { %v805_v57 = vpop.f32.mrf.mxu0  ;;  %11315 = vmatmul.mubr.msk.bf16.vlgmr.msra.gmra.mxu0 %vm345_vm2, %v12975_v19  ;;  %v718_v59 = vpop.f32.mrf.mxu1  ;;  %11743 = vmatpush3.bf16.msra.mxu1 %v3189_v55 }
 0x176   : > { %v13036_v60 = vadd.f32 %v805_v57, %v12972_v18  ;;  %v3372_v13 = vpop.permute.xlu1 %3371  ;;  %3443 = vmatprep.mubr.bf16.mxu0 %v12137_v2  ;;  %v3366_v61 = vpop.permute.xlu0 %3365 }
 0x177   : > { %v807_v62 = vpop.f32.mrf.mxu0  ;;  %v11675_v0 = vpop.f32.mrf.mxu1  ;;  %v3380_v3 = vsel %vm3379_vm0, %v3364_v38, %v3366_v61  ;;  %v3381_v9 = vsel %vm3379_vm0, %v3366_v61, %v3368_v49 }
 0x178   : > { %v13041_v5 = vadd.f32 %v807_v62, %v12979_v23  ;;  %4905 = vrot.lane.b32.xlu1 %v12287_v8, %s12172_s13  ;;  %4695 = vrot.lane.b32.xlu0 %v12827_v46, %s12171_s29  ;;  %v3391_v16 = vsel %vm349_vm1, %v3380_v3, 0 }
 0x179   : > { %v809_v15 = vpop.f32.mrf.mxu0  ;;  %11317 = vmatprep.subr.msk.bf16.mxu0 %vm349_vm1, %v3381_v9  ;;  %v846_v17 = vpop.f32.mrf.mxu1  ;;  %11745 = vmatmul.mubr.msk.bf16.vlgmr.msra.gmra.mxu1 %vm345_vm2, %v12975_v19 }
 0x17a   : > { %3426 = vmatpush1.bf16.msra.mxu0 %v3391_v16  ;;  %v3374_v18 = vpop.permute.xlu1 %3373  ;;  %v13053_v20 = vadd.f32 %v846_v17, %v12990_v29  ;;  %v3370_v21 = vpop.permute.xlu0 %3369  ;;  %3484 = vmatprep.mubr.bf16.mxu1 %v12137_v2 }
 0x17b   : > { %v810_v22 = vpop.f32.mrf.mxu0  ;;  %v848_v23 = vpop.f32.mrf.mxu1  ;;  %v3382_v24 = vsel %vm3379_vm0, %v3368_v49, %v3370_v21  ;;  %v3383_v1 = vsel %vm3379_vm0, %v3370_v21, %v3372_v13  ;;  %v3384_v34 = vsel %vm3379_vm0, %v3372_v13, %v3374_v18 }
 0x17c   : > { %4909 = vrot.lane.b32.xlu1 %v12284_v7, %s12172_s13  ;;  %v13061_v25 = vadd.f32 %v848_v23, %v12996_v6  ;;  %4699 = vrot.lane.b32.xlu0 %v12725_v56, %s12171_s29  ;;  %v3397_v26 = vsel %vm349_vm1, %v3382_v24, 0  ;;  %v3403_v44 = vsel %vm349_vm1, %v3384_v34, 0  ;;  %s12174_s29 = smov 44  }
 0x17d   : > { %v887_v19 = vpop.f32.mrf.mxu0  ;;  %11319 = vmatprep.subr.msk.bf16.mxu1 %vm349_vm1, %v3383_v1  ;;  %v850_v27 = vpop.f32.mrf.mxu1 }
 0x17e   : > { %v13068_v28 = vadd.f32 %v887_v19, %v13003_v36  ;;  %3467 = vmatpush1.bf16.msra.mxu1 %v3397_v26  ;;  %v3378_v29 = vpop.permute.xlu1 %3377  ;;  %v3362_v30 = vpop.permute.xlu0 %3361 }
 0x17f   : > { %v889_v31 = vpop.f32.mrf.mxu0  ;;  %11748 = vmatprep.subr.bf16.mxu1 %v12152_v32  ;;  %v851_v33 = vpop.f32.mrf.mxu1  ;;  %11318 = vmatmul.mubr.msk.bf16.vlgmr.msra.gmra.mxu0 %vm345_vm2, %v3362_v30 }
 0x180   : > { %v13072_v10 = vadd.f32 %v889_v31, %v13010_v43  ;;  %4913 = vrot.lane.b32.xlu1 %v12304_v12, %s12172_s13  ;;  %4907 = vrot.lane.b32.xlu0 %v12279_v4, %s12172_s13 }
 0x181   : > { %v891_v6 = vpop.f32.mrf.mxu0  ;;  %3525 = vmatprep.mubr.bf16.mxu0 %v12137_v2  ;;  %v928_v35 = vpop.f32.mrf.mxu1  ;;  %11320 = vmatmul.mubr.msk.bf16.vlgmr.msra.gmra.mxu1 %vm345_vm2, %v3362_v30 }
 0x182   : > { %v3586_v36 = vpop.permute.xlu1 %3585  ;;  %v13083_v37 = vadd.f32 %v928_v35, %v13023_v50  ;;  %v3376_v38 = vpop.permute.xlu0 %3375  ;;  %11750 = vmatprep.mubr.msk.bf16.mxu1 %vm12153_vm3, %v12152_v32 }
 0x183   : > { %v892_v39 = vpop.f32.mrf.mxu0  ;;  %v11680_v40 = vpop.f32.mrf.mxu1  ;;  %v3386_v41 = vsel %vm3379_vm0, %v3376_v38, %v3378_v29  ;;  %v3385_v42 = vsel %vm3379_vm0, %v3374_v18, %v3376_v38  ;;  %vm6241_vm0 = vcmask 326656  }
 0x184   : > { %4915 = vrot.lane.b32.xlu1 %v12827_v46, %s12172_s13  ;;  %4911 = vrot.lane.b32.xlu0 %v12295_v11, %s12172_s13  ;;  %v3409_v45 = vsel %vm349_vm1, %v3386_v41, 0 }
 0x185   : > { %v1025_v43 = vpop.f32.mrf.mxu0  ;;  %11321 = vmatprep.subr.msk.bf16.mxu0 %vm349_vm1, %v3385_v42  ;;  %v931_v47 = vpop.f32.mrf.mxu1  ;;  %11749 = vmatpush3.bf16.msra.mxu1 %v3409_v45 }
 0x186   : > { %v13097_v48 = vadd.f32 %v1025_v43, %v13036_v60  ;;  %3508 = vmatpush1.bf16.msra.mxu0 %v3403_v44  ;;  %v3590_v49 = vpop.permute.xlu1 %3589  ;;  %v3584_v50 = vpop.permute.xlu0 %3583 }
 0x187   : > { %v1027_v51 = vpop.f32.mrf.mxu0  ;;  %v11681_v52 = vpop.f32.mrf.mxu1  ;;  %v3600_v55 = vsel %vm3599_vm4, %v3584_v50, %v3586_v36 }
 0x188   : > { %v13100_v53 = vadd.f32 %v1027_v51, %v13041_v5  ;;  %4919 = vrot.lane.b32.xlu1 %v12725_v56, %s12172_s13  ;;  %4903 = vrot.lane.b32.xlu0 %v12870_v63, %s12146_s30  ;;  %v3611_v3 = vsel %vm349_vm1, %v3600_v55, 0 }
 0x189   : > { %v1029_v54 = vpop.f32.mrf.mxu0  ;;  %11322 = vmatmul.mubr.msk.bf16.vlgmr.msra.gmra.mxu0 %vm345_vm2, %v3362_v30  ;;  %v1066_v57 = vpop.f32.mrf.mxu1  ;;  %11751 = vmatmul.mubr.msk.bf16.vlgmr.msra.gmra.mxu1 %vm345_vm2, %v3362_v30 }
 0x18a   : > { %v13109_v59 = vpop.permute.xlu1 %3581  ;;  %3663 = vmatprep.mubr.bf16.mxu0 %v12137_v2  ;;  %v13113_v60 = vadd.f32 %v1066_v57, %v13053_v20  ;;  %v3588_v13 = vpop.permute.xlu0 %3587  ;;  %3704 = vmatprep.mubr.bf16.mxu1 %v12137_v2 }
 0x18b   : > { %v1030_v61 = vpop.f32.mrf.mxu0  ;;  %v1068_v62 = vpop.f32.mrf.mxu1  ;;  %v3601_v0 = vsel %vm3599_vm4, %v3586_v36, %v3588_v13  ;;  %v3602_v18 = vsel %vm3599_vm4, %v3588_v13, %v3590_v49 }
 0x18c   : > { %5127 = vrot.lane.b32.xlu1 %v12279_v4, %s12173_s7  ;;  %v13121_v5 = vadd.f32 %v1068_v62, %v13061_v25  ;;  %4917 = vrot.lane.b32.xlu0 %v12313_v14, %s12172_s13  ;;  %v3617_v19 = vsel %vm349_vm1, %v3602_v18, 0  ;;  %s12175_s13 = smov 43  }
 0x18d   : > { %v1107_v9 = vpop.f32.mrf.mxu0  ;;  %11324 = vmatprep.subr.msk.bf16.mxu0 %vm349_vm1, %v3601_v0  ;;  %v1070_v15 = vpop.f32.mrf.mxu1 }
 0x18e   : > { %v13127_v16 = vadd.f32 %v1107_v9, %v13068_v28  ;;  %3646 = vmatpush1.bf16.msra.mxu0 %v3611_v3  ;;  %v3596_v17 = vpop.permute.xlu1 %3595  ;;  %v3592_v20 = vpop.permute.xlu0 %3591 }
 0x18f   : > { %v1109_v21 = vpop.f32.mrf.mxu0  ;;  %v1071_v22 = vpop.f32.mrf.mxu1  ;;  %v3603_v24 = vsel %vm3599_vm4, %v3590_v49, %v3592_v20 }
 0x190   : > { %v13131_v23 = vadd.f32 %v1109_v21, %v13072_v10  ;;  %5131 = vrot.lane.b32.xlu1 %v12295_v11, %s12173_s7  ;;  %5125 = vrot.lane.b32.xlu0 %v12287_v8, %s12173_s7 }
 0x191   : > { %v1111_v1 = vpop.f32.mrf.mxu0  ;;  %11325 = vmatmul.mubr.msk.bf16.vlgmr.msra.gmra.mxu0 %vm345_vm2, %v13109_v59  ;;  %v1148_v25 = vpop.f32.mrf.mxu1  ;;  %11326 = vmatprep.subr.msk.bf16.mxu1 %vm349_vm1, %v3603_v24 }
 0x192   : > { %v3803_v26 = vpop.permute.xlu1 %3802  ;;  %3745 = vmatprep.mubr.bf16.mxu0 %v12137_v2  ;;  %v13144_v27 = vadd.f32 %v1148_v25, %v13083_v37  ;;  %3687 = vmatpush1.bf16.msra.mxu1 %v3617_v19  ;;  %v3594_v28 = vpop.permute.xlu0 %3593 }
 0x193   : > { %v1112_v29 = vpop.f32.mrf.mxu0  ;;  %v11686_v30 = vpop.f32.mrf.mxu1  ;;  %v3604_v31 = vsel %vm3599_vm4, %v3592_v20, %v3594_v28  ;;  %v3605_v33 = vsel %vm3599_vm4, %v3594_v28, %v3596_v17  ;;  %11754 = vmatprep.subr.bf16.mxu1 %v12152_v32 }
 0x194   : > { %5123 = vrot.lane.b32.xlu1 %v12870_v63, %s12148_s6  ;;  %5129 = vrot.lane.b32.xlu0 %v12284_v7, %s12173_s7  ;;  %v3623_v6 = vsel %vm349_vm1, %v3604_v31, 0 }
 0x195   : > { %v1245_v10 = vpop.f32.mrf.mxu0  ;;  %11328 = vmatprep.subr.msk.bf16.mxu0 %vm349_vm1, %v3605_v33  ;;  %v1151_v34 = vpop.f32.mrf.mxu1  ;;  %11327 = vmatmul.mubr.msk.bf16.vlgmr.msra.gmra.mxu1 %vm345_vm2, %v13109_v59 }
 0x196   : > { %v13156_v35 = vadd.f32 %v1245_v10, %v13097_v48  ;;  %3728 = vmatpush1.bf16.msra.mxu0 %v3623_v6  ;;  %v3807_v36 = vpop.permute.xlu1 %3806  ;;  %v3598_v37 = vpop.permute.xlu0 %3597  ;;  %11756 = vmatprep.mubr.msk.bf16.mxu1 %vm12153_vm3, %v12152_v32 }
 0x197   : > { %v1247_v38 = vpop.f32.mrf.mxu0  ;;  %v11687_v39 = vpop.f32.mrf.mxu1  ;;  %v3606_v40 = vsel %vm3599_vm4, %v3596_v17, %v3598_v37  ;;  %vm6461_vm4 = vcmask 850944  }
 0x198   : > { %v13164_v41 = vadd.f32 %v1247_v38, %v13100_v53  ;;  %5137 = vrot.lane.b32.xlu1 %v12313_v14, %s12173_s7  ;;  %v3629_v42 = vsel %vm349_vm1, %v3606_v40, 0  ;;  %5133 = vrot.lane.b32.xlu0 %v12304_v12, %s12173_s7 }
 0x199   : > { %v1249_v43 = vpop.f32.mrf.mxu0  ;;  %11329 = vmatmul.mubr.msk.bf16.vlgmr.msra.gmra.mxu0 %vm345_vm2, %v13109_v59  ;;  %v1286_v44 = vpop.f32.mrf.mxu1  ;;  %11755 = vmatpush3.bf16.msra.mxu1 %v3629_v42 }
 0x19a   : > { %v3811_v45 = vpop.permute.xlu1 %3810  ;;  %3882 = vmatprep.mubr.bf16.mxu0 %v12137_v2  ;;  %v13175_v47 = vadd.f32 %v1286_v44, %v13113_v60  ;;  %v3805_v48 = vpop.permute.xlu0 %3804 }
 0x19b   : > { %v1250_v49 = vpop.f32.mrf.mxu0  ;;  %v1288_v50 = vpop.f32.mrf.mxu1  ;;  %v3819_v51 = vsel %vm3818_vm5, %v3803_v26, %v3805_v48  ;;  %v3820_v52 = vsel %vm3818_vm5, %v3805_v48, %v3807_v36 }
 0x19c   : > { %5345 = vrot.lane.b32.xlu1 %v12287_v8, %s12174_s29  ;;  %v13182_v53 = vadd.f32 %v1288_v50, %v13121_v5  ;;  %5135 = vrot.lane.b32.xlu0 %v12827_v46, %s12173_s7  ;;  %v3830_v55 = vsel %vm349_vm1, %v3819_v51, 0 }
 0x19d   : > { %v1327_v54 = vpop.f32.mrf.mxu0  ;;  %11331 = vmatprep.subr.msk.bf16.mxu0 %vm349_vm1, %v3820_v52  ;;  %v1290_v57 = vpop.f32.mrf.mxu1  ;;  %11757 = vmatmul.mubr.msk.bf16.vlgmr.msra.gmra.mxu1 %vm345_vm2, %v13109_v59 }
 0x19e   : > { %v13189_v60 = vadd.f32 %v1327_v54, %v13127_v16  ;;  %3865 = vmatpush1.bf16.msra.mxu0 %v3830_v55  ;;  %v3815_v13 = vpop.permute.xlu1 %3814  ;;  %v3809_v61 = vpop.permute.xlu0 %3808  ;;  %3923 = vmatprep.mubr.bf16.mxu1 %v12137_v2 }
 0x19f   : > { %v1329_v62 = vpop.f32.mrf.mxu0  ;;  %v1291_v0 = vpop.f32.mrf.mxu1  ;;  %v3821_v3 = vsel %vm3818_vm5, %v3807_v36, %v3809_v61  ;;  %v3822_v9 = vsel %vm3818_vm5, %v3809_v61, %v3811_v45 }
 0x1a0   : > { %v13196_v5 = vadd.f32 %v1329_v62, %v13131_v23  ;;  %5349 = vrot.lane.b32.xlu1 %v12284_v7, %s12174_s29  ;;  %5139 = vrot.lane.b32.xlu0 %v12725_v56, %s12173_s7  ;;  %v3836_v15 = vsel %vm349_vm1, %v3821_v3, 0  ;;  %s12176_s7 = smov 42  }
 0x1a1   : > { %v1331_v59 = vpop.f32.mrf.mxu0  ;;  %11332 = vmatmul.mubr.msk.bf16.vlgmr.msra.gmra.mxu0 %vm345_vm2, %v12855_v58  ;;  %v1368_v16 = vpop.f32.mrf.mxu1  ;;  %11333 = vmatprep.subr.msk.bf16.mxu1 %vm349_vm1, %v3822_v9 }
 0x1a2   : > { %v4026_v17 = vpop.permute.xlu1 %4025  ;;  %3964 = vmatprep.mubr.bf16.mxu0 %v12137_v2  ;;  %v13209_v18 = vadd.f32 %v1368_v16, %v13144_v27  ;;  %3906 = vmatpush1.bf16.msra.mxu1 %v3836_v15  ;;  %v3813_v20 = vpop.permute.xlu0 %3812 }
 0x1a3   : > { %v1332_v21 = vpop.f32.mrf.mxu0  ;;  %v11692_v22 = vpop.f32.mrf.mxu1  ;;  %v3823_v23 = vsel %vm3818_vm5, %v3811_v45, %v3813_v20  ;;  %v3824_v24 = vsel %vm3818_vm5, %v3813_v20, %v3815_v13  ;;  %11760 = vmatprep.subr.bf16.mxu1 %v12152_v32 }
 0x1a4   : > { %5353 = vrot.lane.b32.xlu1 %v12304_v12, %s12174_s29  ;;  %5347 = vrot.lane.b32.xlu0 %v12279_v4, %s12174_s29  ;;  %v3842_v25 = vsel %vm349_vm1, %v3823_v23, 0 }
 0x1a5   : > { %v1465_v1 = vpop.f32.mrf.mxu0  ;;  %11335 = vmatprep.subr.msk.bf16.mxu0 %vm349_vm1, %v3824_v24  ;;  %v1371_v19 = vpop.f32.mrf.mxu1  ;;  %11334 = vmatmul.mubr.msk.bf16.vlgmr.msra.gmra.mxu1 %vm345_vm2, %v12855_v58 }
 0x1a6   : > { %v13221_v26 = vadd.f32 %v1465_v1, %v13156_v35  ;;  %3947 = vmatpush1.bf16.msra.mxu0 %v3842_v25  ;;  %v4030_v27 = vpop.permute.xlu1 %4029  ;;  %v3817_v28 = vpop.permute.xlu0 %3816  ;;  %11762 = vmatprep.mubr.msk.bf16.mxu1 %vm12153_vm3, %v12152_v32 }
 0x1a7   : > { %v1467_v29 = vpop.f32.mrf.mxu0  ;;  %v11693_v30 = vpop.f32.mrf.mxu1  ;;  %v3825_v31 = vsel %vm3818_vm5, %v3815_v13, %v3817_v28  ;;  %vm6681_vm5 = vcmask 842752  }
 0x1a8   : > { %v13229_v33 = vadd.f32 %v1467_v29, %v13164_v41  ;;  %5355 = vrot.lane.b32.xlu1 %v12827_v46, %s12174_s29  ;;  %v3848_v10 = vsel %vm349_vm1, %v3825_v31, 0  ;;  %5351 = vrot.lane.b32.xlu0 %v12295_v11, %s12174_s29 }
 0x1a9   : > { %v1469_v6 = vpop.f32.mrf.mxu0  ;;  %11336 = vmatmul.mubr.msk.bf16.vlgmr.msra.gmra.mxu0 %vm345_vm2, %v12855_v58  ;;  %v1506_v34 = vpop.f32.mrf.mxu1  ;;  %11761 = vmatpush3.bf16.msra.mxu1 %v3848_v10 }
 0x1aa   : > { %v4034_v35 = vpop.permute.xlu1 %4033  ;;  %4105 = vmatprep.mubr.bf16.mxu0 %v12137_v2  ;;  %v13240_v36 = vadd.f32 %v1506_v34, %v13175_v47  ;;  %v4028_v37 = vpop.permute.xlu0 %4027 }
 0x1ab   : > { %v1470_v46 = vpop.f32.mrf.mxu0  ;;  %v1508_v38 = vpop.f32.mrf.mxu1  ;;  %v4042_v39 = vsel %vm4041_vm6, %v4026_v17, %v4028_v37  ;;  %v4043_v40 = vsel %vm4041_vm6, %v4028_v37, %v4030_v27 }
 0x1ac   : > { %5359 = vrot.lane.b32.xlu1 %v12725_v56, %s12174_s29  ;;  %v13247_v41 = vadd.f32 %v1508_v38, %v13182_v53  ;;  %5343 = vrot.lane.b32.xlu0 %v12870_v63, %s12150_s9  ;;  %v4053_v43 = vsel %vm349_vm1, %v4042_v39, 0  ;;  %v13327_v39 = vld [vmem:[%s12272_s8 + $0x18] ss:$0 sps:$4 sm:$0xff]  }
 0x1ad   : > { %v1547_v42 = vpop.f32.mrf.mxu0  ;;  %11339 = vmatprep.subr.msk.bf16.mxu0 %vm349_vm1, %v4043_v40  ;;  %v1510_v44 = vpop.f32.mrf.mxu1  ;;  %11763 = vmatmul.mubr.msk.bf16.vlgmr.msra.gmra.mxu1 %vm345_vm2, %v12855_v58 }
 0x1ae   : > { %v13254_v45 = vadd.f32 %v1547_v42, %v13189_v60  ;;  %4088 = vmatpush1.bf16.msra.mxu0 %v4053_v43  ;;  %v4036_v47 = vpop.permute.xlu1 %4035  ;;  %v4032_v48 = vpop.permute.xlu0 %4031  ;;  %4146 = vmatprep.mubr.bf16.mxu1 %v12137_v2 }
 0x1af   : > { %v1549_v49 = vpop.f32.mrf.mxu0  ;;  %v1511_v50 = vpop.f32.mrf.mxu1  ;;  %v4044_v51 = vsel %vm4041_vm6, %v4030_v27, %v4032_v48  ;;  %v4045_v53 = vsel %vm4041_vm6, %v4032_v48, %v4034_v35  ;;  %v4046_v3 = vsel %vm4041_vm6, %v4034_v35, %v4036_v47 }
 0x1b0   : > { %v13261_v52 = vadd.f32 %v1549_v49, %v13196_v5  ;;  %5567 = vrot.lane.b32.xlu1 %v12279_v4, %s12175_s13  ;;  %5357 = vrot.lane.b32.xlu0 %v12313_v14, %s12174_s29  ;;  %v4059_v54 = vsel %vm349_vm1, %v4044_v51, 0  ;;  %v4065_v23 = vsel %vm349_vm1, %v4046_v3, 0  ;;  %s12177_s29 = smov 41  }
 0x1b1   : > { %v1551_v58 = vpop.f32.mrf.mxu0  ;;  %11341 = vmatprep.subr.msk.bf16.mxu1 %vm349_vm1, %v4045_v53  ;;  %v1588_v55 = vpop.f32.mrf.mxu1 }
 0x1b2   : > { %4129 = vmatpush1.bf16.msra.mxu1 %v4059_v54  ;;  %v4040_v57 = vpop.permute.xlu1 %4039  ;;  %v13271_v60 = vadd.f32 %v1588_v55, %v13209_v18  ;;  %v4024_v13 = vpop.permute.xlu0 %4023 }
 0x1b3   : > { %v1552_v61 = vpop.f32.mrf.mxu0  ;;  %11766 = vmatprep.subr.bf16.mxu1 %v12152_v32  ;;  %v11698_v62 = vpop.f32.mrf.mxu1  ;;  %11340 = vmatmul.mubr.msk.bf16.vlgmr.msra.gmra.mxu0 %vm345_vm2, %v4024_v13 }
 0x1b4   : > { %5571 = vrot.lane.b32.xlu1 %v12295_v11, %s12175_s13  ;;  %5565 = vrot.lane.b32.xlu0 %v12287_v8, %s12175_s13 }
 0x1b5   : > { %v1685_v0 = vpop.f32.mrf.mxu0  ;;  %4187 = vmatprep.mubr.bf16.mxu0 %v12137_v2  ;;  %v1591_v5 = vpop.f32.mrf.mxu1  ;;  %11342 = vmatmul.mubr.msk.bf16.vlgmr.msra.gmra.mxu1 %vm345_vm2, %v4024_v13 }
 0x1b6   : > { %v13282_v9 = vadd.f32 %v1685_v0, %v13221_v26  ;;  %v4248_v59 = vpop.permute.xlu1 %4247  ;;  %v4038_v15 = vpop.permute.xlu0 %4037  ;;  %11768 = vmatprep.mubr.msk.bf16.mxu1 %vm12153_vm3, %v12152_v32 }
 0x1b7   : > { %v1687_v16 = vpop.f32.mrf.mxu0  ;;  %v11699_v17 = vpop.f32.mrf.mxu1  ;;  %v4048_v18 = vsel %vm4041_vm6, %v4038_v15, %v4040_v57  ;;  %v4047_v21 = vsel %vm4041_vm6, %v4036_v47, %v4038_v15  ;;  %vm6901_vm6 = vcmask 834560  }
 0x1b8   : > { %v13289_v20 = vadd.f32 %v1687_v16, %v13229_v33  ;;  %5563 = vrot.lane.b32.xlu1 %v12870_v63, %s12154_s11  ;;  %5569 = vrot.lane.b32.xlu0 %v12284_v7, %s12175_s13  ;;  %v4071_v24 = vsel %vm349_vm1, %v4048_v18, 0 }
 0x1b9   : > { %v1689_v22 = vpop.f32.mrf.mxu0  ;;  %11343 = vmatprep.subr.msk.bf16.mxu0 %vm349_vm1, %v4047_v21  ;;  %v1726_v1 = vpop.f32.mrf.mxu1  ;;  %11767 = vmatpush3.bf16.msra.mxu1 %v4071_v24 }
 0x1ba   : > { %4170 = vmatpush1.bf16.msra.mxu0 %v4065_v23  ;;  %v4252_v25 = vpop.permute.xlu1 %4251  ;;  %v13300_v19 = vadd.f32 %v1726_v1, %v13240_v36  ;;  %v4246_v26 = vpop.permute.xlu0 %4245 }
 0x1bb   : > { %v1690_v27 = vpop.f32.mrf.mxu0  ;;  %v1728_v28 = vpop.f32.mrf.mxu1  ;;  %v4262_v31 = vsel %vm4261_vm7, %v4246_v26, %v4248_v59 }
 0x1bc   : > { %5577 = vrot.lane.b32.xlu1 %v12313_v14, %s12175_s13  ;;  %v13305_v29 = vadd.f32 %v1728_v28, %v13247_v41  ;;  %5573 = vrot.lane.b32.xlu0 %v12304_v12, %s12175_s13  ;;  %v4273_v38 = vsel %vm349_vm1, %v4262_v31, 0 }
 0x1bd   : > { %v1767_v30 = vpop.f32.mrf.mxu0  ;;  %11344 = vmatmul.mubr.msk.bf16.vlgmr.msra.gmra.mxu0 %vm345_vm2, %v4024_v13  ;;  %v1730_v33 = vpop.f32.mrf.mxu1  ;;  %11769 = vmatmul.mubr.msk.bf16.vlgmr.msra.gmra.mxu1 %vm345_vm2, %v4024_v13 }
 0x1be   : > { %v13312_v10 = vadd.f32 %v1767_v30, %v13254_v45  ;;  %v13315_v6 = vpop.permute.xlu1 %4243  ;;  %4325 = vmatprep.mubr.bf16.mxu0 %v12137_v2  ;;  %v4250_v34 = vpop.permute.xlu0 %4249  ;;  %4366 = vmatprep.mubr.bf16.mxu1 %v12137_v2 }
 0x1bf   : > { %v1769_v35 = vpop.f32.mrf.mxu0  ;;  %v1731_v36 = vpop.f32.mrf.mxu1  ;;  %v4263_v46 = vsel %vm4261_vm7, %v4248_v59, %v4250_v34  ;;  %v4264_v43 = vsel %vm4261_vm7, %v4250_v34, %v4252_v25 }
 0x1c0   : > { %v13320_v37 = vadd.f32 %v1769_v35, %v13261_v52  ;;  %5785 = vrot.lane.b32.xlu1 %v12287_v8, %s12176_s7  ;;  %5575 = vrot.lane.b32.xlu0 %v13327_v39, %s12175_s13  ;;  %v4279_v53 = vsel %vm349_vm1, %v4264_v43, 0 }
 0x1c1   : > { %v1771_v40 = vpop.f32.mrf.mxu0  ;;  %11346 = vmatprep.subr.msk.bf16.mxu0 %vm349_vm1, %v4263_v46  ;;  %v1808_v41 = vpop.f32.mrf.mxu1 }
 0x1c2   : > { %4308 = vmatpush1.bf16.msra.mxu0 %v4273_v38  ;;  %v4258_v42 = vpop.permute.xlu1 %4257  ;;  %v13334_v44 = vadd.f32 %v1808_v41, %v13271_v60  ;;  %v4254_v45 = vpop.permute.xlu0 %4253 }
 0x1c3   : > { %v1772_v47 = vpop.f32.mrf.mxu0  ;;  %v11704_v48 = vpop.f32.mrf.mxu1  ;;  %v4265_v49 = vsel %vm4261_vm7, %v4252_v25, %v4254_v45 }
 0x1c4   : > { %5789 = vrot.lane.b32.xlu1 %v12284_v7, %s12176_s7  ;;  %5579 = vrot.lane.b32.xlu0 %v12725_v56, %s12175_s13  ;;  %s12178_s13 = smov 103  }
 0x1c5   : > { %v1905_v50 = vpop.f32.mrf.mxu0  ;;  %11347 = vmatmul.mubr.msk.bf16.vlgmr.msra.gmra.mxu0 %vm345_vm2, %v13315_v6  ;;  %v1811_v51 = vpop.f32.mrf.mxu1  ;;  %11348 = vmatprep.subr.msk.bf16.mxu1 %vm349_vm1, %v4265_v49 }
 0x1c6   : > { %v13344_v52 = vadd.f32 %v1905_v50, %v13282_v9  ;;  %v4466_v58 = vpop.permute.xlu1 %4465  ;;  %4407 = vmatprep.mubr.bf16.mxu0 %v12137_v2  ;;  %4349 = vmatpush1.bf16.msra.mxu1 %v4279_v53  ;;  %v4256_v54 = vpop.permute.xlu0 %4255 }
 0x1c7   : > { %v1907_v55 = vpop.f32.mrf.mxu0  ;;  %v11705_v57 = vpop.f32.mrf.mxu1  ;;  %v4266_v60 = vsel %vm4261_vm7, %v4254_v45, %v4256_v54  ;;  %v4267_v61 = vsel %vm4261_vm7, %v4256_v54, %v4258_v42  ;;  %11772 = vmatprep.subr.bf16.mxu1 %v12152_v32 }
 0x1c8   : > { %v13351_v13 = vadd.f32 %v1907_v55, %v13289_v20  ;;  %5793 = vrot.lane.b32.xlu1 %v12304_v12, %s12176_s7  ;;  %5787 = vrot.lane.b32.xlu0 %v12279_v4, %s12176_s7  ;;  %v4285_v0 = vsel %vm349_vm1, %v4266_v60, 0 }
 0x1c9   : > { %v1909_v62 = vpop.f32.mrf.mxu0  ;;  %11350 = vmatprep.subr.msk.bf16.mxu0 %vm349_vm1, %v4267_v61  ;;  %v1946_v3 = vpop.f32.mrf.mxu1  ;;  %11349 = vmatmul.mubr.msk.bf16.vlgmr.msra.gmra.mxu1 %vm345_vm2, %v13315_v6 }
 0x1ca   : > { %4390 = vmatpush1.bf16.msra.mxu0 %v4285_v0  ;;  %v4470_v5 = vpop.permute.xlu1 %4469  ;;  %v13364_v9 = vadd.f32 %v1946_v3, %v13300_v19  ;;  %v4260_v59 = vpop.permute.xlu0 %4259  ;;  %11774 = vmatprep.mubr.msk.bf16.mxu1 %vm12153_vm3, %v12152_v32 }
 0x1cb   : > { %v1910_v15 = vpop.f32.mrf.mxu0  ;;  %v1948_v16 = vpop.f32.mrf.mxu1  ;;  %v4268_v17 = vsel %vm4261_vm7, %v4258_v42, %v4260_v59  ;;  %vm7121_vm7 = vcmask 826368  }
 0x1cc   : > { %5795 = vrot.lane.b32.xlu1 %v13327_v39, %s12176_s7  ;;  %v13372_v18 = vadd.f32 %v1948_v16, %v13305_v29  ;;  %v4291_v20 = vsel %vm349_vm1, %v4268_v17, 0  ;;  %5791 = vrot.lane.b32.xlu0 %v12295_v11, %s12176_s7 }
 0x1cd   : > { %v1987_v21 = vpop.f32.mrf.mxu0  ;;  %11351 = vmatmul.mubr.msk.bf16.vlgmr.msra.gmra.mxu0 %vm345_vm2, %v13315_v6  ;;  %v1950_v22 = vpop.f32.mrf.mxu1  ;;  %11773 = vmatpush3.bf16.msra.mxu1 %v4291_v20 }
 0x1ce   : > { %v13380_v23 = vadd.f32 %v1987_v21, %v13312_v10  ;;  %v4474_v24 = vpop.permute.xlu1 %4473  ;;  %4545 = vmatprep.mubr.bf16.mxu0 %v12137_v2  ;;  %v4468_v1 = vpop.permute.xlu0 %4467 }
 0x1cf   : > { %v1989_v25 = vpop.f32.mrf.mxu0  ;;  %v1951_v19 = vpop.f32.mrf.mxu1  ;;  %v4482_v26 = vsel %vm4481_vm8, %v4466_v58, %v4468_v1  ;;  %v4483_v28 = vsel %vm4481_vm8, %v4468_v1, %v4470_v5 }
 0x1d0   : > { %v13385_v27 = vadd.f32 %v1989_v25, %v13320_v37  ;;  %5799 = vrot.lane.b32.xlu1 %v12725_v56, %s12176_s7  ;;  %5783 = vrot.lane.b32.xlu0 %v12870_v63, %s12155_s12  ;;  %v4493_v30 = vsel %vm349_vm1, %v4482_v26, 0 }
 0x1d1   : > { %v1991_v29 = vpop.f32.mrf.mxu0  ;;  %11353 = vmatprep.subr.msk.bf16.mxu0 %vm349_vm1, %v4483_v28  ;;  %v2028_v31 = vpop.f32.mrf.mxu1  ;;  %11775 = vmatmul.mubr.msk.bf16.vlgmr.msra.gmra.mxu1 %vm345_vm2, %v13315_v6 }
 0x1d2   : > { %4528 = vmatpush1.bf16.msra.mxu0 %v4493_v30  ;;  %v4476_v33 = vpop.permute.xlu1 %4475  ;;  %v13397_v10 = vadd.f32 %v2028_v31, %v13334_v44  ;;  %v4472_v34 = vpop.permute.xlu0 %4471  ;;  %4586 = vmatprep.mubr.bf16.mxu1 %v12137_v2 }
 0x1d3   : > { %v1992_v35 = vpop.f32.mrf.mxu0  ;;  %v11710_v36 = vpop.f32.mrf.mxu1  ;;  %v4484_v37 = vsel %vm4481_vm8, %v4470_v5, %v4472_v34  ;;  %v4485_v46 = vsel %vm4481_vm8, %v4472_v34, %v4474_v24  ;;  %v4486_v49 = vsel %vm4481_vm8, %v4474_v24, %v4476_v33 }
 0x1d4   : > { %6007 = vrot.lane.b32.xlu1 %v12279_v4, %s12177_s29  ;;  %5797 = vrot.lane.b32.xlu0 %v12313_v14, %s12176_s7  ;;  %v4499_v38 = vsel %vm349_vm1, %v4484_v37, 0  ;;  %v4505_v61 = vsel %vm349_vm1, %v4486_v49, 0  ;;  %s12179_s7 = smov 102  }
 0x1d5   : > { %v2125_v6 = vpop.f32.mrf.mxu0  ;;  %11355 = vmatprep.subr.msk.bf16.mxu1 %vm349_vm1, %v4485_v46  ;;  %v2031_v40 = vpop.f32.mrf.mxu1 }
 0x1d6   : > { %v2254_v41 = vadd.f32 %v2125_v6, %v13344_v52  ;;  %4569 = vmatpush1.bf16.msra.mxu1 %v4499_v38  ;;  %v4480_v42 = vpop.permute.xlu1 %4479  ;;  %v4464_v43 = vpop.permute.xlu0 %4463 }
 0x1d7   : > { %v2127_v44 = vpop.f32.mrf.mxu0  ;;  %11778 = vmatprep.subr.bf16.mxu1 %v12152_v32  ;;  %v11711_v45 = vpop.f32.mrf.mxu1  ;;  %11354 = vmatmul.mubr.msk.bf16.vlgmr.msra.gmra.mxu0 %vm345_vm2, %v4464_v43 }
 0x1d8   : > { %v2255_v47 = vadd.f32 %v2127_v44, %v13351_v13  ;;  %6011 = vrot.lane.b32.xlu1 %v12295_v11, %s12177_s29  ;;  %6005 = vrot.lane.b32.xlu0 %v12287_v8, %s12177_s29 }
 0x1d9   : > { %v2129_v48 = vpop.f32.mrf.mxu0  ;;  %4627 = vmatprep.mubr.bf16.mxu0 %v12137_v2  ;;  %v2166_v50 = vpop.f32.mrf.mxu1  ;;  %11356 = vmatmul.mubr.msk.bf16.vlgmr.msra.gmra.mxu1 %vm345_vm2, %v4464_v43 }
 0x1da   : > { %v4688_v51 = vpop.permute.xlu1 %4687  ;;  %v13420_v52 = vadd.f32 %v2166_v50, %v13364_v9  ;;  %v4478_v53 = vpop.permute.xlu0 %4477  ;;  %11780 = vmatprep.mubr.msk.bf16.mxu1 %vm12153_vm3, %v12152_v32 }
 0x1db   : > { %v2130_v58 = vpop.f32.mrf.mxu0  ;;  %v2168_v54 = vpop.f32.mrf.mxu1  ;;  %v4488_v55 = vsel %vm4481_vm8, %v4478_v53, %v4480_v42  ;;  %v4487_v57 = vsel %vm4481_vm8, %v4476_v33, %v4478_v53  ;;  %vm7340_vm8 = vcmask 818176  }
 0x1dc   : > { %6003 = vrot.lane.b32.xlu1 %v12870_v63, %s12157_s15  ;;  %v13429_v60 = vadd.f32 %v2168_v54, %v13372_v18  ;;  %6009 = vrot.lane.b32.xlu0 %v12284_v7, %s12177_s29  ;;  %v4511_v62 = vsel %vm349_vm1, %v4488_v55, 0 }
 0x1dd   : > { %v2207_v13 = vpop.f32.mrf.mxu0  ;;  %11357 = vmatprep.subr.msk.bf16.mxu0 %vm349_vm1, %v4487_v57  ;;  %v2170_v0 = vpop.f32.mrf.mxu1  ;;  %11779 = vmatpush3.bf16.msra.mxu1 %v4511_v62 }
 0x1de   : > { %v13437_v3 = vadd.f32 %v2207_v13, %v13380_v23  ;;  %4610 = vmatpush1.bf16.msra.mxu0 %v4505_v61  ;;  %v4692_v5 = vpop.permute.xlu1 %4691  ;;  %v4686_v9 = vpop.permute.xlu0 %4685 }
 0x1df   : > { %v2209_v59 = vpop.f32.mrf.mxu0  ;;  %v2171_v15 = vpop.f32.mrf.mxu1  ;;  %v4702_v18 = vsel %vm4701_vm9, %v4686_v9, %v4688_v51 }
 0x1e0   : > { %v13440_v16 = vadd.f32 %v2209_v59, %v13385_v27  ;;  %6017 = vrot.lane.b32.xlu1 %v12313_v14, %s12177_s29  ;;  %6013 = vrot.lane.b32.xlu0 %v12304_v12, %s12177_s29  ;;  %v4713_v19 = vsel %vm349_vm1, %v4702_v18, 0 }
 0x1e1   : > { %v2211_v17 = vpop.f32.mrf.mxu0  ;;  %11358 = vmatmul.mubr.msk.bf16.vlgmr.msra.gmra.mxu0 %vm345_vm2, %v4464_v43  ;;  %v2248_v20 = vpop.f32.mrf.mxu1  ;;  %11781 = vmatmul.mubr.msk.bf16.vlgmr.msra.gmra.mxu1 %vm345_vm2, %v4464_v43 }
 0x1e2   : > { %v13449_v21 = vpop.permute.xlu1 %4683  ;;  %4765 = vmatprep.mubr.bf16.mxu0 %v12137_v2  ;;  %v13453_v22 = vadd.f32 %v2248_v20, %v13397_v10  ;;  %v4690_v23 = vpop.permute.xlu0 %4689  ;;  %4806 = vmatprep.mubr.bf16.mxu1 %v12137_v2 }
 0x1e3   : > { %v2212_v24 = vpop.f32.mrf.mxu0  ;;  %v11716_v1 = vpop.f32.mrf.mxu1  ;;  %v4703_v25 = vsel %vm4701_vm9, %v4688_v51, %v4690_v23  ;;  %v4704_v30 = vsel %vm4701_vm9, %v4690_v23, %v4692_v5 }
 0x1e4   : > { %6225 = vrot.lane.b32.xlu1 %v12287_v8, %s12159_s26  ;;  %6015 = vrot.lane.b32.xlu0 %v13327_v39, %s12177_s29  ;;  %v4719_v37 = vsel %vm349_vm1, %v4704_v30, 0 }
 0x1e5   : > { %v2345_v26 = vpop.f32.mrf.mxu0  ;;  %11360 = vmatprep.subr.msk.bf16.mxu0 %vm349_vm1, %v4703_v25  ;;  %v2251_v27 = vpop.f32.mrf.mxu1 }
 0x1e6   : > { %v13463_v28 = vadd.f32 %v2345_v26, %v2254_v41  ;;  %4748 = vmatpush1.bf16.msra.mxu0 %v4713_v19  ;;  %v4698_v29 = vpop.permute.xlu1 %4697  ;;  %v4694_v31 = vpop.permute.xlu0 %4693 }
 0x1e7   : > { %v2347_v33 = vpop.f32.mrf.mxu0  ;;  %v11717_v8 = vpop.f32.mrf.mxu1  ;;  %v4705_v34 = vsel %vm4701_vm9, %v4692_v5, %v4694_v31 }
 0x1e8   : > { %v13466_v10 = vadd.f32 %v2347_v33, %v2255_v47  ;;  %6229 = vrot.lane.b32.xlu1 %v12284_v7, %s12159_s26  ;;  %6019 = vrot.lane.b32.xlu0 %v12725_v56, %s12177_s29  ;;  %s12180_s29 = smov 101  }
 0x1e9   : > { %v2349_v35 = vpop.f32.mrf.mxu0  ;;  %11361 = vmatmul.mubr.msk.bf16.vlgmr.msra.gmra.mxu0 %vm345_vm2, %v13449_v21  ;;  %v2386_v36 = vpop.f32.mrf.mxu1  ;;  %11362 = vmatprep.subr.msk.bf16.mxu1 %vm349_vm1, %v4705_v34 }
 0x1ea   : > { %v4906_v46 = vpop.permute.xlu1 %4905  ;;  %4847 = vmatprep.mubr.bf16.mxu0 %v12137_v2  ;;  %v13479_v6 = vadd.f32 %v2386_v36, %v13420_v52  ;;  %4789 = vmatpush1.bf16.msra.mxu1 %v4719_v37  ;;  %v4696_v38 = vpop.permute.xlu0 %4695 }
 0x1eb   : > { %v2350_v40 = vpop.f32.mrf.mxu0  ;;  %v2388_v41 = vpop.f32.mrf.mxu1  ;;  %v4706_v42 = vsel %vm4701_vm9, %v4694_v31, %v4696_v38  ;;  %v4707_v43 = vsel %vm4701_vm9, %v4696_v38, %v4698_v29  ;;  %11784 = vmatprep.subr.bf16.mxu1 %v12152_v32 }
 0x1ec   : > { %6233 = vrot.lane.b32.xlu1 %v12304_v12, %s12159_s26  ;;  %v13487_v44 = vadd.f32 %v2388_v41, %v13429_v60  ;;  %6227 = vrot.lane.b32.xlu0 %v12279_v4, %s12159_s26  ;;  %v4725_v47 = vsel %vm349_vm1, %v4706_v42, 0 }
 0x1ed   : > { %v2427_v45 = vpop.f32.mrf.mxu0  ;;  %11364 = vmatprep.subr.msk.bf16.mxu0 %vm349_vm1, %v4707_v43  ;;  %v2390_v48 = vpop.f32.mrf.mxu1  ;;  %11363 = vmatmul.mubr.msk.bf16.vlgmr.msra.gmra.mxu1 %vm345_vm2, %v13449_v21 }
 0x1ee   : > { %v13494_v49 = vadd.f32 %v2427_v45, %v13437_v3  ;;  %4830 = vmatpush1.bf16.msra.mxu0 %v4725_v47  ;;  %v4910_v50 = vpop.permute.xlu1 %4909  ;;  %v4700_v51 = vpop.permute.xlu0 %4699  ;;  %11786 = vmatprep.mubr.msk.bf16.mxu1 %vm12153_vm3, %v12152_v32 }
 0x1ef   : > { %v2429_v52 = vpop.f32.mrf.mxu0  ;;  %v2391_v53 = vpop.f32.mrf.mxu1  ;;  %v4708_v58 = vsel %vm4701_vm9, %v4698_v29, %v4700_v51  ;;  %vm7563_vm9 = vcmask 809984  }
 0x1f0   : > { %v13502_v54 = vadd.f32 %v2429_v52, %v13440_v16  ;;  %6235 = vrot.lane.b32.xlu1 %v13327_v39, %s12159_s26  ;;  %v4731_v55 = vsel %vm349_vm1, %v4708_v58, 0  ;;  %6231 = vrot.lane.b32.xlu0 %v12295_v11, %s12159_s26  ;;  %v286_v53 = vld [vmem:[%s12301_s14 + $0x8] sm:$0xff] }
 0x1f1   : > { %v2431_v57 = vpop.f32.mrf.mxu0  ;;  %11365 = vmatmul.mubr.msk.bf16.vlgmr.msra.gmra.mxu0 %vm345_vm2, %v13449_v21  ;;  %v2468_v60 = vpop.f32.mrf.mxu1  ;;  %11785 = vmatpush3.bf16.msra.mxu1 %v4731_v55 }
 0x1f2   : > { %v4914_v13 = vpop.permute.xlu1 %4913  ;;  %4985 = vmatprep.mubr.bf16.mxu0 %v12137_v2  ;;  %v2480_v61 = vadd.f32 %v2468_v60, %v13453_v22  ;;  %v4908_v62 = vpop.permute.xlu0 %4907 }
 0x1f3   : > { %v2432_v0 = vpop.f32.mrf.mxu0  ;;  %v11722_v3 = vpop.f32.mrf.mxu1  ;;  %v4922_v5 = vsel %vm4921_vm10, %v4906_v46, %v4908_v62  ;;  %v4923_v9 = vsel %vm4921_vm10, %v4908_v62, %v4910_v50 }
 0x1f4   : > { %6239 = vrot.lane.b32.xlu1 %v12725_v56, %s12159_s26  ;;  %6223 = vrot.lane.b32.xlu0 %v12870_v63, %s12159_s26  ;;  %v4933_v59 = vsel %vm349_vm1, %v4922_v5, 0 }
 0x1f5   : > { %11367 = vmatprep.subr.msk.bf16.mxu0 %vm349_vm1, %v4923_v9  ;;  %v2471_v15 = vpop.f32.mrf.mxu1  ;;  %11787 = vmatmul.mubr.msk.bf16.vlgmr.msra.gmra.mxu1 %vm345_vm2, %v13449_v21 }
 0x1f6   : > { %4968 = vmatpush1.bf16.msra.mxu0 %v4933_v59  ;;  %v4916_v16 = vpop.permute.xlu1 %4915  ;;  %v4912_v17 = vpop.permute.xlu0 %4911  ;;  %5026 = vmatprep.mubr.bf16.mxu1 %v12137_v2 }
 0x1f7   : > { %v11723_v18 = vpop.f32.mrf.mxu1  ;;  %v4924_v20 = vsel %vm4921_vm10, %v4910_v50, %v4912_v17  ;;  %v2565_v22 = vpop.f32.mrf.mxu0  ;;  %v4925_v23 = vsel %vm4921_vm10, %v4912_v17, %v4914_v13  ;;  %v4926_v33 = vsel %vm4921_vm10, %v4914_v13, %v4916_v16 }
 0x1f8   : > { %6447 = vrot.lane.b32.xlu1 %v12284_v7, %s12142_s25  ;;  %v13529_v24 = vadd.f32 %v2565_v22, %v13463_v28  ;;  %6237 = vrot.lane.b32.xlu0 %v12313_v14, %s12159_s26  ;;  %v4939_v21 = vsel %vm349_vm1, %v4924_v20, 0  ;;  %v4945_v38 = vsel %vm349_vm1, %v4926_v33, 0 }
 0x1f9   : > { %11369 = vmatprep.subr.msk.bf16.mxu1 %vm349_vm1, %v4925_v23  ;;  %v2606_v1 = vpop.f32.mrf.mxu1  ;;  %v2567_v25 = vpop.f32.mrf.mxu0 }
 0x1fa   : > { %5009 = vmatpush1.bf16.msra.mxu1 %v4939_v21  ;;  %v13536_v19 = vadd.f32 %v2606_v1, %v13479_v6  ;;  %v13539_v26 = vadd.f32 %v2567_v25, %v13466_v10  ;;  %v4920_v27 = vpop.permute.xlu1 %4919  ;;  %v4904_v29 = vpop.permute.xlu0 %4903 }
 0x1fb   : > { %11790 = vmatprep.subr.bf16.mxu1 %v12152_v32  ;;  %v2608_v28 = vpop.f32.mrf.mxu1  ;;  %v2569_v30 = vpop.f32.mrf.mxu0  ;;  %11368 = vmatmul.mubr.msk.bf16.vlgmr.msra.gmra.mxu0 %vm345_vm2, %v4904_v29 }
 0x1fc   : > { %6451 = vrot.lane.b32.xlu1 %v12304_v12, %s12142_s25  ;;  %v13546_v31 = vadd.f32 %v2608_v28, %v13487_v44  ;;  %6445 = vrot.lane.b32.xlu0 %v12279_v4, %s12142_s25 }
 0x1fd   : > { %5067 = vmatprep.mubr.bf16.mxu0 %v12137_v2  ;;  %v2610_v8 = vpop.f32.mrf.mxu1  ;;  %11370 = vmatmul.mubr.msk.bf16.vlgmr.msra.gmra.mxu1 %vm345_vm2, %v4904_v29  ;;  %v2570_v10 = vpop.f32.mrf.mxu0 }
 0x1fe   : > { %v5128_v34 = vpop.permute.xlu1 %5127  ;;  %v4918_v35 = vpop.permute.xlu0 %4917  ;;  %11792 = vmatprep.mubr.msk.bf16.mxu1 %vm12153_vm3, %v12152_v32 }
 0x1ff   : > { %v2611_v36 = vpop.f32.mrf.mxu1  ;;  %v4928_v37 = vsel %vm4921_vm10, %v4918_v35, %v4920_v27  ;;  %v4927_v46 = vsel %vm4921_vm10, %v4916_v16, %v4918_v35  ;;  %vm7783_vm10 = vcmask 801792  }
 0x200   : > { %6443 = vrot.lane.b32.xlu1 %v12870_v63, %s12161_s5  ;;  %6449 = vrot.lane.b32.xlu0 %v12295_v11, %s12142_s25  ;;  %v4951_v40 = vsel %vm349_vm1, %v4928_v37, 0 }
 0x201   : > { %v2647_v6 = vpop.f32.mrf.mxu0  ;;  %11371 = vmatprep.subr.msk.bf16.mxu0 %vm349_vm1, %v4927_v46  ;;  %v2688_v41 = vpop.f32.mrf.mxu1  ;;  %11791 = vmatpush3.bf16.msra.mxu1 %v4951_v40 }
 0x202   : > { %v13565_v42 = vadd.f32 %v2647_v6, %v13494_v49  ;;  %5050 = vmatpush1.bf16.msra.mxu0 %v4945_v38  ;;  %v13567_v43 = vadd.f32 %v2688_v41, %v2480_v61  ;;  %v5132_v44 = vpop.permute.xlu1 %5131  ;;  %v5126_v45 = vpop.permute.xlu0 %5125  ;;  %v13591_v61 = vcombine.low %v286_v53, %v286_v53 }
 0x203   : > { %v11728_v47 = vpop.f32.mrf.mxu1  ;;  %v2649_v48 = vpop.f32.mrf.mxu0  ;;  %v5142_v49 = vsel %vm5141_vm11, %v5126_v45, %v5128_v34 }
 0x204   : > { %6457 = vrot.lane.b32.xlu1 %v12725_v56, %s12142_s25  ;;  %v13572_v50 = vadd.f32 %v2649_v48, %v13502_v54  ;;  %6453 = vrot.lane.b32.xlu0 %v13327_v39, %s12142_s25  ;;  %v5153_v13 = vsel %vm349_vm1, %v5142_v49, 0 }
 0x205   : > { %11372 = vmatmul.mubr.msk.bf16.vlgmr.msra.gmra.mxu0 %vm345_vm2, %v4904_v29  ;;  %v2691_v51 = vpop.f32.mrf.mxu1  ;;  %v2651_v52 = vpop.f32.mrf.mxu0  ;;  %11793 = vmatmul.mubr.msk.bf16.vlgmr.msra.gmra.mxu1 %vm345_vm2, %v4904_v29 }
 0x206   : > { %5205 = vmatprep.mubr.bf16.mxu0 %v12137_v2  ;;  %v13581_v58 = vpop.permute.xlu1 %5123  ;;  %v5130_v55 = vpop.permute.xlu0 %5129  ;;  %5246 = vmatprep.mubr.bf16.mxu1 %v12137_v2 }
 0x207   : > { %v11729_v54 = vpop.f32.mrf.mxu1  ;;  %v2652_v57 = vpop.f32.mrf.mxu0  ;;  %v5143_v60 = vsel %vm5141_vm11, %v5128_v34, %v5130_v55  ;;  %v5144_v0 = vsel %vm5141_vm11, %v5130_v55, %v5132_v44 }
 0x208   : > { %6665 = vrot.lane.b32.xlu1 %v12279_v4, %s12178_s13  ;;  %6455 = vrot.lane.b32.xlu0 %v12313_v14, %s12142_s25  ;;  %v5159_v20 = vsel %vm349_vm1, %v5144_v0, 0 }
 0x209   : > { %11374 = vmatprep.subr.msk.bf16.mxu0 %vm349_vm1, %v5143_v60  ;;  %v2785_v62 = vpop.f32.mrf.mxu0 }
 0x20a   : > { %5188 = vmatpush1.bf16.msra.mxu0 %v5153_v13  ;;  %v13595_v3 = vadd.f32 %v2785_v62, %v13529_v24  ;;  %v5138_v5 = vpop.permute.xlu1 %5137  ;;  %v5134_v9 = vpop.permute.xlu0 %5133 }
 0x20b   : > { %v2787_v59 = vpop.f32.mrf.mxu0  ;;  %v5145_v15 = vsel %vm5141_vm11, %v5132_v44, %v5134_v9 }
 0x20c   : > { %6669 = vrot.lane.b32.xlu1 %v12295_v11, %s12178_s13  ;;  %v13601_v16 = vadd.f32 %v2787_v59, %v13539_v26  ;;  %6459 = vrot.lane.b32.xlu0 %v13591_v61, %s12142_s25 }
 0x20d   : > { %11375 = vmatmul.mubr.msk.bf16.vlgmr.msra.gmra.mxu0 %vm345_vm2, %v13581_v58  ;;  %v2826_v17 = vpop.f32.mrf.mxu1  ;;  %v2789_v18 = vpop.f32.mrf.mxu0  ;;  %11376 = vmatprep.subr.msk.bf16.mxu1 %vm349_vm1, %v5145_v15 }
 0x20e   : > { %5287 = vmatprep.mubr.bf16.mxu0 %v12137_v2  ;;  %v13611_v22 = vadd.f32 %v2826_v17, %v13536_v19  ;;  %5229 = vmatpush1.bf16.msra.mxu1 %v5159_v20  ;;  %v5346_v23 = vpop.permute.xlu1 %5345  ;;  %v5136_v24 = vpop.permute.xlu0 %5135 }
 0x20f   : > { %v2828_v21 = vpop.f32.mrf.mxu1  ;;  %v5146_v1 = vsel %vm5141_vm11, %v5134_v9, %v5136_v24  ;;  %v2790_v25 = vpop.f32.mrf.mxu0  ;;  %v5147_v26 = vsel %vm5141_vm11, %v5136_v24, %v5138_v5  ;;  %11796 = vmatprep.subr.bf16.mxu1 %v12152_v32 }
 0x210   : > { %6673 = vrot.lane.b32.xlu1 %v13327_v39, %s12178_s13  ;;  %v13619_v27 = vadd.f32 %v2828_v21, %v13546_v31  ;;  %6667 = vrot.lane.b32.xlu0 %v12284_v7, %s12178_s13  ;;  %v5165_v19 = vsel %vm349_vm1, %v5146_v1, 0 }
 0x211   : > { %11378 = vmatprep.subr.msk.bf16.mxu0 %vm349_vm1, %v5147_v26  ;;  %v2830_v29 = vpop.f32.mrf.mxu1  ;;  %v2867_v28 = vpop.f32.mrf.mxu0  ;;  %11377 = vmatmul.mubr.msk.bf16.vlgmr.msra.gmra.mxu1 %vm345_vm2, %v13581_v58 }
 0x212   : > { %5270 = vmatpush1.bf16.msra.mxu0 %v5165_v19  ;;  %v13628_v30 = vadd.f32 %v2867_v28, %v13565_v42  ;;  %v5350_v33 = vpop.permute.xlu1 %5349  ;;  %v5140_v8 = vpop.permute.xlu0 %5139  ;;  %11798 = vmatprep.mubr.msk.bf16.mxu1 %vm12153_vm3, %v12152_v32 }
 0x213   : > { %v2831_v31 = vpop.f32.mrf.mxu1  ;;  %v5148_v10 = vsel %vm5141_vm11, %v5138_v5, %v5140_v8  ;;  %v2869_v34 = vpop.f32.mrf.mxu0  ;;  %vm8003_vm11 = vcmask 277504  }
 0x214   : > { %6675 = vrot.lane.b32.xlu1 %v12313_v14, %s12178_s13  ;;  %v5171_v35 = vsel %vm349_vm1, %v5148_v10, 0  ;;  %v13637_v36 = vadd.f32 %v2869_v34, %v13572_v50  ;;  %6671 = vrot.lane.b32.xlu0 %v12304_v12, %s12178_s13 }
 0x215   : > { %11379 = vmatmul.mubr.msk.bf16.vlgmr.msra.gmra.mxu0 %vm345_vm2, %v13581_v58  ;;  %v2908_v37 = vpop.f32.mrf.mxu1  ;;  %v2871_v46 = vpop.f32.mrf.mxu0  ;;  %11797 = vmatpush3.bf16.msra.mxu1 %v5171_v35 }
 0x216   : > { %5425 = vmatprep.mubr.bf16.mxu0 %v12137_v2  ;;  %v2920_v6 = vadd.f32 %v2908_v37, %v13567_v43  ;;  %v5354_v38 = vpop.permute.xlu1 %5353  ;;  %v5348_v40 = vpop.permute.xlu0 %5347 }
 0x217   : > { %v11734_v41 = vpop.f32.mrf.mxu1  ;;  %v5362_v42 = vsel %vm5361_vm12, %v5346_v23, %v5348_v40  ;;  %v2872_v44 = vpop.f32.mrf.mxu0  ;;  %v5363_v45 = vsel %vm5361_vm12, %v5348_v40, %v5350_v33 }
 0x218   : > { %6679 = vrot.lane.b32.xlu1 %v13591_v61, %s12178_s13  ;;  %6663 = vrot.lane.b32.xlu0 %v12870_v63, %s15168_s10  ;;  %v5373_v47 = vsel %vm349_vm1, %v5362_v42, 0  ;;  %s12184_s10 = smov 34  }
 0x219   : > { %11381 = vmatprep.subr.msk.bf16.mxu0 %vm349_vm1, %v5363_v45  ;;  %v2911_v48 = vpop.f32.mrf.mxu1  ;;  %11799 = vmatmul.mubr.msk.bf16.vlgmr.msra.gmra.mxu1 %vm345_vm2, %v13581_v58 }
 0x21a   : > { %5408 = vmatpush1.bf16.msra.mxu0 %v5373_v47  ;;  %v5356_v43 = vpop.permute.xlu1 %5355  ;;  %v5352_v50 = vpop.permute.xlu0 %5351  ;;  %5466 = vmatprep.mubr.bf16.mxu1 %v12137_v2 }
 0x21b   : > { %v11735_v49 = vpop.f32.mrf.mxu1  ;;  %v5364_v51 = vsel %vm5361_vm12, %v5350_v33, %v5352_v50  ;;  %v3005_v52 = vpop.f32.mrf.mxu0  ;;  %v5365_v53 = vsel %vm5361_vm12, %v5352_v50, %v5354_v38  ;;  %v5366_v59 = vsel %vm5361_vm12, %v5354_v38, %v5356_v43 }
 0x21c   : > { %6887 = vrot.lane.b32.xlu1 %v12284_v7, %s12179_s7  ;;  %v13661_v55 = vadd.f32 %v3005_v52, %v13595_v3  ;;  %6677 = vrot.lane.b32.xlu0 %v12725_v56, %s12178_s13  ;;  %v5379_v58 = vsel %vm349_vm1, %v5364_v51, 0  ;;  %v5385_v21 = vsel %vm349_vm1, %v5366_v59, 0  ;;  %s15169_s13 = smov 8  }
 0x21d   : > { %11383 = vmatprep.subr.msk.bf16.mxu1 %vm349_vm1, %v5365_v53  ;;  %v3046_v54 = vpop.f32.mrf.mxu1  ;;  %v3007_v57 = vpop.f32.mrf.mxu0 }
 0x21e   : > { %5449 = vmatpush1.bf16.msra.mxu1 %v5379_v58  ;;  %v13668_v60 = vadd.f32 %v3046_v54, %v13611_v22  ;;  %v13671_v13 = vadd.f32 %v3007_v57, %v13601_v16  ;;  %v5360_v62 = vpop.permute.xlu1 %5359  ;;  %v5344_v0 = vpop.permute.xlu0 %5343 }
 0x21f   : > { %11802 = vmatprep.subr.bf16.mxu1 %v12152_v32  ;;  %v3048_v3 = vpop.f32.mrf.mxu1  ;;  %v3009_v5 = vpop.f32.mrf.mxu0  ;;  %11382 = vmatmul.mubr.msk.bf16.vlgmr.msra.gmra.mxu0 %vm345_vm2, %v5344_v0 }
 0x220   : > { %6891 = vrot.lane.b32.xlu1 %v12304_v12, %s12179_s7  ;;  %v13678_v9 = vadd.f32 %v3048_v3, %v13619_v27  ;;  %6885 = vrot.lane.b32.xlu0 %v12279_v4, %s12179_s7 }
 0x221   : > { %5507 = vmatprep.mubr.bf16.mxu0 %v12137_v2  ;;  %v3050_v15 = vpop.f32.mrf.mxu1  ;;  %11384 = vmatmul.mubr.msk.bf16.vlgmr.msra.gmra.mxu1 %vm345_vm2, %v5344_v0  ;;  %v3010_v16 = vpop.f32.mrf.mxu0 }
 0x222   : > { %v5568_v17 = vpop.permute.xlu1 %5567  ;;  %v5358_v18 = vpop.permute.xlu0 %5357  ;;  %11804 = vmatprep.mubr.msk.bf16.mxu1 %vm12153_vm3, %v12152_v32 }
 0x223   : > { %v3051_v20 = vpop.f32.mrf.mxu1  ;;  %v5368_v22 = vsel %vm5361_vm12, %v5358_v18, %v5360_v62  ;;  %v5367_v23 = vsel %vm5361_vm12, %v5356_v43, %v5358_v18  ;;  %vm8223_vm12 = vcmask 269312  }
 0x224   : > { %6883 = vrot.lane.b32.xlu1 %v12870_v63, %s15167_s23  ;;  %6889 = vrot.lane.b32.xlu0 %v12295_v11, %s12179_s7  ;;  %v5391_v1 = vsel %vm349_vm1, %v5368_v22, 0  ;;  %s12194_s23 = smov 87  }
 0x225   : > { %v3087_v24 = vpop.f32.mrf.mxu0  ;;  %11385 = vmatprep.subr.msk.bf16.mxu0 %vm349_vm1, %v5367_v23  ;;  %v3128_v25 = vpop.f32.mrf.mxu1  ;;  %11803 = vmatpush3.bf16.msra.mxu1 %v5391_v1 }
 0x226   : > { %v13697_v26 = vadd.f32 %v3087_v24, %v13628_v30  ;;  %5490 = vmatpush1.bf16.msra.mxu0 %v5385_v21  ;;  %v13699_v27 = vadd.f32 %v3128_v25, %v2920_v6  ;;  %v5572_v19 = vpop.permute.xlu1 %5571  ;;  %v5566_v29 = vpop.permute.xlu0 %5565 }
 0x227   : > { %v11740_v28 = vpop.f32.mrf.mxu1  ;;  %v3089_v33 = vpop.f32.mrf.mxu0  ;;  %v5582_v30 = vsel %vm5581_vm13, %v5566_v29, %v5568_v17 }
 0x228   : > { %6897 = vrot.lane.b32.xlu1 %v12725_v56, %s12179_s7  ;;  %v13704_v8 = vadd.f32 %v3089_v33, %v13637_v36  ;;  %6893 = vrot.lane.b32.xlu0 %v13327_v39, %s12179_s7  ;;  %v5593_v6 = vsel %vm349_vm1, %v5582_v30, 0 }
 0x229   : > { %11386 = vmatmul.mubr.msk.bf16.vlgmr.msra.gmra.mxu0 %vm345_vm2, %v5344_v0  ;;  %v3131_v31 = vpop.f32.mrf.mxu1  ;;  %v3091_v10 = vpop.f32.mrf.mxu0  ;;  %11805 = vmatmul.mubr.msk.bf16.vlgmr.msra.gmra.mxu1 %vm345_vm2, %v5344_v0 }
 0x22a   : > { %5645 = vmatprep.mubr.bf16.mxu0 %v12137_v2  ;;  %v13712_v34 = vpop.permute.xlu1 %5563  ;;  %v5570_v35 = vpop.permute.xlu0 %5569  ;;  %5686 = vmatprep.mubr.bf16.mxu1 %v12137_v2 }
 0x22b   : > { %v11741_v36 = vpop.f32.mrf.mxu1  ;;  %v3092_v37 = vpop.f32.mrf.mxu0  ;;  %v5583_v46 = vsel %vm5581_vm13, %v5568_v17, %v5570_v35  ;;  %v5584_v40 = vsel %vm5581_vm13, %v5570_v35, %v5572_v19 }
 0x22c   : > { %7105 = vrot.lane.b32.xlu1 %v12279_v4, %s12180_s29  ;;  %6895 = vrot.lane.b32.xlu0 %v12313_v14, %s12179_s7  ;;  %v5599_v49 = vsel %vm349_vm1, %v5584_v40, 0 }
 0x22d   : > { %11388 = vmatprep.subr.msk.bf16.mxu0 %vm349_vm1, %v5583_v46  ;;  %v3225_v38 = vpop.f32.mrf.mxu0 }
 0x22e   : > { %5628 = vmatpush1.bf16.msra.mxu0 %v5593_v6  ;;  %v13724_v41 = vadd.f32 %v3225_v38, %v13661_v55  ;;  %v5578_v42 = vpop.permute.xlu1 %5577  ;;  %v5574_v44 = vpop.permute.xlu0 %5573 }
 0x22f   : > { %v3227_v45 = vpop.f32.mrf.mxu0  ;;  %v5585_v47 = vsel %vm5581_vm13, %v5572_v19, %v5574_v44 }
 0x230   : > { %7109 = vrot.lane.b32.xlu1 %v12295_v11, %s12180_s29  ;;  %v13730_v48 = vadd.f32 %v3227_v45, %v13671_v13  ;;  %6899 = vrot.lane.b32.xlu0 %v13591_v61, %s12179_s7  ;;  %s12181_s7 = smov 100  }
 0x231   : > { %11389 = vmatmul.mubr.msk.bf16.vlgmr.msra.gmra.mxu0 %vm345_vm2, %v13712_v34  ;;  %v3266_v43 = vpop.f32.mrf.mxu1  ;;  %v3229_v50 = vpop.f32.mrf.mxu0  ;;  %11390 = vmatprep.subr.msk.bf16.mxu1 %vm349_vm1, %v5585_v47 }
 0x232   : > { %5727 = vmatprep.mubr.bf16.mxu0 %v12137_v2  ;;  %v13740_v51 = vadd.f32 %v3266_v43, %v13668_v60  ;;  %5669 = vmatpush1.bf16.msra.mxu1 %v5599_v49  ;;  %v5786_v52 = vpop.permute.xlu1 %5785  ;;  %v5576_v53 = vpop.permute.xlu0 %5575 }
 0x233   : > { %v3268_v55 = vpop.f32.mrf.mxu1  ;;  %v5586_v58 = vsel %vm5581_vm13, %v5574_v44, %v5576_v53  ;;  %v3230_v54 = vpop.f32.mrf.mxu0  ;;  %v5587_v57 = vsel %vm5581_vm13, %v5576_v53, %v5578_v42  ;;  %11808 = vmatprep.subr.bf16.mxu1 %v12152_v32 }
 0x234   : > { %7113 = vrot.lane.b32.xlu1 %v13327_v39, %s12180_s29  ;;  %v13748_v13 = vadd.f32 %v3268_v55, %v13678_v9  ;;  %7107 = vrot.lane.b32.xlu0 %v12284_v7, %s12180_s29  ;;  %v5605_v60 = vsel %vm349_vm1, %v5586_v58, 0 }
 0x235   : > { %11392 = vmatprep.subr.msk.bf16.mxu0 %vm349_vm1, %v5587_v57  ;;  %v3270_v62 = vpop.f32.mrf.mxu1  ;;  %v3307_v0 = vpop.f32.mrf.mxu0  ;;  %11391 = vmatmul.mubr.msk.bf16.vlgmr.msra.gmra.mxu1 %vm345_vm2, %v13712_v34 }
 0x236   : > { %5710 = vmatpush1.bf16.msra.mxu0 %v5605_v60  ;;  %v13757_v39 = vadd.f32 %v3307_v0, %v13697_v26  ;;  %v5790_v3 = vpop.permute.xlu1 %5789  ;;  %v5580_v5 = vpop.permute.xlu0 %5579  ;;  %11810 = vmatprep.mubr.msk.bf16.mxu1 %vm12153_vm3, %v12152_v32 }
 0x237   : > { %v3271_v9 = vpop.f32.mrf.mxu1  ;;  %v5588_v59 = vsel %vm5581_vm13, %v5578_v42, %v5580_v5  ;;  %v3309_v15 = vpop.f32.mrf.mxu0  ;;  %vm8443_vm13 = vcmask 261120  }
 0x238   : > { %7115 = vrot.lane.b32.xlu1 %v12313_v14, %s12180_s29  ;;  %v5611_v16 = vsel %vm349_vm1, %v5588_v59, 0  ;;  %v13766_v17 = vadd.f32 %v3309_v15, %v13704_v8  ;;  %7111 = vrot.lane.b32.xlu0 %v12304_v12, %s12180_s29 }
 0x239   : > { %11393 = vmatmul.mubr.msk.bf16.vlgmr.msra.gmra.mxu0 %vm345_vm2, %v13712_v34  ;;  %v3348_v18 = vpop.f32.mrf.mxu1  ;;  %v3311_v20 = vpop.f32.mrf.mxu0  ;;  %11809 = vmatpush3.bf16.msra.mxu1 %v5611_v16 }
 0x23a   : > { %5865 = vmatprep.mubr.bf16.mxu0 %v12137_v2  ;;  %v3360_v22 = vadd.f32 %v3348_v18, %v13699_v27  ;;  %v5794_v23 = vpop.permute.xlu1 %5793  ;;  %v5788_v24 = vpop.permute.xlu0 %5787 }
 0x23b   : > { %v11746_v21 = vpop.f32.mrf.mxu1  ;;  %v5802_v1 = vsel %vm5801_vm14, %v5786_v52, %v5788_v24  ;;  %v3312_v25 = vpop.f32.mrf.mxu0  ;;  %v5803_v26 = vsel %vm5801_vm14, %v5788_v24, %v5790_v3 }
 0x23c   : > { %7119 = vrot.lane.b32.xlu1 %v13591_v61, %s12180_s29  ;;  %7103 = vrot.lane.b32.xlu0 %v12870_v63, %s15169_s13  ;;  %v5813_v19 = vsel %vm349_vm1, %v5802_v1, 0 }
 0x23d   : > { %11395 = vmatprep.subr.msk.bf16.mxu0 %vm349_vm1, %v5803_v26  ;;  %v3351_v29 = vpop.f32.mrf.mxu1  ;;  %11811 = vmatmul.mubr.msk.bf16.vlgmr.msra.gmra.mxu1 %vm345_vm2, %v13712_v34 }
 0x23e   : > { %5848 = vmatpush1.bf16.msra.mxu0 %v5813_v19  ;;  %v5796_v27 = vpop.permute.xlu1 %5795  ;;  %v5792_v28 = vpop.permute.xlu0 %5791  ;;  %5906 = vmatprep.mubr.bf16.mxu1 %v12137_v2 }
 0x23f   : > { %v11747_v33 = vpop.f32.mrf.mxu1  ;;  %v5804_v8 = vsel %vm5801_vm14, %v5790_v3, %v5792_v28  ;;  %v3445_v30 = vpop.f32.mrf.mxu0  ;;  %v5805_v63 = vsel %vm5801_vm14, %v5792_v28, %v5794_v23  ;;  %v5806_v42 = vsel %vm5801_vm14, %v5794_v23, %v5796_v27  ;;  %v13836_v3 = vld [vmem:[%s12272_s8 + $0x18] ss:$0 sps:$4 sm:$0xff]  }
 0x240   : > { %7326 = vrot.lane.b32.xlu1 %v12284_v7, %s12181_s7  ;;  %v13790_v31 = vadd.f32 %v3445_v30, %v13724_v41  ;;  %7117 = vrot.lane.b32.xlu0 %v12725_v56, %s12180_s29  ;;  %v5819_v10 = vsel %vm349_vm1, %v5804_v8, 0  ;;  %v5825_v52 = vsel %vm349_vm1, %v5806_v42, 0  ;;  %s12182_s29 = smov 99  }
 0x241   : > { %11397 = vmatprep.subr.msk.bf16.mxu1 %vm349_vm1, %v5805_v63  ;;  %v3486_v34 = vpop.f32.mrf.mxu1  ;;  %v3447_v35 = vpop.f32.mrf.mxu0 }
 0x242   : > { %5889 = vmatpush1.bf16.msra.mxu1 %v5819_v10  ;;  %v13797_v36 = vadd.f32 %v3486_v34, %v13740_v51  ;;  %v13800_v37 = vadd.f32 %v3447_v35, %v13730_v48  ;;  %v5800_v46 = vpop.permute.xlu1 %5799  ;;  %v5784_v6 = vpop.permute.xlu0 %5783 }
 0x243   : > { %11814 = vmatprep.subr.bf16.mxu1 %v12152_v32  ;;  %v3488_v38 = vpop.f32.mrf.mxu1  ;;  %v3449_v40 = vpop.f32.mrf.mxu0  ;;  %11396 = vmatmul.mubr.msk.bf16.vlgmr.msra.gmra.mxu0 %vm345_vm2, %v5784_v6 }
 0x244   : > { %7330 = vrot.lane.b32.xlu1 %v12304_v12, %s12181_s7  ;;  %v13807_v41 = vadd.f32 %v3488_v38, %v13748_v13  ;;  %7324 = vrot.lane.b32.xlu0 %v12279_v4, %s12181_s7 }
 0x245   : > { %5947 = vmatprep.mubr.bf16.mxu0 %v12137_v2  ;;  %v3490_v44 = vpop.f32.mrf.mxu1  ;;  %11398 = vmatmul.mubr.msk.bf16.vlgmr.msra.gmra.mxu1 %vm345_vm2, %v5784_v6  ;;  %v3450_v45 = vpop.f32.mrf.mxu0 }
 0x246   : > { %v6008_v47 = vpop.permute.xlu1 %6007  ;;  %v5798_v48 = vpop.permute.xlu0 %5797  ;;  %11816 = vmatprep.mubr.msk.bf16.mxu1 %vm12153_vm3, %v12152_v32 }
 0x247   : > { %v3491_v43 = vpop.f32.mrf.mxu1  ;;  %v5808_v50 = vsel %vm5801_vm14, %v5798_v48, %v5800_v46  ;;  %v5807_v49 = vsel %vm5801_vm14, %v5796_v27, %v5798_v48  ;;  %vm8663_vm14 = vcmask 252928  }
 0x248   : > { %7334 = vrot.lane.b32.xlu1 %v12313_v14, %s12181_s7  ;;  %7328 = vrot.lane.b32.xlu0 %v12295_v11, %s12181_s7  ;;  %v5831_v53 = vsel %vm349_vm1, %v5808_v50, 0 }
 0x249   : > { %v3527_v51 = vpop.f32.mrf.mxu0  ;;  %11399 = vmatprep.subr.msk.bf16.mxu0 %vm349_vm1, %v5807_v49  ;;  %v3568_v55 = vpop.f32.mrf.mxu1  ;;  %11815 = vmatpush3.bf16.msra.mxu1 %v5831_v53 }
 0x24a   : > { %v13826_v58 = vadd.f32 %v3527_v51, %v13757_v39  ;;  %5930 = vmatpush1.bf16.msra.mxu0 %v5825_v52  ;;  %v13828_v54 = vadd.f32 %v3568_v55, %v3360_v22  ;;  %v6012_v57 = vpop.permute.xlu1 %6011  ;;  %v6006_v13 = vpop.permute.xlu0 %6005  ;;  %v13857_v22 = vld [vmem:[%s15162_s2 + $0x8] sm:$0xf] }
 0x24b   : > { %v11752_v60 = vpop.f32.mrf.mxu1  ;;  %v3529_v62 = vpop.f32.mrf.mxu0  ;;  %v6022_v39 = vsel %vm6021_vm15, %v6006_v13, %v6008_v47  ;;  %v13868_v29 = vcombine.low %v13857_v22, %v13857_v22 }
 0x24c   : > { %7338 = vrot.lane.b32.xlu1 %v13591_v61, %s12181_s7  ;;  %v13833_v0 = vadd.f32 %v3529_v62, %v13766_v17  ;;  %7332 = vrot.lane.b32.xlu0 %v13836_v3, %s12181_s7  ;;  %v6033_v20 = vsel %vm349_vm1, %v6022_v39, 0 }
 0x24d   : > { %11400 = vmatmul.mubr.msk.bf16.vlgmr.msra.gmra.mxu0 %vm345_vm2, %v5784_v6  ;;  %v3571_v5 = vpop.f32.mrf.mxu1  ;;  %v3531_v9 = vpop.f32.mrf.mxu0  ;;  %11817 = vmatmul.mubr.msk.bf16.vlgmr.msra.gmra.mxu1 %vm345_vm2, %v5784_v6 }
 0x24e   : > { %6085 = vmatprep.mubr.bf16.mxu0 %v12137_v2  ;;  %v13844_v59 = vpop.permute.xlu1 %6003  ;;  %v6010_v15 = vpop.permute.xlu0 %6009  ;;  %6126 = vmatprep.mubr.bf16.mxu1 %v12137_v2 }
 0x24f   : > { %v11753_v16 = vpop.f32.mrf.mxu1  ;;  %v3532_v17 = vpop.f32.mrf.mxu0  ;;  %v6023_v18 = vsel %vm6021_vm15, %v6008_v47, %v6010_v15  ;;  %v6024_v24 = vsel %vm6021_vm15, %v6010_v15, %v6012_v57 }
 0x250   : > { %7549 = vrot.lane.b32.xlu1 %v12284_v7, %s12182_s29  ;;  %7336 = vrot.lane.b32.xlu0 %v12725_v56, %s12181_s7  ;;  %v6039_v8 = vsel %vm349_vm1, %v6024_v24, 0 }
 0x251   : > { %11402 = vmatprep.subr.msk.bf16.mxu0 %vm349_vm1, %v6023_v18  ;;  %v3665_v23 = vpop.f32.mrf.mxu0 }
 0x252   : > { %6068 = vmatpush1.bf16.msra.mxu0 %v6033_v20  ;;  %v13861_v21 = vadd.f32 %v3665_v23, %v13790_v31  ;;  %v6018_v1 = vpop.permute.xlu1 %6017  ;;  %v6014_v25 = vpop.permute.xlu0 %6013 }
 0x253   : > { %v3667_v26 = vpop.f32.mrf.mxu0  ;;  %v6025_v19 = vsel %vm6021_vm15, %v6012_v57, %v6014_v25 }
 0x254   : > { %7553 = vrot.lane.b32.xlu1 %v12304_v12, %s12182_s29  ;;  %v13871_v27 = vadd.f32 %v3667_v26, %v13800_v37  ;;  %7547 = vrot.lane.b32.xlu0 %v12279_v4, %s12182_s29 }
 0x255   : > { %11403 = vmatmul.mubr.msk.bf16.vlgmr.msra.gmra.mxu0 %vm345_vm2, %v13844_v59  ;;  %v3706_v28 = vpop.f32.mrf.mxu1  ;;  %v3669_v33 = vpop.f32.mrf.mxu0  ;;  %11404 = vmatprep.subr.msk.bf16.mxu1 %vm349_vm1, %v6025_v19 }
 0x256   : > { %6167 = vmatprep.mubr.bf16.mxu0 %v12137_v2  ;;  %v13881_v30 = vadd.f32 %v3706_v28, %v13797_v36  ;;  %6109 = vmatpush1.bf16.msra.mxu1 %v6039_v8  ;;  %v6226_v63 = vpop.permute.xlu1 %6225  ;;  %v6016_v31 = vpop.permute.xlu0 %6015 }
 0x257   : > { %v3708_v10 = vpop.f32.mrf.mxu1  ;;  %v6026_v34 = vsel %vm6021_vm15, %v6014_v25, %v6016_v31  ;;  %v3670_v35 = vpop.f32.mrf.mxu0  ;;  %v6027_v37 = vsel %vm6021_vm15, %v6016_v31, %v6018_v1  ;;  %11820 = vmatprep.subr.bf16.mxu1 %v12152_v32 }
 0x258   : > { %7545 = vrot.lane.b32.xlu1 %v13868_v29, %s12136_s27  ;;  %v13889_v46 = vadd.f32 %v3708_v10, %v13807_v41  ;;  %7551 = vrot.lane.b32.xlu0 %v12295_v11, %s12182_s29  ;;  %v6045_v36 = vsel %vm349_vm1, %v6026_v34, 0  ;;  %s12183_s27 = smov 98  }
 0x259   : > { %11406 = vmatprep.subr.msk.bf16.mxu0 %vm349_vm1, %v6027_v37  ;;  %v3710_v6 = vpop.f32.mrf.mxu1  ;;  %v3747_v38 = vpop.f32.mrf.mxu0  ;;  %11405 = vmatmul.mubr.msk.bf16.vlgmr.msra.gmra.mxu1 %vm345_vm2, %v13844_v59 }
 0x25a   : > { %6150 = vmatpush1.bf16.msra.mxu0 %v6045_v36  ;;  %v13898_v40 = vadd.f32 %v3747_v38, %v13826_v58  ;;  %v6230_v42 = vpop.permute.xlu1 %6229  ;;  %v6020_v44 = vpop.permute.xlu0 %6019  ;;  %11822 = vmatprep.mubr.msk.bf16.mxu1 %vm12153_vm3, %v12152_v32 }
 0x25b   : > { %v3711_v41 = vpop.f32.mrf.mxu1  ;;  %v6028_v45 = vsel %vm6021_vm15, %v6018_v1, %v6020_v44  ;;  %v3749_v47 = vpop.f32.mrf.mxu0  ;;  %vm8883_vm15 = vcmask 244736  }
 0x25c   : > { %7559 = vrot.lane.b32.xlu1 %v12725_v56, %s12182_s29  ;;  %v6051_v48 = vsel %vm349_vm1, %v6028_v45, 0  ;;  %v13907_v43 = vadd.f32 %v3749_v47, %v13833_v0  ;;  %7555 = vrot.lane.b32.xlu0 %v13836_v3, %s12182_s29 }
 0x25d   : > { %11407 = vmatmul.mubr.msk.bf16.vlgmr.msra.gmra.mxu0 %vm345_vm2, %v13844_v59  ;;  %v3788_v50 = vpop.f32.mrf.mxu1  ;;  %v3751_v49 = vpop.f32.mrf.mxu0  ;;  %11821 = vmatpush3.bf16.msra.mxu1 %v6051_v48 }
 0x25e   : > { %6305 = vmatprep.mubr.bf16.mxu0 %v12137_v2  ;;  %v13915_v51 = vadd.f32 %v3788_v50, %v13828_v54  ;;  %v6234_v52 = vpop.permute.xlu1 %6233  ;;  %v6228_v53 = vpop.permute.xlu0 %6227 }
 0x25f   : > { %v11758_v55 = vpop.f32.mrf.mxu1  ;;  %v6242_v58 = vsel %vm6241_vm0, %v6226_v63, %v6228_v53  ;;  %v3752_v57 = vpop.f32.mrf.mxu0  ;;  %v6243_v13 = vsel %vm6241_vm0, %v6228_v53, %v6230_v42 }
 0x260   : > { %7767 = vrot.lane.b32.xlu1 %v12279_v4, %s12183_s27  ;;  %7557 = vrot.lane.b32.xlu0 %v12313_v14, %s12182_s29  ;;  %v6253_v54 = vsel %vm349_vm1, %v6242_v58, 0 }
 0x261   : > { %11409 = vmatprep.subr.msk.bf16.mxu0 %vm349_vm1, %v6243_v13  ;;  %v3791_v60 = vpop.f32.mrf.mxu1  ;;  %v3884_v62 = vpop.f32.mrf.mxu0  ;;  %11823 = vmatmul.mubr.msk.bf16.vlgmr.msra.gmra.mxu1 %vm345_vm2, %v13844_v59 }
 0x262   : > { %6288 = vmatpush1.bf16.msra.mxu0 %v6253_v54  ;;  %v13928_v0 = vadd.f32 %v3884_v62, %v13861_v21  ;;  %v6236_v39 = vpop.permute.xlu1 %6235  ;;  %v6232_v5 = vpop.permute.xlu0 %6231  ;;  %6346 = vmatprep.mubr.bf16.mxu1 %v12137_v2 }
 0x263   : > { %v11759_v9 = vpop.f32.mrf.mxu1  ;;  %v6244_v15 = vsel %vm6241_vm0, %v6230_v42, %v6232_v5  ;;  %v3886_v16 = vpop.f32.mrf.mxu0  ;;  %v6245_v17 = vsel %vm6241_vm0, %v6232_v5, %v6234_v52 }
 0x264   : > { %7771 = vrot.lane.b32.xlu1 %v12295_v11, %s12183_s27  ;;  %v13936_v18 = vadd.f32 %v3886_v16, %v13871_v27  ;;  %7561 = vrot.lane.b32.xlu0 %v13591_v61, %s12182_s29  ;;  %v6259_v59 = vsel %vm349_vm1, %v6244_v15, 0  ;;  %v6246_v27 = vsel %vm6241_vm0, %v6234_v52, %v6236_v39 }
 0x265   : > { %11411 = vmatprep.subr.msk.bf16.mxu1 %vm349_vm1, %v6245_v17  ;;  %v3925_v20 = vpop.f32.mrf.mxu1  ;;  %v3888_v23 = vpop.f32.mrf.mxu0 }
 0x266   : > { %6329 = vmatpush1.bf16.msra.mxu1 %v6259_v59  ;;  %v13943_v24 = vadd.f32 %v3925_v20, %v13881_v30  ;;  %v6240_v21 = vpop.permute.xlu1 %6239  ;;  %v6224_v1 = vpop.permute.xlu0 %6223 }
 0x267   : > { %11826 = vmatprep.subr.bf16.mxu1 %v12152_v32  ;;  %v3927_v25 = vpop.f32.mrf.mxu1  ;;  %v3889_v26 = vpop.f32.mrf.mxu0  ;;  %11410 = vmatmul.mubr.msk.bf16.vlgmr.msra.gmra.mxu0 %vm345_vm2, %v6224_v1 }
 0x268   : > { %7775 = vrot.lane.b32.xlu1 %v13836_v3, %s12183_s27  ;;  %v13950_v19 = vadd.f32 %v3927_v25, %v13889_v46  ;;  %7769 = vrot.lane.b32.xlu0 %v12284_v7, %s12183_s27  ;;  %v6265_v46 = vsel %vm349_vm1, %v6246_v27, 0 }
 0x269   : > { %6387 = vmatprep.mubr.bf16.mxu0 %v12137_v2  ;;  %v3929_v28 = vpop.f32.mrf.mxu1  ;;  %v3966_v33 = vpop.f32.mrf.mxu0  ;;  %11412 = vmatmul.mubr.msk.bf16.vlgmr.msra.gmra.mxu1 %vm345_vm2, %v6224_v1 }
 0x26a   : > { %v13958_v8 = vadd.f32 %v3966_v33, %v13898_v40  ;;  %v6448_v30 = vpop.permute.xlu1 %6447  ;;  %v6238_v63 = vpop.permute.xlu0 %6237  ;;  %11828 = vmatprep.mubr.msk.bf16.mxu1 %vm12153_vm3, %v12152_v32 }
 0x26b   : > { %v3930_v31 = vpop.f32.mrf.mxu1  ;;  %v6248_v10 = vsel %vm6241_vm0, %v6238_v63, %v6240_v21  ;;  %v3968_v34 = vpop.f32.mrf.mxu0  ;;  %v6247_v35 = vsel %vm6241_vm0, %v6236_v39, %v6238_v63  ;;  %vm9103_vm0 = vcmask 236544  }
 0x26c   : > { %7777 = vrot.lane.b32.xlu1 %v12313_v14, %s12183_s27  ;;  %v13967_v37 = vadd.f32 %v3968_v34, %v13907_v43  ;;  %7773 = vrot.lane.b32.xlu0 %v12304_v12, %s12183_s27  ;;  %v6271_v36 = vsel %vm349_vm1, %v6248_v10, 0 }
 0x26d   : > { %11413 = vmatprep.subr.msk.bf16.mxu0 %vm349_vm1, %v6247_v35  ;;  %v4007_v6 = vpop.f32.mrf.mxu1  ;;  %11827 = vmatpush3.bf16.msra.mxu1 %v6271_v36  ;;  %v3970_v38 = vpop.f32.mrf.mxu0 }
 0x26e   : > { %6370 = vmatpush1.bf16.msra.mxu0 %v6265_v46  ;;  %v4019_v40 = vadd.f32 %v4007_v6, %v13915_v51  ;;  %v6452_v42 = vpop.permute.xlu1 %6451  ;;  %v6446_v44 = vpop.permute.xlu0 %6445 }
 0x26f   : > { %v11764_v41 = vpop.f32.mrf.mxu1  ;;  %v3971_v45 = vpop.f32.mrf.mxu0  ;;  %v6462_v47 = vsel %vm6461_vm4, %v6446_v44, %v6448_v30 }
 0x270   : > { %7781 = vrot.lane.b32.xlu1 %v13591_v61, %s12183_s27  ;;  %7765 = vrot.lane.b32.xlu0 %v13868_v29, %s12140_s22  ;;  %v6473_v53 = vsel %vm349_vm1, %v6462_v47, 0  ;;  %s12185_s22 = smov 33  }
 0x271   : > { %11414 = vmatmul.mubr.msk.bf16.vlgmr.msra.gmra.mxu0 %vm345_vm2, %v6224_v1  ;;  %v4010_v48 = vpop.f32.mrf.mxu1  ;;  %11829 = vmatmul.mubr.msk.bf16.vlgmr.msra.gmra.mxu1 %vm345_vm2, %v6224_v1 }
 0x272   : > { %6525 = vmatprep.mubr.bf16.mxu0 %v12137_v2  ;;  %v13983_v43 = vpop.permute.xlu1 %6443  ;;  %v6450_v50 = vpop.permute.xlu0 %6449  ;;  %6566 = vmatprep.mubr.bf16.mxu1 %v12137_v2 }
 0x273   : > { %v11765_v49 = vpop.f32.mrf.mxu1  ;;  %v4107_v51 = vpop.f32.mrf.mxu0  ;;  %v6463_v52 = vsel %vm6461_vm4, %v6448_v30, %v6450_v50  ;;  %v6464_v13 = vsel %vm6461_vm4, %v6450_v50, %v6452_v42 }
 0x274   : > { %7989 = vrot.lane.b32.xlu1 %v12284_v7, %s12184_s10  ;;  %v13991_v55 = vadd.f32 %v4107_v51, %v13928_v0  ;;  %7779 = vrot.lane.b32.xlu0 %v12725_v56, %s12183_s27  ;;  %s11959_s27 = smul.u32 35, %s15183_s16 }
 0x275   : > { %11416 = vmatprep.subr.msk.bf16.mxu0 %vm349_vm1, %v6463_v52  ;;  %v4148_v58 = vpop.f32.mrf.mxu1  ;;  %v4109_v57 = vpop.f32.mrf.mxu0 }
 0x276   : > { %6508 = vmatpush1.bf16.msra.mxu0 %v6473_v53  ;;  %v13998_v54 = vadd.f32 %v4148_v58, %v13943_v24  ;;  %v14001_v60 = vadd.f32 %v4109_v57, %v13936_v18  ;;  %v6458_v62 = vpop.permute.xlu1 %6457  ;;  %v6454_v39 = vpop.permute.xlu0 %6453  ;;  %v6479_v18 = vsel %vm349_vm1, %v6464_v13, 0  ;;  %s276_s16 = sadd.s32 %s11959_s27, %s15187_s24 }
 0x277   : > { %v4150_v0 = vpop.f32.mrf.mxu1  ;;  %v4111_v5 = vpop.f32.mrf.mxu0  ;;  %v6465_v9 = vsel %vm6461_vm4, %v6452_v42, %v6454_v39 }
 0x278   : > { %7993 = vrot.lane.b32.xlu1 %v12304_v12, %s12184_s10  ;;  %v14007_v15 = vadd.f32 %v4150_v0, %v13950_v19  ;;  %7987 = vrot.lane.b32.xlu0 %v12279_v4, %s12184_s10 }
 0x279   : > { %11417 = vmatmul.mubr.msk.bf16.vlgmr.msra.gmra.mxu0 %vm345_vm2, %v13983_v43  ;;  %v4152_v16 = vpop.f32.mrf.mxu1  ;;  %11418 = vmatprep.subr.msk.bf16.mxu1 %vm349_vm1, %v6465_v9  ;;  %v4112_v17 = vpop.f32.mrf.mxu0 }
 0x27a   : > { %6607 = vmatprep.mubr.bf16.mxu0 %v12137_v2  ;;  %6549 = vmatpush1.bf16.msra.mxu1 %v6479_v18  ;;  %v6666_v59 = vpop.permute.xlu1 %6665  ;;  %v6456_v20 = vpop.permute.xlu0 %6455 }
 0x27b   : > { %v4153_v23 = vpop.f32.mrf.mxu1  ;;  %v6466_v24 = vsel %vm6461_vm4, %v6454_v39, %v6456_v20  ;;  %v6467_v21 = vsel %vm6461_vm4, %v6456_v20, %v6458_v62  ;;  %11832 = vmatprep.subr.bf16.mxu1 %v12152_v32 }
 0x27c   : > { %7985 = vrot.lane.b32.xlu1 %v13868_v29, %s12142_s25  ;;  %7991 = vrot.lane.b32.xlu0 %v12295_v11, %s12184_s10  ;;  %v6485_v25 = vsel %vm349_vm1, %v6466_v24, 0  ;;  %s12186_s25 = smov 31  }
 0x27d   : > { %v4189_v1 = vpop.f32.mrf.mxu0  ;;  %11420 = vmatprep.subr.msk.bf16.mxu0 %vm349_vm1, %v6467_v21  ;;  %v4230_v26 = vpop.f32.mrf.mxu1  ;;  %11419 = vmatmul.mubr.msk.bf16.vlgmr.msra.gmra.mxu1 %vm345_vm2, %v13983_v43 }
 0x27e   : > { %v14026_v19 = vadd.f32 %v4189_v1, %v13958_v8  ;;  %6590 = vmatpush1.bf16.msra.mxu0 %v6485_v25  ;;  %v14030_v27 = vadd.f32 %v4230_v26, %v4019_v40  ;;  %v6670_v28 = vpop.permute.xlu1 %6669  ;;  %v6460_v33 = vpop.permute.xlu0 %6459  ;;  %11834 = vmatprep.mubr.msk.bf16.mxu1 %vm12153_vm3, %v12152_v32 }
 0x27f   : > { %v11770_v30 = vpop.f32.mrf.mxu1  ;;  %v6468_v63 = vsel %vm6461_vm4, %v6458_v62, %v6460_v33  ;;  %v4191_v31 = vpop.f32.mrf.mxu0  ;;  %vm9323_vm4 = vcmask 228352  }
 0x280   : > { %7999 = vrot.lane.b32.xlu1 %v12725_v56, %s12184_s10  ;;  %v6491_v8 = vsel %vm349_vm1, %v6468_v63, 0  ;;  %v4241_v10 = vadd.f32 %v4191_v31, %v13967_v37  ;;  %7995 = vrot.lane.b32.xlu0 %v13836_v3, %s12184_s10 }
 0x281   : > { %11421 = vmatmul.mubr.msk.bf16.vlgmr.msra.gmra.mxu0 %vm345_vm2, %v13983_v43  ;;  %v4233_v34 = vpop.f32.mrf.mxu1  ;;  %v4193_v35 = vpop.f32.mrf.mxu0  ;;  %11833 = vmatpush3.bf16.msra.mxu1 %v6491_v8 }
 0x282   : > { %6745 = vmatprep.mubr.bf16.mxu0 %v12137_v2  ;;  %v6674_v46 = vpop.permute.xlu1 %6673  ;;  %v6668_v36 = vpop.permute.xlu0 %6667 }
 0x283   : > { %v11771_v6 = vpop.f32.mrf.mxu1  ;;  %v6682_v38 = vsel %vm6681_vm5, %v6666_v59, %v6668_v36  ;;  %v4194_v40 = vpop.f32.mrf.mxu0  ;;  %v6683_v37 = vsel %vm6681_vm5, %v6668_v36, %v6670_v28 }
 0x284   : > { %8207 = vrot.lane.b32.xlu1 %v12279_v4, %s12185_s22  ;;  %7997 = vrot.lane.b32.xlu0 %v12313_v14, %s12184_s10  ;;  %v6693_v42 = vsel %vm349_vm1, %v6682_v38, 0 }
 0x285   : > { %11423 = vmatprep.subr.msk.bf16.mxu0 %vm349_vm1, %v6683_v37  ;;  %v4327_v44 = vpop.f32.mrf.mxu0  ;;  %11835 = vmatmul.mubr.msk.bf16.vlgmr.msra.gmra.mxu1 %vm345_vm2, %v13983_v43 }
 0x286   : > { %6728 = vmatpush1.bf16.msra.mxu0 %v6693_v42  ;;  %v14055_v41 = vadd.f32 %v4327_v44, %v13991_v55  ;;  %v6676_v45 = vpop.permute.xlu1 %6675  ;;  %v6672_v47 = vpop.permute.xlu0 %6671  ;;  %6786 = vmatprep.mubr.bf16.mxu1 %v12137_v2 }
 0x287   : > { %v6684_v48 = vsel %vm6681_vm5, %v6670_v28, %v6672_v47  ;;  %v4329_v50 = vpop.f32.mrf.mxu0  ;;  %v6685_v49 = vsel %vm6681_vm5, %v6672_v47, %v6674_v46 }
 0x288   : > { %8211 = vrot.lane.b32.xlu1 %v12295_v11, %s12185_s22  ;;  %v14063_v51 = vadd.f32 %v4329_v50, %v14001_v60  ;;  %8001 = vrot.lane.b32.xlu0 %v13591_v61, %s12184_s10  ;;  %v6699_v43 = vsel %vm349_vm1, %v6684_v48, 0  ;;  %s11206_s10 = sshll.u32 %s276_s16, 3 }
 0x289   : > { %11425 = vmatprep.subr.msk.bf16.mxu1 %vm349_vm1, %v6685_v49  ;;  %v4368_v52 = vpop.f32.mrf.mxu1  ;;  %v4331_v53 = vpop.f32.mrf.mxu0  ;;  %s278_s24 = scalar_lea.vmem %s15164_s4, %s11206_s10 }
 0x28a   : > { %6769 = vmatpush1.bf16.msra.mxu1 %v6699_v43  ;;  %v4458_v55 = vadd.f32 %v4368_v52, %v13998_v54  ;;  %v6680_v58 = vpop.permute.xlu1 %6679  ;;  %v6664_v57 = vpop.permute.xlu0 %6663  ;;  %v6686_v54 = vsel %vm6681_vm5, %v6674_v46, %v6676_v45 }
 0x28b   : > { %11838 = vmatprep.subr.bf16.mxu1 %v12152_v32  ;;  %v4370_v13 = vpop.f32.mrf.mxu1  ;;  %v4332_v62 = vpop.f32.mrf.mxu0  ;;  %11424 = vmatmul.mubr.msk.bf16.vlgmr.msra.gmra.mxu0 %vm345_vm2, %v6664_v57  ;;  %v6705_v23 = vsel %vm349_vm1, %v6686_v54, 0 }
 0x28c   : > { %8215 = vrot.lane.b32.xlu1 %v13836_v3, %s12185_s22  ;;  %v4459_v60 = vadd.f32 %v4370_v13, %v14007_v15  ;;  %8209 = vrot.lane.b32.xlu0 %v12284_v7, %s12185_s22 }
 0x28d   : > { %6827 = vmatprep.mubr.bf16.mxu0 %v12137_v2  ;;  %v4372_v39 = vpop.f32.mrf.mxu1  ;;  %v4409_v0 = vpop.f32.mrf.mxu0  ;;  %11426 = vmatmul.mubr.msk.bf16.vlgmr.msra.gmra.mxu1 %vm345_vm2, %v6664_v57 }
 0x28e   : > { %v14081_v5 = vadd.f32 %v4409_v0, %v14026_v19  ;;  %v6888_v9 = vpop.permute.xlu1 %6887  ;;  %v6678_v16 = vpop.permute.xlu0 %6677  ;;  %11840 = vmatprep.mubr.msk.bf16.mxu1 %vm12153_vm3, %v12152_v32 }
 0x28f   : > { %v4373_v15 = vpop.f32.mrf.mxu1  ;;  %v6688_v17 = vsel %vm6681_vm5, %v6678_v16, %v6680_v58  ;;  %v4411_v18 = vpop.f32.mrf.mxu0  ;;  %v6687_v59 = vsel %vm6681_vm5, %v6676_v45, %v6678_v16  ;;  %vm9543_vm5 = vcmask 752640  }
 0x290   : > { %8217 = vrot.lane.b32.xlu1 %v12313_v14, %s12185_s22  ;;  %v14089_v20 = vadd.f32 %v4411_v18, %v4241_v10  ;;  %8213 = vrot.lane.b32.xlu0 %v12304_v12, %s12185_s22  ;;  %v6711_v24 = vsel %vm349_vm1, %v6688_v17, 0 }
 0x291   : > { %11427 = vmatprep.subr.msk.bf16.mxu0 %vm349_vm1, %v6687_v59  ;;  %v4450_v21 = vpop.f32.mrf.mxu1  ;;  %v4413_v1 = vpop.f32.mrf.mxu0  ;;  %11839 = vmatpush3.bf16.msra.mxu1 %v6711_v24 }
 0x292   : > { %6810 = vmatpush1.bf16.msra.mxu0 %v6705_v23  ;;  %v4462_v25 = vadd.f32 %v4450_v21, %v14030_v27  ;;  %v6892_v26 = vpop.permute.xlu1 %6891  ;;  %v6886_v19 = vpop.permute.xlu0 %6885 }
 0x293   : > { %v11776_v28 = vpop.f32.mrf.mxu1  ;;  %v4414_v33 = vpop.f32.mrf.mxu0  ;;  %v6902_v30 = vsel %vm6901_vm6, %v6886_v19, %v6888_v9 }
 0x294   : > { %8221 = vrot.lane.b32.xlu1 %v13591_v61, %s12185_s22  ;;  %8205 = vrot.lane.b32.xlu0 %v13868_v29, %s12144_s28  ;;  %v6913_v35 = vsel %vm349_vm1, %v6902_v30, 0  ;;  %s12187_s28 = smov 30  }
 0x295   : > { %11428 = vmatmul.mubr.msk.bf16.vlgmr.msra.gmra.mxu0 %vm345_vm2, %v6664_v57  ;;  %v4453_v63 = vpop.f32.mrf.mxu1  ;;  %11841 = vmatmul.mubr.msk.bf16.vlgmr.msra.gmra.mxu1 %vm345_vm2, %v6664_v57 }
 0x296   : > { %6965 = vmatprep.mubr.bf16.mxu0 %v12137_v2  ;;  %v14105_v27 = vpop.permute.xlu1 %6883  ;;  %v6890_v31 = vpop.permute.xlu0 %6889  ;;  %7006 = vmatprep.mubr.bf16.mxu1 %v12137_v2 }
 0x297   : > { %v11777_v8 = vpop.f32.mrf.mxu1  ;;  %v4547_v10 = vpop.f32.mrf.mxu0  ;;  %v6903_v34 = vsel %vm6901_vm6, %v6888_v9, %v6890_v31  ;;  %v6904_v38 = vsel %vm6901_vm6, %v6890_v31, %v6892_v26 }
 0x298   : > { %8429 = vrot.lane.b32.xlu1 %v12284_v7, %s12161_s5  ;;  %v14113_v46 = vadd.f32 %v4547_v10, %v14055_v41  ;;  %8219 = vrot.lane.b32.xlu0 %v12725_v56, %s12185_s22 }
 0x299   : > { %11430 = vmatprep.subr.msk.bf16.mxu0 %vm349_vm1, %v6903_v34  ;;  %v4588_v36 = vpop.f32.mrf.mxu1  ;;  %v4549_v6 = vpop.f32.mrf.mxu0 }
 0x29a   : > { %6948 = vmatpush1.bf16.msra.mxu0 %v6913_v35  ;;  %v14119_v40 = vadd.f32 %v4588_v36, %v4458_v55  ;;  %v14122_v37 = vadd.f32 %v4549_v6, %v14063_v51  ;;  %v6898_v42 = vpop.permute.xlu1 %6897  ;;  %v6894_v44 = vpop.permute.xlu0 %6893  ;;  %v6919_v51 = vsel %vm349_vm1, %v6904_v38, 0 }
 0x29b   : > { %v4590_v45 = vpop.f32.mrf.mxu1  ;;  %v4551_v41 = vpop.f32.mrf.mxu0  ;;  %v6905_v47 = vsel %vm6901_vm6, %v6892_v26, %v6894_v44 }
 0x29c   : > { %8433 = vrot.lane.b32.xlu1 %v12304_v12, %s12161_s5  ;;  %v14127_v48 = vadd.f32 %v4590_v45, %v4459_v60  ;;  %8427 = vrot.lane.b32.xlu0 %v12279_v4, %s12161_s5 }
 0x29d   : > { %11431 = vmatmul.mubr.msk.bf16.vlgmr.msra.gmra.mxu0 %vm345_vm2, %v14105_v27  ;;  %v4592_v50 = vpop.f32.mrf.mxu1  ;;  %11432 = vmatprep.subr.msk.bf16.mxu1 %vm349_vm1, %v6905_v47  ;;  %v4552_v49 = vpop.f32.mrf.mxu0 }
 0x29e   : > { %7047 = vmatprep.mubr.bf16.mxu0 %v12137_v2  ;;  %6989 = vmatpush1.bf16.msra.mxu1 %v6919_v51  ;;  %v7106_v43 = vpop.permute.xlu1 %7105  ;;  %v6896_v52 = vpop.permute.xlu0 %6895 }
 0x29f   : > { %v4593_v53 = vpop.f32.mrf.mxu1  ;;  %v6906_v55 = vsel %vm6901_vm6, %v6894_v44, %v6896_v52  ;;  %v6907_v58 = vsel %vm6901_vm6, %v6896_v52, %v6898_v42  ;;  %11844 = vmatprep.subr.bf16.mxu1 %v12152_v32 }
 0x2a0   : > { %8425 = vrot.lane.b32.xlu1 %v13868_v29, %s12146_s30  ;;  %8431 = vrot.lane.b32.xlu0 %v12295_v11, %s12161_s5  ;;  %v6925_v13 = vsel %vm349_vm1, %v6906_v55, 0 }
 0x2a1   : > { %v4629_v57 = vpop.f32.mrf.mxu0  ;;  %11434 = vmatprep.subr.msk.bf16.mxu0 %vm349_vm1, %v6907_v58  ;;  %v4670_v62 = vpop.f32.mrf.mxu1  ;;  %11433 = vmatmul.mubr.msk.bf16.vlgmr.msra.gmra.mxu1 %vm345_vm2, %v14105_v27 }
 0x2a2   : > { %v14146_v60 = vadd.f32 %v4629_v57, %v14081_v5  ;;  %7030 = vmatpush1.bf16.msra.mxu0 %v6925_v13  ;;  %v14150_v54 = vadd.f32 %v4670_v62, %v4462_v25  ;;  %v7110_v39 = vpop.permute.xlu1 %7109  ;;  %v6900_v0 = vpop.permute.xlu0 %6899  ;;  %11846 = vmatprep.mubr.msk.bf16.mxu1 %vm12153_vm3, %v12152_v32 }
 0x2a3   : > { %v11782_v9 = vpop.f32.mrf.mxu1  ;;  %v6908_v16 = vsel %vm6901_vm6, %v6898_v42, %v6900_v0  ;;  %v4631_v15 = vpop.f32.mrf.mxu0  ;;  %vm9763_vm6 = vcmask 744448  }
 0x2a4   : > { %8439 = vrot.lane.b32.xlu1 %v12725_v56, %s12161_s5  ;;  %v6931_v5 = vsel %vm349_vm1, %v6908_v16, 0  ;;  %v4681_v17 = vadd.f32 %v4631_v15, %v14089_v20  ;;  %8435 = vrot.lane.b32.xlu0 %v13836_v3, %s12161_s5 }
 0x2a5   : > { %11435 = vmatmul.mubr.msk.bf16.vlgmr.msra.gmra.mxu0 %vm345_vm2, %v14105_v27  ;;  %v4673_v18 = vpop.f32.mrf.mxu1  ;;  %v4633_v59 = vpop.f32.mrf.mxu0  ;;  %11845 = vmatpush3.bf16.msra.mxu1 %v6931_v5 }
 0x2a6   : > { %7185 = vmatprep.mubr.bf16.mxu0 %v12137_v2  ;;  %v7114_v23 = vpop.permute.xlu1 %7113  ;;  %v7108_v24 = vpop.permute.xlu0 %7107 }
 0x2a7   : > { %v11783_v21 = vpop.f32.mrf.mxu1  ;;  %v7122_v1 = vsel %vm7121_vm7, %v7106_v43, %v7108_v24  ;;  %v4634_v25 = vpop.f32.mrf.mxu0  ;;  %v7123_v20 = vsel %vm7121_vm7, %v7108_v24, %v7110_v39 }
 0x2a8   : > { %8647 = vrot.lane.b32.xlu1 %v12279_v4, %s12186_s25  ;;  %8437 = vrot.lane.b32.xlu0 %v12313_v14, %s12161_s5  ;;  %v7133_v26 = vsel %vm349_vm1, %v7122_v1, 0 }
 0x2a9   : > { %11437 = vmatprep.subr.msk.bf16.mxu0 %vm349_vm1, %v7123_v20  ;;  %v4767_v19 = vpop.f32.mrf.mxu0  ;;  %11847 = vmatmul.mubr.msk.bf16.vlgmr.msra.gmra.mxu1 %vm345_vm2, %v14105_v27 }
 0x2aa   : > { %7168 = vmatpush1.bf16.msra.mxu0 %v7133_v26  ;;  %v14175_v28 = vadd.f32 %v4767_v19, %v14113_v46  ;;  %v7116_v33 = vpop.permute.xlu1 %7115  ;;  %v7112_v30 = vpop.permute.xlu0 %7111  ;;  %7226 = vmatprep.mubr.bf16.mxu1 %v12137_v2 }
 0x2ab   : > { %v7124_v63 = vsel %vm7121_vm7, %v7110_v39, %v7112_v30  ;;  %v4769_v31 = vpop.f32.mrf.mxu0  ;;  %v7125_v8 = vsel %vm7121_vm7, %v7112_v30, %v7114_v23 }
 0x2ac   : > { %8651 = vrot.lane.b32.xlu1 %v12295_v11, %s12186_s25  ;;  %v14183_v10 = vadd.f32 %v4769_v31, %v14122_v37  ;;  %8441 = vrot.lane.b32.xlu0 %v13591_v61, %s12161_s5  ;;  %v7139_v27 = vsel %vm349_vm1, %v7124_v63, 0 }
 0x2ad   : > { %11439 = vmatprep.subr.msk.bf16.mxu1 %vm349_vm1, %v7125_v8  ;;  %v4808_v34 = vpop.f32.mrf.mxu1  ;;  %v4771_v35 = vpop.f32.mrf.mxu0 }
 0x2ae   : > { %7209 = vmatpush1.bf16.msra.mxu1 %v7139_v27  ;;  %v14190_v46 = vadd.f32 %v4808_v34, %v14119_v40  ;;  %v7120_v36 = vpop.permute.xlu1 %7119  ;;  %v7104_v6 = vpop.permute.xlu0 %7103  ;;  %v7126_v40 = vsel %vm7121_vm7, %v7114_v23, %v7116_v33 }
 0x2af   : > { %11850 = vmatprep.subr.bf16.mxu1 %v12152_v32  ;;  %v4810_v38 = vpop.f32.mrf.mxu1  ;;  %v4772_v37 = vpop.f32.mrf.mxu0  ;;  %11438 = vmatmul.mubr.msk.bf16.vlgmr.msra.gmra.mxu0 %vm345_vm2, %v7104_v6  ;;  %v7145_v53 = vsel %vm349_vm1, %v7126_v40, 0 }
 0x2b0   : > { %8655 = vrot.lane.b32.xlu1 %v13836_v3, %s12186_s25  ;;  %v14197_v42 = vadd.f32 %v4810_v38, %v14127_v48  ;;  %8649 = vrot.lane.b32.xlu0 %v12284_v7, %s12186_s25 }
 0x2b1   : > { %7267 = vmatprep.mubr.bf16.mxu0 %v12137_v2  ;;  %v4812_v44 = vpop.f32.mrf.mxu1  ;;  %v4849_v45 = vpop.f32.mrf.mxu0  ;;  %11440 = vmatmul.mubr.msk.bf16.vlgmr.msra.gmra.mxu1 %vm345_vm2, %v7104_v6 }
 0x2b2   : > { %v14205_v41 = vadd.f32 %v4849_v45, %v14146_v60  ;;  %v7327_v47 = vpop.permute.xlu1 %7326  ;;  %v7118_v50 = vpop.permute.xlu0 %7117  ;;  %11852 = vmatprep.mubr.msk.bf16.mxu1 %vm12153_vm3, %v12152_v32 }
 0x2b3   : > { %v4813_v48 = vpop.f32.mrf.mxu1  ;;  %v7128_v49 = vsel %vm7121_vm7, %v7118_v50, %v7120_v36  ;;  %v4851_v51 = vpop.f32.mrf.mxu0  ;;  %v7127_v43 = vsel %vm7121_vm7, %v7116_v33, %v7118_v50  ;;  %vm9983_vm7 = vcmask 736256  }
 0x2b4   : > { %8657 = vrot.lane.b32.xlu1 %v12313_v14, %s12186_s25  ;;  %v14213_v52 = vadd.f32 %v4851_v51, %v4681_v17  ;;  %8653 = vrot.lane.b32.xlu0 %v12304_v12, %s12186_s25  ;;  %v7151_v55 = vsel %vm349_vm1, %v7128_v49, 0 }
 0x2b5   : > { %11441 = vmatprep.subr.msk.bf16.mxu0 %vm349_vm1, %v7127_v43  ;;  %v4890_v58 = vpop.f32.mrf.mxu1  ;;  %v4853_v57 = vpop.f32.mrf.mxu0  ;;  %11851 = vmatpush3.bf16.msra.mxu1 %v7151_v55 }
 0x2b6   : > { %7250 = vmatpush1.bf16.msra.mxu0 %v7145_v53  ;;  %v14221_v13 = vadd.f32 %v4890_v58, %v14150_v54  ;;  %v7331_v62 = vpop.permute.xlu1 %7330  ;;  %v7325_v60 = vpop.permute.xlu0 %7324 }
 0x2b7   : > { %v11788_v39 = vpop.f32.mrf.mxu1  ;;  %v4854_v0 = vpop.f32.mrf.mxu0  ;;  %v7341_v9 = vsel %vm7340_vm8, %v7325_v60, %v7327_v47 }
 0x2b8   : > { %8661 = vrot.lane.b32.xlu1 %v13591_v61, %s12186_s25  ;;  %8645 = vrot.lane.b32.xlu0 %v13868_v29, %s12148_s6  ;;  %v7352_v59 = vsel %vm349_vm1, %v7341_v9, 0  ;;  %s12188_s6 = smov 29  }
 0x2b9   : > { %11442 = vmatmul.mubr.msk.bf16.vlgmr.msra.gmra.mxu0 %vm345_vm2, %v7104_v6  ;;  %v4893_v16 = vpop.f32.mrf.mxu1  ;;  %11853 = vmatmul.mubr.msk.bf16.vlgmr.msra.gmra.mxu1 %vm345_vm2, %v7104_v6 }
 0x2ba   : > { %7404 = vmatprep.mubr.bf16.mxu0 %v12137_v2  ;;  %v7335_v54 = vpop.permute.xlu1 %7334  ;;  %v7329_v15 = vpop.permute.xlu0 %7328  ;;  %7445 = vmatprep.mubr.bf16.mxu1 %v12137_v2 }
 0x2bb   : > { %v11789_v5 = vpop.f32.mrf.mxu1  ;;  %v4987_v17 = vpop.f32.mrf.mxu0  ;;  %v7342_v18 = vsel %vm7340_vm8, %v7327_v47, %v7329_v15  ;;  %v7343_v1 = vsel %vm7340_vm8, %v7329_v15, %v7331_v62 }
 0x2bc   : > { %8869 = vrot.lane.b32.xlu1 %v12284_v7, %s12187_s28  ;;  %v14237_v23 = vadd.f32 %v4987_v17, %v14175_v28  ;;  %8659 = vrot.lane.b32.xlu0 %v12725_v56, %s12186_s25  ;;  %v7358_v27 = vsel %vm349_vm1, %v7343_v1, 0 }
 0x2bd   : > { %11444 = vmatprep.subr.msk.bf16.mxu0 %vm349_vm1, %v7342_v18  ;;  %v5028_v24 = vpop.f32.mrf.mxu1  ;;  %v4989_v21 = vpop.f32.mrf.mxu0 }
 0x2be   : > { %7387 = vmatpush1.bf16.msra.mxu0 %v7352_v59  ;;  %v14244_v25 = vadd.f32 %v5028_v24, %v14190_v46  ;;  %v14247_v20 = vadd.f32 %v4989_v21, %v14183_v10  ;;  %v7339_v26 = vpop.permute.xlu1 %7338  ;;  %v7333_v19 = vpop.permute.xlu0 %7332 }
 0x2bf   : > { %v5030_v28 = vpop.f32.mrf.mxu1  ;;  %v4991_v33 = vpop.f32.mrf.mxu0  ;;  %v7344_v30 = vsel %vm7340_vm8, %v7331_v62, %v7333_v19  ;;  %v7345_v31 = vsel %vm7340_vm8, %v7333_v19, %v7335_v54 }
 0x2c0   : > { %8873 = vrot.lane.b32.xlu1 %v12304_v12, %s12187_s28  ;;  %v14253_v63 = vadd.f32 %v5030_v28, %v14197_v42  ;;  %8867 = vrot.lane.b32.xlu0 %v12279_v4, %s12187_s28  ;;  %v7364_v37 = vsel %vm349_vm1, %v7345_v31, 0 }
 0x2c1   : > { %11445 = vmatmul.mubr.msk.bf16.vlgmr.msra.gmra.mxu0 %vm345_vm2, %v13857_v22  ;;  %v5032_v8 = vpop.f32.mrf.mxu1  ;;  %11446 = vmatprep.subr.msk.bf16.mxu1 %vm349_vm1, %v7344_v30  ;;  %v4992_v10 = vpop.f32.mrf.mxu0 }
 0x2c2   : > { %7486 = vmatprep.mubr.bf16.mxu0 %v12137_v2  ;;  %7428 = vmatpush1.bf16.msra.mxu1 %v7358_v27  ;;  %v7550_v34 = vpop.permute.xlu1 %7549  ;;  %v7337_v35 = vpop.permute.xlu0 %7336 }
 0x2c3   : > { %v5033_v46 = vpop.f32.mrf.mxu1  ;;  %v7347_v36 = vsel %vm7340_vm8, %v7337_v35, %v7339_v26  ;;  %v7346_v6 = vsel %vm7340_vm8, %v7335_v54, %v7337_v35  ;;  %11856 = vmatprep.subr.bf16.mxu1 %v12152_v32  ;;  %vm10203_vm8 = vcmask 728064  }
 0x2c4   : > { %8865 = vrot.lane.b32.xlu1 %v13868_v29, %s12150_s9  ;;  %8871 = vrot.lane.b32.xlu0 %v12295_v11, %s12187_s28  ;;  %v7370_v42 = vsel %vm349_vm1, %v7347_v36, 0  ;;  %s12189_s9 = smov 28  }
 0x2c5   : > { %v5069_v38 = vpop.f32.mrf.mxu0  ;;  %11448 = vmatprep.subr.msk.bf16.mxu0 %vm349_vm1, %v7346_v6  ;;  %v5110_v40 = vpop.f32.mrf.mxu1  ;;  %11447 = vmatmul.mubr.msk.bf16.vlgmr.msra.gmra.mxu1 %vm345_vm2, %v13857_v22 }
 0x2c6   : > { %v14274_v44 = vadd.f32 %v5069_v38, %v14205_v41  ;;  %7469 = vmatpush1.bf16.msra.mxu0 %v7364_v37  ;;  %v14279_v45 = vadd.f32 %v5110_v40, %v14221_v13  ;;  %11857 = vmatpush3.bf16.msra.mxu1 %v7370_v42  ;;  %v7554_v47 = vpop.permute.xlu1 %7553  ;;  %v7548_v50 = vpop.permute.xlu0 %7547 }
 0x2c7   : > { %11858 = vmatprep.mubr.msk.bf16.mxu1 %vm12153_vm3, %v12152_v32  ;;  %v11794_v48 = vpop.f32.mrf.mxu1  ;;  %v5071_v49 = vpop.f32.mrf.mxu0  ;;  %v7564_v51 = vsel %vm7563_vm9, %v7548_v50, %v7550_v34 }
 0x2c8   : > { %8879 = vrot.lane.b32.xlu1 %v12725_v56, %s12187_s28  ;;  %v14286_v41 = vadd.f32 %v5071_v49, %v14213_v52  ;;  %8875 = vrot.lane.b32.xlu0 %v13836_v3, %s12187_s28  ;;  %v7575_v52 = vsel %vm349_vm1, %v7564_v51, 0 }
 0x2c9   : > { %11449 = vmatmul.mubr.msk.bf16.vlgmr.msra.gmra.mxu0 %vm345_vm2, %v13857_v22  ;;  %v5113_v43 = vpop.f32.mrf.mxu1  ;;  %v5073_v53 = vpop.f32.mrf.mxu0 }
 0x2ca   : > { %7627 = vmatprep.mubr.bf16.mxu0 %v12137_v2  ;;  %v14294_v55 = vpop.permute.xlu1 %7545  ;;  %v7552_v58 = vpop.permute.xlu0 %7551 }
 0x2cb   : > { %v11795_v57 = vpop.f32.mrf.mxu1  ;;  %v5074_v13 = vpop.f32.mrf.mxu0  ;;  %v7565_v3 = vsel %vm7563_vm9, %v7550_v34, %v7552_v58  ;;  %v7566_v60 = vsel %vm7563_vm9, %v7552_v58, %v7554_v47 }
 0x2cc   : > { %9087 = vrot.lane.b32.xlu1 %v12279_v4, %s12188_s6  ;;  %8877 = vrot.lane.b32.xlu0 %v12313_v14, %s12187_s28  ;;  %v7581_v17 = vsel %vm349_vm1, %v7566_v60, 0 }
 0x2cd   : > { %11452 = vmatprep.subr.msk.bf16.mxu0 %vm349_vm1, %v7565_v3  ;;  %v5207_v62 = vpop.f32.mrf.mxu0  ;;  %11859 = vmatmul.mubr.msk.bf16.vlgmr.msra.gmra.mxu1 %vm345_vm2, %v13857_v22 }
 0x2ce   : > { %7610 = vmatpush1.bf16.msra.mxu0 %v7575_v52  ;;  %v14307_v39 = vadd.f32 %v5207_v62, %v14237_v23  ;;  %v7560_v0 = vpop.permute.xlu1 %7559  ;;  %v7556_v9 = vpop.permute.xlu0 %7555  ;;  %7668 = vmatprep.mubr.bf16.mxu1 %v12137_v2 }
 0x2cf   : > { %v5209_v16 = vpop.f32.mrf.mxu0  ;;  %v7567_v54 = vsel %vm7563_vm9, %v7554_v47, %v7556_v9 }
 0x2d0   : > { %9091 = vrot.lane.b32.xlu1 %v12295_v11, %s12188_s6  ;;  %v14314_v15 = vadd.f32 %v5209_v16, %v14247_v20  ;;  %8881 = vrot.lane.b32.xlu0 %v13591_v61, %s12187_s28  ;;  %v14328_v20 = vld [vmem:[%s12272_s8 + $0x18] ss:$0 sps:$4 sm:$0xff]  }
 0x2d1   : > { %11453 = vmatmul.mubr.msk.bf16.vlgmr.msra.gmra.mxu0 %vm345_vm2, %v14294_v55  ;;  %v5248_v22 = vpop.f32.mrf.mxu1  ;;  %v5211_v5 = vpop.f32.mrf.mxu0  ;;  %11454 = vmatprep.subr.msk.bf16.mxu1 %vm349_vm1, %v7567_v54 }
 0x2d2   : > { %7709 = vmatprep.mubr.bf16.mxu0 %v12137_v2  ;;  %v14324_v18 = vadd.f32 %v5248_v22, %v14244_v25  ;;  %7651 = vmatpush1.bf16.msra.mxu1 %v7581_v17  ;;  %v7768_v59 = vpop.permute.xlu1 %7767  ;;  %v7558_v23 = vpop.permute.xlu0 %7557 }
 0x2d3   : > { %v5250_v24 = vpop.f32.mrf.mxu1  ;;  %v7568_v21 = vsel %vm7563_vm9, %v7556_v9, %v7558_v23  ;;  %v5212_v1 = vpop.f32.mrf.mxu0  ;;  %v7569_v26 = vsel %vm7563_vm9, %v7558_v23, %v7560_v0  ;;  %11862 = vmatprep.subr.bf16.mxu1 %v12152_v32 }
 0x2d4   : > { %9095 = vrot.lane.b32.xlu1 %v14328_v20, %s12188_s6  ;;  %v14335_v19 = vadd.f32 %v5250_v24, %v14253_v63  ;;  %9089 = vrot.lane.b32.xlu0 %v12284_v7, %s12188_s6  ;;  %v7587_v25 = vsel %vm349_vm1, %v7568_v21, 0 }
 0x2d5   : > { %11456 = vmatprep.subr.msk.bf16.mxu0 %vm349_vm1, %v7569_v26  ;;  %v5252_v28 = vpop.f32.mrf.mxu1  ;;  %v5289_v33 = vpop.f32.mrf.mxu0  ;;  %11455 = vmatmul.mubr.msk.bf16.vlgmr.msra.gmra.mxu1 %vm345_vm2, %v14294_v55 }
 0x2d6   : > { %7692 = vmatpush1.bf16.msra.mxu0 %v7587_v25  ;;  %v14344_v30 = vadd.f32 %v5289_v33, %v14274_v44  ;;  %v7772_v31 = vpop.permute.xlu1 %7771  ;;  %v7562_v8 = vpop.permute.xlu0 %7561  ;;  %11864 = vmatprep.mubr.msk.bf16.mxu1 %vm12153_vm3, %v12152_v32 }
 0x2d7   : > { %v5253_v63 = vpop.f32.mrf.mxu1  ;;  %v7570_v10 = vsel %vm7563_vm9, %v7560_v0, %v7562_v8  ;;  %v5291_v27 = vpop.f32.mrf.mxu0  ;;  %vm10423_vm9 = vcmask 719872  }
 0x2d8   : > { %9097 = vrot.lane.b32.xlu1 %v12313_v14, %s12188_s6  ;;  %v7593_v34 = vsel %vm349_vm1, %v7570_v10, 0  ;;  %v14353_v35 = vadd.f32 %v5291_v27, %v14286_v41  ;;  %9093 = vrot.lane.b32.xlu0 %v12304_v12, %s12188_s6 }
 0x2d9   : > { %11457 = vmatmul.mubr.msk.bf16.vlgmr.msra.gmra.mxu0 %vm345_vm2, %v14294_v55  ;;  %v5330_v46 = vpop.f32.mrf.mxu1  ;;  %v5293_v36 = vpop.f32.mrf.mxu0  ;;  %11863 = vmatpush3.bf16.msra.mxu1 %v7593_v34 }
 0x2da   : > { %7847 = vmatprep.mubr.bf16.mxu0 %v12137_v2  ;;  %v5342_v6 = vadd.f32 %v5330_v46, %v14279_v45  ;;  %v7776_v38 = vpop.permute.xlu1 %7775  ;;  %v7770_v37 = vpop.permute.xlu0 %7769 }
 0x2db   : > { %v11800_v42 = vpop.f32.mrf.mxu1  ;;  %v7784_v40 = vsel %vm7783_vm10, %v7768_v59, %v7770_v37  ;;  %v5294_v44 = vpop.f32.mrf.mxu0  ;;  %v7785_v47 = vsel %vm7783_vm10, %v7770_v37, %v7772_v31 }
 0x2dc   : > { %9101 = vrot.lane.b32.xlu1 %v13591_v61, %s12188_s6  ;;  %9085 = vrot.lane.b32.xlu0 %v13868_v29, %s12154_s11  ;;  %v7795_v50 = vsel %vm349_vm1, %v7784_v40, 0  ;;  %s12190_s11 = smov 92  }
 0x2dd   : > { %11459 = vmatprep.subr.msk.bf16.mxu0 %vm349_vm1, %v7785_v47  ;;  %v5333_v48 = vpop.f32.mrf.mxu1  ;;  %11865 = vmatmul.mubr.msk.bf16.vlgmr.msra.gmra.mxu1 %vm345_vm2, %v14294_v55 }
 0x2de   : > { %7830 = vmatpush1.bf16.msra.mxu0 %v7795_v50  ;;  %v7778_v45 = vpop.permute.xlu1 %7777  ;;  %v7774_v49 = vpop.permute.xlu0 %7773  ;;  %7888 = vmatprep.mubr.bf16.mxu1 %v12137_v2 }
 0x2df   : > { %v11801_v41 = vpop.f32.mrf.mxu1  ;;  %v7786_v51 = vsel %vm7783_vm10, %v7772_v31, %v7774_v49  ;;  %v5427_v43 = vpop.f32.mrf.mxu0  ;;  %v7787_v53 = vsel %vm7783_vm10, %v7774_v49, %v7776_v38  ;;  %v7788_v16 = vsel %vm7783_vm10, %v7776_v38, %v7778_v45 }
 0x2e0   : > { %9309 = vrot.lane.b32.xlu1 %v12284_v7, %s12189_s9  ;;  %v14377_v58 = vadd.f32 %v5427_v43, %v14307_v39  ;;  %9099 = vrot.lane.b32.xlu0 %v12725_v56, %s12188_s6  ;;  %v7801_v55 = vsel %vm349_vm1, %v7786_v51, 0  ;;  %v7807_v23 = vsel %vm349_vm1, %v7788_v16, 0 }
 0x2e1   : > { %11461 = vmatprep.subr.msk.bf16.mxu1 %vm349_vm1, %v7787_v53  ;;  %v5468_v57 = vpop.f32.mrf.mxu1  ;;  %v5429_v13 = vpop.f32.mrf.mxu0 }
 0x2e2   : > { %7871 = vmatpush1.bf16.msra.mxu1 %v7801_v55  ;;  %v14384_v3 = vadd.f32 %v5468_v57, %v14324_v18  ;;  %v14387_v52 = vadd.f32 %v5429_v13, %v14314_v15  ;;  %v7782_v62 = vpop.permute.xlu1 %7781  ;;  %v7766_v60 = vpop.permute.xlu0 %7765 }
 0x2e3   : > { %11868 = vmatprep.subr.bf16.mxu1 %v12152_v32  ;;  %v5470_v39 = vpop.f32.mrf.mxu1  ;;  %v5431_v0 = vpop.f32.mrf.mxu0  ;;  %11460 = vmatmul.mubr.msk.bf16.vlgmr.msra.gmra.mxu0 %vm345_vm2, %v7766_v60 }
 0x2e4   : > { %9313 = vrot.lane.b32.xlu1 %v12304_v12, %s12189_s9  ;;  %v14394_v9 = vadd.f32 %v5470_v39, %v14335_v19  ;;  %9307 = vrot.lane.b32.xlu0 %v12279_v4, %s12189_s9 }
 0x2e5   : > { %7929 = vmatprep.mubr.bf16.mxu0 %v12137_v2  ;;  %v5472_v54 = vpop.f32.mrf.mxu1  ;;  %11462 = vmatmul.mubr.msk.bf16.vlgmr.msra.gmra.mxu1 %vm345_vm2, %v7766_v60  ;;  %v5432_v15 = vpop.f32.mrf.mxu0 }
 0x2e6   : > { %v7990_v22 = vpop.permute.xlu1 %7989  ;;  %v7780_v5 = vpop.permute.xlu0 %7779  ;;  %11870 = vmatprep.mubr.msk.bf16.mxu1 %vm12153_vm3, %v12152_v32  ;;  %v12094_v15 = vld [vmem:[%s12301_s14 + $0x8] sm:$0xff]  ;;  %s12191_s14 = smov 91  }
 0x2e7   : > { %v5473_v17 = vpop.f32.mrf.mxu1  ;;  %v7790_v18 = vsel %vm7783_vm10, %v7780_v5, %v7782_v62  ;;  %v7789_v4 = vsel %vm7783_vm10, %v7778_v45, %v7780_v5  ;;  %vm10643_vm10 = vcmask 711680  }
 0x2e8   : > { %9305 = vrot.lane.b32.xlu1 %v13868_v29, %s12155_s12  ;;  %9311 = vrot.lane.b32.xlu0 %v12295_v11, %s12189_s9  ;;  %v7813_v24 = vsel %vm349_vm1, %v7790_v18, 0  ;;  %s12192_s12 = smov 90  }
 0x2e9   : > { %v5509_v59 = vpop.f32.mrf.mxu0  ;;  %11463 = vmatprep.subr.msk.bf16.mxu0 %vm349_vm1, %v7789_v4  ;;  %v5550_v21 = vpop.f32.mrf.mxu1  ;;  %11869 = vmatpush3.bf16.msra.mxu1 %v7813_v24 }
 0x2ea   : > { %v14413_v1 = vadd.f32 %v5509_v59, %v14344_v30  ;;  %7912 = vmatpush1.bf16.msra.mxu0 %v7807_v23  ;;  %v14415_v26 = vadd.f32 %v5550_v21, %v5342_v6  ;;  %v7994_v19 = vpop.permute.xlu1 %7993  ;;  %v7988_v25 = vpop.permute.xlu0 %7987 }
 0x2eb   : > { %v11806_v28 = vpop.f32.mrf.mxu1  ;;  %v5511_v33 = vpop.f32.mrf.mxu0  ;;  %v8004_v30 = vsel %vm8003_vm11, %v7988_v25, %v7990_v22 }
 0x2ec   : > { %9319 = vrot.lane.b32.xlu1 %v12725_v56, %s12189_s9  ;;  %v14420_v31 = vadd.f32 %v5511_v33, %v14353_v35  ;;  %9315 = vrot.lane.b32.xlu0 %v14328_v20, %s12189_s9  ;;  %v8015_v36 = vsel %vm349_vm1, %v8004_v30, 0 }
 0x2ed   : > { %11464 = vmatmul.mubr.msk.bf16.vlgmr.msra.gmra.mxu0 %vm345_vm2, %v7766_v60  ;;  %v5553_v8 = vpop.f32.mrf.mxu1  ;;  %v5513_v63 = vpop.f32.mrf.mxu0  ;;  %11871 = vmatmul.mubr.msk.bf16.vlgmr.msra.gmra.mxu1 %vm345_vm2, %v7766_v60 }
 0x2ee   : > { %8067 = vmatprep.mubr.bf16.mxu0 %v12137_v2  ;;  %v14428_v10 = vpop.permute.xlu1 %7985  ;;  %v7992_v27 = vpop.permute.xlu0 %7991  ;;  %8108 = vmatprep.mubr.bf16.mxu1 %v12137_v2 }
 0x2ef   : > { %v11807_v34 = vpop.f32.mrf.mxu1  ;;  %v5514_v35 = vpop.f32.mrf.mxu0  ;;  %v8005_v46 = vsel %vm8003_vm11, %v7990_v22, %v7992_v27  ;;  %v8006_v38 = vsel %vm8003_vm11, %v7992_v27, %v7994_v19  ;;  %v14481_v22 = vcombine.high %v12094_v15, %v12094_v15 }
 0x2f0   : > { %9527 = vrot.lane.b32.xlu1 %v12284_v7, %s12190_s11  ;;  %9317 = vrot.lane.b32.xlu0 %v12313_v14, %s12189_s9  ;;  %v8021_v49 = vsel %vm349_vm1, %v8006_v38, 0 }
 0x2f1   : > { %11466 = vmatprep.subr.msk.bf16.mxu0 %vm349_vm1, %v8005_v46  ;;  %v5647_v6 = vpop.f32.mrf.mxu0 }
 0x2f2   : > { %8050 = vmatpush1.bf16.msra.mxu0 %v8015_v36  ;;  %v14440_v37 = vadd.f32 %v5647_v6, %v14377_v58  ;;  %v8000_v42 = vpop.permute.xlu1 %7999  ;;  %v7996_v40 = vpop.permute.xlu0 %7995 }
 0x2f3   : > { %v5649_v44 = vpop.f32.mrf.mxu0  ;;  %v8007_v47 = vsel %vm8003_vm11, %v7994_v19, %v7996_v40 }
 0x2f4   : > { %9531 = vrot.lane.b32.xlu1 %v12304_v12, %s12190_s11  ;;  %v14446_v50 = vadd.f32 %v5649_v44, %v14387_v52  ;;  %9321 = vrot.lane.b32.xlu0 %v13591_v61, %s12189_s9 }
 0x2f5   : > { %11467 = vmatmul.mubr.msk.bf16.vlgmr.msra.gmra.mxu0 %vm345_vm2, %v14428_v10  ;;  %v5688_v48 = vpop.f32.mrf.mxu1  ;;  %v5651_v45 = vpop.f32.mrf.mxu0  ;;  %11468 = vmatprep.subr.msk.bf16.mxu1 %vm349_vm1, %v8007_v47 }
 0x2f6   : > { %8149 = vmatprep.mubr.bf16.mxu0 %v12137_v2  ;;  %v14456_v41 = vadd.f32 %v5688_v48, %v14384_v3  ;;  %8091 = vmatpush1.bf16.msra.mxu1 %v8021_v49  ;;  %v8208_v51 = vpop.permute.xlu1 %8207  ;;  %v7998_v43 = vpop.permute.xlu0 %7997 }
 0x2f7   : > { %v5690_v53 = vpop.f32.mrf.mxu1  ;;  %v8008_v58 = vsel %vm8003_vm11, %v7996_v40, %v7998_v43  ;;  %v5652_v55 = vpop.f32.mrf.mxu0  ;;  %v8009_v57 = vsel %vm8003_vm11, %v7998_v43, %v8000_v42  ;;  %11874 = vmatprep.subr.bf16.mxu1 %v12152_v32 }
 0x2f8   : > { %9535 = vrot.lane.b32.xlu1 %v12313_v14, %s12190_s11  ;;  %v14464_v13 = vadd.f32 %v5690_v53, %v14394_v9  ;;  %9529 = vrot.lane.b32.xlu0 %v12295_v11, %s12190_s11  ;;  %v8027_v3 = vsel %vm349_vm1, %v8008_v58, 0 }
 0x2f9   : > { %11470 = vmatprep.subr.msk.bf16.mxu0 %vm349_vm1, %v8009_v57  ;;  %v5692_v52 = vpop.f32.mrf.mxu1  ;;  %v5729_v62 = vpop.f32.mrf.mxu0  ;;  %11469 = vmatmul.mubr.msk.bf16.vlgmr.msra.gmra.mxu1 %vm345_vm2, %v14428_v10 }
 0x2fa   : > { %8132 = vmatpush1.bf16.msra.mxu0 %v8027_v3  ;;  %v14473_v60 = vadd.f32 %v5729_v62, %v14413_v1  ;;  %v8212_v39 = vpop.permute.xlu1 %8211  ;;  %v8002_v0 = vpop.permute.xlu0 %8001  ;;  %11876 = vmatprep.mubr.msk.bf16.mxu1 %vm12153_vm3, %v12152_v32 }
 0x2fb   : > { %v5693_v9 = vpop.f32.mrf.mxu1  ;;  %v8010_v16 = vsel %vm8003_vm11, %v8000_v42, %v8002_v0  ;;  %v5731_v54 = vpop.f32.mrf.mxu0  ;;  %vm10862_vm11 = vcmask 703488  }
 0x2fc   : > { %9537 = vrot.lane.b32.xlu1 %v12725_v56, %s12190_s11  ;;  %v8033_v5 = vsel %vm349_vm1, %v8010_v16, 0  ;;  %v14485_v17 = vadd.f32 %v5731_v54, %v14420_v31  ;;  %9533 = vrot.lane.b32.xlu0 %v14328_v20, %s12190_s11 }
 0x2fd   : > { %11471 = vmatmul.mubr.msk.bf16.vlgmr.msra.gmra.mxu0 %vm345_vm2, %v14428_v10  ;;  %v5770_v18 = vpop.f32.mrf.mxu1  ;;  %v5733_v4 = vpop.f32.mrf.mxu0  ;;  %11875 = vmatpush3.bf16.msra.mxu1 %v8033_v5 }
 0x2fe   : > { %8287 = vmatprep.mubr.bf16.mxu0 %v12137_v2  ;;  %v5782_v59 = vadd.f32 %v5770_v18, %v14415_v26  ;;  %v8216_v23 = vpop.permute.xlu1 %8215  ;;  %v8210_v24 = vpop.permute.xlu0 %8209 }
 0x2ff   : > { %v11812_v21 = vpop.f32.mrf.mxu1  ;;  %v8224_v1 = vsel %vm8223_vm12, %v8208_v51, %v8210_v24  ;;  %v5734_v19 = vpop.f32.mrf.mxu0  ;;  %v8225_v25 = vsel %vm8223_vm12, %v8210_v24, %v8212_v39 }
 0x300   : > { %9541 = vrot.lane.b32.xlu1 %v14481_v22, %s12190_s11  ;;  %9525 = vrot.lane.b32.xlu0 %v13868_v29, %s12157_s15  ;;  %v8235_v28 = vsel %vm349_vm1, %v8224_v1, 0  ;;  %s12193_s15 = smov 89  }
 0x301   : > { %11473 = vmatprep.subr.msk.bf16.mxu0 %vm349_vm1, %v8225_v25  ;;  %v5773_v33 = vpop.f32.mrf.mxu1  ;;  %11877 = vmatmul.mubr.msk.bf16.vlgmr.msra.gmra.mxu1 %vm345_vm2, %v14428_v10 }
 0x302   : > { %8270 = vmatpush1.bf16.msra.mxu0 %v8235_v28  ;;  %v8218_v26 = vpop.permute.xlu1 %8217  ;;  %v8214_v31 = vpop.permute.xlu0 %8213  ;;  %8328 = vmatprep.mubr.bf16.mxu1 %v12137_v2 }
 0x303   : > { %v11813_v30 = vpop.f32.mrf.mxu1  ;;  %v8226_v8 = vsel %vm8223_vm12, %v8212_v39, %v8214_v31  ;;  %v5867_v63 = vpop.f32.mrf.mxu0  ;;  %v8227_v27 = vsel %vm8223_vm12, %v8214_v31, %v8216_v23  ;;  %v8228_v47 = vsel %vm8223_vm12, %v8216_v23, %v8218_v26 }
 0x304   : > { %9749 = vrot.lane.b32.xlu1 %v12295_v11, %s12191_s14  ;;  %v14509_v34 = vadd.f32 %v5867_v63, %v14440_v37  ;;  %9539 = vrot.lane.b32.xlu0 %v13591_v61, %s12190_s11  ;;  %v8241_v10 = vsel %vm349_vm1, %v8226_v8, 0  ;;  %v8247_v58 = vsel %vm349_vm1, %v8228_v47, 0 }
 0x305   : > { %11475 = vmatprep.subr.msk.bf16.mxu1 %vm349_vm1, %v8227_v27  ;;  %v5908_v35 = vpop.f32.mrf.mxu1  ;;  %v5869_v46 = vpop.f32.mrf.mxu0 }
 0x306   : > { %8311 = vmatpush1.bf16.msra.mxu1 %v8241_v10  ;;  %v14516_v36 = vadd.f32 %v5908_v35, %v14456_v41  ;;  %v14519_v6 = vadd.f32 %v5869_v46, %v14446_v50  ;;  %v8222_v38 = vpop.permute.xlu1 %8221  ;;  %v8206_v42 = vpop.permute.xlu0 %8205 }
 0x307   : > { %11880 = vmatprep.subr.bf16.mxu1 %v12152_v32  ;;  %v5910_v37 = vpop.f32.mrf.mxu1  ;;  %v5871_v40 = vpop.f32.mrf.mxu0  ;;  %11474 = vmatmul.mubr.msk.bf16.vlgmr.msra.gmra.mxu0 %vm345_vm2, %v8206_v42 }
 0x308   : > { %9753 = vrot.lane.b32.xlu1 %v14328_v20, %s12191_s14  ;;  %v14526_v44 = vadd.f32 %v5910_v37, %v14464_v13  ;;  %9747 = vrot.lane.b32.xlu0 %v12284_v7, %s12191_s14 }
 0x309   : > { %8369 = vmatprep.mubr.bf16.mxu0 %v12137_v2  ;;  %v5912_v50 = vpop.f32.mrf.mxu1  ;;  %11476 = vmatmul.mubr.msk.bf16.vlgmr.msra.gmra.mxu1 %vm345_vm2, %v8206_v42  ;;  %v5872_v48 = vpop.f32.mrf.mxu0 }
 0x30a   : > { %v8430_v45 = vpop.permute.xlu1 %8429  ;;  %v8220_v49 = vpop.permute.xlu0 %8219  ;;  %11882 = vmatprep.mubr.msk.bf16.mxu1 %vm12153_vm3, %v12152_v32 }
 0x30b   : > { %v5913_v41 = vpop.f32.mrf.mxu1  ;;  %v8230_v51 = vsel %vm8223_vm12, %v8220_v49, %v8222_v38  ;;  %v8229_v43 = vsel %vm8223_vm12, %v8218_v26, %v8220_v49 }
 0x30c   : > { %9745 = vrot.lane.b32.xlu1 %v13868_v29, %s12159_s26  ;;  %9751 = vrot.lane.b32.xlu0 %v12304_v12, %s12191_s14  ;;  %v8253_v55 = vsel %vm349_vm1, %v8230_v51, 0  ;;  %s15170_s26 = smov 24  }
 0x30d   : > { %v5949_v53 = vpop.f32.mrf.mxu0  ;;  %11477 = vmatprep.subr.msk.bf16.mxu0 %vm349_vm1, %v8229_v43  ;;  %v5990_v57 = vpop.f32.mrf.mxu1  ;;  %11881 = vmatpush3.bf16.msra.mxu1 %v8253_v55 }
 0x30e   : > { %v14545_v13 = vadd.f32 %v5949_v53, %v14473_v60  ;;  %8352 = vmatpush1.bf16.msra.mxu0 %v8247_v58  ;;  %v14547_v3 = vadd.f32 %v5990_v57, %v5782_v59  ;;  %v8434_v52 = vpop.permute.xlu1 %8433  ;;  %v8428_v62 = vpop.permute.xlu0 %8427 }
 0x30f   : > { %v11818_v39 = vpop.f32.mrf.mxu1  ;;  %v5951_v0 = vpop.f32.mrf.mxu0  ;;  %v8444_v60 = vsel %vm8443_vm13, %v8428_v62, %v8430_v45 }
 0x310   : > { %9759 = vrot.lane.b32.xlu1 %v13591_v61, %s12191_s14  ;;  %v14552_v9 = vadd.f32 %v5951_v0, %v14485_v17  ;;  %9755 = vrot.lane.b32.xlu0 %v12313_v14, %s12191_s14  ;;  %v8455_v59 = vsel %vm349_vm1, %v8444_v60, 0 }
 0x311   : > { %11478 = vmatmul.mubr.msk.bf16.vlgmr.msra.gmra.mxu0 %vm345_vm2, %v8206_v42  ;;  %v5993_v16 = vpop.f32.mrf.mxu1  ;;  %v5953_v54 = vpop.f32.mrf.mxu0  ;;  %11883 = vmatmul.mubr.msk.bf16.vlgmr.msra.gmra.mxu1 %vm345_vm2, %v8206_v42 }
 0x312   : > { %8507 = vmatprep.mubr.bf16.mxu0 %v12137_v2  ;;  %v14560_v15 = vpop.permute.xlu1 %8425  ;;  %v8432_v5 = vpop.permute.xlu0 %8431  ;;  %8548 = vmatprep.mubr.bf16.mxu1 %v12137_v2 }
 0x313   : > { %v11819_v17 = vpop.f32.mrf.mxu1  ;;  %v5954_v18 = vpop.f32.mrf.mxu0  ;;  %v8445_v4 = vsel %vm8443_vm13, %v8430_v45, %v8432_v5  ;;  %v8446_v24 = vsel %vm8443_vm13, %v8432_v5, %v8434_v52 }
 0x314   : > { %9967 = vrot.lane.b32.xlu1 %v12284_v7, %s12192_s12  ;;  %9757 = vrot.lane.b32.xlu0 %v12725_v56, %s12191_s14  ;;  %v8461_v30 = vsel %vm349_vm1, %v8446_v24, 0 }
 0x315   : > { %11480 = vmatprep.subr.msk.bf16.mxu0 %vm349_vm1, %v8445_v4  ;;  %v6087_v23 = vpop.f32.mrf.mxu0 }
 0x316   : > { %8490 = vmatpush1.bf16.msra.mxu0 %v8455_v59  ;;  %v14572_v21 = vadd.f32 %v6087_v23, %v14509_v34  ;;  %v8440_v1 = vpop.permute.xlu1 %8439  ;;  %v8436_v19 = vpop.permute.xlu0 %8435 }
 0x317   : > { %v6089_v25 = vpop.f32.mrf.mxu0  ;;  %v8447_v28 = vsel %vm8443_vm13, %v8434_v52, %v8436_v19 }
 0x318   : > { %9971 = vrot.lane.b32.xlu1 %v12304_v12, %s12192_s12  ;;  %v14578_v33 = vadd.f32 %v6089_v25, %v14519_v6  ;;  %9761 = vrot.lane.b32.xlu0 %v14481_v22, %s12191_s14 }
 0x319   : > { %11481 = vmatmul.mubr.msk.bf16.vlgmr.msra.gmra.mxu0 %vm345_vm2, %v14560_v15  ;;  %v6128_v26 = vpop.f32.mrf.mxu1  ;;  %v6091_v31 = vpop.f32.mrf.mxu0  ;;  %11482 = vmatprep.subr.msk.bf16.mxu1 %vm349_vm1, %v8447_v28 }
 0x31a   : > { %8589 = vmatprep.mubr.bf16.mxu0 %v12137_v2  ;;  %v14588_v8 = vadd.f32 %v6128_v26, %v14516_v36  ;;  %8531 = vmatpush1.bf16.msra.mxu1 %v8461_v30  ;;  %v8648_v63 = vpop.permute.xlu1 %8647  ;;  %v8438_v27 = vpop.permute.xlu0 %8437 }
 0x31b   : > { %v6130_v34 = vpop.f32.mrf.mxu1  ;;  %v8448_v10 = vsel %vm8443_vm13, %v8436_v19, %v8438_v27  ;;  %v6092_v35 = vpop.f32.mrf.mxu0  ;;  %v8449_v46 = vsel %vm8443_vm13, %v8438_v27, %v8440_v1  ;;  %11886 = vmatprep.subr.bf16.mxu1 %v12152_v32 }
 0x31c   : > { %9975 = vrot.lane.b32.xlu1 %v12313_v14, %s12192_s12  ;;  %v14596_v6 = vadd.f32 %v6130_v34, %v14526_v44  ;;  %9969 = vrot.lane.b32.xlu0 %v12295_v11, %s12192_s12  ;;  %v8467_v36 = vsel %vm349_vm1, %v8448_v10, 0 }
 0x31d   : > { %11484 = vmatprep.subr.msk.bf16.mxu0 %vm349_vm1, %v8449_v46  ;;  %v6132_v38 = vpop.f32.mrf.mxu1  ;;  %v6169_v42 = vpop.f32.mrf.mxu0  ;;  %11483 = vmatmul.mubr.msk.bf16.vlgmr.msra.gmra.mxu1 %vm345_vm2, %v14560_v15 }
 0x31e   : > { %8572 = vmatpush1.bf16.msra.mxu0 %v8467_v36  ;;  %v14605_v37 = vadd.f32 %v6169_v42, %v14545_v13  ;;  %v8652_v40 = vpop.permute.xlu1 %8651  ;;  %v8442_v47 = vpop.permute.xlu0 %8441  ;;  %11888 = vmatprep.mubr.msk.bf16.mxu1 %vm12153_vm3, %v12152_v32 }
 0x31f   : > { %v6133_v44 = vpop.f32.mrf.mxu1  ;;  %v8450_v50 = vsel %vm8443_vm13, %v8440_v1, %v8442_v47  ;;  %v6171_v48 = vpop.f32.mrf.mxu0 }
 0x320   : > { %9977 = vrot.lane.b32.xlu1 %v12725_v56, %s12192_s12  ;;  %v8473_v45 = vsel %vm349_vm1, %v8450_v50, 0  ;;  %v14614_v49 = vadd.f32 %v6171_v48, %v14552_v9  ;;  %9973 = vrot.lane.b32.xlu0 %v14328_v20, %s12192_s12 }
 0x321   : > { %11485 = vmatmul.mubr.msk.bf16.vlgmr.msra.gmra.mxu0 %vm345_vm2, %v14560_v15  ;;  %v6210_v41 = vpop.f32.mrf.mxu1  ;;  %v6173_v51 = vpop.f32.mrf.mxu0  ;;  %11887 = vmatpush3.bf16.msra.mxu1 %v8473_v45 }
 0x322   : > { %8727 = vmatprep.mubr.bf16.mxu0 %v12137_v2  ;;  %v6222_v43 = vadd.f32 %v6210_v41, %v14547_v3  ;;  %v8656_v53 = vpop.permute.xlu1 %8655  ;;  %v8650_v58 = vpop.permute.xlu0 %8649 }
 0x323   : > { %v11824_v55 = vpop.f32.mrf.mxu1  ;;  %v8664_v57 = vsel %vm8663_vm14, %v8648_v63, %v8650_v58  ;;  %v8665_v13 = vsel %vm8663_vm14, %v8650_v58, %v8652_v40  ;;  %v6174_v52 = vpop.f32.mrf.mxu0 }
 0x324   : > { %9981 = vrot.lane.b32.xlu1 %v14481_v22, %s12192_s12  ;;  %v8675_v62 = vsel %vm349_vm1, %v8664_v57, 0  ;;  %9965 = vrot.lane.b32.xlu0 %v13868_v29, %s12161_s5  ;;  %s15171_s5 = smov 16  }
 0x325   : > { %11487 = vmatprep.subr.msk.bf16.mxu0 %vm349_vm1, %v8665_v13  ;;  %v6213_v39 = vpop.f32.mrf.mxu1  ;;  %11889 = vmatmul.mubr.msk.bf16.vlgmr.msra.gmra.mxu1 %vm345_vm2, %v14560_v15 }
 0x326   : > { %8710 = vmatpush1.bf16.msra.mxu0 %v8675_v62  ;;  %v8658_v3 = vpop.permute.xlu1 %8657  ;;  %v8654_v0 = vpop.permute.xlu0 %8653  ;;  %8768 = vmatprep.mubr.bf16.mxu1 %v12137_v2 }
 0x327   : > { %v11825_v9 = vpop.f32.mrf.mxu1  ;;  %v8666_v60 = vsel %vm8663_vm14, %v8652_v40, %v8654_v0  ;;  %v8667_v16 = vsel %vm8663_vm14, %v8654_v0, %v8656_v53  ;;  %v6307_v54 = vpop.f32.mrf.mxu0  ;;  %v8668_v25 = vsel %vm8663_vm14, %v8656_v53, %v8658_v3 }
 0x328   : > { %10189 = vrot.lane.b32.xlu1 %v12295_v11, %s12193_s15  ;;  %v8681_v5 = vsel %vm349_vm1, %v8666_v60, 0  ;;  %v14639_v17 = vadd.f32 %v6307_v54, %v14572_v21  ;;  %9979 = vrot.lane.b32.xlu0 %v13591_v61, %s12192_s12  ;;  %v8687_v27 = vsel %vm349_vm1, %v8668_v25, 0 }
 0x329   : > { %11489 = vmatprep.subr.msk.bf16.mxu1 %vm349_vm1, %v8667_v16  ;;  %v6348_v15 = vpop.f32.mrf.mxu1  ;;  %v6309_v18 = vpop.f32.mrf.mxu0 }
 0x32a   : > { %8751 = vmatpush1.bf16.msra.mxu1 %v8681_v5  ;;  %v14645_v4 = vadd.f32 %v6348_v15, %v14588_v8  ;;  %v14648_v59 = vadd.f32 %v6309_v18, %v14578_v33  ;;  %v8662_v23 = vpop.permute.xlu1 %8661  ;;  %v8646_v24 = vpop.permute.xlu0 %8645 }
 0x32b   : > { %11892 = vmatprep.subr.bf16.mxu1 %v12152_v32  ;;  %v6350_v21 = vpop.f32.mrf.mxu1  ;;  %v6311_v1 = vpop.f32.mrf.mxu0  ;;  %11488 = vmatmul.mubr.msk.bf16.vlgmr.msra.gmra.mxu0 %vm345_vm2, %v8646_v24 }
 0x32c   : > { %10193 = vrot.lane.b32.xlu1 %v14328_v20, %s12193_s15  ;;  %v14655_v19 = vadd.f32 %v6350_v21, %v14596_v6  ;;  %10187 = vrot.lane.b32.xlu0 %v12284_v7, %s12193_s15 }
 0x32d   : > { %8809 = vmatprep.mubr.bf16.mxu0 %v12137_v2  ;;  %v6352_v28 = vpop.f32.mrf.mxu1  ;;  %11490 = vmatmul.mubr.msk.bf16.vlgmr.msra.gmra.mxu1 %vm345_vm2, %v8646_v24  ;;  %v6312_v33 = vpop.f32.mrf.mxu0 }
 0x32e   : > { %v8870_v26 = vpop.permute.xlu1 %8869  ;;  %v8660_v31 = vpop.permute.xlu0 %8659  ;;  %11894 = vmatprep.mubr.msk.bf16.mxu1 %vm12153_vm3, %v12152_v32 }
 0x32f   : > { %v6353_v30 = vpop.f32.mrf.mxu1  ;;  %v8669_v8 = vsel %vm8663_vm14, %v8658_v3, %v8660_v31  ;;  %v8670_v63 = vsel %vm8663_vm14, %v8660_v31, %v8662_v23 }
 0x330   : > { %10185 = vrot.lane.b32.xlu1 %v13868_v29, %s15170_s26  ;;  %v8693_v34 = vsel %vm349_vm1, %v8670_v63, 0  ;;  %10191 = vrot.lane.b32.xlu0 %v12304_v12, %s12193_s15 }
 0x331   : > { %v6389_v10 = vpop.f32.mrf.mxu0  ;;  %11491 = vmatprep.subr.msk.bf16.mxu0 %vm349_vm1, %v8669_v8  ;;  %v6430_v35 = vpop.f32.mrf.mxu1  ;;  %11893 = vmatpush3.bf16.msra.mxu1 %v8693_v34 }
 0x332   : > { %v14674_v46 = vadd.f32 %v6389_v10, %v14605_v37  ;;  %8792 = vmatpush1.bf16.msra.mxu0 %v8687_v27  ;;  %v14676_v6 = vadd.f32 %v6430_v35, %v6222_v43  ;;  %v8874_v36 = vpop.permute.xlu1 %8873  ;;  %v8868_v38 = vpop.permute.xlu0 %8867 }
 0x333   : > { %v11830_v42 = vpop.f32.mrf.mxu1  ;;  %v6391_v40 = vpop.f32.mrf.mxu0  ;;  %v8884_v37 = vsel %vm8883_vm15, %v8868_v38, %v8870_v26 }
 0x334   : > { %10199 = vrot.lane.b32.xlu1 %v13591_v61, %s12193_s15  ;;  %v6441_v47 = vadd.f32 %v6391_v40, %v14614_v49  ;;  %10195 = vrot.lane.b32.xlu0 %v12313_v14, %s12193_s15  ;;  %v8895_v43 = vsel %vm349_vm1, %v8884_v37, 0 }
 0x335   : > { %11492 = vmatmul.mubr.msk.bf16.vlgmr.msra.gmra.mxu0 %vm345_vm2, %v8646_v24  ;;  %v6433_v44 = vpop.f32.mrf.mxu1  ;;  %v6393_v50 = vpop.f32.mrf.mxu0  ;;  %11895 = vmatmul.mubr.msk.bf16.vlgmr.msra.gmra.mxu1 %vm345_vm2, %v8646_v24 }
 0x336   : > { %8947 = vmatprep.mubr.bf16.mxu0 %v12137_v2  ;;  %v14687_v48 = vpop.permute.xlu1 %8865  ;;  %v8872_v45 = vpop.permute.xlu0 %8871  ;;  %8988 = vmatprep.mubr.bf16.mxu1 %v12137_v2 }
 0x337   : > { %v11831_v41 = vpop.f32.mrf.mxu1  ;;  %v8885_v49 = vsel %vm8883_vm15, %v8870_v26, %v8872_v45  ;;  %v6394_v51 = vpop.f32.mrf.mxu0  ;;  %v8886_v58 = vsel %vm8883_vm15, %v8872_v45, %v8874_v36 }
 0x338   : > { %10407 = vrot.lane.b32.xlu1 %v12284_v7, %s12146_s30  ;;  %10197 = vrot.lane.b32.xlu0 %v12725_v56, %s12193_s15  ;;  %v8901_v3 = vsel %vm349_vm1, %v8886_v58, 0 }
 0x339   : > { %11494 = vmatprep.subr.msk.bf16.mxu0 %vm349_vm1, %v8885_v49  ;;  %v6527_v53 = vpop.f32.mrf.mxu0 }
 0x33a   : > { %8930 = vmatpush1.bf16.msra.mxu0 %v8895_v43  ;;  %v14699_v55 = vadd.f32 %v6527_v53, %v14639_v17  ;;  %v8880_v57 = vpop.permute.xlu1 %8879  ;;  %v8876_v13 = vpop.permute.xlu0 %8875 }
 0x33b   : > { %v8887_v52 = vsel %vm8883_vm15, %v8874_v36, %v8876_v13  ;;  %v6529_v62 = vpop.f32.mrf.mxu0 }
 0x33c   : > { %10411 = vrot.lane.b32.xlu1 %v12304_v12, %s12146_s30  ;;  %v14705_v39 = vadd.f32 %v6529_v62, %v14648_v59  ;;  %10201 = vrot.lane.b32.xlu0 %v14481_v22, %s12193_s15 }
 0x33d   : > { %11495 = vmatmul.mubr.msk.bf16.vlgmr.msra.gmra.mxu0 %vm345_vm2, %v14687_v48  ;;  %v6568_v0 = vpop.f32.mrf.mxu1  ;;  %v6531_v9 = vpop.f32.mrf.mxu0  ;;  %11496 = vmatprep.subr.msk.bf16.mxu1 %vm349_vm1, %v8887_v52 }
 0x33e   : > { %9029 = vmatprep.mubr.bf16.mxu0 %v12137_v2  ;;  %v14715_v60 = vadd.f32 %v6568_v0, %v14645_v4  ;;  %8971 = vmatpush1.bf16.msra.mxu1 %v8901_v3  ;;  %v9088_v16 = vpop.permute.xlu1 %9087  ;;  %v8878_v54 = vpop.permute.xlu0 %8877 }
 0x33f   : > { %v6570_v5 = vpop.f32.mrf.mxu1  ;;  %v8888_v17 = vsel %vm8883_vm15, %v8876_v13, %v8878_v54  ;;  %v8889_v15 = vsel %vm8883_vm15, %v8878_v54, %v8880_v57  ;;  %v6532_v18 = vpop.f32.mrf.mxu0  ;;  %11898 = vmatprep.subr.bf16.mxu1 %v12152_v32 }
 0x340   : > { %10415 = vrot.lane.b32.xlu1 %v12313_v14, %s12146_s30  ;;  %v14723_v59 = vadd.f32 %v6570_v5, %v14655_v19  ;;  %v8907_v4 = vsel %vm349_vm1, %v8888_v17, 0  ;;  %10409 = vrot.lane.b32.xlu0 %v12295_v11, %s12146_s30 }
 0x341   : > { %11498 = vmatprep.subr.msk.bf16.mxu0 %vm349_vm1, %v8889_v15  ;;  %v6572_v23 = vpop.f32.mrf.mxu1  ;;  %v6609_v24 = vpop.f32.mrf.mxu0  ;;  %11497 = vmatmul.mubr.msk.bf16.vlgmr.msra.gmra.mxu1 %vm345_vm2, %v14687_v48 }
 0x342   : > { %9012 = vmatpush1.bf16.msra.mxu0 %v8907_v4  ;;  %v14732_v21 = vadd.f32 %v6609_v24, %v14674_v46  ;;  %v9092_v1 = vpop.permute.xlu1 %9091  ;;  %v8882_v25 = vpop.permute.xlu0 %8881  ;;  %11900 = vmatprep.mubr.msk.bf16.mxu1 %vm12153_vm3, %v12152_v32 }
 0x343   : > { %v6573_v19 = vpop.f32.mrf.mxu1  ;;  %v8890_v28 = vsel %vm8883_vm15, %v8880_v57, %v8882_v25  ;;  %v6611_v33 = vpop.f32.mrf.mxu0 }
 0x344   : > { %10417 = vrot.lane.b32.xlu1 %v12725_v56, %s12146_s30  ;;  %v8913_v26 = vsel %vm349_vm1, %v8890_v28, 0  ;;  %v14740_v31 = vadd.f32 %v6611_v33, %v6441_v47  ;;  %10413 = vrot.lane.b32.xlu0 %v14328_v20, %s12146_s30 }
 0x345   : > { %11499 = vmatmul.mubr.msk.bf16.vlgmr.msra.gmra.mxu0 %vm345_vm2, %v14687_v48  ;;  %v6650_v30 = vpop.f32.mrf.mxu1  ;;  %v6613_v8 = vpop.f32.mrf.mxu0  ;;  %11899 = vmatpush3.bf16.msra.mxu1 %v8913_v26 }
 0x346   : > { %9167 = vmatprep.mubr.bf16.mxu0 %v12137_v2  ;;  %v6662_v63 = vadd.f32 %v6650_v30, %v14676_v6  ;;  %v9096_v27 = vpop.permute.xlu1 %9095  ;;  %v9090_v34 = vpop.permute.xlu0 %9089 }
 0x347   : > { %v11836_v10 = vpop.f32.mrf.mxu1  ;;  %v9104_v35 = vsel %vm9103_vm0, %v9088_v16, %v9090_v34  ;;  %v9105_v46 = vsel %vm9103_vm0, %v9090_v34, %v9092_v1  ;;  %v6614_v36 = vpop.f32.mrf.mxu0 }
 0x348   : > { %10421 = vrot.lane.b32.xlu1 %v14481_v22, %s12146_s30  ;;  %v9115_v38 = vsel %vm349_vm1, %v9104_v35, 0  ;;  %10405 = vrot.lane.b32.xlu0 %v13868_v29, %s15171_s5 }
 0x349   : > { %11501 = vmatprep.subr.msk.bf16.mxu0 %vm349_vm1, %v9105_v46  ;;  %v6653_v42 = vpop.f32.mrf.mxu1  ;;  %11901 = vmatmul.mubr.msk.bf16.vlgmr.msra.gmra.mxu1 %vm345_vm2, %v14687_v48 }
 0x34a   : > { %9150 = vmatpush1.bf16.msra.mxu0 %v9115_v38  ;;  %v9098_v6 = vpop.permute.xlu1 %9097  ;;  %v9094_v40 = vpop.permute.xlu0 %9093  ;;  %9208 = vmatprep.mubr.bf16.mxu1 %v12137_v2 }
 0x34b   : > { %v11837_v47 = vpop.f32.mrf.mxu1  ;;  %v9106_v37 = vsel %vm9103_vm0, %v9092_v1, %v9094_v40  ;;  %v9107_v44 = vsel %vm9103_vm0, %v9094_v40, %v9096_v27  ;;  %v6747_v50 = vpop.f32.mrf.mxu0  ;;  %v9108_v52 = vsel %vm9103_vm0, %v9096_v27, %v9098_v6 }
 0x34c   : > { %10629 = vrot.lane.b32.xlu1 %v12295_v11, %s12194_s23  ;;  %v9121_v45 = vsel %vm349_vm1, %v9106_v37, 0  ;;  %v14765_v41 = vadd.f32 %v6747_v50, %v14699_v55  ;;  %10419 = vrot.lane.b32.xlu0 %v13591_v61, %s12146_s30  ;;  %v9127_v16 = vsel %vm349_vm1, %v9108_v52, 0  ;;  %s12195_s30 = smov 86  }
 0x34d   : > { %11503 = vmatprep.subr.msk.bf16.mxu1 %vm349_vm1, %v9107_v44  ;;  %v6788_v48 = vpop.f32.mrf.mxu1  ;;  %v6749_v49 = vpop.f32.mrf.mxu0 }
 0x34e   : > { %9191 = vmatpush1.bf16.msra.mxu1 %v9121_v45  ;;  %v14771_v51 = vadd.f32 %v6788_v48, %v14715_v60  ;;  %v14774_v43 = vadd.f32 %v6749_v49, %v14705_v39  ;;  %v9102_v53 = vpop.permute.xlu1 %9101  ;;  %v9086_v58 = vpop.permute.xlu0 %9085 }
 0x34f   : > { %11904 = vmatprep.subr.bf16.mxu1 %v12152_v32  ;;  %v6790_v55 = vpop.f32.mrf.mxu1  ;;  %v6751_v57 = vpop.f32.mrf.mxu0  ;;  %11502 = vmatmul.mubr.msk.bf16.vlgmr.msra.gmra.mxu0 %vm345_vm2, %v9086_v58 }
 0x350   : > { %10633 = vrot.lane.b32.xlu1 %v14328_v20, %s12194_s23  ;;  %v14781_v13 = vadd.f32 %v6790_v55, %v14723_v59  ;;  %10627 = vrot.lane.b32.xlu0 %v12284_v7, %s12194_s23 }
 0x351   : > { %9249 = vmatprep.mubr.bf16.mxu0 %v12137_v2  ;;  %v6792_v62 = vpop.f32.mrf.mxu1  ;;  %11504 = vmatmul.mubr.msk.bf16.vlgmr.msra.gmra.mxu1 %vm345_vm2, %v9086_v58  ;;  %v6752_v39 = vpop.f32.mrf.mxu0 }
 0x352   : > { %v9310_v3 = vpop.permute.xlu1 %9309  ;;  %v9100_v0 = vpop.permute.xlu0 %9099  ;;  %11906 = vmatprep.mubr.msk.bf16.mxu1 %vm12153_vm3, %v12152_v32 }
 0x353   : > { %v6793_v20 = vpop.f32.mrf.mxu1  ;;  %v9109_v9 = vsel %vm9103_vm0, %v9098_v6, %v9100_v0  ;;  %v9110_v60 = vsel %vm9103_vm0, %v9100_v0, %v9102_v53 }
 0x354   : > { %10625 = vrot.lane.b32.xlu1 %v13868_v29, %s15169_s13  ;;  %v9133_v54 = vsel %vm349_vm1, %v9110_v60, 0  ;;  %10631 = vrot.lane.b32.xlu0 %v12304_v12, %s12194_s23 }
 0x355   : > { %v6829_v5 = vpop.f32.mrf.mxu0  ;;  %11505 = vmatprep.subr.msk.bf16.mxu0 %vm349_vm1, %v9109_v9  ;;  %v6870_v17 = vpop.f32.mrf.mxu1  ;;  %11905 = vmatpush3.bf16.msra.mxu1 %v9133_v54 }
 0x356   : > { %v14800_v15 = vadd.f32 %v6829_v5, %v14732_v21  ;;  %9232 = vmatpush1.bf16.msra.mxu0 %v9127_v16  ;;  %v14802_v18 = vadd.f32 %v6870_v17, %v6662_v63  ;;  %v9314_v59 = vpop.permute.xlu1 %9313  ;;  %v9308_v29 = vpop.permute.xlu0 %9307 }
 0x357   : > { %v11842_v4 = vpop.f32.mrf.mxu1  ;;  %v6831_v23 = vpop.f32.mrf.mxu0  ;;  %v9324_v21 = vsel %vm9323_vm4, %v9308_v29, %v9310_v3 }
 0x358   : > { %10639 = vrot.lane.b32.xlu1 %v13591_v61, %s12194_s23  ;;  %v14807_v24 = vadd.f32 %v6831_v23, %v14740_v31  ;;  %10635 = vrot.lane.b32.xlu0 %v12313_v14, %s12194_s23  ;;  %v9335_v30 = vsel %vm349_vm1, %v9324_v21, 0 }
 0x359   : > { %11506 = vmatmul.mubr.msk.bf16.vlgmr.msra.gmra.mxu0 %vm345_vm2, %v9086_v58  ;;  %v6873_v1 = vpop.f32.mrf.mxu1  ;;  %v6833_v25 = vpop.f32.mrf.mxu0  ;;  %11907 = vmatmul.mubr.msk.bf16.vlgmr.msra.gmra.mxu1 %vm345_vm2, %v9086_v58 }
 0x35a   : > { %9387 = vmatprep.mubr.bf16.mxu0 %v12137_v2  ;;  %v14815_v19 = vpop.permute.xlu1 %9305  ;;  %v9312_v28 = vpop.permute.xlu0 %9311  ;;  %9428 = vmatprep.mubr.bf16.mxu1 %v12137_v2 }
 0x35b   : > { %v11843_v33 = vpop.f32.mrf.mxu1  ;;  %v9325_v26 = vsel %vm9323_vm4, %v9310_v3, %v9312_v28  ;;  %v6834_v31 = vpop.f32.mrf.mxu0  ;;  %v9326_v63 = vsel %vm9323_vm4, %v9312_v28, %v9314_v59 }
 0x35c   : > { %10846 = vrot.lane.b32.xlu1 %v12284_v7, %s12195_s30  ;;  %10637 = vrot.lane.b32.xlu0 %v12725_v56, %s12194_s23  ;;  %v9341_v36 = vsel %vm349_vm1, %v9326_v63, 0 }
 0x35d   : > { %11508 = vmatprep.subr.msk.bf16.mxu0 %vm349_vm1, %v9325_v26  ;;  %v6967_v8 = vpop.f32.mrf.mxu0 }
 0x35e   : > { %9370 = vmatpush1.bf16.msra.mxu0 %v9335_v30  ;;  %v14827_v27 = vadd.f32 %v6967_v8, %v14765_v41  ;;  %v9320_v34 = vpop.permute.xlu1 %9319  ;;  %v9316_v10 = vpop.permute.xlu0 %9315 }
 0x35f   : > { %v9327_v35 = vsel %vm9323_vm4, %v9314_v59, %v9316_v10  ;;  %v6969_v46 = vpop.f32.mrf.mxu0 }
 0x360   : > { %10850 = vrot.lane.b32.xlu1 %v12304_v12, %s12195_s30  ;;  %v14833_v7 = vadd.f32 %v6969_v46, %v14774_v43  ;;  %10641 = vrot.lane.b32.xlu0 %v14481_v22, %s12194_s23 }
 0x361   : > { %11509 = vmatmul.mubr.msk.bf16.vlgmr.msra.gmra.mxu0 %vm345_vm2, %v14815_v19  ;;  %v7008_v38 = vpop.f32.mrf.mxu1  ;;  %v6971_v42 = vpop.f32.mrf.mxu0  ;;  %11510 = vmatprep.subr.msk.bf16.mxu1 %vm349_vm1, %v9327_v35 }
 0x362   : > { %9469 = vmatprep.mubr.bf16.mxu0 %v12137_v2  ;;  %v14843_v6 = vadd.f32 %v7008_v38, %v14771_v51  ;;  %9411 = vmatpush1.bf16.msra.mxu1 %v9341_v36  ;;  %v9528_v12 = vpop.permute.xlu1 %9527  ;;  %v9318_v40 = vpop.permute.xlu0 %9317 }
 0x363   : > { %v7010_v47 = vpop.f32.mrf.mxu1  ;;  %v9328_v37 = vsel %vm9323_vm4, %v9316_v10, %v9318_v40  ;;  %v9329_v44 = vsel %vm9323_vm4, %v9318_v40, %v9320_v34  ;;  %v6972_v50 = vpop.f32.mrf.mxu0  ;;  %11910 = vmatprep.subr.bf16.mxu1 %v12152_v32 }
 0x364   : > { %10854 = vrot.lane.b32.xlu1 %v12313_v14, %s12195_s30  ;;  %v7099_v45 = vadd.f32 %v7010_v47, %v14781_v13  ;;  %v9347_v41 = vsel %vm349_vm1, %v9328_v37, 0  ;;  %10848 = vrot.lane.b32.xlu0 %v12295_v11, %s12195_s30  ;;  %v12095_v13 = vld [vmem:[%s12272_s8 + $0x18] ss:$0 sps:$4 sm:$0xff]  }
 0x365   : > { %11512 = vmatprep.subr.msk.bf16.mxu0 %vm349_vm1, %v9329_v44  ;;  %v7012_v48 = vpop.f32.mrf.mxu1  ;;  %v7049_v49 = vpop.f32.mrf.mxu0  ;;  %11511 = vmatmul.mubr.msk.bf16.vlgmr.msra.gmra.mxu1 %vm345_vm2, %v14815_v19 }
 0x366   : > { %9452 = vmatpush1.bf16.msra.mxu0 %v9347_v41  ;;  %v14858_v14 = vadd.f32 %v7049_v49, %v14800_v15  ;;  %v9532_v51 = vpop.permute.xlu1 %9531  ;;  %v9322_v43 = vpop.permute.xlu0 %9321  ;;  %11912 = vmatprep.mubr.msk.bf16.mxu1 %vm12153_vm3, %v12152_v32 }
 0x367   : > { %v7013_v53 = vpop.f32.mrf.mxu1  ;;  %v9330_v11 = vsel %vm9323_vm4, %v9320_v34, %v9322_v43  ;;  %v7051_v58 = vpop.f32.mrf.mxu0 }
 0x368   : > { %10858 = vrot.lane.b32.xlu1 %v13591_v61, %s12195_s30  ;;  %v9353_v55 = vsel %vm349_vm1, %v9330_v11, 0  ;;  %v14867_v57 = vadd.f32 %v7051_v58, %v14807_v24  ;;  %10852 = vrot.lane.b32.xlu0 %v12095_v13, %s12195_s30 }
 0x369   : > { %11513 = vmatmul.mubr.msk.bf16.vlgmr.msra.gmra.mxu0 %vm345_vm2, %v14815_v19  ;;  %v7090_v52 = vpop.f32.mrf.mxu1  ;;  %v7053_v62 = vpop.f32.mrf.mxu0  ;;  %11911 = vmatpush3.bf16.msra.mxu1 %v9353_v55 }
 0x36a   : > { %9607 = vmatprep.mubr.bf16.mxu0 %v12137_v2  ;;  %v7102_v39 = vadd.f32 %v7090_v52, %v14802_v18  ;;  %v9536_v61 = vpop.permute.xlu1 %9535  ;;  %v9530_v3 = vpop.permute.xlu0 %9529 }
 0x36b   : > { %v11848_v0 = vpop.f32.mrf.mxu1  ;;  %v9544_v20 = vsel %vm9543_vm5, %v9528_v12, %v9530_v3  ;;  %v9545_v9 = vsel %vm9543_vm5, %v9530_v3, %v9532_v51  ;;  %v7054_v60 = vpop.f32.mrf.mxu0 }
 0x36c   : > { %v9555_v16 = vsel %vm349_vm1, %v9544_v20, 0  ;;  %10856 = vrot.lane.b32.xlu0 %v12725_v56, %s12195_s30  ;;  %11515 = vmatprep.subr.msk.bf16.mxu0 %vm349_vm1, %v9545_v9 }
 0x36d   : > { %v7093_v54 = vpop.f32.mrf.mxu1  ;;  %11913 = vmatmul.mubr.msk.bf16.vlgmr.msra.gmra.mxu1 %vm345_vm2, %v14815_v19  ;;  %9590 = vmatpush1.bf16.msra.mxu0 %v9555_v16 }
 0x36e   : > { %v9538_v5 = vpop.permute.xlu1 %9537  ;;  %v9534_v17 = vpop.permute.xlu0 %9533  ;;  %9648 = vmatprep.mubr.bf16.mxu1 %v12137_v2 }
 0x36f   : > { %v11849_v15 = vpop.f32.mrf.mxu1  ;;  %v9546_v18 = vsel %vm9543_vm5, %v9532_v51, %v9534_v17  ;;  %v9547_v59 = vsel %vm9543_vm5, %v9534_v17, %v9536_v61  ;;  %v7187_v29 = vpop.f32.mrf.mxu0 }
 0x370   : > { %v9561_v4 = vsel %vm349_vm1, %v9546_v18, 0  ;;  %v7316_v56 = vadd.f32 %v7187_v29, %v14827_v27  ;;  %10860 = vrot.lane.b32.xlu0 %v14481_v22, %s12195_s30  ;;  %11517 = vmatprep.subr.msk.bf16.mxu1 %vm349_vm1, %v9547_v59  ;;  %v9548_v22 = vsel %vm9543_vm5, %v9536_v61, %v9538_v5 }
 0x371   : > { %v7228_v23 = vpop.f32.mrf.mxu1  ;;  %v7189_v24 = vpop.f32.mrf.mxu0  ;;  %9631 = vmatpush1.bf16.msra.mxu1 %v9561_v4  ;;  %v9567_v35 = vsel %vm349_vm1, %v9548_v22, 0 }
 0x372   : > { %v14892_v21 = vadd.f32 %v7228_v23, %v14843_v6  ;;  %v7317_v1 = vadd.f32 %v7189_v24, %v14833_v7  ;;  %v9542_v25 = vpop.permute.xlu1 %9541  ;;  %v9526_v19 = vpop.permute.xlu0 %9525  ;;  %11916 = vmatprep.subr.bf16.mxu1 %v12152_v32 }
 0x373   : > { %v7230_v28 = vpop.f32.mrf.mxu1  ;;  %v7191_v33 = vpop.f32.mrf.mxu0  ;;  %11516 = vmatmul.mubr.msk.bf16.vlgmr.msra.gmra.mxu0 %vm345_vm2, %v9526_v19 }
 0x374   : > { %v14897_v26 = vadd.f32 %v7230_v28, %v7099_v45  ;;  %9689 = vmatprep.mubr.bf16.mxu0 %v12137_v2 }
 0x375   : > { %v7232_v31 = vpop.f32.mrf.mxu1  ;;  %11518 = vmatmul.mubr.msk.bf16.vlgmr.msra.gmra.mxu1 %vm345_vm2, %v9526_v19  ;;  %v7192_v30 = vpop.f32.mrf.mxu0 }
 0x376   : > { %v9750_v8 = vpop.permute.xlu1 %9749  ;;  %v9540_v63 = vpop.permute.xlu0 %9539  ;;  %11918 = vmatprep.mubr.msk.bf16.mxu1 %vm12153_vm3, %v12152_v32 }
 0x377   : > { %v7233_v27 = vpop.f32.mrf.mxu1  ;;  %v9549_v34 = vsel %vm9543_vm5, %v9538_v5, %v9540_v63  ;;  %v9550_v10 = vsel %vm9543_vm5, %v9540_v63, %v9542_v25 }
 0x378   : > { %v9573_v46 = vsel %vm349_vm1, %v9550_v10, 0  ;;  %11519 = vmatprep.subr.msk.bf16.mxu0 %vm349_vm1, %v9549_v34 }
 0x379   : > { %v7269_v7 = vpop.f32.mrf.mxu0  ;;  %v7310_v38 = vpop.f32.mrf.mxu1  ;;  %9672 = vmatpush1.bf16.msra.mxu0 %v9567_v35  ;;  %11917 = vmatpush3.bf16.msra.mxu1 %v9573_v46 }
 0x37a   : > { %v7320_v36 = vadd.f32 %v7269_v7, %v14858_v14  ;;  %v14910_v42 = vadd.f32 %v7310_v38, %v7102_v39  ;;  %v9754_v6 = vpop.permute.xlu1 %9753  ;;  %v9748_v12 = vpop.permute.xlu0 %9747 }
 0x37b   : > { %v11854_v40 = vpop.f32.mrf.mxu1  ;;  %v7271_v47 = vpop.f32.mrf.mxu0  ;;  %v9764_v44 = vsel %vm9763_vm6, %v9748_v12, %v9750_v8 }
 0x37c   : > { %v7321_v37 = vadd.f32 %v7271_v47, %v14867_v57  ;;  %11520 = vmatmul.mubr.msk.bf16.vlgmr.msra.gmra.mxu0 %vm345_vm2, %v9526_v19  ;;  %v9775_v43 = vsel %vm349_vm1, %v9764_v44, 0 }
 0x37d   : > { %v7273_v50 = vpop.f32.mrf.mxu0  ;;  %v7313_v45 = vpop.f32.mrf.mxu1  ;;  %11919 = vmatmul.mubr.msk.bf16.vlgmr.msra.gmra.mxu1 %vm345_vm2, %v9526_v19  ;;  %9827 = vmatprep.mubr.bf16.mxu0 %v12137_v2 }
 0x37e   : > { %v9746_v41 = vpop.permute.xlu1 %9745  ;;  %v9752_v48 = vpop.permute.xlu0 %9751  ;;  %9868 = vmatprep.mubr.bf16.mxu1 %v12137_v2 }
 0x37f   : > { %v11855_v49 = vpop.f32.mrf.mxu1  ;;  %v9765_v14 = vsel %vm9763_vm6, %v9750_v8, %v9752_v48  ;;  %v7274_v51 = vpop.f32.mrf.mxu0  ;;  %v9766_v53 = vsel %vm9763_vm6, %v9752_v48, %v9754_v6 }
 0x380   : > { %11522 = vmatprep.subr.msk.bf16.mxu0 %vm349_vm1, %v9765_v14  ;;  %v9781_v62 = vsel %vm349_vm1, %v9766_v53, 0 }
 0x381   : > { %v7406_v11 = vpop.f32.mrf.mxu0  ;;  %9810 = vmatpush1.bf16.msra.mxu0 %v9775_v43 }
 0x382   : > { %v7535_v58 = vadd.f32 %v7406_v11, %v7316_v56  ;;  %v9760_v55 = vpop.permute.xlu1 %9759  ;;  %v9756_v57 = vpop.permute.xlu0 %9755 }
 0x383   : > { %v9767_v13 = vsel %vm9763_vm6, %v9754_v6, %v9756_v57  ;;  %v7408_v52 = vpop.f32.mrf.mxu0 }
 0x384   : > { %v7536_v39 = vadd.f32 %v7408_v52, %v7317_v1  ;;  %11523 = vmatmul.mubr.msk.bf16.vlgmr.msra.gmra.mxu0 %vm345_vm2, %v9746_v41  ;;  %11524 = vmatprep.subr.msk.bf16.mxu1 %vm349_vm1, %v9767_v13 }
 0x385   : > { %v7410_v61 = vpop.f32.mrf.mxu0  ;;  %v7447_v3 = vpop.f32.mrf.mxu1  ;;  %9851 = vmatpush1.bf16.msra.mxu1 %v9781_v62  ;;  %9909 = vmatprep.mubr.bf16.mxu0 %v12137_v2 }
 0x386   : > { %v7537_v0 = vadd.f32 %v7447_v3, %v14892_v21  ;;  %v9968_v20 = vpop.permute.xlu1 %9967  ;;  %v9758_v9 = vpop.permute.xlu0 %9757  ;;  %11922 = vmatprep.subr.bf16.mxu1 %v12152_v32 }
 0x387   : > { %v7449_v60 = vpop.f32.mrf.mxu1  ;;  %v9768_v16 = vsel %vm9763_vm6, %v9756_v57, %v9758_v9  ;;  %v9769_v54 = vsel %vm9763_vm6, %v9758_v9, %v9760_v55  ;;  %v7411_v5 = vpop.f32.mrf.mxu0 }
 0x388   : > { %v7538_v17 = vadd.f32 %v7449_v60, %v14897_v26  ;;  %v9787_v15 = vsel %vm349_vm1, %v9768_v16, 0  ;;  %11525 = vmatmul.mubr.msk.bf16.vlgmr.msra.gmra.mxu1 %vm345_vm2, %v9746_v41  ;;  %11526 = vmatprep.subr.msk.bf16.mxu0 %vm349_vm1, %v9769_v54 }
 0x389   : > { %v7451_v18 = vpop.f32.mrf.mxu1  ;;  %v7488_v59 = vpop.f32.mrf.mxu0  ;;  %9892 = vmatpush1.bf16.msra.mxu0 %v9787_v15  ;;  %11924 = vmatprep.mubr.msk.bf16.mxu1 %vm12153_vm3, %v12152_v32 }
 0x38a   : > { %v7539_v29 = vadd.f32 %v7488_v59, %v7320_v36  ;;  %v9972_v4 = vpop.permute.xlu1 %9971  ;;  %v9762_v56 = vpop.permute.xlu0 %9761 }
 0x38b   : > { %v7452_v23 = vpop.f32.mrf.mxu1  ;;  %v9770_v24 = vsel %vm9763_vm6, %v9760_v55, %v9762_v56  ;;  %v7490_v21 = vpop.f32.mrf.mxu0  ;;  %v11064_v56 = vld [vmem:[%s15163_s3] sm:$0xff] }
 0x38c   : > { %v9793_v1 = vsel %vm349_vm1, %v9770_v24, 0  ;;  %v7540_v25 = vadd.f32 %v7490_v21, %v7321_v37  ;;  %11527 = vmatmul.mubr.msk.bf16.vlgmr.msra.gmra.mxu0 %vm345_vm2, %v9746_v41  ;;  %11067 = vperm.xlu1 %12060, %v11064_v56  }
 0x38d   : > { %v7492_v19 = vpop.f32.mrf.mxu0  ;;  %v7529_v28 = vpop.f32.mrf.mxu1  ;;  %11923 = vmatpush3.bf16.msra.mxu1 %v9793_v1  ;;  %10047 = vmatprep.mubr.bf16.mxu0 %v12137_v2 }
 0x38e   : > { %v7541_v33 = vadd.f32 %v7529_v28, %v14910_v42  ;;  %v9976_v26 = vpop.permute.xlu1 %9975  ;;  %v9970_v22 = vpop.permute.xlu0 %9969 }
 0x38f   : > { %v11860_v31 = vpop.f32.mrf.mxu1  ;;  %v9984_v30 = vsel %vm9983_vm7, %v9968_v20, %v9970_v22  ;;  %v9985_v8 = vsel %vm9983_vm7, %v9970_v22, %v9972_v4  ;;  %v7493_v63 = vpop.f32.mrf.mxu0 }
 0x390   : > { %v9995_v27 = vsel %vm349_vm1, %v9984_v30, 0  ;;  %11925 = vmatmul.mubr.msk.bf16.vlgmr.msra.gmra.mxu1 %vm345_vm2, %v9746_v41  ;;  %11529 = vmatprep.subr.msk.bf16.mxu0 %vm349_vm1, %v9985_v8 }
 0x391   : > { %v7532_v34 = vpop.f32.mrf.mxu1  ;;  %v7629_v10 = vpop.f32.mrf.mxu0  ;;  %10030 = vmatpush1.bf16.msra.mxu0 %v9995_v27  ;;  %10088 = vmatprep.mubr.bf16.mxu1 %v12137_v2 }
 0x392   : > { %v7758_v35 = vadd.f32 %v7629_v10, %v7535_v58  ;;  %v9978_v46 = vpop.permute.xlu1 %9977  ;;  %v9974_v7 = vpop.permute.xlu0 %9973 }
 0x393   : > { %v11861_v36 = vpop.f32.mrf.mxu1  ;;  %v9986_v38 = vsel %vm9983_vm7, %v9972_v4, %v9974_v7  ;;  %v9987_v42 = vsel %vm9983_vm7, %v9974_v7, %v9976_v26  ;;  %v7631_v6 = vpop.f32.mrf.mxu0  ;;  %v9988_v14 = vsel %vm9983_vm7, %v9976_v26, %v9978_v46 }
 0x394   : > { %v10001_v12 = vsel %vm349_vm1, %v9986_v38, 0  ;;  %v7759_v40 = vadd.f32 %v7631_v6, %v7536_v39  ;;  %11531 = vmatprep.subr.msk.bf16.mxu1 %vm349_vm1, %v9987_v42  ;;  %v10007_v62 = vsel %vm349_vm1, %v9988_v14, 0 }
 0x395   : > { %v7633_v47 = vpop.f32.mrf.mxu0  ;;  %v7670_v37 = vpop.f32.mrf.mxu1  ;;  %10071 = vmatpush1.bf16.msra.mxu1 %v10001_v12 }
 0x396   : > { %v7760_v44 = vadd.f32 %v7670_v37, %v7537_v0  ;;  %v9982_v50 = vpop.permute.xlu1 %9981  ;;  %v9966_v45 = vpop.permute.xlu0 %9965  ;;  %11928 = vmatprep.subr.bf16.mxu1 %v12152_v32 }
 0x397   : > { %v7672_v41 = vpop.f32.mrf.mxu1  ;;  %v7634_v48 = vpop.f32.mrf.mxu0  ;;  %11530 = vmatmul.mubr.msk.bf16.vlgmr.msra.gmra.mxu0 %vm345_vm2, %v9966_v45 }
 0x398   : > { %v7761_v49 = vadd.f32 %v7672_v41, %v7538_v17  ;;  %11532 = vmatmul.mubr.msk.bf16.vlgmr.msra.gmra.mxu1 %vm345_vm2, %v9966_v45  ;;  %10129 = vmatprep.mubr.bf16.mxu0 %v12137_v2 }
 0x399   : > { %v7674_v51 = vpop.f32.mrf.mxu1  ;;  %v7711_v43 = vpop.f32.mrf.mxu0  ;;  %11930 = vmatprep.mubr.msk.bf16.mxu1 %vm12153_vm3, %v12152_v32 }
 0x39a   : > { %v14959_v53 = vadd.f32 %v7711_v43, %v7539_v29  ;;  %v10190_v11 = vpop.permute.xlu1 %10189  ;;  %v9980_v58 = vpop.permute.xlu0 %9979 }
 0x39b   : > { %v7675_v55 = vpop.f32.mrf.mxu1  ;;  %v9989_v57 = vsel %vm9983_vm7, %v9978_v46, %v9980_v58  ;;  %v9990_v13 = vsel %vm9983_vm7, %v9980_v58, %v9982_v50  ;;  %v7713_v52 = vpop.f32.mrf.mxu0 }
 0x39c   : > { %v10013_v39 = vsel %vm349_vm1, %v9990_v13, 0  ;;  %v14965_v61 = vadd.f32 %v7713_v52, %v7540_v25  ;;  %11533 = vmatprep.subr.msk.bf16.mxu0 %vm349_vm1, %v9989_v57 }
 0x39d   : > { %v7715_v3 = vpop.f32.mrf.mxu0  ;;  %v7752_v0 = vpop.f32.mrf.mxu1  ;;  %10112 = vmatpush1.bf16.msra.mxu0 %v10007_v62  ;;  %11929 = vmatpush3.bf16.msra.mxu1 %v10013_v39 }
 0x39e   : > { %v7764_v20 = vadd.f32 %v7752_v0, %v7541_v33  ;;  %v10194_v9 = vpop.permute.xlu1 %10193  ;;  %v10188_v60 = vpop.permute.xlu0 %10187 }
 0x39f   : > { %v11866_v16 = vpop.f32.mrf.mxu1  ;;  %v7716_v54 = vpop.f32.mrf.mxu0  ;;  %v10204_v5 = vsel %vm10203_vm8, %v10188_v60, %v10190_v11 }
 0x3a0   : > { %11534 = vmatmul.mubr.msk.bf16.vlgmr.msra.gmra.mxu0 %vm345_vm2, %v9966_v45  ;;  %11931 = vmatmul.mubr.msk.bf16.vlgmr.msra.gmra.mxu1 %vm345_vm2, %v9966_v45  ;;  %v10215_v23 = vsel %vm349_vm1, %v10204_v5, 0 }
 0x3a1   : > { %v7755_v17 = vpop.f32.mrf.mxu1  ;;  %10267 = vmatprep.mubr.bf16.mxu0 %v12137_v2  ;;  %10308 = vmatprep.mubr.bf16.mxu1 %v12137_v2 }
 0x3a2   : > { %v14973_v15 = vpop.permute.xlu1 %10185  ;;  %v10192_v18 = vpop.permute.xlu0 %10191 }
 0x3a3   : > { %v11867_v59 = vpop.f32.mrf.mxu1  ;;  %v10205_v29 = vsel %vm10203_vm8, %v10190_v11, %v10192_v18  ;;  %v7849_v4 = vpop.f32.mrf.mxu0  ;;  %v10206_v21 = vsel %vm10203_vm8, %v10192_v18, %v10194_v9 }
 0x3a4   : > { %v7978_v24 = vadd.f32 %v7849_v4, %v7758_v35  ;;  %11536 = vmatprep.subr.msk.bf16.mxu0 %vm349_vm1, %v10205_v29  ;;  %v10221_v8 = vsel %vm349_vm1, %v10206_v21, 0 }
 0x3a5   : > { %v7890_v1 = vpop.f32.mrf.mxu1  ;;  %v7851_v25 = vpop.f32.mrf.mxu0  ;;  %10250 = vmatpush1.bf16.msra.mxu0 %v10215_v23 }
 0x3a6   : > { %v14982_v19 = vadd.f32 %v7890_v1, %v7760_v44  ;;  %v7979_v28 = vadd.f32 %v7851_v25, %v7759_v40  ;;  %v10200_v33 = vpop.permute.xlu1 %10199  ;;  %v10196_v26 = vpop.permute.xlu0 %10195 }
 0x3a7   : > { %v7892_v22 = vpop.f32.mrf.mxu1  ;;  %v10207_v31 = vsel %vm10203_vm8, %v10194_v9, %v10196_v26  ;;  %v7853_v30 = vpop.f32.mrf.mxu0 }
 0x3a8   : > { %v14986_v63 = vadd.f32 %v7892_v22, %v7761_v49  ;;  %11537 = vmatmul.mubr.msk.bf16.vlgmr.msra.gmra.mxu0 %vm345_vm2, %v14973_v15  ;;  %11538 = vmatprep.subr.msk.bf16.mxu1 %vm349_vm1, %v10207_v31 }
 0x3a9   : > { %v7894_v27 = vpop.f32.mrf.mxu1  ;;  %v7854_v34 = vpop.f32.mrf.mxu0  ;;  %10291 = vmatpush1.bf16.msra.mxu1 %v10221_v8  ;;  %10349 = vmatprep.mubr.bf16.mxu0 %v12137_v2 }
 0x3aa   : > { %v10408_v10 = vpop.permute.xlu1 %10407  ;;  %v10198_v35 = vpop.permute.xlu0 %10197  ;;  %11934 = vmatprep.subr.bf16.mxu1 %v12152_v32 }
 0x3ab   : > { %v7895_v46 = vpop.f32.mrf.mxu1  ;;  %v10208_v7 = vsel %vm10203_vm8, %v10196_v26, %v10198_v35  ;;  %v10209_v36 = vsel %vm10203_vm8, %v10198_v35, %v10200_v33 }
 0x3ac   : > { %v10227_v38 = vsel %vm349_vm1, %v10208_v7, 0  ;;  %11539 = vmatmul.mubr.msk.bf16.vlgmr.msra.gmra.mxu1 %vm345_vm2, %v14973_v15  ;;  %11540 = vmatprep.subr.msk.bf16.mxu0 %vm349_vm1, %v10209_v36 }
 0x3ad   : > { %v7931_v42 = vpop.f32.mrf.mxu0  ;;  %v7972_v12 = vpop.f32.mrf.mxu1  ;;  %10332 = vmatpush1.bf16.msra.mxu0 %v10227_v38  ;;  %11936 = vmatprep.mubr.msk.bf16.mxu1 %vm12153_vm3, %v12152_v32 }
 0x3ae   : > { %v7982_v6 = vadd.f32 %v7931_v42, %v14959_v53  ;;  %v15002_v40 = vadd.f32 %v7972_v12, %v7764_v20  ;;  %v10412_v47 = vpop.permute.xlu1 %10411  ;;  %v10202_v37 = vpop.permute.xlu0 %10201 }
 0x3af   : > { %v11872_v44 = vpop.f32.mrf.mxu1  ;;  %v10210_v50 = vsel %vm10203_vm8, %v10200_v33, %v10202_v37  ;;  %v7933_v45 = vpop.f32.mrf.mxu0 }
 0x3b0   : > { %v10233_v41 = vsel %vm349_vm1, %v10210_v50, 0  ;;  %v7983_v48 = vadd.f32 %v7933_v45, %v14965_v61  ;;  %11541 = vmatmul.mubr.msk.bf16.vlgmr.msra.gmra.mxu0 %vm345_vm2, %v14973_v15 }
 0x3b1   : > { %v7935_v49 = vpop.f32.mrf.mxu0  ;;  %v7975_v14 = vpop.f32.mrf.mxu1  ;;  %11935 = vmatpush3.bf16.msra.mxu1 %v10233_v41  ;;  %10487 = vmatprep.mubr.bf16.mxu0 %v12137_v2 }
 0x3b2   : > { %v10416_v51 = vpop.permute.xlu1 %10415  ;;  %v10410_v43 = vpop.permute.xlu0 %10409 }
 0x3b3   : > { %v11873_v53 = vpop.f32.mrf.mxu1  ;;  %v10424_v11 = vsel %vm10423_vm9, %v10408_v10, %v10410_v43  ;;  %v10425_v58 = vsel %vm10423_vm9, %v10410_v43, %v10412_v47  ;;  %v7936_v55 = vpop.f32.mrf.mxu0 }
 0x3b4   : > { %v10435_v57 = vsel %vm349_vm1, %v10424_v11, 0  ;;  %11937 = vmatmul.mubr.msk.bf16.vlgmr.msra.gmra.mxu1 %vm345_vm2, %v14973_v15  ;;  %11543 = vmatprep.subr.msk.bf16.mxu0 %vm349_vm1, %v10425_v58 }
 0x3b5   : > { %v8069_v13 = vpop.f32.mrf.mxu0  ;;  %10470 = vmatpush1.bf16.msra.mxu0 %v10435_v57  ;;  %10528 = vmatprep.mubr.bf16.mxu1 %v12137_v2 }
 0x3b6   : > { %v8198_v52 = vadd.f32 %v8069_v13, %v7978_v24  ;;  %v10418_v62 = vpop.permute.xlu1 %10417  ;;  %v10414_v39 = vpop.permute.xlu0 %10413 }
 0x3b7   : > { %v10426_v61 = vsel %vm10423_vm9, %v10412_v47, %v10414_v39  ;;  %v10427_v3 = vsel %vm10423_vm9, %v10414_v39, %v10416_v51  ;;  %v8071_v0 = vpop.f32.mrf.mxu0  ;;  %v10428_v29 = vsel %vm10423_vm9, %v10416_v51, %v10418_v62 }
 0x3b8   : > { %v10441_v20 = vsel %vm349_vm1, %v10426_v61, 0  ;;  %v8199_v9 = vadd.f32 %v8071_v0, %v7979_v28  ;;  %11545 = vmatprep.subr.msk.bf16.mxu1 %vm349_vm1, %v10427_v3  ;;  %v10447_v33 = vsel %vm349_vm1, %v10428_v29, 0 }
 0x3b9   : > { %v8073_v60 = vpop.f32.mrf.mxu0  ;;  %v8110_v16 = vpop.f32.mrf.mxu1  ;;  %10511 = vmatpush1.bf16.msra.mxu1 %v10441_v20 }
 0x3ba   : > { %v8200_v54 = vadd.f32 %v8110_v16, %v14982_v19  ;;  %v10406_v5 = vpop.permute.xlu0 %10405  ;;  %v10422_v17 = vpop.permute.xlu1 %10421  ;;  %11940 = vmatprep.subr.bf16.mxu1 %v12152_v32 }
 0x3bb   : > { %v8112_v15 = vpop.f32.mrf.mxu1  ;;  %v8074_v18 = vpop.f32.mrf.mxu0  ;;  %11544 = vmatmul.mubr.msk.bf16.vlgmr.msra.gmra.mxu0 %vm345_vm2, %v10406_v5 }
 0x3bc   : > { %v8201_v59 = vadd.f32 %v8112_v15, %v14986_v63  ;;  %11546 = vmatmul.mubr.msk.bf16.vlgmr.msra.gmra.mxu1 %vm345_vm2, %v10406_v5  ;;  %10569 = vmatprep.mubr.bf16.mxu0 %v12137_v2 }
 0x3bd   : > { %v8114_v4 = vpop.f32.mrf.mxu1  ;;  %v8151_v56 = vpop.f32.mrf.mxu0  ;;  %11942 = vmatprep.mubr.msk.bf16.mxu1 %vm12153_vm3, %v12152_v32 }
 0x3be   : > { %v15030_v23 = vadd.f32 %v8151_v56, %v7982_v6  ;;  %v10420_v24 = vpop.permute.xlu0 %10419  ;;  %v10630_v21 = vpop.permute.xlu1 %10629 }
 0x3bf   : > { %v8115_v1 = vpop.f32.mrf.mxu1  ;;  %v10429_v25 = vsel %vm10423_vm9, %v10418_v62, %v10420_v24  ;;  %v10430_v19 = vsel %vm10423_vm9, %v10420_v24, %v10422_v17  ;;  %v8153_v28 = vpop.f32.mrf.mxu0 }
 0x3c0   : > { %v10453_v26 = vsel %vm349_vm1, %v10430_v19, 0  ;;  %v15036_v22 = vadd.f32 %v8153_v28, %v7983_v48  ;;  %11547 = vmatprep.subr.msk.bf16.mxu0 %vm349_vm1, %v10429_v25  ;;  %v10845_v28 = vld [vmem:[%s15162_s2 + $0xc] sm:$0xf] }
 0x3c1   : > { %v8155_v31 = vpop.f32.mrf.mxu0  ;;  %v8192_v30 = vpop.f32.mrf.mxu1  ;;  %10552 = vmatpush1.bf16.msra.mxu0 %v10447_v33  ;;  %11941 = vmatpush3.bf16.msra.mxu1 %v10453_v26 }
 0x3c2   : > { %v8204_v8 = vadd.f32 %v8192_v30, %v15002_v40  ;;  %v10628_v63 = vpop.permute.xlu0 %10627  ;;  %v10634_v27 = vpop.permute.xlu1 %10633 }
 0x3c3   : > { %v11878_v34 = vpop.f32.mrf.mxu1  ;;  %v8156_v10 = vpop.f32.mrf.mxu0  ;;  %v10644_v35 = vsel %vm10643_vm10, %v10628_v63, %v10630_v21 }
 0x3c4   : > { %11548 = vmatmul.mubr.msk.bf16.vlgmr.msra.gmra.mxu0 %vm345_vm2, %v10406_v5  ;;  %11943 = vmatmul.mubr.msk.bf16.vlgmr.msra.gmra.mxu1 %vm345_vm2, %v10406_v5  ;;  %v10655_v12 = vsel %vm349_vm1, %v10644_v35, 0 }
 0x3c5   : > { %v8195_v46 = vpop.f32.mrf.mxu1  ;;  %10707 = vmatprep.mubr.bf16.mxu0 %v12137_v2  ;;  %10748 = vmatprep.mubr.bf16.mxu1 %v12137_v2 }
 0x3c6   : > { %v10632_v7 = vpop.permute.xlu0 %10631  ;;  %v10626_v36 = vpop.permute.xlu1 %10625 }
 0x3c7   : > { %v11879_v38 = vpop.f32.mrf.mxu1  ;;  %v10645_v42 = vsel %vm10643_vm10, %v10630_v21, %v10632_v7  ;;  %v8289_v6 = vpop.f32.mrf.mxu0  ;;  %v10646_v47 = vsel %vm10643_vm10, %v10632_v7, %v10634_v27 }
 0x3c8   : > { %v8418_v40 = vadd.f32 %v8289_v6, %v8198_v52  ;;  %11550 = vmatprep.subr.msk.bf16.mxu0 %vm349_vm1, %v10645_v42  ;;  %v10661_v43 = vsel %vm349_vm1, %v10646_v47, 0 }
 0x3c9   : > { %v8330_v37 = vpop.f32.mrf.mxu1  ;;  %v8291_v44 = vpop.f32.mrf.mxu0  ;;  %10690 = vmatpush1.bf16.msra.mxu0 %v10655_v12 }
 0x3ca   : > { %v15049_v50 = vadd.f32 %v8330_v37, %v8200_v54  ;;  %v8419_v45 = vadd.f32 %v8291_v44, %v8199_v9  ;;  %v10636_v41 = vpop.permute.xlu0 %10635  ;;  %v10640_v48 = vpop.permute.xlu1 %10639 }
 0x3cb   : > { %v8332_v49 = vpop.f32.mrf.mxu1  ;;  %v10647_v14 = vsel %vm10643_vm10, %v10634_v27, %v10636_v41  ;;  %v8293_v51 = vpop.f32.mrf.mxu0 }
 0x3cc   : > { %v15053_v53 = vadd.f32 %v8332_v49, %v8201_v59  ;;  %11551 = vmatmul.mubr.msk.bf16.vlgmr.msra.gmra.mxu0 %vm345_vm2, %v10626_v36  ;;  %11552 = vmatprep.subr.msk.bf16.mxu1 %vm349_vm1, %v10647_v14 }
 0x3cd   : > { %v8334_v11 = vpop.f32.mrf.mxu1  ;;  %v8294_v58 = vpop.f32.mrf.mxu0  ;;  %10731 = vmatpush1.bf16.msra.mxu1 %v10661_v43  ;;  %10789 = vmatprep.mubr.bf16.mxu0 %v12137_v2 }
 0x3ce   : > { %v10638_v55 = vpop.permute.xlu0 %10637  ;;  %v10847_v57 = vpop.permute.xlu1 %10846  ;;  %11946 = vmatprep.subr.bf16.mxu1 %v12152_v32 }
 0x3cf   : > { %v8335_v13 = vpop.f32.mrf.mxu1  ;;  %v10648_v52 = vsel %vm10643_vm10, %v10636_v41, %v10638_v55  ;;  %v10649_v62 = vsel %vm10643_vm10, %v10638_v55, %v10640_v48 }
 0x3d0   : > { %v10667_v39 = vsel %vm349_vm1, %v10648_v52, 0  ;;  %11553 = vmatmul.mubr.msk.bf16.vlgmr.msra.gmra.mxu1 %vm345_vm2, %v10626_v36  ;;  %11554 = vmatprep.subr.msk.bf16.mxu0 %vm349_vm1, %v10649_v62 }
 0x3d1   : > { %v8371_v61 = vpop.f32.mrf.mxu0  ;;  %v8412_v0 = vpop.f32.mrf.mxu1  ;;  %10772 = vmatpush1.bf16.msra.mxu0 %v10667_v39  ;;  %11948 = vmatprep.mubr.msk.bf16.mxu1 %vm12153_vm3, %v12152_v32 }
 0x3d2   : > { %v8422_v3 = vadd.f32 %v8371_v61, %v15030_v23  ;;  %v15067_v20 = vadd.f32 %v8412_v0, %v8204_v8  ;;  %v10642_v9 = vpop.permute.xlu0 %10641  ;;  %v10851_v17 = vpop.permute.xlu1 %10850 }
 0x3d3   : > { %v8373_v60 = vpop.f32.mrf.mxu0  ;;  %v11884_v16 = vpop.f32.mrf.mxu1  ;;  %v10650_v54 = vsel %vm10643_vm10, %v10640_v48, %v10642_v9 }
 0x3d4   : > { %v8423_v5 = vadd.f32 %v8373_v60, %v15036_v22  ;;  %v10673_v15 = vsel %vm349_vm1, %v10650_v54, 0  ;;  %11555 = vmatmul.mubr.msk.bf16.vlgmr.msra.gmra.mxu0 %vm345_vm2, %v10626_v36 }
 0x3d5   : > { %v8375_v18 = vpop.f32.mrf.mxu0  ;;  %v8415_v59 = vpop.f32.mrf.mxu1  ;;  %11947 = vmatpush3.bf16.msra.mxu1 %v10673_v15  ;;  %10926 = vmatprep.mubr.bf16.mxu0 %v12137_v2 }
 0x3d6   : > { %v10849_v29 = vpop.permute.xlu0 %10848  ;;  %v10855_v21 = vpop.permute.xlu1 %10854 }
 0x3d7   : > { %v8376_v4 = vpop.f32.mrf.mxu0  ;;  %v11885_v56 = vpop.f32.mrf.mxu1  ;;  %v10863_v23 = vsel %vm10862_vm11, %v10847_v57, %v10849_v29  ;;  %v10864_v24 = vsel %vm10862_vm11, %v10849_v29, %v10851_v17 }
 0x3d8   : > { %v10874_v1 = vsel %vm349_vm1, %v10863_v23, 0  ;;  %11949 = vmatmul.mubr.msk.bf16.vlgmr.msra.gmra.mxu1 %vm345_vm2, %v10626_v36  ;;  %11557 = vmatprep.subr.msk.bf16.mxu0 %vm349_vm1, %v10864_v24 }
 0x3d9   : > { %v8509_v25 = vpop.f32.mrf.mxu0  ;;  %10909 = vmatpush1.bf16.msra.mxu0 %v10874_v1  ;;  %10967 = vmatprep.mubr.bf16.mxu1 %v12137_v2 }
 0x3da   : > { %v8638_v19 = vadd.f32 %v8509_v25, %v8418_v40  ;;  %v10853_v33 = vpop.permute.xlu0 %10852  ;;  %v10859_v27 = vpop.permute.xlu1 %10858 }
 0x3db   : > { %v8511_v26 = vpop.f32.mrf.mxu0  ;;  %v10865_v22 = vsel %vm10862_vm11, %v10851_v17, %v10853_v33  ;;  %v10866_v31 = vsel %vm10862_vm11, %v10853_v33, %v10855_v21 }
 0x3dc   : > { %v8639_v30 = vadd.f32 %v8511_v26, %v8419_v45  ;;  %v10880_v8 = vsel %vm349_vm1, %v10865_v22, 0  ;;  %11558 = vmatmul.mubr.msk.bf16.vlgmr.msra.gmra.mxu0 %vm345_vm2, %v10845_v28  ;;  %11559 = vmatprep.subr.msk.bf16.mxu1 %vm349_vm1, %v10866_v31 }
 0x3dd   : > { %v8513_v63 = vpop.f32.mrf.mxu0  ;;  %v8550_v34 = vpop.f32.mrf.mxu1  ;;  %10950 = vmatpush1.bf16.msra.mxu1 %v10880_v8  ;;  %11008 = vmatprep.mubr.bf16.mxu0 %v12137_v2 }
 0x3de   : > { %v8640_v10 = vadd.f32 %v8550_v34, %v15049_v50  ;;  %v10857_v35 = vpop.permute.xlu0 %10856  ;;  %11952 = vmatprep.subr.bf16.mxu1 %v12152_v32 }
 0x3df   : > { %v8514_v46 = vpop.f32.mrf.mxu0  ;;  %v8552_v7 = vpop.f32.mrf.mxu1  ;;  %v10867_v36 = vsel %vm10862_vm11, %v10855_v21, %v10857_v35  ;;  %v10868_v38 = vsel %vm10862_vm11, %v10857_v35, %v10859_v27 }
 0x3e0   : > { %v8641_v42 = vadd.f32 %v8552_v7, %v15053_v53  ;;  %v10886_v6 = vsel %vm349_vm1, %v10867_v36, 0  ;;  %11560 = vmatmul.mubr.msk.bf16.vlgmr.msra.gmra.mxu1 %vm345_vm2, %v10845_v28  ;;  %11561 = vmatprep.subr.msk.bf16.mxu0 %vm349_vm1, %v10868_v38 }
 0x3e1   : > { %v8591_v12 = vpop.f32.mrf.mxu0  ;;  %v8554_v2 = vpop.f32.mrf.mxu1  ;;  %10991 = vmatpush1.bf16.msra.mxu0 %v10886_v6  ;;  %11954 = vmatprep.mubr.msk.bf16.mxu1 %vm12153_vm3, %v12152_v32 }
 0x3e2   : > { %v8642_v40 = vadd.f32 %v8591_v12, %v8422_v3  ;;  %v10861_v47 = vpop.permute.xlu0 %10860 }
 0x3e3   : > { %v8593_v37 = vpop.f32.mrf.mxu0  ;;  %v8555_v44 = vpop.f32.mrf.mxu1  ;;  %v10869_v50 = vsel %vm10862_vm11, %v10859_v27, %v10861_v47 }
 0x3e4   : > { %v8643_v45 = vadd.f32 %v8593_v37, %v8423_v5  ;;  %v10892_v41 = vsel %vm349_vm1, %v10869_v50, 0  ;;  %11562 = vmatmul.mubr.msk.bf16.vlgmr.msra.gmra.mxu0 %vm345_vm2, %v10845_v28 }
 0x3e5   : > { %v8595_v48 = vpop.f32.mrf.mxu0  ;;  %v8632_v49 = vpop.f32.mrf.mxu1  ;;  %11953 = vmatpush3.bf16.msra.mxu1 %v10892_v41 }
 0x3e6   : > { %v8644_v14 = vadd.f32 %v8632_v49, %v15067_v20 }
 0x3e7   : > { %v8596_v51 = vpop.f32.mrf.mxu0  ;;  %v11890_v43 = vpop.f32.mrf.mxu1 }
 0x3e8   : > { %11955 = vmatmul.mubr.msk.bf16.vlgmr.msra.gmra.mxu1 %vm345_vm2, %v10845_v28 }
 0x3e9   : > { %v8635_v32 = vpop.f32.mrf.mxu1 }
 0x3eb   : > { %v11891_v53 = vpop.f32.mrf.mxu1  ;;  %v8729_v11 = vpop.f32.mrf.mxu0 }
 0x3ec   : > { %v8858_v58 = vadd.f32 %v8729_v11, %v8638_v19 }
 0x3ed   : > { %v8770_v55 = vpop.f32.mrf.mxu1  ;;  %v8731_v57 = vpop.f32.mrf.mxu0 }
 0x3ee   : > { %v8860_v13 = vadd.f32 %v8770_v55, %v8640_v10  ;;  %v8859_v52 = vadd.f32 %v8731_v57, %v8639_v30 }
 0x3ef   : > { %v8772_v62 = vpop.f32.mrf.mxu1  ;;  %v8733_v39 = vpop.f32.mrf.mxu0 }
 0x3f0   : > { %v8861_v61 = vadd.f32 %v8772_v62, %v8641_v42 }
 0x3f1   : > { %v8774_v3 = vpop.f32.mrf.mxu1  ;;  %v8734_v0 = vpop.f32.mrf.mxu0 }
 0x3f3   : > { %v8775_v9 = vpop.f32.mrf.mxu1 }
 0x3f5   : > { %v8811_v60 = vpop.f32.mrf.mxu0  ;;  %v8852_v16 = vpop.f32.mrf.mxu1 }
 0x3f6   : > { %v8862_v20 = vadd.f32 %v8811_v60, %v8642_v40  ;;  %v8864_v54 = vadd.f32 %v8852_v16, %v8644_v14 }
 0x3f7   : > { %v8813_v5 = vpop.f32.mrf.mxu0  ;;  %v11896_v15 = vpop.f32.mrf.mxu1 }
 0x3f8   : > { %v8863_v17 = vadd.f32 %v8813_v5, %v8643_v45 }
 0x3f9   : > { %v8815_v18 = vpop.f32.mrf.mxu0  ;;  %v8855_v59 = vpop.f32.mrf.mxu1 }
 0x3fb   : > { %v8816_v29 = vpop.f32.mrf.mxu0  ;;  %v11897_v4 = vpop.f32.mrf.mxu1 }
 0x3fd   : > { %v8949_v56 = vpop.f32.mrf.mxu0 }
 0x3fe   : > { %v9078_v23 = vadd.f32 %v8949_v56, %v8858_v58 }
 0x3ff   : > { %v8951_v24 = vpop.f32.mrf.mxu0 }
 0x400   : > { %v9079_v21 = vadd.f32 %v8951_v24, %v8859_v52 }
 0x401   : > { %v8953_v1 = vpop.f32.mrf.mxu0  ;;  %v8990_v25 = vpop.f32.mrf.mxu1 }
 0x402   : > { %v9080_v19 = vadd.f32 %v8990_v25, %v8860_v13 }
 0x403   : > { %v8954_v28 = vpop.f32.mrf.mxu0  ;;  %v8992_v33 = vpop.f32.mrf.mxu1 }
 0x404   : > { %v9081_v26 = vadd.f32 %v8992_v33, %v8861_v61 }
 0x405   : > { %v9031_v22 = vpop.f32.mrf.mxu0  ;;  %v8994_v31 = vpop.f32.mrf.mxu1 }
 0x406   : > { %v9082_v30 = vadd.f32 %v9031_v22, %v8862_v20 }
 0x407   : > { %v9033_v8 = vpop.f32.mrf.mxu0  ;;  %v8995_v63 = vpop.f32.mrf.mxu1 }
 0x408   : > { %v9083_v27 = vadd.f32 %v9033_v8, %v8863_v17 }
 0x409   : > { %v9035_v34 = vpop.f32.mrf.mxu0  ;;  %v9072_v10 = vpop.f32.mrf.mxu1 }
 0x40a   : > { %v9084_v35 = vadd.f32 %v9072_v10, %v8864_v54 }
 0x40b   : > { %v9036_v46 = vpop.f32.mrf.mxu0  ;;  %v11902_v7 = vpop.f32.mrf.mxu1 }
 0x40d   : > { %v9075_v36 = vpop.f32.mrf.mxu1 }
 0x40f   : > { %v11903_v38 = vpop.f32.mrf.mxu1  ;;  %v9169_v42 = vpop.f32.mrf.mxu0 }
 0x410   : > { %v9298_v6 = vadd.f32 %v9169_v42, %v9078_v23 }
 0x411   : > { %v9210_v12 = vpop.f32.mrf.mxu1  ;;  %v9171_v2 = vpop.f32.mrf.mxu0 }
 0x412   : > { %v9300_v40 = vadd.f32 %v9210_v12, %v9080_v19  ;;  %v9299_v47 = vadd.f32 %v9171_v2, %v9079_v21 }
 0x413   : > { %v9212_v37 = vpop.f32.mrf.mxu1  ;;  %v9173_v44 = vpop.f32.mrf.mxu0 }
 0x414   : > { %v9301_v50 = vadd.f32 %v9212_v37, %v9081_v26 }
 0x415   : > { %v9214_v45 = vpop.f32.mrf.mxu1  ;;  %v9174_v41 = vpop.f32.mrf.mxu0 }
 0x417   : > { %v9215_v48 = vpop.f32.mrf.mxu1 }
 0x419   : > { %v9251_v49 = vpop.f32.mrf.mxu0  ;;  %v9292_v51 = vpop.f32.mrf.mxu1 }
 0x41a   : > { %v9302_v14 = vadd.f32 %v9251_v49, %v9082_v30  ;;  %v9304_v43 = vadd.f32 %v9292_v51, %v9084_v35 }
 0x41b   : > { %v9253_v32 = vpop.f32.mrf.mxu0  ;;  %v11908_v11 = vpop.f32.mrf.mxu1 }
 0x41c   : > { %v9303_v53 = vadd.f32 %v9253_v32, %v9083_v27 }
 0x41d   : > { %v9255_v58 = vpop.f32.mrf.mxu0  ;;  %v9295_v55 = vpop.f32.mrf.mxu1 }
 0x41f   : > { %v9256_v57 = vpop.f32.mrf.mxu0  ;;  %v11909_v13 = vpop.f32.mrf.mxu1 }
 0x421   : > { %v9389_v52 = vpop.f32.mrf.mxu0 }
 0x422   : > { %v9518_v62 = vadd.f32 %v9389_v52, %v9298_v6 }
 0x423   : > { %v9391_v39 = vpop.f32.mrf.mxu0 }
 0x424   : > { %v9519_v61 = vadd.f32 %v9391_v39, %v9299_v47 }
 0x425   : > { %v9393_v3 = vpop.f32.mrf.mxu0  ;;  %v9430_v0 = vpop.f32.mrf.mxu1 }
 0x426   : > { %v9520_v9 = vadd.f32 %v9430_v0, %v9300_v40 }
 0x427   : > { %v9394_v60 = vpop.f32.mrf.mxu0  ;;  %v9432_v20 = vpop.f32.mrf.mxu1 }
 0x428   : > { %v9521_v16 = vadd.f32 %v9432_v20, %v9301_v50 }
 0x429   : > { %v9471_v54 = vpop.f32.mrf.mxu0  ;;  %v9434_v5 = vpop.f32.mrf.mxu1 }
 0x42a   : > { %v9522_v17 = vadd.f32 %v9471_v54, %v9302_v14 }
 0x42b   : > { %v9473_v15 = vpop.f32.mrf.mxu0  ;;  %v9435_v18 = vpop.f32.mrf.mxu1 }
 0x42c   : > { %v9523_v59 = vadd.f32 %v9473_v15, %v9303_v53 }
 0x42d   : > { %v9475_v29 = vpop.f32.mrf.mxu0  ;;  %v9512_v4 = vpop.f32.mrf.mxu1 }
 0x42e   : > { %v9524_v56 = vadd.f32 %v9512_v4, %v9304_v43 }
 0x42f   : > { %v9476_v23 = vpop.f32.mrf.mxu0  ;;  %v11914_v24 = vpop.f32.mrf.mxu1 }
 0x431   : > { %v9515_v21 = vpop.f32.mrf.mxu1 }
 0x433   : > { %v11915_v1 = vpop.f32.mrf.mxu1  ;;  %v9609_v25 = vpop.f32.mrf.mxu0 }
 0x434   : > { %v9738_v19 = vadd.f32 %v9609_v25, %v9518_v62 }
 0x435   : > { %v9650_v28 = vpop.f32.mrf.mxu1  ;;  %v9611_v33 = vpop.f32.mrf.mxu0 }
 0x436   : > { %v9740_v26 = vadd.f32 %v9650_v28, %v9520_v9  ;;  %v9739_v22 = vadd.f32 %v9611_v33, %v9519_v61 }
 0x437   : > { %v9652_v31 = vpop.f32.mrf.mxu1  ;;  %v9613_v30 = vpop.f32.mrf.mxu0 }
 0x438   : > { %v9741_v8 = vadd.f32 %v9652_v31, %v9521_v16 }
 0x439   : > { %v9654_v63 = vpop.f32.mrf.mxu1  ;;  %v9614_v27 = vpop.f32.mrf.mxu0 }
 0x43b   : > { %v9655_v34 = vpop.f32.mrf.mxu1 }
 0x43c   : > { %v9691_v10 = vpop.f32.mrf.mxu0 }
 0x43d   : > { %v9742_v35 = vadd.f32 %v9691_v10, %v9522_v17  ;;  %v9732_v46 = vpop.f32.mrf.mxu1 }
 0x43e   : > { %v9744_v7 = vadd.f32 %v9732_v46, %v9524_v56  ;;  %v9693_v36 = vpop.f32.mrf.mxu0 }
 0x43f   : > { %v9743_v38 = vadd.f32 %v9693_v36, %v9523_v59  ;;  %v11920_v42 = vpop.f32.mrf.mxu1 }
 0x440   : > { %v9695_v6 = vpop.f32.mrf.mxu0 }
 0x441   : > { %v9735_v12 = vpop.f32.mrf.mxu1 }
 0x442   : > { %v9696_v2 = vpop.f32.mrf.mxu0 }
 0x443   : > { %v11921_v40 = vpop.f32.mrf.mxu1 }
 0x444   : > { %v9829_v47 = vpop.f32.mrf.mxu0 }
 0x445   : > { %v15104_v37 = vadd.f32 %v9829_v47, %v9738_v19 }
 0x446   : > { %v9831_v44 = vpop.f32.mrf.mxu0 }
 0x447   : > { %v15106_v50 = vadd.f32 %v9831_v44, %v9739_v22 }
 0x448   : > { %v9833_v45 = vpop.f32.mrf.mxu0  ;;  %v9870_v41 = vpop.f32.mrf.mxu1 }
 0x449   : > { %v9960_v48 = vadd.f32 %v9870_v41, %v9740_v26 }
 0x44a   : > { %v9834_v49 = vpop.f32.mrf.mxu0  ;;  %v9872_v14 = vpop.f32.mrf.mxu1 }
 0x44b   : > { %v9961_v51 = vadd.f32 %v9872_v14, %v9741_v8 }
 0x44c   : > { %v9874_v43 = vpop.f32.mrf.mxu1  ;;  %v9911_v32 = vpop.f32.mrf.mxu0 }
 0x44d   : > { %v15108_v53 = vadd.f32 %v9911_v32, %v9742_v35 }
 0x44e   : > { %v9875_v11 = vpop.f32.mrf.mxu1  ;;  %v9913_v58 = vpop.f32.mrf.mxu0 }
 0x44f   : > { %v15110_v55 = vadd.f32 %v9913_v58, %v9743_v38 }
 0x450   : > { %v9915_v57 = vpop.f32.mrf.mxu0  ;;  %v9952_v13 = vpop.f32.mrf.mxu1 }
 0x451   : > { %v9964_v52 = vadd.f32 %v9952_v13, %v9744_v7 }
 0x452   : > { %v9916_v62 = vpop.f32.mrf.mxu0  ;;  %v11926_v39 = vpop.f32.mrf.mxu1 }
 0x454   : > { %v9955_v61 = vpop.f32.mrf.mxu1 }
 0x456   : > { %v11927_v3 = vpop.f32.mrf.mxu1 }
 0x457   : > { %v10049_v0 = vpop.f32.mrf.mxu0 }
 0x458   : > { %v10090_v9 = vpop.f32.mrf.mxu1  ;;  %v10178_v3 = vadd.f32 %v10049_v0, %v15104_v37 }
 0x459   : > { %v15112_v60 = vadd.f32 %v10090_v9, %v9960_v48  ;;  %v10051_v20 = vpop.f32.mrf.mxu0 }
 0x45a   : > { %v10092_v16 = vpop.f32.mrf.mxu1 }
 0x45b   : > { %v15114_v54 = vadd.f32 %v10092_v16, %v9961_v51  ;;  %v10053_v5 = vpop.f32.mrf.mxu0 }
 0x45c   : > { %v10094_v17 = vpop.f32.mrf.mxu1  ;;  %v10179_v5 = vadd.f32 %v10051_v20, %v15106_v50 }
 0x45d   : > { %v10054_v15 = vpop.f32.mrf.mxu0 }
 0x45e   : > { %v10095_v18 = vpop.f32.mrf.mxu1 }
 0x460   : > { %v15116_v59 = vpop.f32.mrf.mxu0  ;;  %v10172_v29 = vpop.f32.mrf.mxu1 }
 0x461   : > { %v15118_v4 = vadd.f32 %v10172_v29, %v9964_v52  ;;  %v10182_v37 = vadd.f32 %v15116_v59, %v15108_v53 }
 0x462   : > { %v15120_v56 = vpop.f32.mrf.mxu0  ;;  %v11932_v23 = vpop.f32.mrf.mxu1 }
 0x464   : > { %v10135_v24 = vpop.f32.mrf.mxu0  ;;  %v10175_v21 = vpop.f32.mrf.mxu1 }
 0x466   : > { %v10136_v1 = vpop.f32.mrf.mxu0  ;;  %v11933_v25 = vpop.f32.mrf.mxu1 }
 0x468   : > { %v10269_v19 = vpop.f32.mrf.mxu0 }
 0x469   : > { %v10398_v17 = vadd.f32 %v10269_v19, %v10178_v3 }
 0x46a   : > { %v10271_v28 = vpop.f32.mrf.mxu0 }
 0x46b   : > { %v10399_v29 = vadd.f32 %v10271_v28, %v10179_v5 }
 0x46c   : > { %v10273_v33 = vpop.f32.mrf.mxu0  ;;  %v10310_v26 = vpop.f32.mrf.mxu1 }
 0x46d   : > { %v10400_v1 = vadd.f32 %v10310_v26, %v15112_v60 }
 0x46e   : > { %v10274_v22 = vpop.f32.mrf.mxu0  ;;  %v10312_v31 = vpop.f32.mrf.mxu1 }
 0x46f   : > { %v11068_v22 = vpop.permute.xlu1 %11067  ;;  %v10401_v50 = vadd.f32 %v10312_v31, %v15114_v54 }
 0x470   : > { %v10314_v30 = vpop.f32.mrf.mxu1  ;;  %v10351_v8 = vpop.f32.mrf.mxu0 }
 0x472   : > { %v10315_v63 = vpop.f32.mrf.mxu1  ;;  %v10353_v27 = vpop.f32.mrf.mxu0 }
 0x473   : > { %v10183_v63 = vadd.f32 %v15120_v56, %v15110_v55 }
 0x474   : > { %v10355_v34 = vpop.f32.mrf.mxu0  ;;  %v15122_v10 = vpop.f32.mrf.mxu1 }
 0x475   : > { %v10402_v34 = vadd.f32 %v10351_v8, %v10182_v37  ;;  %v10404_v55 = vadd.f32 %v15122_v10, %v15118_v4 }
 0x476   : > { %v10356_v35 = vpop.f32.mrf.mxu0  ;;  %v11938_v46 = vpop.f32.mrf.mxu1 }
 0x478   : > { %v10395_v7 = vpop.f32.mrf.mxu1 }
 0x479   : > { %v10403_v7 = vadd.f32 %v10353_v27, %v10183_v63 }
 0x47a   : > { %v11939_v36 = vpop.f32.mrf.mxu1 }
 0x47b   : > { %v10489_v38 = vpop.f32.mrf.mxu0 }
 0x47c   : > { %v10530_v42 = vpop.f32.mrf.mxu1  ;;  %v10618_v23 = vadd.f32 %v10489_v38, %v10398_v17 }
 0x47d   : > { %v10491_v6 = vpop.f32.mrf.mxu0  ;;  %v10620_v20 = vadd.f32 %v10530_v42, %v10400_v1 }
 0x47e   : > { %v10532_v12 = vpop.f32.mrf.mxu1  ;;  %v10619_v25 = vadd.f32 %v10491_v6, %v10399_v29 }
 0x47f   : > { %v10493_v2 = vpop.f32.mrf.mxu0  ;;  %v10621_v35 = vadd.f32 %v10532_v12, %v10401_v50 }
 0x480   : > { %v10534_v40 = vpop.f32.mrf.mxu1 }
 0x481   : > { %v10494_v47 = vpop.f32.mrf.mxu0 }
 0x482   : > { %v10535_v44 = vpop.f32.mrf.mxu1 }
 0x484   : > { %v10571_v45 = vpop.f32.mrf.mxu0  ;;  %v15124_v41 = vpop.f32.mrf.mxu1 }
 0x485   : > { %v10622_v36 = vadd.f32 %v10571_v45, %v10402_v34  ;;  %v10624_v47 = vadd.f32 %v15124_v41, %v10404_v55 }
 0x486   : > { %v10573_v48 = vpop.f32.mrf.mxu0  ;;  %v11944_v49 = vpop.f32.mrf.mxu1 }
 0x487   : > { %v10623_v56 = vadd.f32 %v10573_v48, %v10403_v7 }
 0x488   : > { %v10575_v14 = vpop.f32.mrf.mxu0  ;;  %v10615_v51 = vpop.f32.mrf.mxu1 }
 0x48a   : > { %v10576_v43 = vpop.f32.mrf.mxu0  ;;  %v11945_v32 = vpop.f32.mrf.mxu1 }
 0x48c   : > { %v10709_v11 = vpop.f32.mrf.mxu0 }
 0x48d   : > { %v10838_v33 = vadd.f32 %v10709_v11, %v10618_v23 }
 0x48e   : > { %v10711_v58 = vpop.f32.mrf.mxu0 }
 0x48f   : > { %v10839_v19 = vadd.f32 %v10711_v58, %v10619_v25 }
 0x490   : > { %v10713_v57 = vpop.f32.mrf.mxu0  ;;  %v10750_v13 = vpop.f32.mrf.mxu1 }
 0x491   : > { %v10840_v46 = vadd.f32 %v10750_v13, %v10620_v20 }
 0x492   : > { %v10714_v52 = vpop.f32.mrf.mxu0  ;;  %v10752_v62 = vpop.f32.mrf.mxu1 }
 0x493   : > { %v10841_v38 = vadd.f32 %v10752_v62, %v10621_v35 }
 0x494   : > { %v10754_v39 = vpop.f32.mrf.mxu1  ;;  %v10791_v61 = vpop.f32.mrf.mxu0 }
 0x495   : > { %v10842_v2 = vadd.f32 %v10791_v61, %v10622_v36 }
 0x496   : > { %v10755_v9 = vpop.f32.mrf.mxu1  ;;  %v10793_v16 = vpop.f32.mrf.mxu0 }
 0x497   : > { %v10843_v49 = vadd.f32 %v10793_v16, %v10623_v56 }
 0x498   : > { %v10795_v15 = vpop.f32.mrf.mxu0  ;;  %v10832_v18 = vpop.f32.mrf.mxu1 }
 0x499   : > { %v10844_v10 = vadd.f32 %v10832_v18, %v10624_v47 }
 0x49a   : > { %v10796_v24 = vpop.f32.mrf.mxu0  ;;  %v11950_v21 = vpop.f32.mrf.mxu1 }
 0x49c   : > { %v10835_v0 = vpop.f32.mrf.mxu1  ;;  %v10928_v30 = vpop.f32.mrf.mxu0 }
 0x49d   : > { %v11057_v28 = vadd.f32 %v10928_v30, %v10838_v33 }
 0x49e   : > { %v11951_v60 = vpop.f32.mrf.mxu1  ;;  %v10930_v26 = vpop.f32.mrf.mxu0 }
 0x49f   : > { %v11070_v53 = vadd.f32 %v11068_v22, %v11057_v28  ;;  %v11058_v59 = vadd.f32 %v10930_v26, %v10839_v19 }
 0x4a0   : > { %v10932_v54 = vpop.f32.mrf.mxu0  ;;  %v10969_v31 = vpop.f32.mrf.mxu1 }
 0x4a1   : > { %12076 = vtanh.f32 %v11070_v53  ;;  %v11071_v42 = vadd.f32 %v11068_v22, %v11058_v59  ;;  %v11059_v6 = vadd.f32 %v10969_v31, %v10840_v46 }
 0x4a2   : > { %v10933_v8 = vpop.f32.mrf.mxu0  ;;  %v10971_v12 = vpop.f32.mrf.mxu1 }
 0x4a3   : > { %12078 = vtanh.f32 %v11071_v42  ;;  %v11072_v40 = vadd.f32 %v11068_v22, %v11059_v6  ;;  %v11060_v27 = vadd.f32 %v10971_v12, %v10841_v38 }
 0x4a4   : > { %v10973_v44 = vpop.f32.mrf.mxu1  ;;  %v11010_v45 = vpop.f32.mrf.mxu0 }
 0x4a5   : > { %12080 = vtanh.f32 %v11072_v40  ;;  %v11073_v14 = vadd.f32 %v11068_v22, %v11060_v27  ;;  %v11061_v51 = vadd.f32 %v11010_v45, %v10842_v2 }
 0x4a6   : > { %v10974_v43 = vpop.f32.mrf.mxu1  ;;  %v11012_v4 = vpop.f32.mrf.mxu0 }
 0x4a7   : > { %12082 = vtanh.f32 %v11073_v14  ;;  %v11074_v48 = vadd.f32 %v11068_v22, %v11061_v51  ;;  %v11062_v32 = vadd.f32 %v11012_v4, %v10843_v49 }
 0x4a8   : > { %v11051_v11 = vpop.f32.mrf.mxu1  ;;  %v11014_v58 = vpop.f32.mrf.mxu0 }
 0x4a9   : > { %12084 = vtanh.f32 %v11074_v48  ;;  %v11075_v57 = vadd.f32 %v11068_v22, %v11062_v32  ;;  %v11063_v13 = vadd.f32 %v11051_v11, %v10844_v10 }
 0x4aa   : > { %v11956_v41 = vpop.f32.mrf.mxu1  ;;  %v11015_v52 = vpop.f32.mrf.mxu0 }
 0x4ab   : > { %12086 = vtanh.f32 %v11075_v57  ;;  %v11076_v62 = vadd.f32 %v11068_v22, %v11063_v13 }
 0x4ac   : > { %v11054_v39 = vpop.f32.mrf.mxu1 }
 0x4ad   : > { %12088 = vtanh.f32 %v11076_v62 }
 0x4ae   : > { %v12077_v61 = vpop.eup %12076  ;;  %v11957_v3 = vpop.f32.mrf.mxu1 }
 0x4af   : > { %11084 = vst [vmem:[%s278_s24] sm:$0xff] %v12077_v61 }
 0x4b0   : > { %v12079_v9 = vpop.eup %12078 }
 0x4b1   : > { %11085 = vst [vmem:[%s278_s24 + $0x8] sm:$0xff] %v12079_v9 }
 0x4b2   : > { %v12081_v16 = vpop.eup %12080 }
 0x4b3   : > { %11086 = vst [vmem:[%s278_s24 + $0x10] sm:$0xff] %v12081_v16 }
 0x4b4   : > { %v12083_v5 = vpop.eup %12082 }
 0x4b5   : > { %11087 = vst [vmem:[%s278_s24 + $0x18] sm:$0xff] %v12083_v5 }
 0x4b6   : > { %v12085_v17 = vpop.eup %12084 }
 0x4b7   : > { %11088 = vst [vmem:[%s278_s24 + $0x20] sm:$0xff] %v12085_v17 }
 0x4b8   : > { %v12087_v15 = vpop.eup %12086 }
 0x4b9   : > { %11089 = vst [vmem:[%s278_s24 + $0x28] sm:$0xff] %v12087_v15 }
 0x4ba   : > { %v12089_v18 = vpop.eup %12088 }
 0x4bb   : > { %11090 = vst [vmem:[%s278_s24 + $0x30] sm:$0xff] %v12089_v18 }
 0x4bc PF: > { %s14_s19 = sadd.s32 1, %s12134_s19   ;;  %s15172_s15 = smov %s12126_s17 }
 0x4bd   : > { %p11_p9 = scmp.ge.s32.totalorder %s14_s19, 12   ;;  %s15173_s16 = smov %s12130_s18 }
 0x4be   : > { %s15174_s17 = smov %s15177_s20  ;;  %s15175_s18 = smov %s15181_s21 }
 0x4bf   :  { %13 = sbr.rel (!%p11_p9) target bundleno = 3 (0x3), region = 69 }

</bundles_post_ra>
